<compile_context>
chip_gen: v7x
topology: tpu7x:2x2x1
jax: 0.10.0
libtpu: 0.0.40
codegen_flags: <defaults>
</compile_context>

<pallas_src>
import functools

import jax
import jax.numpy as jnp
from jax.experimental import pallas as pl
from jax.experimental.pallas import tpu as pltpu


# ----------------------------------------------------------------------------
# Small helpers
# ----------------------------------------------------------------------------
_VMEM_SPEC = pl.BlockSpec(memory_space=pltpu.MemorySpace.VMEM)
_TM = 1024  # M (pixel) tile for the gridded matmul


def _round_up(x, m):
    return (x + m - 1) // m * m


def _stable_sigmoid(x):
    # exp(-|x|) in (0, 1]; no overflow in either branch.
    z = jnp.exp(-jnp.abs(x))
    return jnp.where(x >= 0, 1.0 / (1.0 + z), z / (1.0 + z))


# ----------------------------------------------------------------------------
# Pallas kernels
# ----------------------------------------------------------------------------
def matmul_bias_act_kernel(a_ref, w_ref, b_ref, o_ref, *extra_out, act):
    """o = act(a @ w + b); optionally also emits sigmoid(o) (fused feedback)."""
    acc = jnp.dot(a_ref[...], w_ref[...], preferred_element_type=jnp.float32)
    acc = acc + b_ref[...]
    if act == "relu":
        acc = jnp.maximum(acc, 0.0)
    o_ref[...] = acc
    if extra_out:                       # fused output sigmoid (feedback frame)
        extra_out[0][...] = _stable_sigmoid(acc)


def convlstm_fused_kernel(patch_ref, w_ref, b_ref, c_ref,
                          wci_ref, wcf_ref, wco_ref,
                          h_out_ref, c_out_ref, *, f):
    """Gate conv (matmul) + peephole LSTM gate math, all in one kernel.

    gates stay in VMEM/registers; gi/gf/gg/go are static in-kernel slices.
    """
    gates = jnp.dot(patch_ref[...], w_ref[...],
                    preferred_element_type=jnp.float32)
    gates = gates + b_ref[...]
    c = c_ref[...]
    gi = gates[:, 0 * f:1 * f]
    gf = gates[:, 1 * f:2 * f]
    gg = gates[:, 2 * f:3 * f]
    go = gates[:, 3 * f:4 * f]
    i = _stable_sigmoid(gi + wci_ref[...] * c)
    fg = _stable_sigmoid(gf + wcf_ref[...] * c)
    c_new = fg * c + i * jnp.tanh(gg)
    o = _stable_sigmoid(go + wco_ref[...] * c_new)
    h_out_ref[...] = o * jnp.tanh(c_new)
    c_out_ref[...] = c_new


# ----------------------------------------------------------------------------
# Pallas call wrappers
# ----------------------------------------------------------------------------
def matmul_bias_act(a, w, b, act, fuse_sigmoid=False):
    """a: (M, K) bf16, w: (K, N) bf16, b: (1, N) f32 -> (M, N) f32 [, sigmoid]."""
    m, k = a.shape
    n = w.shape[1]

    tm = min(_TM, _round_up(m, 8))
    m_pad = _round_up(m, tm)
    if m_pad != m:
        a = jnp.pad(a, ((0, m_pad - m), (0, 0)))
    grid = (m_pad // tm,)

    in_specs = [pl.BlockSpec((tm, k), lambda i: (i, 0)),
                pl.BlockSpec((k, n), lambda i: (0, 0)),
                pl.BlockSpec((1, n), lambda i: (0, 0))]
    out_block = pl.BlockSpec((tm, n), lambda i: (i, 0))
    kernel = functools.partial(matmul_bias_act_kernel, act=act)
    cparams = pltpu.CompilerParams(dimension_semantics=("parallel",))

    if fuse_sigmoid:
        y, s = pl.pallas_call(
            kernel,
            grid=grid,
            out_shape=(jax.ShapeDtypeStruct((m_pad, n), jnp.float32),
                       jax.ShapeDtypeStruct((m_pad, n), jnp.float32)),
            in_specs=in_specs,
            out_specs=(out_block, pl.BlockSpec((tm, n), lambda i: (i, 0))),
            compiler_params=cparams,
        )(a, w, b)
        return y[:m], s[:m]

    y = pl.pallas_call(
        kernel,
        grid=grid,
        out_shape=jax.ShapeDtypeStruct((m_pad, n), jnp.float32),
        in_specs=in_specs,
        out_specs=out_block,
        compiler_params=cparams,
    )(a, w, b)
    return y[:m]


# ----------------------------------------------------------------------------
# Conv building blocks (im2col glue in JAX, matmul in Pallas) — NHWC layout
# ----------------------------------------------------------------------------
def im2col_nhwc(x, kh, kw, pad):
    """x: (N, H, W, C), stride 1 -> ((N*Ho*Wo), kh*kw*C)."""
    n, h, w, c = x.shape
    if pad:
        x = jnp.pad(x, ((0, 0), (pad, pad), (pad, pad), (0, 0)))
    ho = h + 2 * pad - kh + 1
    wo = w + 2 * pad - kw + 1
    cols = []
    for i in range(kh):
        for j in range(kw):
            cols.append(x[:, i:i + ho, j:j + wo, :])
    patches = cols[0] if len(cols) == 1 else jnp.concatenate(cols, axis=-1)
    return patches.reshape(n * ho * wo, kh * kw * c), ho, wo


def conv2d_nhwc(x, wm, bias, kh, kw, pad, act, fuse_sigmoid=False):
    """x: (N,H,W,Cin) f32; wm: (kh*kw*Cin, Cout) bf16; bias: (1, Cout) f32."""
    n = x.shape[0]
    patches, ho, wo = im2col_nhwc(x.astype(jnp.bfloat16), kh, kw, pad)
    out = matmul_bias_act(patches, wm, bias, act, fuse_sigmoid=fuse_sigmoid)
    if fuse_sigmoid:
        y, s = out
        return y.reshape(n, ho, wo, -1), s.reshape(n, ho, wo, -1)
    return out.reshape(n, ho, wo, -1)


def dilate2d_nhwc(x, s):
    n, h, w, c = x.shape
    out = jnp.zeros((n, (h - 1) * s + 1, (w - 1) * s + 1, c), x.dtype)
    return out.at[:, ::s, ::s, :].set(x)


def conv_transpose2d_nhwc(x, wm, bias, k, stride, padding, output_padding, act):
    """Equivalent stride-1 conv of the dilated+padded input with the flipped,
    in/out-swapped kernel (wm already converted in prepare_params)."""
    xd = dilate2d_nhwc(x.astype(jnp.bfloat16), stride)
    lo = k - 1 - padding
    hi = k - 1 - padding + output_padding
    xp = jnp.pad(xd, ((0, 0), (lo, hi), (lo, hi), (0, 0)))
    return conv2d_nhwc(xp, wm, bias, k, k, pad=0, act=act)


def maxpool2x2_nhwc(x):
    # Plain jnp (XLA fuses the strided access + max); no pallas_call needed.
    n, h, w, c = x.shape
    ho, wo = h // 2, w // 2
    x = x[:, :2 * ho, :2 * wo, :]
    return x.reshape(n, ho, 2, wo, 2, c).max(axis=(2, 4))


# ----------------------------------------------------------------------------
# ConvLSTM2D step (peephole ConvLSTM, LightNet style) — single fused kernel
# ----------------------------------------------------------------------------
def convlstm_step(x, h, c, pp, f):
    """x: (B, hh, ww, 4); h, c: (B, hh, ww, F) — all NHWC."""
    b, hh, ww, _ = x.shape
    m = b * hh * ww

    xh = jnp.concatenate([x, h], axis=-1).astype(jnp.bfloat16)  # (B,hh,ww,4+F)
    patches, _, _ = im2col_nhwc(xh, 5, 5, pad=2)                # (M, 25*(4+F))
    c_mf = c.reshape(m, f)

    h_mf, c_new_mf = pl.pallas_call(
        functools.partial(convlstm_fused_kernel, f=f),
        out_shape=(jax.ShapeDtypeStruct((m, f), jnp.float32),
                   jax.ShapeDtypeStruct((m, f), jnp.float32)),
        in_specs=[_VMEM_SPEC] * 7,
        out_specs=(_VMEM_SPEC, _VMEM_SPEC),
    )(patches, pp["lstm_w"], pp["lstm_b"], c_mf,
      pp["wci"], pp["wcf"], pp["wco"])

    return h_mf.reshape(b, hh, ww, f), c_new_mf.reshape(b, hh, ww, f)


# ----------------------------------------------------------------------------
# Parameter preparation (hoisted once per forward, outside the frame loop)
# ----------------------------------------------------------------------------
def _conv_w_to_matmul(w):
    # torch Conv2d weight (Cout, Cin, kh, kw) -> (kh*kw*Cin, Cout) bf16
    cout, cin, kh, kw = w.shape
    return w.transpose(2, 3, 1, 0).reshape(kh * kw * cin, cout).astype(jnp.bfloat16)


def _tconv_w_to_matmul(w):
    # torch ConvTranspose2d weight (Cin, Cout, kh, kw) -> equivalent fwd conv
    w_eq = jnp.flip(w, axis=(2, 3)).transpose(1, 0, 2, 3)  # (Cout, Cin, kh, kw)
    return _conv_w_to_matmul(w_eq)


def prepare_params(params, batch, hh, ww, f):
    def bias2d(v):
        return v.reshape(1, -1).astype(jnp.float32)

    def peep(wp):  # (F, hh, ww) -> (batch*hh*ww, F), broadcast ONCE over batch
        w2 = wp.transpose(1, 2, 0).reshape(hh * ww, f)
        return jnp.broadcast_to(w2[None], (batch, hh * ww, f)).reshape(batch * hh * ww, f)

    return dict(
        conv1_w=_conv_w_to_matmul(params["conv1_w"]), conv1_b=bias2d(params["conv1_b"]),
        conv2_w=_conv_w_to_matmul(params["conv2_w"]), conv2_b=bias2d(params["conv2_b"]),
        lstm_w=_conv_w_to_matmul(params["lstm_w"]),   lstm_b=bias2d(params["lstm_b"]),
        wci=peep(params["lstm_wci"]), wcf=peep(params["lstm_wcf"]), wco=peep(params["lstm_wco"]),
        tconv1_w=_tconv_w_to_matmul(params["tconv1_w"]), tconv1_b=bias2d(params["tconv1_b"]),
        tconv2_w=_tconv_w_to_matmul(params["tconv2_w"]), tconv2_b=bias2d(params["tconv2_b"]),
        conv1x1_w=_conv_w_to_matmul(params["conv1x1_w"]), conv1x1_b=bias2d(params["conv1x1_b"]),
    )


# ----------------------------------------------------------------------------
# Decoder_model forward
# ----------------------------------------------------------------------------
def decoder_forward(params, frame, h, c, pre_frames_n):
    # Module boundary is NCHW (torch layout); internally everything is NHWC.
    b, _, _, _ = frame.shape
    f = h.shape[1]
    hh, ww = h.shape[2], h.shape[3]
    pp = prepare_params(params, b, hh, ww, f)

    x_frame = frame.transpose(0, 2, 3, 1)   # (B, G, G, 1)
    h = h.transpose(0, 2, 3, 1)             # (B, hh, ww, F)
    c = c.transpose(0, 2, 3, 1)

    outs = []
    for _ in range(pre_frames_n):
        # decoder_conv2D: Conv(1->4,k5,p2)+ReLU -> MaxPool2 -> Conv(4->4,k5,p2)+ReLU -> MaxPool2
        x = conv2d_nhwc(x_frame, pp["conv1_w"], pp["conv1_b"], 5, 5, pad=2, act="relu")
        x = maxpool2x2_nhwc(x)
        x = conv2d_nhwc(x, pp["conv2_w"], pp["conv2_b"], 5, 5, pad=2, act="relu")
        x = maxpool2x2_nhwc(x)
        # decoder_convLSTM2D (single fused Pallas call)
        h, c = convlstm_step(x, h, c, pp, f)
        # decoder_transconv2D: TConv(s2,p2,op1)+ReLU -> TConv(s2)+ReLU -> Conv1x1 (+fused sigmoid)
        y = conv_transpose2d_nhwc(h, pp["tconv1_w"], pp["tconv1_b"], 5,
                                  stride=2, padding=2, output_padding=1, act="relu")
        y = conv_transpose2d_nhwc(y, pp["tconv2_w"], pp["tconv2_b"], 5,
                                  stride=2, padding=0, output_padding=0, act="relu")
        y, y_sig = conv2d_nhwc(y, pp["conv1x1_w"], pp["conv1x1_b"], 1, 1,
                               pad=0, act=None, fuse_sigmoid=True)
        outs.append(y.transpose(0, 3, 1, 2))   # back to NCHW (B, 1, G, G)
        x_frame = y_sig                        # feedback frame stays NHWC
    return jnp.stack(outs, axis=0)             # (pre_frames, B, 1, G, G)


def init_params(key, f, g):
    img = g // 2 // 2
    ks = jax.random.split(key, 13)

    def w(k, shape, scale=0.1):
        return (scale * jax.random.normal(k, shape)).astype(jnp.float32)

    return dict(
        conv1_w=w(ks[0], (4, 1, 5, 5)),      conv1_b=w(ks[1], (4,)),
        conv2_w=w(ks[2], (4, 4, 5, 5)),      conv2_b=w(ks[3], (4,)),
        lstm_w=w(ks[4], (4 * f, 4 + f, 5, 5)),
        lstm_b=w(ks[5], (4 * f,)),
        lstm_wci=w(ks[6], (f, img, img)),
        lstm_wcf=w(ks[7], (f, img, img)),
        lstm_wco=w(ks[8], (f, img, img)),
        tconv1_w=w(ks[9], (f, f, 5, 5)),     tconv1_b=w(ks[10], (f,)),
        tconv2_w=w(ks[11], (f, f, 5, 5)),    tconv2_b=jnp.zeros((f,), jnp.float32),
        conv1x1_w=w(ks[12], (1, f, 1, 1)),   conv1x1_b=jnp.zeros((1,), jnp.float32),
    )


if __name__ == "__main__":
    # GridRowColNum must satisfy G % 4 == 3 so the transposed convs restore G
    # (same constraint as the original LightNet grid, e.g. 159).
    B, G, F = 2, 19, 8          # batch, GridRowColNum, ConvLSTM2D_filters
    PRE_FRAMES = 2

    key = jax.random.PRNGKey(0)
    kp, kf, kh, kc = jax.random.split(key, 4)
    params = init_params(kp, F, G)

    frame = jax.random.normal(kf, (B, 1, G, G), jnp.float32)
    h0 = jax.random.normal(kh, (B, F, G // 4, G // 4), jnp.float32)
    c0 = jax.random.normal(kc, (B, F, G // 4, G // 4), jnp.float32)

    fwd = jax.jit(functools.partial(decoder_forward, pre_frames_n=PRE_FRAMES))
    out = fwd(params, frame, h0, c0)
    jax.block_until_ready(out)

    assert out.shape == (PRE_FRAMES, B, 1, G, G), out.shape
    assert jnp.all(jnp.isfinite(out))
    print("KERNEL_OK")
</pallas_src>

<mosaic_0001>
module attributes {stable_mosaic.version = 11 : i64} {
  func.func @matmul_bias_act_kernel(%arg0: i32, %arg1: memref<728x25xbf16, #tpu.memory_space<vmem>>, %arg2: memref<25x4xbf16, #tpu.memory_space<vmem>>, %arg3: memref<1x4xf32, #tpu.memory_space<vmem>>, %arg4: memref<728x4xf32, #tpu.memory_space<vmem>>) attributes {dimension_semantics = [#tpu.dimension_semantics<parallel>], iteration_bounds = array<i64: 1>, scalar_prefetch = 0 : i64, scratch_operands = 0 : i64, tpu.core_type = #tpu.core_type<tc>, window_params = [{transform_indices = @transform_0, window_bounds = array<i64: 728, 25>}, {pipeline_mode = #tpu.pipeline_mode<synchronous>, transform_indices = @transform_1, window_bounds = array<i64: 25, 4>}, {pipeline_mode = #tpu.pipeline_mode<synchronous>, transform_indices = @transform_2, window_bounds = array<i64: 1, 4>}, {transform_indices = @transform_3, window_bounds = array<i64: 728, 4>}]} {
    %c0 = arith.constant 0 : index
    %c0_0 = arith.constant 0 : index
    %0 = vector.load %arg1[%c0, %c0_0] : memref<728x25xbf16, #tpu.memory_space<vmem>>, vector<728x25xbf16>
    %c0_1 = arith.constant 0 : index
    %c0_2 = arith.constant 0 : index
    %1 = vector.load %arg2[%c0_1, %c0_2] : memref<25x4xbf16, #tpu.memory_space<vmem>>, vector<25x4xbf16>
    %cst = arith.constant dense<0.000000e+00> : vector<728x4xf32>
    %2 = tpu.matmul %0, %1, %cst {dimension_numbers = #tpu.dot_dimension_numbers<[1], [0], [0], [1], [0, 0, 1, 1], [], []>} : vector<728x25xbf16>, vector<25x4xbf16>, vector<728x4xf32> -> vector<728x4xf32>
    %c0_3 = arith.constant 0 : index
    %c0_4 = arith.constant 0 : index
    %3 = vector.load %arg3[%c0_3, %c0_4] : memref<1x4xf32, #tpu.memory_space<vmem>>, vector<1x4xf32>
    %4 = vector.broadcast %3 : vector<1x4xf32> to vector<728x4xf32>
    %5 = arith.addf %2, %4 : vector<728x4xf32>
    %cst_5 = arith.constant 0.000000e+00 : f32
    %6 = vector.broadcast %cst_5 : f32 to vector<728x4xf32>
    %7 = arith.maximumf %5, %6 : vector<728x4xf32>
    %c0_6 = arith.constant 0 : index
    %c0_7 = arith.constant 0 : index
    %8 = vector.load %arg4[%c0_6, %c0_7] : memref<728x4xf32, #tpu.memory_space<vmem>>, vector<728x4xf32>
    tpu.vector_store %arg4[%c0_6, %c0_7], %7 {strides = array<i32>} : memref<728x4xf32, #tpu.memory_space<vmem>>, vector<728x4xf32>,
    return
  }
  func.func @transform_0(%arg0: i32) -> (i32, i32) {
    %c0_i32 = arith.constant 0 : i32
    %c0_i32_0 = arith.constant 0 : i32
    return %arg0, %c0_i32 : i32, i32
  }
  func.func @transform_1(%arg0: i32) -> (i32, i32) {
    %c0_i32 = arith.constant 0 : i32
    %c0_i32_0 = arith.constant 0 : i32
    %c0_i32_1 = arith.constant 0 : i32
    return %c0_i32, %c0_i32_0 : i32, i32
  }
  func.func @transform_2(%arg0: i32) -> (i32, i32) {
    %c0_i32 = arith.constant 0 : i32
    %c0_i32_0 = arith.constant 0 : i32
    %c0_i32_1 = arith.constant 0 : i32
    return %c0_i32, %c0_i32_0 : i32, i32
  }
  func.func @transform_3(%arg0: i32) -> (i32, i32) {
    %c0_i32 = arith.constant 0 : i32
    %c0_i32_0 = arith.constant 0 : i32
    return %arg0, %c0_i32 : i32, i32
  }
}

module attributes {stable_mosaic.version = 11 : i64} {
  func.func @matmul_bias_act_kernel(%arg0: i32, %arg1: memref<168x100xbf16, #tpu.memory_space<vmem>>, %arg2: memref<100x4xbf16, #tpu.memory_space<vmem>>, %arg3: memref<1x4xf32, #tpu.memory_space<vmem>>, %arg4: memref<168x4xf32, #tpu.memory_space<vmem>>) attributes {dimension_semantics = [#tpu.dimension_semantics<parallel>], iteration_bounds = array<i64: 1>, scalar_prefetch = 0 : i64, scratch_operands = 0 : i64, tpu.core_type = #tpu.core_type<tc>, window_params = [{transform_indices = @transform_0, window_bounds = array<i64: 168, 100>}, {pipeline_mode = #tpu.pipeline_mode<synchronous>, transform_indices = @transform_1, window_bounds = array<i64: 100, 4>}, {pipeline_mode = #tpu.pipeline_mode<synchronous>, transform_indices = @transform_2, window_bounds = array<i64: 1, 4>}, {transform_indices = @transform_3, window_bounds = array<i64: 168, 4>}]} {
    %c0 = arith.constant 0 : index
    %c0_0 = arith.constant 0 : index
    %0 = vector.load %arg1[%c0, %c0_0] : memref<168x100xbf16, #tpu.memory_space<vmem>>, vector<168x100xbf16>
    %c0_1 = arith.constant 0 : index
    %c0_2 = arith.constant 0 : index
    %1 = vector.load %arg2[%c0_1, %c0_2] : memref<100x4xbf16, #tpu.memory_space<vmem>>, vector<100x4xbf16>
    %cst = arith.constant dense<0.000000e+00> : vector<168x4xf32>
    %2 = tpu.matmul %0, %1, %cst {dimension_numbers = #tpu.dot_dimension_numbers<[1], [0], [0], [1], [0, 0, 1, 1], [], []>} : vector<168x100xbf16>, vector<100x4xbf16>, vector<168x4xf32> -> vector<168x4xf32>
    %c0_3 = arith.constant 0 : index
    %c0_4 = arith.constant 0 : index
    %3 = vector.load %arg3[%c0_3, %c0_4] : memref<1x4xf32, #tpu.memory_space<vmem>>, vector<1x4xf32>
    %4 = vector.broadcast %3 : vector<1x4xf32> to vector<168x4xf32>
    %5 = arith.addf %2, %4 : vector<168x4xf32>
    %cst_5 = arith.constant 0.000000e+00 : f32
    %6 = vector.broadcast %cst_5 : f32 to vector<168x4xf32>
    %7 = arith.maximumf %5, %6 : vector<168x4xf32>
    %c0_6 = arith.constant 0 : index
    %c0_7 = arith.constant 0 : index
    %8 = vector.load %arg4[%c0_6, %c0_7] : memref<168x4xf32, #tpu.memory_space<vmem>>, vector<168x4xf32>
    tpu.vector_store %arg4[%c0_6, %c0_7], %7 {strides = array<i32>} : memref<168x4xf32, #tpu.memory_space<vmem>>, vector<168x4xf32>,
    return
  }
  func.func @transform_0(%arg0: i32) -> (i32, i32) {
    %c0_i32 = arith.constant 0 : i32
    %c0_i32_0 = arith.constant 0 : i32
    return %arg0, %c0_i32 : i32, i32
  }
  func.func @transform_1(%arg0: i32) -> (i32, i32) {
    %c0_i32 = arith.constant 0 : i32
    %c0_i32_0 = arith.constant 0 : i32
    %c0_i32_1 = arith.constant 0 : i32
    return %c0_i32, %c0_i32_0 : i32, i32
  }
  func.func @transform_2(%arg0: i32) -> (i32, i32) {
    %c0_i32 = arith.constant 0 : i32
    %c0_i32_0 = arith.constant 0 : i32
    %c0_i32_1 = arith.constant 0 : i32
    return %c0_i32, %c0_i32_0 : i32, i32
  }
  func.func @transform_3(%arg0: i32) -> (i32, i32) {
    %c0_i32 = arith.constant 0 : i32
    %c0_i32_0 = arith.constant 0 : i32
    return %arg0, %c0_i32 : i32, i32
  }
}

module attributes {stable_mosaic.version = 11 : i64} {
  func.func @convlstm_fused_kernel(%arg0: memref<32x300xbf16, #tpu.memory_space<vmem>>, %arg1: memref<300x32xbf16, #tpu.memory_space<vmem>>, %arg2: memref<1x32xf32, #tpu.memory_space<vmem>>, %arg3: memref<32x8xf32, #tpu.memory_space<vmem>>, %arg4: memref<32x8xf32, #tpu.memory_space<vmem>>, %arg5: memref<32x8xf32, #tpu.memory_space<vmem>>, %arg6: memref<32x8xf32, #tpu.memory_space<vmem>>, %arg7: memref<32x8xf32, #tpu.memory_space<vmem>>, %arg8: memref<32x8xf32, #tpu.memory_space<vmem>>) attributes {dimension_semantics = [], scalar_prefetch = 0 : i64, scratch_operands = 0 : i64, tpu.core_type = #tpu.core_type<tc>} {
    %c0 = arith.constant 0 : index
    %c0_0 = arith.constant 0 : index
    %0 = vector.load %arg0[%c0, %c0_0] : memref<32x300xbf16, #tpu.memory_space<vmem>>, vector<32x300xbf16>
    %c0_1 = arith.constant 0 : index
    %c0_2 = arith.constant 0 : index
    %1 = vector.load %arg1[%c0_1, %c0_2] : memref<300x32xbf16, #tpu.memory_space<vmem>>, vector<300x32xbf16>
    %cst = arith.constant dense<0.000000e+00> : vector<32x32xf32>
    %2 = tpu.matmul %0, %1, %cst {dimension_numbers = #tpu.dot_dimension_numbers<[1], [0], [0], [1], [0, 0, 1, 1], [], []>} : vector<32x300xbf16>, vector<300x32xbf16>, vector<32x32xf32> -> vector<32x32xf32>
    %c0_3 = arith.constant 0 : index
    %c0_4 = arith.constant 0 : index
    %3 = vector.load %arg2[%c0_3, %c0_4] : memref<1x32xf32, #tpu.memory_space<vmem>>, vector<1x32xf32>
    %4 = vector.broadcast %3 : vector<1x32xf32> to vector<32x32xf32>
    %5 = arith.addf %2, %4 : vector<32x32xf32>
    %c0_5 = arith.constant 0 : index
    %c0_6 = arith.constant 0 : index
    %6 = vector.load %arg3[%c0_5, %c0_6] : memref<32x8xf32, #tpu.memory_space<vmem>>, vector<32x8xf32>
    %7 = vector.extract_strided_slice %5 {offsets = [0, 0], sizes = [32, 8], strides = [1, 1]} : vector<32x32xf32> to vector<32x8xf32>
    %8 = vector.extract_strided_slice %5 {offsets = [0, 8], sizes = [32, 8], strides = [1, 1]} : vector<32x32xf32> to vector<32x8xf32>
    %9 = vector.extract_strided_slice %5 {offsets = [0, 16], sizes = [32, 8], strides = [1, 1]} : vector<32x32xf32> to vector<32x8xf32>
    %10 = vector.extract_strided_slice %5 {offsets = [0, 24], sizes = [32, 8], strides = [1, 1]} : vector<32x32xf32> to vector<32x8xf32>
    %c0_7 = arith.constant 0 : index
    %c0_8 = arith.constant 0 : index
    %11 = vector.load %arg4[%c0_7, %c0_8] : memref<32x8xf32, #tpu.memory_space<vmem>>, vector<32x8xf32>
    %12 = arith.mulf %11, %6 : vector<32x8xf32>
    %13 = arith.addf %7, %12 : vector<32x8xf32>
    %14 = math.absf %13 : vector<32x8xf32>
    %cst_9 = arith.constant 0.000000e+00 : f32
    %15 = vector.broadcast %cst_9 : f32 to vector<32x8xf32>
    %16 = arith.subf %15, %14 : vector<32x8xf32>
    %17 = math.exp %16 : vector<32x8xf32>
    %cst_10 = arith.constant 0.000000e+00 : f32
    %18 = vector.broadcast %cst_10 : f32 to vector<32x8xf32>
    %19 = arith.cmpf oge, %13, %18 : vector<32x8xf32>
    %cst_11 = arith.constant 1.000000e+00 : f32
    %20 = vector.broadcast %cst_11 : f32 to vector<32x8xf32>
    %21 = arith.addf %20, %17 : vector<32x8xf32>
    %cst_12 = arith.constant 1.000000e+00 : f32
    %22 = vector.broadcast %cst_12 : f32 to vector<32x8xf32>
    %23 = arith.divf %22, %21 : vector<32x8xf32>
    %cst_13 = arith.constant 1.000000e+00 : f32
    %24 = vector.broadcast %cst_13 : f32 to vector<32x8xf32>
    %25 = arith.addf %24, %17 : vector<32x8xf32>
    %26 = arith.divf %17, %25 : vector<32x8xf32>
    %27 = arith.select %19, %23, %26 : vector<32x8xi1>, vector<32x8xf32>
    %c0_14 = arith.constant 0 : index
    %c0_15 = arith.constant 0 : index
    %28 = vector.load %arg5[%c0_14, %c0_15] : memref<32x8xf32, #tpu.memory_space<vmem>>, vector<32x8xf32>
    %29 = arith.mulf %28, %6 : vector<32x8xf32>
    %30 = arith.addf %8, %29 : vector<32x8xf32>
    %31 = math.absf %30 : vector<32x8xf32>
    %cst_16 = arith.constant 0.000000e+00 : f32
    %32 = vector.broadcast %cst_16 : f32 to vector<32x8xf32>
    %33 = arith.subf %32, %31 : vector<32x8xf32>
    %34 = math.exp %33 : vector<32x8xf32>
    %cst_17 = arith.constant 0.000000e+00 : f32
    %35 = vector.broadcast %cst_17 : f32 to vector<32x8xf32>
    %36 = arith.cmpf oge, %30, %35 : vector<32x8xf32>
    %cst_18 = arith.constant 1.000000e+00 : f32
    %37 = vector.broadcast %cst_18 : f32 to vector<32x8xf32>
    %38 = arith.addf %37, %34 : vector<32x8xf32>
    %cst_19 = arith.constant 1.000000e+00 : f32
    %39 = vector.broadcast %cst_19 : f32 to vector<32x8xf32>
    %40 = arith.divf %39, %38 : vector<32x8xf32>
    %cst_20 = arith.constant 1.000000e+00 : f32
    %41 = vector.broadcast %cst_20 : f32 to vector<32x8xf32>
    %42 = arith.addf %41, %34 : vector<32x8xf32>
    %43 = arith.divf %34, %42 : vector<32x8xf32>
    %44 = arith.select %36, %40, %43 : vector<32x8xi1>, vector<32x8xf32>
    %45 = arith.mulf %44, %6 : vector<32x8xf32>
    %46 = math.tanh %9 : vector<32x8xf32>
    %47 = arith.mulf %27, %46 : vector<32x8xf32>
    %48 = arith.addf %45, %47 : vector<32x8xf32>
    %c0_21 = arith.constant 0 : index
    %c0_22 = arith.constant 0 : index
    %49 = vector.load %arg6[%c0_21, %c0_22] : memref<32x8xf32, #tpu.memory_space<vmem>>, vector<32x8xf32>
    %50 = arith.mulf %49, %48 : vector<32x8xf32>
    %51 = arith.addf %10, %50 : vector<32x8xf32>
    %52 = math.absf %51 : vector<32x8xf32>
    %cst_23 = arith.constant 0.000000e+00 : f32
    %53 = vector.broadcast %cst_23 : f32 to vector<32x8xf32>
    %54 = arith.subf %53, %52 : vector<32x8xf32>
    %55 = math.exp %54 : vector<32x8xf32>
    %cst_24 = arith.constant 0.000000e+00 : f32
    %56 = vector.broadcast %cst_24 : f32 to vector<32x8xf32>
    %57 = arith.cmpf oge, %51, %56 : vector<32x8xf32>
    %cst_25 = arith.constant 1.000000e+00 : f32
    %58 = vector.broadcast %cst_25 : f32 to vector<32x8xf32>
    %59 = arith.addf %58, %55 : vector<32x8xf32>
    %cst_26 = arith.constant 1.000000e+00 : f32
    %60 = vector.broadcast %cst_26 : f32 to vector<32x8xf32>
    %61 = arith.divf %60, %59 : vector<32x8xf32>
    %cst_27 = arith.constant 1.000000e+00 : f32
    %62 = vector.broadcast %cst_27 : f32 to vector<32x8xf32>
    %63 = arith.addf %62, %55 : vector<32x8xf32>
    %64 = arith.divf %55, %63 : vector<32x8xf32>
    %65 = arith.select %57, %61, %64 : vector<32x8xi1>, vector<32x8xf32>
    %66 = math.tanh %48 : vector<32x8xf32>
    %67 = arith.mulf %65, %66 : vector<32x8xf32>
    %c0_28 = arith.constant 0 : index
    %c0_29 = arith.constant 0 : index
    %68 = vector.load %arg7[%c0_28, %c0_29] : memref<32x8xf32, #tpu.memory_space<vmem>>, vector<32x8xf32>
    tpu.vector_store %arg7[%c0_28, %c0_29], %67 {strides = array<i32>} : memref<32x8xf32, #tpu.memory_space<vmem>>, vector<32x8xf32>,
    %c0_30 = arith.constant 0 : index
    %c0_31 = arith.constant 0 : index
    %69 = vector.load %arg8[%c0_30, %c0_31] : memref<32x8xf32, #tpu.memory_space<vmem>>, vector<32x8xf32>
    tpu.vector_store %arg8[%c0_30, %c0_31], %48 {strides = array<i32>} : memref<32x8xf32, #tpu.memory_space<vmem>>, vector<32x8xf32>,
    return
  }
}

module attributes {stable_mosaic.version = 11 : i64} {
  func.func @matmul_bias_act_kernel(%arg0: i32, %arg1: memref<128x200xbf16, #tpu.memory_space<vmem>>, %arg2: memref<200x8xbf16, #tpu.memory_space<vmem>>, %arg3: memref<1x8xf32, #tpu.memory_space<vmem>>, %arg4: memref<128x8xf32, #tpu.memory_space<vmem>>) attributes {dimension_semantics = [#tpu.dimension_semantics<parallel>], iteration_bounds = array<i64: 1>, scalar_prefetch = 0 : i64, scratch_operands = 0 : i64, tpu.core_type = #tpu.core_type<tc>, window_params = [{transform_indices = @transform_0, window_bounds = array<i64: 128, 200>}, {pipeline_mode = #tpu.pipeline_mode<synchronous>, transform_indices = @transform_1, window_bounds = array<i64: 200, 8>}, {pipeline_mode = #tpu.pipeline_mode<synchronous>, transform_indices = @transform_2, window_bounds = array<i64: 1, 8>}, {transform_indices = @transform_3, window_bounds = array<i64: 128, 8>}]} {
    %c0 = arith.constant 0 : index
    %c0_0 = arith.constant 0 : index
    %0 = vector.load %arg1[%c0, %c0_0] : memref<128x200xbf16, #tpu.memory_space<vmem>>, vector<128x200xbf16>
    %c0_1 = arith.constant 0 : index
    %c0_2 = arith.constant 0 : index
    %1 = vector.load %arg2[%c0_1, %c0_2] : memref<200x8xbf16, #tpu.memory_space<vmem>>, vector<200x8xbf16>
    %cst = arith.constant dense<0.000000e+00> : vector<128x8xf32>
    %2 = tpu.matmul %0, %1, %cst {dimension_numbers = #tpu.dot_dimension_numbers<[1], [0], [0], [1], [0, 0, 1, 1], [], []>} : vector<128x200xbf16>, vector<200x8xbf16>, vector<128x8xf32> -> vector<128x8xf32>
    %c0_3 = arith.constant 0 : index
    %c0_4 = arith.constant 0 : index
    %3 = vector.load %arg3[%c0_3, %c0_4] : memref<1x8xf32, #tpu.memory_space<vmem>>, vector<1x8xf32>
    %4 = vector.broadcast %3 : vector<1x8xf32> to vector<128x8xf32>
    %5 = arith.addf %2, %4 : vector<128x8xf32>
    %cst_5 = arith.constant 0.000000e+00 : f32
    %6 = vector.broadcast %cst_5 : f32 to vector<128x8xf32>
    %7 = arith.maximumf %5, %6 : vector<128x8xf32>
    %c0_6 = arith.constant 0 : index
    %c0_7 = arith.constant 0 : index
    %8 = vector.load %arg4[%c0_6, %c0_7] : memref<128x8xf32, #tpu.memory_space<vmem>>, vector<128x8xf32>
    tpu.vector_store %arg4[%c0_6, %c0_7], %7 {strides = array<i32>} : memref<128x8xf32, #tpu.memory_space<vmem>>, vector<128x8xf32>,
    return
  }
  func.func @transform_0(%arg0: i32) -> (i32, i32) {
    %c0_i32 = arith.constant 0 : i32
    %c0_i32_0 = arith.constant 0 : i32
    return %arg0, %c0_i32 : i32, i32
  }
  func.func @transform_1(%arg0: i32) -> (i32, i32) {
    %c0_i32 = arith.constant 0 : i32
    %c0_i32_0 = arith.constant 0 : i32
    %c0_i32_1 = arith.constant 0 : i32
    return %c0_i32, %c0_i32_0 : i32, i32
  }
  func.func @transform_2(%arg0: i32) -> (i32, i32) {
    %c0_i32 = arith.constant 0 : i32
    %c0_i32_0 = arith.constant 0 : i32
    %c0_i32_1 = arith.constant 0 : i32
    return %c0_i32, %c0_i32_0 : i32, i32
  }
  func.func @transform_3(%arg0: i32) -> (i32, i32) {
    %c0_i32 = arith.constant 0 : i32
    %c0_i32_0 = arith.constant 0 : i32
    return %arg0, %c0_i32 : i32, i32
  }
}

module attributes {stable_mosaic.version = 11 : i64} {
  func.func @matmul_bias_act_kernel(%arg0: i32, %arg1: memref<728x200xbf16, #tpu.memory_space<vmem>>, %arg2: memref<200x8xbf16, #tpu.memory_space<vmem>>, %arg3: memref<1x8xf32, #tpu.memory_space<vmem>>, %arg4: memref<728x8xf32, #tpu.memory_space<vmem>>) attributes {dimension_semantics = [#tpu.dimension_semantics<parallel>], iteration_bounds = array<i64: 1>, scalar_prefetch = 0 : i64, scratch_operands = 0 : i64, tpu.core_type = #tpu.core_type<tc>, window_params = [{transform_indices = @transform_0, window_bounds = array<i64: 728, 200>}, {pipeline_mode = #tpu.pipeline_mode<synchronous>, transform_indices = @transform_1, window_bounds = array<i64: 200, 8>}, {pipeline_mode = #tpu.pipeline_mode<synchronous>, transform_indices = @transform_2, window_bounds = array<i64: 1, 8>}, {transform_indices = @transform_3, window_bounds = array<i64: 728, 8>}]} {
    %c0 = arith.constant 0 : index
    %c0_0 = arith.constant 0 : index
    %0 = vector.load %arg1[%c0, %c0_0] : memref<728x200xbf16, #tpu.memory_space<vmem>>, vector<728x200xbf16>
    %c0_1 = arith.constant 0 : index
    %c0_2 = arith.constant 0 : index
    %1 = vector.load %arg2[%c0_1, %c0_2] : memref<200x8xbf16, #tpu.memory_space<vmem>>, vector<200x8xbf16>
    %cst = arith.constant dense<0.000000e+00> : vector<728x8xf32>
    %2 = tpu.matmul %0, %1, %cst {dimension_numbers = #tpu.dot_dimension_numbers<[1], [0], [0], [1], [0, 0, 1, 1], [], []>} : vector<728x200xbf16>, vector<200x8xbf16>, vector<728x8xf32> -> vector<728x8xf32>
    %c0_3 = arith.constant 0 : index
    %c0_4 = arith.constant 0 : index
    %3 = vector.load %arg3[%c0_3, %c0_4] : memref<1x8xf32, #tpu.memory_space<vmem>>, vector<1x8xf32>
    %4 = vector.broadcast %3 : vector<1x8xf32> to vector<728x8xf32>
    %5 = arith.addf %2, %4 : vector<728x8xf32>
    %cst_5 = arith.constant 0.000000e+00 : f32
    %6 = vector.broadcast %cst_5 : f32 to vector<728x8xf32>
    %7 = arith.maximumf %5, %6 : vector<728x8xf32>
    %c0_6 = arith.constant 0 : index
    %c0_7 = arith.constant 0 : index
    %8 = vector.load %arg4[%c0_6, %c0_7] : memref<728x8xf32, #tpu.memory_space<vmem>>, vector<728x8xf32>
    tpu.vector_store %arg4[%c0_6, %c0_7], %7 {strides = array<i32>} : memref<728x8xf32, #tpu.memory_space<vmem>>, vector<728x8xf32>,
    return
  }
  func.func @transform_0(%arg0: i32) -> (i32, i32) {
    %c0_i32 = arith.constant 0 : i32
    %c0_i32_0 = arith.constant 0 : i32
    return %arg0, %c0_i32 : i32, i32
  }
  func.func @transform_1(%arg0: i32) -> (i32, i32) {
    %c0_i32 = arith.constant 0 : i32
    %c0_i32_0 = arith.constant 0 : i32
    %c0_i32_1 = arith.constant 0 : i32
    return %c0_i32, %c0_i32_0 : i32, i32
  }
  func.func @transform_2(%arg0: i32) -> (i32, i32) {
    %c0_i32 = arith.constant 0 : i32
    %c0_i32_0 = arith.constant 0 : i32
    %c0_i32_1 = arith.constant 0 : i32
    return %c0_i32, %c0_i32_0 : i32, i32
  }
  func.func @transform_3(%arg0: i32) -> (i32, i32) {
    %c0_i32 = arith.constant 0 : i32
    %c0_i32_0 = arith.constant 0 : i32
    return %arg0, %c0_i32 : i32, i32
  }
}

module attributes {stable_mosaic.version = 11 : i64} {
  func.func @matmul_bias_act_kernel(%arg0: i32, %arg1: memref<728x8xbf16, #tpu.memory_space<vmem>>, %arg2: memref<8x1xbf16, #tpu.memory_space<vmem>>, %arg3: memref<1x1xf32, #tpu.memory_space<vmem>>, %arg4: memref<728x1xf32, #tpu.memory_space<vmem>>, %arg5: memref<728x1xf32, #tpu.memory_space<vmem>>) attributes {dimension_semantics = [#tpu.dimension_semantics<parallel>], iteration_bounds = array<i64: 1>, scalar_prefetch = 0 : i64, scratch_operands = 0 : i64, tpu.core_type = #tpu.core_type<tc>, window_params = [{transform_indices = @transform_0, window_bounds = array<i64: 728, 8>}, {pipeline_mode = #tpu.pipeline_mode<synchronous>, transform_indices = @transform_1, window_bounds = array<i64: 8, 1>}, {pipeline_mode = #tpu.pipeline_mode<synchronous>, transform_indices = @transform_2, window_bounds = array<i64: 1, 1>}, {transform_indices = @transform_3, window_bounds = array<i64: 728, 1>}, {transform_indices = @transform_4, window_bounds = array<i64: 728, 1>}]} {
    %c0 = arith.constant 0 : index
    %c0_0 = arith.constant 0 : index
    %0 = vector.load %arg1[%c0, %c0_0] : memref<728x8xbf16, #tpu.memory_space<vmem>>, vector<728x8xbf16>
    %c0_1 = arith.constant 0 : index
    %c0_2 = arith.constant 0 : index
    %1 = vector.load %arg2[%c0_1, %c0_2] : memref<8x1xbf16, #tpu.memory_space<vmem>>, vector<8x1xbf16>
    %cst = arith.constant dense<0.000000e+00> : vector<728x1xf32>
    %2 = tpu.matmul %0, %1, %cst {dimension_numbers = #tpu.dot_dimension_numbers<[1], [0], [0], [1], [0, 0, 1, 1], [], []>} : vector<728x8xbf16>, vector<8x1xbf16>, vector<728x1xf32> -> vector<728x1xf32>
    %c0_3 = arith.constant 0 : index
    %c0_4 = arith.constant 0 : index
    %3 = vector.load %arg3[%c0_3, %c0_4] : memref<1x1xf32, #tpu.memory_space<vmem>>, vector<1x1xf32>
    %4 = vector.broadcast %3 : vector<1x1xf32> to vector<728x1xf32>
    %5 = arith.addf %2, %4 : vector<728x1xf32>
    %c0_5 = arith.constant 0 : index
    %c0_6 = arith.constant 0 : index
    %6 = vector.load %arg4[%c0_5, %c0_6] : memref<728x1xf32, #tpu.memory_space<vmem>>, vector<728x1xf32>
    tpu.vector_store %arg4[%c0_5, %c0_6], %5 {strides = array<i32>} : memref<728x1xf32, #tpu.memory_space<vmem>>, vector<728x1xf32>,
    %7 = math.absf %5 : vector<728x1xf32>
    %cst_7 = arith.constant 0.000000e+00 : f32
    %8 = vector.broadcast %cst_7 : f32 to vector<728x1xf32>
    %9 = arith.subf %8, %7 : vector<728x1xf32>
    %10 = math.exp %9 : vector<728x1xf32>
    %cst_8 = arith.constant 0.000000e+00 : f32
    %11 = vector.broadcast %cst_8 : f32 to vector<728x1xf32>
    %12 = arith.cmpf oge, %5, %11 : vector<728x1xf32>
    %cst_9 = arith.constant 1.000000e+00 : f32
    %13 = vector.broadcast %cst_9 : f32 to vector<728x1xf32>
    %14 = arith.addf %13, %10 : vector<728x1xf32>
    %cst_10 = arith.constant 1.000000e+00 : f32
    %15 = vector.broadcast %cst_10 : f32 to vector<728x1xf32>
    %16 = arith.divf %15, %14 : vector<728x1xf32>
    %cst_11 = arith.constant 1.000000e+00 : f32
    %17 = vector.broadcast %cst_11 : f32 to vector<728x1xf32>
    %18 = arith.addf %17, %10 : vector<728x1xf32>
    %19 = arith.divf %10, %18 : vector<728x1xf32>
    %20 = arith.select %12, %16, %19 : vector<728x1xi1>, vector<728x1xf32>
    %c0_12 = arith.constant 0 : index
    %c0_13 = arith.constant 0 : index
    %21 = vector.load %arg5[%c0_12, %c0_13] : memref<728x1xf32, #tpu.memory_space<vmem>>, vector<728x1xf32>
    tpu.vector_store %arg5[%c0_12, %c0_13], %20 {strides = array<i32>} : memref<728x1xf32, #tpu.memory_space<vmem>>, vector<728x1xf32>,
    return
  }
  func.func @transform_0(%arg0: i32) -> (i32, i32) {
    %c0_i32 = arith.constant 0 : i32
    %c0_i32_0 = arith.constant 0 : i32
    return %arg0, %c0_i32 : i32, i32
  }
  func.func @transform_1(%arg0: i32) -> (i32, i32) {
    %c0_i32 = arith.constant 0 : i32
    %c0_i32_0 = arith.constant 0 : i32
    %c0_i32_1 = arith.constant 0 : i32
    return %c0_i32, %c0_i32_0 : i32, i32
  }
  func.func @transform_2(%arg0: i32) -> (i32, i32) {
    %c0_i32 = arith.constant 0 : i32
    %c0_i32_0 = arith.constant 0 : i32
    %c0_i32_1 = arith.constant 0 : i32
    return %c0_i32, %c0_i32_0 : i32, i32
  }
  func.func @transform_3(%arg0: i32) -> (i32, i32) {
    %c0_i32 = arith.constant 0 : i32
    %c0_i32_0 = arith.constant 0 : i32
    return %arg0, %c0_i32 : i32, i32
  }
  func.func @transform_4(%arg0: i32) -> (i32, i32) {
    %c0_i32 = arith.constant 0 : i32
    %c0_i32_0 = arith.constant 0 : i32
    return %arg0, %c0_i32 : i32, i32
  }
}

module attributes {stable_mosaic.version = 11 : i64} {
  func.func @convlstm_fused_kernel(%arg0: memref<32x300xbf16, #tpu.memory_space<vmem>>, %arg1: memref<300x32xbf16, #tpu.memory_space<vmem>>, %arg2: memref<1x32xf32, #tpu.memory_space<vmem>>, %arg3: memref<32x8xf32, #tpu.memory_space<vmem>>, %arg4: memref<32x8xf32, #tpu.memory_space<vmem>>, %arg5: memref<32x8xf32, #tpu.memory_space<vmem>>, %arg6: memref<32x8xf32, #tpu.memory_space<vmem>>, %arg7: memref<32x8xf32, #tpu.memory_space<vmem>>, %arg8: memref<32x8xf32, #tpu.memory_space<vmem>>) attributes {dimension_semantics = [], scalar_prefetch = 0 : i64, scratch_operands = 0 : i64, tpu.core_type = #tpu.core_type<tc>} {
    %c0 = arith.constant 0 : index
    %c0_0 = arith.constant 0 : index
    %0 = vector.load %arg0[%c0, %c0_0] : memref<32x300xbf16, #tpu.memory_space<vmem>>, vector<32x300xbf16>
    %c0_1 = arith.constant 0 : index
    %c0_2 = arith.constant 0 : index
    %1 = vector.load %arg1[%c0_1, %c0_2] : memref<300x32xbf16, #tpu.memory_space<vmem>>, vector<300x32xbf16>
    %cst = arith.constant dense<0.000000e+00> : vector<32x32xf32>
    %2 = tpu.matmul %0, %1, %cst {dimension_numbers = #tpu.dot_dimension_numbers<[1], [0], [0], [1], [0, 0, 1, 1], [], []>} : vector<32x300xbf16>, vector<300x32xbf16>, vector<32x32xf32> -> vector<32x32xf32>
    %c0_3 = arith.constant 0 : index
    %c0_4 = arith.constant 0 : index
    %3 = vector.load %arg2[%c0_3, %c0_4] : memref<1x32xf32, #tpu.memory_space<vmem>>, vector<1x32xf32>
    %4 = vector.broadcast %3 : vector<1x32xf32> to vector<32x32xf32>
    %5 = arith.addf %2, %4 : vector<32x32xf32>
    %c0_5 = arith.constant 0 : index
    %c0_6 = arith.constant 0 : index
    %6 = vector.load %arg3[%c0_5, %c0_6] : memref<32x8xf32, #tpu.memory_space<vmem>>, vector<32x8xf32>
    %7 = vector.extract_strided_slice %5 {offsets = [0, 0], sizes = [32, 8], strides = [1, 1]} : vector<32x32xf32> to vector<32x8xf32>
    %8 = vector.extract_strided_slice %5 {offsets = [0, 8], sizes = [32, 8], strides = [1, 1]} : vector<32x32xf32> to vector<32x8xf32>
    %9 = vector.extract_strided_slice %5 {offsets = [0, 16], sizes = [32, 8], strides = [1, 1]} : vector<32x32xf32> to vector<32x8xf32>
    %10 = vector.extract_strided_slice %5 {offsets = [0, 24], sizes = [32, 8], strides = [1, 1]} : vector<32x32xf32> to vector<32x8xf32>
    %c0_7 = arith.constant 0 : index
    %c0_8 = arith.constant 0 : index
    %11 = vector.load %arg4[%c0_7, %c0_8] : memref<32x8xf32, #tpu.memory_space<vmem>>, vector<32x8xf32>
    %12 = arith.mulf %11, %6 : vector<32x8xf32>
    %13 = arith.addf %7, %12 : vector<32x8xf32>
    %14 = math.absf %13 : vector<32x8xf32>
    %cst_9 = arith.constant 0.000000e+00 : f32
    %15 = vector.broadcast %cst_9 : f32 to vector<32x8xf32>
    %16 = arith.subf %15, %14 : vector<32x8xf32>
    %17 = math.exp %16 : vector<32x8xf32>
    %cst_10 = arith.constant 0.000000e+00 : f32
    %18 = vector.broadcast %cst_10 : f32 to vector<32x8xf32>
    %19 = arith.cmpf oge, %13, %18 : vector<32x8xf32>
    %cst_11 = arith.constant 1.000000e+00 : f32
    %20 = vector.broadcast %cst_11 : f32 to vector<32x8xf32>
    %21 = arith.addf %20, %17 : vector<32x8xf32>
    %cst_12 = arith.constant 1.000000e+00 : f32
    %22 = vector.broadcast %cst_12 : f32 to vector<32x8xf32>
    %23 = arith.divf %22, %21 : vector<32x8xf32>
    %cst_13 = arith.constant 1.000000e+00 : f32
    %24 = vector.broadcast %cst_13 : f32 to vector<32x8xf32>
    %25 = arith.addf %24, %17 : vector<32x8xf32>
    %26 = arith.divf %17, %25 : vector<32x8xf32>
    %27 = arith.select %19, %23, %26 : vector<32x8xi1>, vector<32x8xf32>
    %c0_14 = arith.constant 0 : index
    %c0_15 = arith.constant 0 : index
    %28 = vector.load %arg5[%c0_14, %c0_15] : memref<32x8xf32, #tpu.memory_space<vmem>>, vector<32x8xf32>
    %29 = arith.mulf %28, %6 : vector<32x8xf32>
    %30 = arith.addf %8, %29 : vector<32x8xf32>
    %31 = math.absf %30 : vector<32x8xf32>
    %cst_16 = arith.constant 0.000000e+00 : f32
    %32 = vector.broadcast %cst_16 : f32 to vector<32x8xf32>
    %33 = arith.subf %32, %31 : vector<32x8xf32>
    %34 = math.exp %33 : vector<32x8xf32>
    %cst_17 = arith.constant 0.000000e+00 : f32
    %35 = vector.broadcast %cst_17 : f32 to vector<32x8xf32>
    %36 = arith.cmpf oge, %30, %35 : vector<32x8xf32>
    %cst_18 = arith.constant 1.000000e+00 : f32
    %37 = vector.broadcast %cst_18 : f32 to vector<32x8xf32>
    %38 = arith.addf %37, %34 : vector<32x8xf32>
    %cst_19 = arith.constant 1.000000e+00 : f32
    %39 = vector.broadcast %cst_19 : f32 to vector<32x8xf32>
    %40 = arith.divf %39, %38 : vector<32x8xf32>
    %cst_20 = arith.constant 1.000000e+00 : f32
    %41 = vector.broadcast %cst_20 : f32 to vector<32x8xf32>
    %42 = arith.addf %41, %34 : vector<32x8xf32>
    %43 = arith.divf %34, %42 : vector<32x8xf32>
    %44 = arith.select %36, %40, %43 : vector<32x8xi1>, vector<32x8xf32>
    %45 = arith.mulf %44, %6 : vector<32x8xf32>
    %46 = math.tanh %9 : vector<32x8xf32>
    %47 = arith.mulf %27, %46 : vector<32x8xf32>
    %48 = arith.addf %45, %47 : vector<32x8xf32>
    %c0_21 = arith.constant 0 : index
    %c0_22 = arith.constant 0 : index
    %49 = vector.load %arg6[%c0_21, %c0_22] : memref<32x8xf32, #tpu.memory_space<vmem>>, vector<32x8xf32>
    %50 = arith.mulf %49, %48 : vector<32x8xf32>
    %51 = arith.addf %10, %50 : vector<32x8xf32>
    %52 = math.absf %51 : vector<32x8xf32>
    %cst_23 = arith.constant 0.000000e+00 : f32
    %53 = vector.broadcast %cst_23 : f32 to vector<32x8xf32>
    %54 = arith.subf %53, %52 : vector<32x8xf32>
    %55 = math.exp %54 : vector<32x8xf32>
    %cst_24 = arith.constant 0.000000e+00 : f32
    %56 = vector.broadcast %cst_24 : f32 to vector<32x8xf32>
    %57 = arith.cmpf oge, %51, %56 : vector<32x8xf32>
    %cst_25 = arith.constant 1.000000e+00 : f32
    %58 = vector.broadcast %cst_25 : f32 to vector<32x8xf32>
    %59 = arith.addf %58, %55 : vector<32x8xf32>
    %cst_26 = arith.constant 1.000000e+00 : f32
    %60 = vector.broadcast %cst_26 : f32 to vector<32x8xf32>
    %61 = arith.divf %60, %59 : vector<32x8xf32>
    %cst_27 = arith.constant 1.000000e+00 : f32
    %62 = vector.broadcast %cst_27 : f32 to vector<32x8xf32>
    %63 = arith.addf %62, %55 : vector<32x8xf32>
    %64 = arith.divf %55, %63 : vector<32x8xf32>
    %65 = arith.select %57, %61, %64 : vector<32x8xi1>, vector<32x8xf32>
    %66 = math.tanh %48 : vector<32x8xf32>
    %67 = arith.mulf %65, %66 : vector<32x8xf32>
    %c0_28 = arith.constant 0 : index
    %c0_29 = arith.constant 0 : index
    %68 = vector.load %arg7[%c0_28, %c0_29] : memref<32x8xf32, #tpu.memory_space<vmem>>, vector<32x8xf32>
    tpu.vector_store %arg7[%c0_28, %c0_29], %67 {strides = array<i32>} : memref<32x8xf32, #tpu.memory_space<vmem>>, vector<32x8xf32>,
    %c0_30 = arith.constant 0 : index
    %c0_31 = arith.constant 0 : index
    %69 = vector.load %arg8[%c0_30, %c0_31] : memref<32x8xf32, #tpu.memory_space<vmem>>, vector<32x8xf32>
    tpu.vector_store %arg8[%c0_30, %c0_31], %48 {strides = array<i32>} : memref<32x8xf32, #tpu.memory_space<vmem>>, vector<32x8xf32>,
    return
  }
}

module attributes {stable_mosaic.version = 11 : i64} {
  func.func @matmul_bias_act_kernel(%arg0: i32, %arg1: memref<728x8xbf16, #tpu.memory_space<vmem>>, %arg2: memref<8x1xbf16, #tpu.memory_space<vmem>>, %arg3: memref<1x1xf32, #tpu.memory_space<vmem>>, %arg4: memref<728x1xf32, #tpu.memory_space<vmem>>, %arg5: memref<728x1xf32, #tpu.memory_space<vmem>>) attributes {dimension_semantics = [#tpu.dimension_semantics<parallel>], iteration_bounds = array<i64: 1>, scalar_prefetch = 0 : i64, scratch_operands = 0 : i64, tpu.core_type = #tpu.core_type<tc>, window_params = [{transform_indices = @transform_0, window_bounds = array<i64: 728, 8>}, {pipeline_mode = #tpu.pipeline_mode<synchronous>, transform_indices = @transform_1, window_bounds = array<i64: 8, 1>}, {pipeline_mode = #tpu.pipeline_mode<synchronous>, transform_indices = @transform_2, window_bounds = array<i64: 1, 1>}, {transform_indices = @transform_3, window_bounds = array<i64: 728, 1>}, {transform_indices = @transform_4, window_bounds = array<i64: 728, 1>}]} {
    %c0 = arith.constant 0 : index
    %c0_0 = arith.constant 0 : index
    %0 = vector.load %arg1[%c0, %c0_0] : memref<728x8xbf16, #tpu.memory_space<vmem>>, vector<728x8xbf16>
    %c0_1 = arith.constant 0 : index
    %c0_2 = arith.constant 0 : index
    %1 = vector.load %arg2[%c0_1, %c0_2] : memref<8x1xbf16, #tpu.memory_space<vmem>>, vector<8x1xbf16>
    %cst = arith.constant dense<0.000000e+00> : vector<728x1xf32>
    %2 = tpu.matmul %0, %1, %cst {dimension_numbers = #tpu.dot_dimension_numbers<[1], [0], [0], [1], [0, 0, 1, 1], [], []>} : vector<728x8xbf16>, vector<8x1xbf16>, vector<728x1xf32> -> vector<728x1xf32>
    %c0_3 = arith.constant 0 : index
    %c0_4 = arith.constant 0 : index
    %3 = vector.load %arg3[%c0_3, %c0_4] : memref<1x1xf32, #tpu.memory_space<vmem>>, vector<1x1xf32>
    %4 = vector.broadcast %3 : vector<1x1xf32> to vector<728x1xf32>
    %5 = arith.addf %2, %4 : vector<728x1xf32>
    %c0_5 = arith.constant 0 : index
    %c0_6 = arith.constant 0 : index
    %6 = vector.load %arg4[%c0_5, %c0_6] : memref<728x1xf32, #tpu.memory_space<vmem>>, vector<728x1xf32>
    tpu.vector_store %arg4[%c0_5, %c0_6], %5 {strides = array<i32>} : memref<728x1xf32, #tpu.memory_space<vmem>>, vector<728x1xf32>,
    %7 = math.absf %5 : vector<728x1xf32>
    %cst_7 = arith.constant 0.000000e+00 : f32
    %8 = vector.broadcast %cst_7 : f32 to vector<728x1xf32>
    %9 = arith.subf %8, %7 : vector<728x1xf32>
    %10 = math.exp %9 : vector<728x1xf32>
    %cst_8 = arith.constant 0.000000e+00 : f32
    %11 = vector.broadcast %cst_8 : f32 to vector<728x1xf32>
    %12 = arith.cmpf oge, %5, %11 : vector<728x1xf32>
    %cst_9 = arith.constant 1.000000e+00 : f32
    %13 = vector.broadcast %cst_9 : f32 to vector<728x1xf32>
    %14 = arith.addf %13, %10 : vector<728x1xf32>
    %cst_10 = arith.constant 1.000000e+00 : f32
    %15 = vector.broadcast %cst_10 : f32 to vector<728x1xf32>
    %16 = arith.divf %15, %14 : vector<728x1xf32>
    %cst_11 = arith.constant 1.000000e+00 : f32
    %17 = vector.broadcast %cst_11 : f32 to vector<728x1xf32>
    %18 = arith.addf %17, %10 : vector<728x1xf32>
    %19 = arith.divf %10, %18 : vector<728x1xf32>
    %20 = arith.select %12, %16, %19 : vector<728x1xi1>, vector<728x1xf32>
    %c0_12 = arith.constant 0 : index
    %c0_13 = arith.constant 0 : index
    %21 = vector.load %arg5[%c0_12, %c0_13] : memref<728x1xf32, #tpu.memory_space<vmem>>, vector<728x1xf32>
    tpu.vector_store %arg5[%c0_12, %c0_13], %20 {strides = array<i32>} : memref<728x1xf32, #tpu.memory_space<vmem>>, vector<728x1xf32>,
    return
  }
  func.func @transform_0(%arg0: i32) -> (i32, i32) {
    %c0_i32 = arith.constant 0 : i32
    %c0_i32_0 = arith.constant 0 : i32
    return %arg0, %c0_i32 : i32, i32
  }
  func.func @transform_1(%arg0: i32) -> (i32, i32) {
    %c0_i32 = arith.constant 0 : i32
    %c0_i32_0 = arith.constant 0 : i32
    %c0_i32_1 = arith.constant 0 : i32
    return %c0_i32, %c0_i32_0 : i32, i32
  }
  func.func @transform_2(%arg0: i32) -> (i32, i32) {
    %c0_i32 = arith.constant 0 : i32
    %c0_i32_0 = arith.constant 0 : i32
    %c0_i32_1 = arith.constant 0 : i32
    return %c0_i32, %c0_i32_0 : i32, i32
  }
  func.func @transform_3(%arg0: i32) -> (i32, i32) {
    %c0_i32 = arith.constant 0 : i32
    %c0_i32_0 = arith.constant 0 : i32
    return %arg0, %c0_i32 : i32, i32
  }
  func.func @transform_4(%arg0: i32) -> (i32, i32) {
    %c0_i32 = arith.constant 0 : i32
    %c0_i32_0 = arith.constant 0 : i32
    return %arg0, %c0_i32 : i32, i32
  }
}

</mosaic_0001>

<bundles_post_ra>
// kernel: decoder_forward.12
= control target key start
LH: loop header
LB: loop body
LE: loop exit
PB: predicated region body
PF: predicated region fallthrough
CT: control target
= control target key end

     0   :  { %vm495_vm0 = vcmask 1043456   ;;  %vm496_vm1 = vcmask 1044480   ;;  %vm356_vm2 = vcmask 203776   ;;  %v1381_v1 = vmov 65535   ;;  %s2052_s1 = inlined_call_operand.vmem [shape: bf16[25,4], index: 1, kind: input, shape index: {}]   ;;  %s2053_s0 = inlined_call_operand.vmem [shape: bf16[728,25], index: 0, kind: input, shape index: {}]   ;;  %s2054_s2 = inlined_call_operand.vmem [shape: f32[1,4], index: 2, kind: input, shape index: {}]   ;;  %s2055_s3 = inlined_call_operand.vmem [shape: f32[728,4], index: 3, kind: output, shape index: {}]  }
   0x1   :  { %v1333_v0 = vld [vmem:[%s2052_s1] sm:$0xff]   ;;  %v497_v2 = vsel %vm495_vm0, 4294967295, %v1381_v1  ;;  %v1334_v3 = vld [vmem:[%s2052_s1 + $0x8] sm:$0x1f]   ;;  %v1339_v10 = vld [vmem:[%s2053_s0 + $0x10] sm:$0xff]   ;;  %vm993_vm3 = vcmask 31744  }
   0x2   :  { %1232 = vmatprep.subr.bf16.mxu0 %v1333_v0  ;;  %v498_v4 = vsel %vm496_vm1, %v497_v2, 0  ;;  %1328 = vmatprep.subr.bf16.mxu1 %v1333_v0  ;;  %v1335_v5 = vld [vmem:[%s2053_s0] sm:$0xff]   ;;  %v1336_v8 = vld [vmem:[%s2053_s0 + $0x8] sm:$0xff]   ;;  %v1341_v11 = vld [vmem:[%s2053_s0 + $0xd0] sm:$0xff]  }
   0x3   :  { %1233 = vmatpush3.bf16.msra.mxu0 %v1333_v0  ;;  %v500_v6 = vand.u32 %v1334_v3, %v498_v4  ;;  %1330 = vmatpush3.bf16.msra.mxu1 %v1333_v0  ;;  %v1337_v7 = vld [vmem:[%s2053_s0 + $0xc0] sm:$0xff]   ;;  %v1338_v9 = vld [vmem:[%s2053_s0 + $0xc8] sm:$0xff]   ;;  %v1340_v12 = vld [vmem:[%s2053_s0 + $0x18] sm:$0xff]  }
   0x4   :  { %1236 = vmatprep.mubr.msk.bf16.mxu0 %vm356_vm2, %v1335_v5  ;;  %1284 = vmatprep.mubr.msk.bf16.mxu1 %vm356_vm2, %v1337_v7  ;;  %v1342_v13 = vld [vmem:[%s2053_s0 + $0xd8] sm:$0xff]   ;;  %v1343_v14 = vld [vmem:[%s2053_s0 + $0x20] sm:$0xff]   ;;  %v1344_v16 = vld [vmem:[%s2053_s0 + $0x28] sm:$0xff]  }
   0x5   :  { %1234 = vmatprep.subr.bf16.mxu0 %v500_v6  ;;  %1329 = vmatprep.subr.bf16.mxu1 %v500_v6  ;;  %v1345_v15 = vld [vmem:[%s2053_s0 + $0xe0] sm:$0xff]   ;;  %v1346_v17 = vld [vmem:[%s2053_s0 + $0xe8] sm:$0xff]   ;;  %v1347_v18 = vld [vmem:[%s2053_s0 + $0x30] sm:$0xff]  }
   0x6   :  { %v1349_v19 = vld [vmem:[%s2053_s0 + $0xf0] sm:$0xff]   ;;  %v1348_v20 = vld [vmem:[%s2053_s0 + $0x38] sm:$0xff]   ;;  %v1351_v22 = vld [vmem:[%s2053_s0 + $0x40] sm:$0xff]  }
   0x7   :  { %1235 = vmatpush3.bf16.msra.mxu0 %v500_v6  ;;  %1331 = vmatpush3.bf16.msra.mxu1 %v500_v6  ;;  %v1350_v21 = vld [vmem:[%s2053_s0 + $0xf8] sm:$0xff]   ;;  %v1353_v23 = vld [vmem:[%s2053_s0 + $0x100] sm:$0xff]   ;;  %v1352_v24 = vld [vmem:[%s2053_s0 + $0x48] sm:$0xff]  }
   0x8   :  { %v1354_v25 = vld [vmem:[%s2053_s0 + $0x108] sm:$0xff]   ;;  %v1355_v26 = vld [vmem:[%s2053_s0 + $0x50] sm:$0xff]   ;;  %v1356_v28 = vld [vmem:[%s2053_s0 + $0x58] sm:$0xff]  }
   0x9   :  { %v1357_v27 = vld [vmem:[%s2053_s0 + $0x110] sm:$0xff]   ;;  %v1358_v29 = vld [vmem:[%s2053_s0 + $0x118] sm:$0xff]   ;;  %v1359_v30 = vld [vmem:[%s2053_s0 + $0x60] sm:$0xff]  }
   0xa   :  { %1237 = vmatmul.mubr.msk.bf16.vlgmr.msra.gmra.mrb[0].mxu0 %vm356_vm2, %v1336_v8  ;;  %1285 = vmatmul.mubr.msk.bf16.vlgmr.msra.gmra.mrb[0].mxu1 %vm356_vm2, %v1338_v9  ;;  %v1361_v31 = vld [vmem:[%s2053_s0 + $0x120] sm:$0xff]   ;;  %v1360_v32 = vld [vmem:[%s2053_s0 + $0x68] sm:$0xff]   ;;  %v1363_v34 = vld [vmem:[%s2053_s0 + $0x70] sm:$0xff]  }
   0xb   :  { %1240 = vmatprep.mubr.msk.bf16.mxu0 %vm356_vm2, %v1339_v10  ;;  %1288 = vmatprep.mubr.msk.bf16.mxu1 %vm356_vm2, %v1341_v11  ;;  %v1362_v33 = vld [vmem:[%s2053_s0 + $0x128] sm:$0xff]   ;;  %v1365_v35 = vld [vmem:[%s2053_s0 + $0x130] sm:$0xff]   ;;  %v1364_v36 = vld [vmem:[%s2053_s0 + $0x78] sm:$0xff]  }
   0xc   :  { %v1366_v37 = vld [vmem:[%s2053_s0 + $0x138] sm:$0xff]   ;;  %v1367_v38 = vld [vmem:[%s2053_s0 + $0x80] sm:$0xff]   ;;  %v1368_v40 = vld [vmem:[%s2053_s0 + $0x88] sm:$0xff]  }
   0xd   :  { %v1369_v39 = vld [vmem:[%s2053_s0 + $0x140] sm:$0xff]   ;;  %v1370_v41 = vld [vmem:[%s2053_s0 + $0x148] sm:$0xff]   ;;  %v1371_v42 = vld [vmem:[%s2053_s0 + $0x90] sm:$0xff]  }
   0xe   :  { %v1373_v43 = vld [vmem:[%s2053_s0 + $0x150] sm:$0xff]   ;;  %v1372_v44 = vld [vmem:[%s2053_s0 + $0x98] sm:$0xff]   ;;  %v1375_v46 = vld [vmem:[%s2053_s0 + $0xa0] sm:$0xff]  }
   0xf   :  { %v1374_v45 = vld [vmem:[%s2053_s0 + $0x158] sm:$0xff]   ;;  %v1377_v47 = vld [vmem:[%s2053_s0 + $0x160] sm:$0xff]   ;;  %v1376_v48 = vld [vmem:[%s2053_s0 + $0xa8] sm:$0xff]  }
  0x10   :  { %v1378_v49 = vld [vmem:[%s2053_s0 + $0x168] ss:$0 sps:$4 sm:$0xff]   ;;  %v1379_v50 = vld [vmem:[%s2053_s0 + $0xb0] sm:$0xff]   ;;  %v1380_v51 = vld [vmem:[%s2053_s0 + $0xb8] sm:$0xff]  }
  0x11   :  { %v1595_v52 = vld [vmem:[%s2054_s2] ss:$0 sm:$0xff] }
  0x12   :  { %1241 = vmatmul.mubr.msk.bf16.gmra.mrb[4].mxu0 %vm356_vm2, %v1340_v12  ;;  %1289 = vmatmul.mubr.msk.bf16.gmra.mrb[4].mxu1 %vm356_vm2, %v1342_v13 }
  0x13   :  { %1244 = vmatprep.mubr.msk.bf16.mxu0 %vm356_vm2, %v1343_v14  ;;  %1292 = vmatprep.mubr.msk.bf16.mxu1 %vm356_vm2, %v1345_v15 }
  0x1a   :  { %1245 = vmatmul.mubr.msk.bf16.gmra.mrb[8].mxu0 %vm356_vm2, %v1344_v16  ;;  %1293 = vmatmul.mubr.msk.bf16.gmra.mrb[8].mxu1 %vm356_vm2, %v1346_v17 }
  0x1b   :  { %1248 = vmatprep.mubr.msk.bf16.mxu0 %vm356_vm2, %v1347_v18  ;;  %1296 = vmatprep.mubr.msk.bf16.mxu1 %vm356_vm2, %v1349_v19 }
  0x22   :  { %1249 = vmatmul.mubr.msk.bf16.gmra.mrb[12].mxu0 %vm356_vm2, %v1348_v20  ;;  %1297 = vmatmul.mubr.msk.bf16.gmra.mrb[12].mxu1 %vm356_vm2, %v1350_v21 }
  0x23   :  { %1252 = vmatprep.mubr.msk.bf16.mxu0 %vm356_vm2, %v1351_v22  ;;  %1300 = vmatprep.mubr.msk.bf16.mxu1 %vm356_vm2, %v1353_v23 }
  0x2a   :  { %1253 = vmatmul.mubr.msk.bf16.gmra.mrb[16].mxu0 %vm356_vm2, %v1352_v24  ;;  %1301 = vmatmul.mubr.msk.bf16.gmra.mrb[16].mxu1 %vm356_vm2, %v1354_v25 }
  0x2b   :  { %1256 = vmatprep.mubr.msk.bf16.mxu0 %vm356_vm2, %v1355_v26  ;;  %1304 = vmatprep.mubr.msk.bf16.mxu1 %vm356_vm2, %v1357_v27 }
  0x32   :  { %1257 = vmatmul.mubr.msk.bf16.gmra.mrb[20].mxu0 %vm356_vm2, %v1356_v28  ;;  %1305 = vmatmul.mubr.msk.bf16.gmra.mrb[20].mxu1 %vm356_vm2, %v1358_v29 }
  0x33   :  { %1260 = vmatprep.mubr.msk.bf16.mxu0 %vm356_vm2, %v1359_v30  ;;  %1308 = vmatprep.mubr.msk.bf16.mxu1 %vm356_vm2, %v1361_v31 }
  0x3a   :  { %1261 = vmatmul.mubr.msk.bf16.gmra.mrb[24].mxu0 %vm356_vm2, %v1360_v32  ;;  %1309 = vmatmul.mubr.msk.bf16.gmra.mrb[24].mxu1 %vm356_vm2, %v1362_v33 }
  0x3b   :  { %1264 = vmatprep.mubr.msk.bf16.mxu0 %vm356_vm2, %v1363_v34  ;;  %1312 = vmatprep.mubr.msk.bf16.mxu1 %vm356_vm2, %v1365_v35 }
  0x42   :  { %1265 = vmatmul.mubr.msk.bf16.gmra.mrb[28].mxu0 %vm356_vm2, %v1364_v36  ;;  %1313 = vmatmul.mubr.msk.bf16.gmra.mrb[28].mxu1 %vm356_vm2, %v1366_v37 }
  0x43   :  { %1268 = vmatprep.mubr.msk.bf16.mxu0 %vm356_vm2, %v1367_v38  ;;  %1316 = vmatprep.mubr.msk.bf16.mxu1 %vm356_vm2, %v1369_v39 }
  0x4a   :  { %1269 = vmatmul.mubr.msk.bf16.gmra.mrb[32].mxu0 %vm356_vm2, %v1368_v40  ;;  %1317 = vmatmul.mubr.msk.bf16.gmra.mrb[32].mxu1 %vm356_vm2, %v1370_v41 }
  0x4b   :  { %1272 = vmatprep.mubr.msk.bf16.mxu0 %vm356_vm2, %v1371_v42  ;;  %1320 = vmatprep.mubr.msk.bf16.mxu1 %vm356_vm2, %v1373_v43 }
  0x52   :  { %1273 = vmatmul.mubr.msk.bf16.gmra.mrb[36].mxu0 %vm356_vm2, %v1372_v44  ;;  %1321 = vmatmul.mubr.msk.bf16.gmra.mrb[36].mxu1 %vm356_vm2, %v1374_v45 }
  0x53   :  { %1276 = vmatprep.mubr.msk.bf16.mxu0 %vm356_vm2, %v1375_v46  ;;  %1324 = vmatprep.mubr.msk.bf16.mxu1 %vm356_vm2, %v1377_v47 }
  0x5a   :  { %1277 = vmatmul.mubr.msk.bf16.gmra.mrb[40].mxu0 %vm356_vm2, %v1376_v48  ;;  %1325 = vmatmul.mubr.msk.bf16.gmra.mrb[40].mxu1 %vm356_vm2, %v1378_v49 }
  0x5b   :  { %1280 = vmatprep.mubr.msk.bf16.mxu0 %vm356_vm2, %v1379_v50 }
  0x62   :  { %1281 = vmatmul.mubr.msk.bf16.gmra.mrb[44].mxu0 %vm356_vm2, %v1380_v51 }
  0xdd   :  { %v1238_v53 = vpop.f32.mrb[0].mxu0  ;;  %v1286_v54 = vpop.f32.mrb[0].mxu1 }
  0xde   :  { %v545_v55 = vadd.f32 %v1238_v53, %v1595_v52  ;;  %v536_v56 = vpop.f32.mrb[1].mxu0  ;;  %v737_v57 = vadd.f32 %v1286_v54, %v1595_v52  ;;  %v728_v58 = vpop.f32.mrb[1].mxu1 }
  0xdf   :  { %v537_v59 = vadd.f32 %v1595_v52, %v536_v56  ;;  %v1239_v60 = vpop.f32.mrb[2].mxu0  ;;  %v729_v61 = vadd.f32 %v1595_v52, %v728_v58  ;;  %v1287_v62 = vpop.f32.mrb[2].mxu1 }
  0xe0   :  { %v904_v63 = vmax.f32 %v545_v55, 0.0  ;;  %v548_v0 = vadd.f32 %v1239_v60, %v1595_v52  ;;  %v539_v1 = vpop.f32.mrb[3].mxu0  ;;  %v952_v2 = vmax.f32 %v737_v57, 0.0  ;;  %v740_v3 = vadd.f32 %v1287_v62, %v1595_v52  ;;  %v731_v4 = vpop.f32.mrb[3].mxu1 }
  0xe1   :  { %v902_v5 = vmax.f32 %v537_v59, 0.0  ;;  %v540_v6 = vadd.f32 %v1595_v52, %v539_v1  ;;  %v950_v7 = vmax.f32 %v729_v61, 0.0  ;;  %v732_v8 = vadd.f32 %v1595_v52, %v731_v4 }
  0xe2   :  { %996 = vst.msk [vmem:[%s2055_s3 + $0x10] sm:$0xff] %vm993_vm3, %v904_v63  ;;  %v905_v9 = vmax.f32 %v548_v0, 0.0  ;;  %1044 = vst.msk [vmem:[%s2055_s3 + $0x190] sm:$0xff] %vm993_vm3, %v952_v2  ;;  %v953_v10 = vmax.f32 %v740_v3, 0.0 }
  0xe3   :  { %994 = vst.msk [vmem:[%s2055_s3] sm:$0xff] %vm993_vm3, %v902_v5  ;;  %v903_v11 = vmax.f32 %v540_v6, 0.0  ;;  %1042 = vst.msk [vmem:[%s2055_s3 + $0x180] sm:$0xff] %vm993_vm3, %v950_v7  ;;  %v951_v12 = vmax.f32 %v732_v8, 0.0 }
  0xe4   :  { %997 = vst.msk [vmem:[%s2055_s3 + $0x18] sm:$0xff] %vm993_vm3, %v905_v9  ;;  %1045 = vst.msk [vmem:[%s2055_s3 + $0x198] sm:$0xff] %vm993_vm3, %v953_v10 }
  0xe5   :  { %995 = vst.msk [vmem:[%s2055_s3 + $0x8] sm:$0xff] %vm993_vm3, %v903_v11  ;;  %v1242_v13 = vpop.f32.mrb[4].mxu0  ;;  %1043 = vst.msk [vmem:[%s2055_s3 + $0x188] sm:$0xff] %vm993_vm3, %v951_v12  ;;  %v1290_v14 = vpop.f32.mrb[4].mxu1 }
  0xe6   :  { %v561_v15 = vadd.f32 %v1242_v13, %v1595_v52  ;;  %v552_v16 = vpop.f32.mrb[5].mxu0  ;;  %v753_v17 = vadd.f32 %v1290_v14, %v1595_v52  ;;  %v744_v18 = vpop.f32.mrb[5].mxu1 }
  0xe7   :  { %v553_v19 = vadd.f32 %v1595_v52, %v552_v16  ;;  %v1243_v20 = vpop.f32.mrb[6].mxu0  ;;  %v745_v21 = vadd.f32 %v1595_v52, %v744_v18  ;;  %v1291_v22 = vpop.f32.mrb[6].mxu1 }
  0xe8   :  { %v908_v23 = vmax.f32 %v561_v15, 0.0  ;;  %v564_v24 = vadd.f32 %v1243_v20, %v1595_v52  ;;  %v555_v25 = vpop.f32.mrb[7].mxu0  ;;  %v956_v26 = vmax.f32 %v753_v17, 0.0  ;;  %v756_v27 = vadd.f32 %v1291_v22, %v1595_v52  ;;  %v747_v28 = vpop.f32.mrb[7].mxu1 }
  0xe9   :  { %v906_v29 = vmax.f32 %v553_v19, 0.0  ;;  %v556_v30 = vadd.f32 %v1595_v52, %v555_v25  ;;  %v954_v31 = vmax.f32 %v745_v21, 0.0  ;;  %v748_v32 = vadd.f32 %v1595_v52, %v747_v28 }
  0xea   :  { %1000 = vst.msk [vmem:[%s2055_s3 + $0x30] sm:$0xff] %vm993_vm3, %v908_v23  ;;  %v909_v33 = vmax.f32 %v564_v24, 0.0  ;;  %1048 = vst.msk [vmem:[%s2055_s3 + $0x1b0] sm:$0xff] %vm993_vm3, %v956_v26  ;;  %v957_v34 = vmax.f32 %v756_v27, 0.0 }
  0xeb   :  { %998 = vst.msk [vmem:[%s2055_s3 + $0x20] sm:$0xff] %vm993_vm3, %v906_v29  ;;  %v907_v35 = vmax.f32 %v556_v30, 0.0  ;;  %1046 = vst.msk [vmem:[%s2055_s3 + $0x1a0] sm:$0xff] %vm993_vm3, %v954_v31  ;;  %v955_v36 = vmax.f32 %v748_v32, 0.0 }
  0xec   :  { %1001 = vst.msk [vmem:[%s2055_s3 + $0x38] sm:$0xff] %vm993_vm3, %v909_v33  ;;  %1049 = vst.msk [vmem:[%s2055_s3 + $0x1b8] sm:$0xff] %vm993_vm3, %v957_v34 }
  0xed   :  { %999 = vst.msk [vmem:[%s2055_s3 + $0x28] sm:$0xff] %vm993_vm3, %v907_v35  ;;  %v1246_v37 = vpop.f32.mrb[8].mxu0  ;;  %1047 = vst.msk [vmem:[%s2055_s3 + $0x1a8] sm:$0xff] %vm993_vm3, %v955_v36  ;;  %v1294_v38 = vpop.f32.mrb[8].mxu1 }
  0xee   :  { %v577_v39 = vadd.f32 %v1246_v37, %v1595_v52  ;;  %v568_v40 = vpop.f32.mrb[9].mxu0  ;;  %v769_v41 = vadd.f32 %v1294_v38, %v1595_v52  ;;  %v760_v42 = vpop.f32.mrb[9].mxu1 }
  0xef   :  { %v569_v43 = vadd.f32 %v1595_v52, %v568_v40  ;;  %v1247_v44 = vpop.f32.mrb[10].mxu0  ;;  %v761_v45 = vadd.f32 %v1595_v52, %v760_v42  ;;  %v1295_v46 = vpop.f32.mrb[10].mxu1 }
  0xf0   :  { %v912_v47 = vmax.f32 %v577_v39, 0.0  ;;  %v580_v48 = vadd.f32 %v1247_v44, %v1595_v52  ;;  %v571_v49 = vpop.f32.mrb[11].mxu0  ;;  %v960_v50 = vmax.f32 %v769_v41, 0.0  ;;  %v772_v51 = vadd.f32 %v1295_v46, %v1595_v52  ;;  %v763_v53 = vpop.f32.mrb[11].mxu1 }
  0xf1   :  { %v910_v54 = vmax.f32 %v569_v43, 0.0  ;;  %v572_v55 = vadd.f32 %v1595_v52, %v571_v49  ;;  %v958_v56 = vmax.f32 %v761_v45, 0.0  ;;  %v764_v57 = vadd.f32 %v1595_v52, %v763_v53 }
  0xf2   :  { %1004 = vst.msk [vmem:[%s2055_s3 + $0x50] sm:$0xff] %vm993_vm3, %v912_v47  ;;  %v913_v58 = vmax.f32 %v580_v48, 0.0  ;;  %1052 = vst.msk [vmem:[%s2055_s3 + $0x1d0] sm:$0xff] %vm993_vm3, %v960_v50  ;;  %v961_v59 = vmax.f32 %v772_v51, 0.0 }
  0xf3   :  { %1002 = vst.msk [vmem:[%s2055_s3 + $0x40] sm:$0xff] %vm993_vm3, %v910_v54  ;;  %v911_v60 = vmax.f32 %v572_v55, 0.0  ;;  %1050 = vst.msk [vmem:[%s2055_s3 + $0x1c0] sm:$0xff] %vm993_vm3, %v958_v56  ;;  %v959_v61 = vmax.f32 %v764_v57, 0.0 }
  0xf4   :  { %1005 = vst.msk [vmem:[%s2055_s3 + $0x58] sm:$0xff] %vm993_vm3, %v913_v58  ;;  %1053 = vst.msk [vmem:[%s2055_s3 + $0x1d8] sm:$0xff] %vm993_vm3, %v961_v59 }
  0xf5   :  { %1003 = vst.msk [vmem:[%s2055_s3 + $0x48] sm:$0xff] %vm993_vm3, %v911_v60  ;;  %v1250_v62 = vpop.f32.mrb[12].mxu0  ;;  %1051 = vst.msk [vmem:[%s2055_s3 + $0x1c8] sm:$0xff] %vm993_vm3, %v959_v61  ;;  %v1298_v63 = vpop.f32.mrb[12].mxu1 }
  0xf6   :  { %v593_v0 = vadd.f32 %v1250_v62, %v1595_v52  ;;  %v584_v1 = vpop.f32.mrb[13].mxu0  ;;  %v785_v2 = vadd.f32 %v1298_v63, %v1595_v52  ;;  %v776_v3 = vpop.f32.mrb[13].mxu1 }
  0xf7   :  { %v585_v4 = vadd.f32 %v1595_v52, %v584_v1  ;;  %v1251_v5 = vpop.f32.mrb[14].mxu0  ;;  %v777_v6 = vadd.f32 %v1595_v52, %v776_v3  ;;  %v1299_v7 = vpop.f32.mrb[14].mxu1 }
  0xf8   :  { %v916_v8 = vmax.f32 %v593_v0, 0.0  ;;  %v596_v9 = vadd.f32 %v1251_v5, %v1595_v52  ;;  %v587_v10 = vpop.f32.mrb[15].mxu0  ;;  %v964_v11 = vmax.f32 %v785_v2, 0.0  ;;  %v788_v12 = vadd.f32 %v1299_v7, %v1595_v52  ;;  %v779_v13 = vpop.f32.mrb[15].mxu1 }
  0xf9   :  { %v914_v14 = vmax.f32 %v585_v4, 0.0  ;;  %v588_v15 = vadd.f32 %v1595_v52, %v587_v10  ;;  %v962_v16 = vmax.f32 %v777_v6, 0.0  ;;  %v780_v17 = vadd.f32 %v1595_v52, %v779_v13 }
  0xfa   :  { %1008 = vst.msk [vmem:[%s2055_s3 + $0x70] sm:$0xff] %vm993_vm3, %v916_v8  ;;  %v917_v18 = vmax.f32 %v596_v9, 0.0  ;;  %1056 = vst.msk [vmem:[%s2055_s3 + $0x1f0] sm:$0xff] %vm993_vm3, %v964_v11  ;;  %v965_v19 = vmax.f32 %v788_v12, 0.0 }
  0xfb   :  { %1006 = vst.msk [vmem:[%s2055_s3 + $0x60] sm:$0xff] %vm993_vm3, %v914_v14  ;;  %v915_v20 = vmax.f32 %v588_v15, 0.0  ;;  %1054 = vst.msk [vmem:[%s2055_s3 + $0x1e0] sm:$0xff] %vm993_vm3, %v962_v16  ;;  %v963_v21 = vmax.f32 %v780_v17, 0.0 }
  0xfc   :  { %1009 = vst.msk [vmem:[%s2055_s3 + $0x78] sm:$0xff] %vm993_vm3, %v917_v18  ;;  %1057 = vst.msk [vmem:[%s2055_s3 + $0x1f8] sm:$0xff] %vm993_vm3, %v965_v19 }
  0xfd   :  { %1007 = vst.msk [vmem:[%s2055_s3 + $0x68] sm:$0xff] %vm993_vm3, %v915_v20  ;;  %v1254_v22 = vpop.f32.mrb[16].mxu0  ;;  %1055 = vst.msk [vmem:[%s2055_s3 + $0x1e8] sm:$0xff] %vm993_vm3, %v963_v21  ;;  %v1302_v23 = vpop.f32.mrb[16].mxu1 }
  0xfe   :  { %v609_v24 = vadd.f32 %v1254_v22, %v1595_v52  ;;  %v600_v25 = vpop.f32.mrb[17].mxu0  ;;  %v801_v26 = vadd.f32 %v1302_v23, %v1595_v52  ;;  %v792_v27 = vpop.f32.mrb[17].mxu1 }
  0xff   :  { %v601_v28 = vadd.f32 %v1595_v52, %v600_v25  ;;  %v1255_v29 = vpop.f32.mrb[18].mxu0  ;;  %v793_v30 = vadd.f32 %v1595_v52, %v792_v27  ;;  %v1303_v31 = vpop.f32.mrb[18].mxu1 }
 0x100   :  { %v920_v32 = vmax.f32 %v609_v24, 0.0  ;;  %v612_v33 = vadd.f32 %v1255_v29, %v1595_v52  ;;  %v603_v34 = vpop.f32.mrb[19].mxu0  ;;  %v968_v35 = vmax.f32 %v801_v26, 0.0  ;;  %v804_v36 = vadd.f32 %v1303_v31, %v1595_v52  ;;  %v795_v37 = vpop.f32.mrb[19].mxu1 }
 0x101   :  { %v918_v38 = vmax.f32 %v601_v28, 0.0  ;;  %v604_v39 = vadd.f32 %v1595_v52, %v603_v34  ;;  %v966_v40 = vmax.f32 %v793_v30, 0.0  ;;  %v796_v41 = vadd.f32 %v1595_v52, %v795_v37 }
 0x102   :  { %1012 = vst.msk [vmem:[%s2055_s3 + $0x90] sm:$0xff] %vm993_vm3, %v920_v32  ;;  %v921_v42 = vmax.f32 %v612_v33, 0.0  ;;  %1060 = vst.msk [vmem:[%s2055_s3 + $0x210] sm:$0xff] %vm993_vm3, %v968_v35  ;;  %v969_v43 = vmax.f32 %v804_v36, 0.0 }
 0x103   :  { %1010 = vst.msk [vmem:[%s2055_s3 + $0x80] sm:$0xff] %vm993_vm3, %v918_v38  ;;  %v919_v44 = vmax.f32 %v604_v39, 0.0  ;;  %1058 = vst.msk [vmem:[%s2055_s3 + $0x200] sm:$0xff] %vm993_vm3, %v966_v40  ;;  %v967_v45 = vmax.f32 %v796_v41, 0.0 }
 0x104   :  { %1013 = vst.msk [vmem:[%s2055_s3 + $0x98] sm:$0xff] %vm993_vm3, %v921_v42  ;;  %1061 = vst.msk [vmem:[%s2055_s3 + $0x218] sm:$0xff] %vm993_vm3, %v969_v43 }
 0x105   :  { %1011 = vst.msk [vmem:[%s2055_s3 + $0x88] sm:$0xff] %vm993_vm3, %v919_v44  ;;  %v1258_v46 = vpop.f32.mrb[20].mxu0  ;;  %1059 = vst.msk [vmem:[%s2055_s3 + $0x208] sm:$0xff] %vm993_vm3, %v967_v45  ;;  %v1306_v47 = vpop.f32.mrb[20].mxu1 }
 0x106   :  { %v625_v48 = vadd.f32 %v1258_v46, %v1595_v52  ;;  %v616_v49 = vpop.f32.mrb[21].mxu0  ;;  %v817_v50 = vadd.f32 %v1306_v47, %v1595_v52  ;;  %v808_v51 = vpop.f32.mrb[21].mxu1 }
 0x107   :  { %v617_v53 = vadd.f32 %v1595_v52, %v616_v49  ;;  %v1259_v54 = vpop.f32.mrb[22].mxu0  ;;  %v809_v55 = vadd.f32 %v1595_v52, %v808_v51  ;;  %v1307_v56 = vpop.f32.mrb[22].mxu1 }
 0x108   :  { %v924_v57 = vmax.f32 %v625_v48, 0.0  ;;  %v628_v58 = vadd.f32 %v1259_v54, %v1595_v52  ;;  %v619_v59 = vpop.f32.mrb[23].mxu0  ;;  %v972_v60 = vmax.f32 %v817_v50, 0.0  ;;  %v820_v61 = vadd.f32 %v1307_v56, %v1595_v52  ;;  %v811_v62 = vpop.f32.mrb[23].mxu1 }
 0x109   :  { %v922_v63 = vmax.f32 %v617_v53, 0.0  ;;  %v620_v0 = vadd.f32 %v1595_v52, %v619_v59  ;;  %v970_v1 = vmax.f32 %v809_v55, 0.0  ;;  %v812_v2 = vadd.f32 %v1595_v52, %v811_v62 }
 0x10a   :  { %1016 = vst.msk [vmem:[%s2055_s3 + $0xb0] sm:$0xff] %vm993_vm3, %v924_v57  ;;  %v925_v3 = vmax.f32 %v628_v58, 0.0  ;;  %1064 = vst.msk [vmem:[%s2055_s3 + $0x230] sm:$0xff] %vm993_vm3, %v972_v60  ;;  %v973_v4 = vmax.f32 %v820_v61, 0.0 }
 0x10b   :  { %1014 = vst.msk [vmem:[%s2055_s3 + $0xa0] sm:$0xff] %vm993_vm3, %v922_v63  ;;  %v923_v5 = vmax.f32 %v620_v0, 0.0  ;;  %1062 = vst.msk [vmem:[%s2055_s3 + $0x220] sm:$0xff] %vm993_vm3, %v970_v1  ;;  %v971_v6 = vmax.f32 %v812_v2, 0.0 }
 0x10c   :  { %1017 = vst.msk [vmem:[%s2055_s3 + $0xb8] sm:$0xff] %vm993_vm3, %v925_v3  ;;  %1065 = vst.msk [vmem:[%s2055_s3 + $0x238] sm:$0xff] %vm993_vm3, %v973_v4 }
 0x10d   :  { %1015 = vst.msk [vmem:[%s2055_s3 + $0xa8] sm:$0xff] %vm993_vm3, %v923_v5  ;;  %v1262_v7 = vpop.f32.mrb[24].mxu0  ;;  %1063 = vst.msk [vmem:[%s2055_s3 + $0x228] sm:$0xff] %vm993_vm3, %v971_v6  ;;  %v1310_v8 = vpop.f32.mrb[24].mxu1 }
 0x10e   :  { %v641_v9 = vadd.f32 %v1262_v7, %v1595_v52  ;;  %v632_v10 = vpop.f32.mrb[25].mxu0  ;;  %v833_v11 = vadd.f32 %v1310_v8, %v1595_v52  ;;  %v824_v12 = vpop.f32.mrb[25].mxu1 }
 0x10f   :  { %v633_v13 = vadd.f32 %v1595_v52, %v632_v10  ;;  %v1263_v14 = vpop.f32.mrb[26].mxu0  ;;  %v825_v15 = vadd.f32 %v1595_v52, %v824_v12  ;;  %v1311_v16 = vpop.f32.mrb[26].mxu1 }
 0x110   :  { %v928_v17 = vmax.f32 %v641_v9, 0.0  ;;  %v644_v18 = vadd.f32 %v1263_v14, %v1595_v52  ;;  %v635_v19 = vpop.f32.mrb[27].mxu0  ;;  %v976_v20 = vmax.f32 %v833_v11, 0.0  ;;  %v836_v21 = vadd.f32 %v1311_v16, %v1595_v52  ;;  %v827_v22 = vpop.f32.mrb[27].mxu1 }
 0x111   :  { %v926_v23 = vmax.f32 %v633_v13, 0.0  ;;  %v636_v24 = vadd.f32 %v1595_v52, %v635_v19  ;;  %v974_v25 = vmax.f32 %v825_v15, 0.0  ;;  %v828_v26 = vadd.f32 %v1595_v52, %v827_v22 }
 0x112   :  { %1020 = vst.msk [vmem:[%s2055_s3 + $0xd0] sm:$0xff] %vm993_vm3, %v928_v17  ;;  %v929_v27 = vmax.f32 %v644_v18, 0.0  ;;  %1068 = vst.msk [vmem:[%s2055_s3 + $0x250] sm:$0xff] %vm993_vm3, %v976_v20  ;;  %v977_v28 = vmax.f32 %v836_v21, 0.0 }
 0x113   :  { %1018 = vst.msk [vmem:[%s2055_s3 + $0xc0] sm:$0xff] %vm993_vm3, %v926_v23  ;;  %v927_v29 = vmax.f32 %v636_v24, 0.0  ;;  %1066 = vst.msk [vmem:[%s2055_s3 + $0x240] sm:$0xff] %vm993_vm3, %v974_v25  ;;  %v975_v30 = vmax.f32 %v828_v26, 0.0 }
 0x114   :  { %1021 = vst.msk [vmem:[%s2055_s3 + $0xd8] sm:$0xff] %vm993_vm3, %v929_v27  ;;  %1069 = vst.msk [vmem:[%s2055_s3 + $0x258] sm:$0xff] %vm993_vm3, %v977_v28 }
 0x115   :  { %1019 = vst.msk [vmem:[%s2055_s3 + $0xc8] sm:$0xff] %vm993_vm3, %v927_v29  ;;  %v1266_v31 = vpop.f32.mrb[28].mxu0  ;;  %1067 = vst.msk [vmem:[%s2055_s3 + $0x248] sm:$0xff] %vm993_vm3, %v975_v30  ;;  %v1314_v32 = vpop.f32.mrb[28].mxu1 }
 0x116   :  { %v657_v33 = vadd.f32 %v1266_v31, %v1595_v52  ;;  %v648_v34 = vpop.f32.mrb[29].mxu0  ;;  %v849_v35 = vadd.f32 %v1314_v32, %v1595_v52  ;;  %v840_v36 = vpop.f32.mrb[29].mxu1 }
 0x117   :  { %v649_v37 = vadd.f32 %v1595_v52, %v648_v34  ;;  %v1267_v38 = vpop.f32.mrb[30].mxu0  ;;  %v841_v39 = vadd.f32 %v1595_v52, %v840_v36  ;;  %v1315_v40 = vpop.f32.mrb[30].mxu1 }
 0x118   :  { %v932_v41 = vmax.f32 %v657_v33, 0.0  ;;  %v660_v42 = vadd.f32 %v1267_v38, %v1595_v52  ;;  %v651_v43 = vpop.f32.mrb[31].mxu0  ;;  %v980_v44 = vmax.f32 %v849_v35, 0.0  ;;  %v852_v45 = vadd.f32 %v1315_v40, %v1595_v52  ;;  %v843_v46 = vpop.f32.mrb[31].mxu1 }
 0x119   :  { %v930_v47 = vmax.f32 %v649_v37, 0.0  ;;  %v652_v48 = vadd.f32 %v1595_v52, %v651_v43  ;;  %v978_v49 = vmax.f32 %v841_v39, 0.0  ;;  %v844_v50 = vadd.f32 %v1595_v52, %v843_v46 }
 0x11a   :  { %1024 = vst.msk [vmem:[%s2055_s3 + $0xf0] sm:$0xff] %vm993_vm3, %v932_v41  ;;  %v933_v51 = vmax.f32 %v660_v42, 0.0  ;;  %1072 = vst.msk [vmem:[%s2055_s3 + $0x270] sm:$0xff] %vm993_vm3, %v980_v44  ;;  %v981_v53 = vmax.f32 %v852_v45, 0.0 }
 0x11b   :  { %1022 = vst.msk [vmem:[%s2055_s3 + $0xe0] sm:$0xff] %vm993_vm3, %v930_v47  ;;  %v931_v54 = vmax.f32 %v652_v48, 0.0  ;;  %1070 = vst.msk [vmem:[%s2055_s3 + $0x260] sm:$0xff] %vm993_vm3, %v978_v49  ;;  %v979_v55 = vmax.f32 %v844_v50, 0.0 }
 0x11c   :  { %1025 = vst.msk [vmem:[%s2055_s3 + $0xf8] sm:$0xff] %vm993_vm3, %v933_v51  ;;  %1073 = vst.msk [vmem:[%s2055_s3 + $0x278] sm:$0xff] %vm993_vm3, %v981_v53 }
 0x11d   :  { %1023 = vst.msk [vmem:[%s2055_s3 + $0xe8] sm:$0xff] %vm993_vm3, %v931_v54  ;;  %v1270_v56 = vpop.f32.mrb[32].mxu0  ;;  %1071 = vst.msk [vmem:[%s2055_s3 + $0x268] sm:$0xff] %vm993_vm3, %v979_v55  ;;  %v1318_v57 = vpop.f32.mrb[32].mxu1 }
 0x11e   :  { %v673_v58 = vadd.f32 %v1270_v56, %v1595_v52  ;;  %v664_v59 = vpop.f32.mrb[33].mxu0  ;;  %v865_v60 = vadd.f32 %v1318_v57, %v1595_v52  ;;  %v856_v61 = vpop.f32.mrb[33].mxu1 }
 0x11f   :  { %v665_v62 = vadd.f32 %v1595_v52, %v664_v59  ;;  %v1271_v63 = vpop.f32.mrb[34].mxu0  ;;  %v857_v0 = vadd.f32 %v1595_v52, %v856_v61  ;;  %v1319_v1 = vpop.f32.mrb[34].mxu1 }
 0x120   :  { %v936_v2 = vmax.f32 %v673_v58, 0.0  ;;  %v676_v3 = vadd.f32 %v1271_v63, %v1595_v52  ;;  %v667_v4 = vpop.f32.mrb[35].mxu0  ;;  %v984_v5 = vmax.f32 %v865_v60, 0.0  ;;  %v868_v6 = vadd.f32 %v1319_v1, %v1595_v52  ;;  %v859_v7 = vpop.f32.mrb[35].mxu1 }
 0x121   :  { %v934_v8 = vmax.f32 %v665_v62, 0.0  ;;  %v668_v9 = vadd.f32 %v1595_v52, %v667_v4  ;;  %v982_v10 = vmax.f32 %v857_v0, 0.0  ;;  %v860_v11 = vadd.f32 %v1595_v52, %v859_v7 }
 0x122   :  { %1028 = vst.msk [vmem:[%s2055_s3 + $0x110] sm:$0xff] %vm993_vm3, %v936_v2  ;;  %v937_v12 = vmax.f32 %v676_v3, 0.0  ;;  %1076 = vst.msk [vmem:[%s2055_s3 + $0x290] sm:$0xff] %vm993_vm3, %v984_v5  ;;  %v985_v13 = vmax.f32 %v868_v6, 0.0 }
 0x123   :  { %1026 = vst.msk [vmem:[%s2055_s3 + $0x100] sm:$0xff] %vm993_vm3, %v934_v8  ;;  %v935_v14 = vmax.f32 %v668_v9, 0.0  ;;  %1074 = vst.msk [vmem:[%s2055_s3 + $0x280] sm:$0xff] %vm993_vm3, %v982_v10  ;;  %v983_v15 = vmax.f32 %v860_v11, 0.0 }
 0x124   :  { %1029 = vst.msk [vmem:[%s2055_s3 + $0x118] sm:$0xff] %vm993_vm3, %v937_v12  ;;  %1077 = vst.msk [vmem:[%s2055_s3 + $0x298] sm:$0xff] %vm993_vm3, %v985_v13 }
 0x125   :  { %1027 = vst.msk [vmem:[%s2055_s3 + $0x108] sm:$0xff] %vm993_vm3, %v935_v14  ;;  %v1274_v16 = vpop.f32.mrb[36].mxu0  ;;  %1075 = vst.msk [vmem:[%s2055_s3 + $0x288] sm:$0xff] %vm993_vm3, %v983_v15  ;;  %v1322_v17 = vpop.f32.mrb[36].mxu1 }
 0x126   :  { %v689_v18 = vadd.f32 %v1274_v16, %v1595_v52  ;;  %v680_v19 = vpop.f32.mrb[37].mxu0  ;;  %v881_v20 = vadd.f32 %v1322_v17, %v1595_v52  ;;  %v872_v21 = vpop.f32.mrb[37].mxu1 }
 0x127   :  { %v681_v22 = vadd.f32 %v1595_v52, %v680_v19  ;;  %v1275_v23 = vpop.f32.mrb[38].mxu0  ;;  %v873_v24 = vadd.f32 %v1595_v52, %v872_v21  ;;  %v1323_v25 = vpop.f32.mrb[38].mxu1 }
 0x128   :  { %v940_v26 = vmax.f32 %v689_v18, 0.0  ;;  %v692_v27 = vadd.f32 %v1275_v23, %v1595_v52  ;;  %v683_v28 = vpop.f32.mrb[39].mxu0  ;;  %v988_v29 = vmax.f32 %v881_v20, 0.0  ;;  %v884_v30 = vadd.f32 %v1323_v25, %v1595_v52  ;;  %v875_v31 = vpop.f32.mrb[39].mxu1 }
 0x129   :  { %v938_v32 = vmax.f32 %v681_v22, 0.0  ;;  %v684_v33 = vadd.f32 %v1595_v52, %v683_v28  ;;  %v986_v34 = vmax.f32 %v873_v24, 0.0  ;;  %v876_v35 = vadd.f32 %v1595_v52, %v875_v31 }
 0x12a   :  { %1032 = vst.msk [vmem:[%s2055_s3 + $0x130] sm:$0xff] %vm993_vm3, %v940_v26  ;;  %v941_v36 = vmax.f32 %v692_v27, 0.0  ;;  %1080 = vst.msk [vmem:[%s2055_s3 + $0x2b0] sm:$0xff] %vm993_vm3, %v988_v29  ;;  %v989_v37 = vmax.f32 %v884_v30, 0.0 }
 0x12b   :  { %1030 = vst.msk [vmem:[%s2055_s3 + $0x120] sm:$0xff] %vm993_vm3, %v938_v32  ;;  %v939_v38 = vmax.f32 %v684_v33, 0.0  ;;  %1078 = vst.msk [vmem:[%s2055_s3 + $0x2a0] sm:$0xff] %vm993_vm3, %v986_v34  ;;  %v987_v39 = vmax.f32 %v876_v35, 0.0 }
 0x12c   :  { %1033 = vst.msk [vmem:[%s2055_s3 + $0x138] sm:$0xff] %vm993_vm3, %v941_v36  ;;  %1081 = vst.msk [vmem:[%s2055_s3 + $0x2b8] sm:$0xff] %vm993_vm3, %v989_v37 }
 0x12d   :  { %1031 = vst.msk [vmem:[%s2055_s3 + $0x128] sm:$0xff] %vm993_vm3, %v939_v38  ;;  %v1278_v40 = vpop.f32.mrb[40].mxu0  ;;  %1079 = vst.msk [vmem:[%s2055_s3 + $0x2a8] sm:$0xff] %vm993_vm3, %v987_v39  ;;  %v1326_v41 = vpop.f32.mrb[40].mxu1 }
 0x12e   :  { %v705_v42 = vadd.f32 %v1278_v40, %v1595_v52  ;;  %v696_v43 = vpop.f32.mrb[41].mxu0  ;;  %v897_v44 = vadd.f32 %v1326_v41, %v1595_v52  ;;  %v888_v45 = vpop.f32.mrb[41].mxu1 }
 0x12f   :  { %v697_v46 = vadd.f32 %v1595_v52, %v696_v43  ;;  %v1279_v47 = vpop.f32.mrb[42].mxu0  ;;  %v889_v48 = vadd.f32 %v1595_v52, %v888_v45  ;;  %v1327_v49 = vpop.f32.mrb[42].mxu1 }
 0x130   :  { %v944_v50 = vmax.f32 %v705_v42, 0.0  ;;  %v708_v51 = vadd.f32 %v1279_v47, %v1595_v52  ;;  %v699_v53 = vpop.f32.mrb[43].mxu0  ;;  %v992_v54 = vmax.f32 %v897_v44, 0.0  ;;  %v891_v55 = vpop.f32.mrb[43].mxu1 }
 0x131   :  { %v942_v56 = vmax.f32 %v697_v46, 0.0  ;;  %v700_v57 = vadd.f32 %v1595_v52, %v699_v53  ;;  %v990_v58 = vmax.f32 %v889_v48, 0.0  ;;  %v892_v59 = vadd.f32 %v1595_v52, %v891_v55 }
 0x132   :  { %1036 = vst.msk [vmem:[%s2055_s3 + $0x150] sm:$0xff] %vm993_vm3, %v944_v50  ;;  %v945_v60 = vmax.f32 %v708_v51, 0.0  ;;  %1084 = vst.msk [vmem:[%s2055_s3 + $0x2d0] sm:$0xff] %vm993_vm3, %v992_v54 }
 0x133   :  { %1034 = vst.msk [vmem:[%s2055_s3 + $0x140] sm:$0xff] %vm993_vm3, %v942_v56  ;;  %v943_v61 = vmax.f32 %v700_v57, 0.0  ;;  %1082 = vst.msk [vmem:[%s2055_s3 + $0x2c0] sm:$0xff] %vm993_vm3, %v990_v58  ;;  %v991_v62 = vmax.f32 %v892_v59, 0.0 }
 0x134   :  { %1037 = vst.msk [vmem:[%s2055_s3 + $0x158] sm:$0xff] %vm993_vm3, %v945_v60 }
 0x135   :  { %1035 = vst.msk [vmem:[%s2055_s3 + $0x148] sm:$0xff] %vm993_vm3, %v943_v61  ;;  %v1282_v63 = vpop.f32.mrb[44].mxu0  ;;  %1083 = vst.msk [vmem:[%s2055_s3 + $0x2c8] sm:$0xff] %vm993_vm3, %v991_v62 }
 0x136   :  { %v721_v0 = vadd.f32 %v1282_v63, %v1595_v52  ;;  %v712_v1 = vpop.f32.mrb[45].mxu0 }
 0x137   :  { %v713_v2 = vadd.f32 %v1595_v52, %v712_v1  ;;  %v1283_v3 = vpop.f32.mrb[46].mxu0 }
 0x138   :  { %v948_v4 = vmax.f32 %v721_v0, 0.0  ;;  %v724_v5 = vadd.f32 %v1283_v3, %v1595_v52  ;;  %v715_v6 = vpop.f32.mrb[47].mxu0 }
 0x139   :  { %v946_v7 = vmax.f32 %v713_v2, 0.0  ;;  %v716_v8 = vadd.f32 %v1595_v52, %v715_v6 }
 0x13a   :  { %1040 = vst.msk [vmem:[%s2055_s3 + $0x170] sm:$0xff] %vm993_vm3, %v948_v4  ;;  %v949_v9 = vmax.f32 %v724_v5, 0.0 }
 0x13b   :  { %1038 = vst.msk [vmem:[%s2055_s3 + $0x160] sm:$0xff] %vm993_vm3, %v946_v7  ;;  %v947_v10 = vmax.f32 %v716_v8, 0.0 }
 0x13c   :  { %1041 = vst.msk [vmem:[%s2055_s3 + $0x178] sm:$0xff] %vm993_vm3, %v949_v9 }
 0x13d   :  { %1039 = vst.msk [vmem:[%s2055_s3 + $0x168] sm:$0xff] %vm993_vm3, %v947_v10 }

// kernel: decoder_forward.13
= control target key start
LH: loop header
LB: loop body
LE: loop exit
PB: predicated region body
PF: predicated region fallthrough
CT: control target
= control target key end

     0   :  { %v493_v0 = vmov 0.0   ;;  %vm494_vm0 = vmmov 0   ;;  %vm182_vm1 = vcmask 1041408   ;;  %vm148_vm2 = vcmask 818176   ;;  %s726_s1 = inlined_call_operand.vmem [shape: bf16[100,4], index: 1, kind: input, shape index: {}]   ;;  %s727_s0 = inlined_call_operand.vmem [shape: bf16[168,100], index: 0, kind: input, shape index: {}]   ;;  %s728_s2 = inlined_call_operand.vmem [shape: f32[1,4], index: 2, kind: input, shape index: {}]   ;;  %s729_s3 = inlined_call_operand.vmem [shape: f32[168,4], index: 3, kind: output, shape index: {}]  }
   0x1   :  { %401 = vmatprep.subr.bf16.mxu0 %v493_v0  ;;  %v475_v1 = vld [vmem:[%s726_s1] sm:$0xff]   ;;  %459 = vmatprep.subr.bf16.mxu1 %v493_v0  ;;  %v476_v2 = vld [vmem:[%s726_s1 + $0x8] sm:$0xff]   ;;  %v477_v3 = vld [vmem:[%s726_s1 + $0x10] sm:$0xff]   ;;  %vm327_vm3 = vcmask 31744  }
   0x2   :  { %415 = vmatprep.mubr.msk.bf16.mxu0 %vm494_vm0, %v493_v0  ;;  %439 = vmatprep.mubr.msk.bf16.mxu1 %vm494_vm0, %v493_v0  ;;  %v478_v4 = vld [vmem:[%s726_s1 + $0x18] sm:$0xff]   ;;  %v479_v5 = vld [vmem:[%s726_s1 + $0x20] sm:$0xff]   ;;  %v480_v6 = vld [vmem:[%s726_s1 + $0x28] sm:$0xff]  }
   0x3   :  { %402 = vmatpush3.bf16.msra.mxu0 %v475_v1  ;;  %466 = vmatpush3.bf16.msra.mxu1 %v475_v1  ;;  %v481_v7 = vld [vmem:[%s726_s1 + $0x30] ss:$0 sps:$4 sm:$0x33]   ;;  %v482_v9 = vld [vmem:[%s727_s0] sm:$0xff]   ;;  %v484_v11 = vld [vmem:[%s727_s0 + $0x8] sm:$0xff]  }
   0x4   :  { %403 = vmatprep.subr.bf16.mxu0 %v493_v0  ;;  %460 = vmatprep.subr.bf16.mxu1 %v493_v0  ;;  %v184_v8 = vsel %vm182_vm1, %v481_v7, 0  ;;  %v483_v10 = vld [vmem:[%s727_s0 + $0x30] sm:$0xff]   ;;  %v485_v12 = vld [vmem:[%s727_s0 + $0x38] sm:$0xff]   ;;  %v487_v14 = vld [vmem:[%s727_s0 + $0x40] sm:$0xff]  }
   0x5   :  { %v486_v13 = vld [vmem:[%s727_s0 + $0x10] sm:$0xff]   ;;  %v488_v15 = vld [vmem:[%s727_s0 + $0x18] sm:$0xff]   ;;  %v489_v16 = vld [vmem:[%s727_s0 + $0x48] sm:$0xff]  }
   0x6   :  { %v490_v17 = vld [vmem:[%s727_s0 + $0x20] sm:$0xff]   ;;  %v491_v18 = vld [vmem:[%s727_s0 + $0x50] ss:$0 sps:$4 sm:$0xff]   ;;  %v492_v19 = vld [vmem:[%s727_s0 + $0x28] sm:$0xff]  }
   0x7   :  { %404 = vmatpush3.bf16.msra.mxu0 %v476_v2  ;;  %467 = vmatpush3.bf16.msra.mxu1 %v476_v2  ;;  %v619_v20 = vld [vmem:[%s728_s2] ss:$0 sm:$0xff] }
   0x8   :  { %405 = vmatprep.subr.bf16.mxu0 %v493_v0  ;;  %461 = vmatprep.subr.bf16.mxu1 %v493_v0 }
   0xb   :  { %406 = vmatpush3.bf16.msra.mxu0 %v477_v3  ;;  %468 = vmatpush3.bf16.msra.mxu1 %v477_v3 }
   0xc   :  { %407 = vmatprep.subr.bf16.mxu0 %v493_v0  ;;  %462 = vmatprep.subr.bf16.mxu1 %v493_v0 }
   0xf   :  { %408 = vmatpush3.bf16.msra.mxu0 %v478_v4  ;;  %469 = vmatpush3.bf16.msra.mxu1 %v478_v4 }
  0x10   :  { %409 = vmatprep.subr.bf16.mxu0 %v493_v0  ;;  %463 = vmatprep.subr.bf16.mxu1 %v493_v0 }
  0x13   :  { %410 = vmatpush3.bf16.msra.mxu0 %v479_v5  ;;  %470 = vmatpush3.bf16.msra.mxu1 %v479_v5 }
  0x14   :  { %411 = vmatprep.subr.bf16.mxu0 %v493_v0  ;;  %464 = vmatprep.subr.bf16.mxu1 %v493_v0 }
  0x17   :  { %412 = vmatpush3.bf16.msra.mxu0 %v480_v6  ;;  %471 = vmatpush3.bf16.msra.mxu1 %v480_v6 }
  0x18   :  { %413 = vmatprep.subr.bf16.mxu0 %v493_v0  ;;  %465 = vmatprep.subr.bf16.mxu1 %v493_v0 }
  0x1b   :  { %414 = vmatpush3.bf16.msra.mxu0 %v184_v8  ;;  %472 = vmatpush3.bf16.msra.mxu1 %v184_v8 }
  0x1e   :  { %416 = vmatmul.mubr.msk.bf16.vlgmr.msra.gmra.mrb[0].mxu0 %vm148_vm2, %v482_v9  ;;  %440 = vmatmul.mubr.msk.bf16.vlgmr.msra.gmra.mrb[0].mxu1 %vm148_vm2, %v483_v10 }
  0x1f   :  { %419 = vmatprep.mubr.msk.bf16.mxu0 %vm494_vm0, %v493_v0  ;;  %443 = vmatprep.mubr.msk.bf16.mxu1 %vm494_vm0, %v493_v0 }
  0x26   :  { %420 = vmatmul.mubr.msk.bf16.gmra.mrb[4].mxu0 %vm148_vm2, %v484_v11  ;;  %444 = vmatmul.mubr.msk.bf16.gmra.mrb[4].mxu1 %vm148_vm2, %v485_v12 }
  0x27   :  { %423 = vmatprep.mubr.msk.bf16.mxu0 %vm494_vm0, %v493_v0  ;;  %447 = vmatprep.mubr.msk.bf16.mxu1 %vm494_vm0, %v493_v0 }
  0x2e   :  { %424 = vmatmul.mubr.msk.bf16.gmra.mrb[8].mxu0 %vm148_vm2, %v486_v13  ;;  %448 = vmatmul.mubr.msk.bf16.gmra.mrb[8].mxu1 %vm148_vm2, %v487_v14 }
  0x2f   :  { %427 = vmatprep.mubr.msk.bf16.mxu0 %vm494_vm0, %v493_v0  ;;  %451 = vmatprep.mubr.msk.bf16.mxu1 %vm494_vm0, %v493_v0 }
  0x36   :  { %428 = vmatmul.mubr.msk.bf16.gmra.mrb[12].mxu0 %vm148_vm2, %v488_v15  ;;  %452 = vmatmul.mubr.msk.bf16.gmra.mrb[12].mxu1 %vm148_vm2, %v489_v16 }
  0x37   :  { %431 = vmatprep.mubr.msk.bf16.mxu0 %vm494_vm0, %v493_v0  ;;  %455 = vmatprep.mubr.msk.bf16.mxu1 %vm494_vm0, %v493_v0 }
  0x3e   :  { %432 = vmatmul.mubr.msk.bf16.gmra.mrb[16].mxu0 %vm148_vm2, %v490_v17  ;;  %456 = vmatmul.mubr.msk.bf16.gmra.mrb[16].mxu1 %vm148_vm2, %v491_v18 }
  0x3f   :  { %435 = vmatprep.mubr.msk.bf16.mxu0 %vm494_vm0, %v493_v0 }
  0x46   :  { %436 = vmatmul.mubr.msk.bf16.gmra.mrb[20].mxu0 %vm148_vm2, %v492_v19 }
  0xf1   :  { %v220_v21 = vpop.f32.mrb[0].mxu0  ;;  %v268_v22 = vpop.f32.mrb[0].mxu1 }
  0xf2   :  { %v221_v23 = vadd.f32 %v619_v20, %v220_v21  ;;  %v417_v24 = vpop.f32.mrb[1].mxu0  ;;  %v269_v25 = vadd.f32 %v619_v20, %v268_v22  ;;  %v441_v26 = vpop.f32.mrb[1].mxu1 }
  0xf3   :  { %v223_v27 = vpop.f32.mrb[2].mxu0  ;;  %v271_v28 = vpop.f32.mrb[2].mxu1 }
  0xf4   :  { %v306_v29 = vmax.f32 %v221_v23, 0.0  ;;  %v224_v30 = vadd.f32 %v619_v20, %v223_v27  ;;  %v418_v31 = vpop.f32.mrb[3].mxu0  ;;  %v318_v32 = vmax.f32 %v269_v25, 0.0  ;;  %v272_v33 = vadd.f32 %v619_v20, %v271_v28  ;;  %v442_v34 = vpop.f32.mrb[3].mxu1 }
  0xf6   :  { %328 = vst.msk [vmem:[%s729_s3] sm:$0xff] %vm327_vm3, %v306_v29  ;;  %v307_v35 = vmax.f32 %v224_v30, 0.0  ;;  %340 = vst.msk [vmem:[%s729_s3 + $0x60] sm:$0xff] %vm327_vm3, %v318_v32  ;;  %v319_v36 = vmax.f32 %v272_v33, 0.0 }
  0xf8   :  { %329 = vst.msk [vmem:[%s729_s3 + $0x8] sm:$0xff] %vm327_vm3, %v307_v35  ;;  %341 = vst.msk [vmem:[%s729_s3 + $0x68] sm:$0xff] %vm327_vm3, %v319_v36 }
  0xf9   :  { %v228_v37 = vpop.f32.mrb[4].mxu0  ;;  %v276_v38 = vpop.f32.mrb[4].mxu1 }
  0xfa   :  { %v229_v39 = vadd.f32 %v619_v20, %v228_v37  ;;  %v421_v40 = vpop.f32.mrb[5].mxu0  ;;  %v277_v41 = vadd.f32 %v619_v20, %v276_v38  ;;  %v445_v42 = vpop.f32.mrb[5].mxu1 }
  0xfb   :  { %v231_v43 = vpop.f32.mrb[6].mxu0  ;;  %v279_v44 = vpop.f32.mrb[6].mxu1 }
  0xfc   :  { %v308_v45 = vmax.f32 %v229_v39, 0.0  ;;  %v232_v46 = vadd.f32 %v619_v20, %v231_v43  ;;  %v422_v47 = vpop.f32.mrb[7].mxu0  ;;  %v320_v48 = vmax.f32 %v277_v41, 0.0  ;;  %v280_v49 = vadd.f32 %v619_v20, %v279_v44  ;;  %v446_v50 = vpop.f32.mrb[7].mxu1 }
  0xfe   :  { %330 = vst.msk [vmem:[%s729_s3 + $0x10] sm:$0xff] %vm327_vm3, %v308_v45  ;;  %v309_v51 = vmax.f32 %v232_v46, 0.0  ;;  %342 = vst.msk [vmem:[%s729_s3 + $0x70] sm:$0xff] %vm327_vm3, %v320_v48  ;;  %v321_v52 = vmax.f32 %v280_v49, 0.0 }
 0x100   :  { %331 = vst.msk [vmem:[%s729_s3 + $0x18] sm:$0xff] %vm327_vm3, %v309_v51  ;;  %343 = vst.msk [vmem:[%s729_s3 + $0x78] sm:$0xff] %vm327_vm3, %v321_v52 }
 0x101   :  { %v236_v53 = vpop.f32.mrb[8].mxu0  ;;  %v284_v54 = vpop.f32.mrb[8].mxu1 }
 0x102   :  { %v237_v55 = vadd.f32 %v619_v20, %v236_v53  ;;  %v425_v56 = vpop.f32.mrb[9].mxu0  ;;  %v285_v57 = vadd.f32 %v619_v20, %v284_v54  ;;  %v449_v58 = vpop.f32.mrb[9].mxu1 }
 0x103   :  { %v239_v59 = vpop.f32.mrb[10].mxu0  ;;  %v287_v60 = vpop.f32.mrb[10].mxu1 }
 0x104   :  { %v310_v61 = vmax.f32 %v237_v55, 0.0  ;;  %v240_v62 = vadd.f32 %v619_v20, %v239_v59  ;;  %v426_v63 = vpop.f32.mrb[11].mxu0  ;;  %v322_v0 = vmax.f32 %v285_v57, 0.0  ;;  %v288_v1 = vadd.f32 %v619_v20, %v287_v60  ;;  %v450_v2 = vpop.f32.mrb[11].mxu1 }
 0x106   :  { %332 = vst.msk [vmem:[%s729_s3 + $0x20] sm:$0xff] %vm327_vm3, %v310_v61  ;;  %v311_v3 = vmax.f32 %v240_v62, 0.0  ;;  %344 = vst.msk [vmem:[%s729_s3 + $0x80] sm:$0xff] %vm327_vm3, %v322_v0  ;;  %v323_v4 = vmax.f32 %v288_v1, 0.0 }
 0x108   :  { %333 = vst.msk [vmem:[%s729_s3 + $0x28] sm:$0xff] %vm327_vm3, %v311_v3  ;;  %345 = vst.msk [vmem:[%s729_s3 + $0x88] sm:$0xff] %vm327_vm3, %v323_v4 }
 0x109   :  { %v244_v5 = vpop.f32.mrb[12].mxu0  ;;  %v292_v6 = vpop.f32.mrb[12].mxu1 }
 0x10a   :  { %v245_v7 = vadd.f32 %v619_v20, %v244_v5  ;;  %v429_v8 = vpop.f32.mrb[13].mxu0  ;;  %v293_v9 = vadd.f32 %v619_v20, %v292_v6  ;;  %v453_v10 = vpop.f32.mrb[13].mxu1 }
 0x10b   :  { %v247_v11 = vpop.f32.mrb[14].mxu0  ;;  %v295_v12 = vpop.f32.mrb[14].mxu1 }
 0x10c   :  { %v312_v13 = vmax.f32 %v245_v7, 0.0  ;;  %v248_v14 = vadd.f32 %v619_v20, %v247_v11  ;;  %v430_v15 = vpop.f32.mrb[15].mxu0  ;;  %v324_v16 = vmax.f32 %v293_v9, 0.0  ;;  %v296_v17 = vadd.f32 %v619_v20, %v295_v12  ;;  %v454_v18 = vpop.f32.mrb[15].mxu1 }
 0x10e   :  { %334 = vst.msk [vmem:[%s729_s3 + $0x30] sm:$0xff] %vm327_vm3, %v312_v13  ;;  %v313_v19 = vmax.f32 %v248_v14, 0.0  ;;  %346 = vst.msk [vmem:[%s729_s3 + $0x90] sm:$0xff] %vm327_vm3, %v324_v16  ;;  %v325_v21 = vmax.f32 %v296_v17, 0.0 }
 0x110   :  { %335 = vst.msk [vmem:[%s729_s3 + $0x38] sm:$0xff] %vm327_vm3, %v313_v19  ;;  %347 = vst.msk [vmem:[%s729_s3 + $0x98] sm:$0xff] %vm327_vm3, %v325_v21 }
 0x111   :  { %v252_v22 = vpop.f32.mrb[16].mxu0  ;;  %v300_v23 = vpop.f32.mrb[16].mxu1 }
 0x112   :  { %v253_v24 = vadd.f32 %v619_v20, %v252_v22  ;;  %v433_v25 = vpop.f32.mrb[17].mxu0  ;;  %v301_v26 = vadd.f32 %v619_v20, %v300_v23  ;;  %v457_v27 = vpop.f32.mrb[17].mxu1 }
 0x113   :  { %v255_v28 = vpop.f32.mrb[18].mxu0  ;;  %v303_v29 = vpop.f32.mrb[18].mxu1 }
 0x114   :  { %v314_v30 = vmax.f32 %v253_v24, 0.0  ;;  %v256_v31 = vadd.f32 %v619_v20, %v255_v28  ;;  %v434_v32 = vpop.f32.mrb[19].mxu0  ;;  %v326_v33 = vmax.f32 %v301_v26, 0.0  ;;  %v458_v34 = vpop.f32.mrb[19].mxu1 }
 0x116   :  { %336 = vst.msk [vmem:[%s729_s3 + $0x40] sm:$0xff] %vm327_vm3, %v314_v30  ;;  %v315_v35 = vmax.f32 %v256_v31, 0.0  ;;  %348 = vst.msk [vmem:[%s729_s3 + $0xa0] sm:$0xff] %vm327_vm3, %v326_v33 }
 0x118   :  { %337 = vst.msk [vmem:[%s729_s3 + $0x48] sm:$0xff] %vm327_vm3, %v315_v35 }
 0x119   :  { %v260_v36 = vpop.f32.mrb[20].mxu0 }
 0x11a   :  { %v261_v37 = vadd.f32 %v619_v20, %v260_v36  ;;  %v437_v38 = vpop.f32.mrb[21].mxu0 }
 0x11b   :  { %v263_v39 = vpop.f32.mrb[22].mxu0 }
 0x11c   :  { %v316_v40 = vmax.f32 %v261_v37, 0.0  ;;  %v264_v41 = vadd.f32 %v619_v20, %v263_v39  ;;  %v438_v42 = vpop.f32.mrb[23].mxu0 }
 0x11e   :  { %338 = vst.msk [vmem:[%s729_s3 + $0x50] sm:$0xff] %vm327_vm3, %v316_v40  ;;  %v317_v43 = vmax.f32 %v264_v41, 0.0 }
 0x120   :  { %339 = vst.msk [vmem:[%s729_s3 + $0x58] sm:$0xff] %vm327_vm3, %v317_v43 }

// kernel: decoder_forward.14
= control target key start
LH: loop header
LB: loop body
LE: loop exit
PB: predicated region body
PF: predicated region fallthrough
CT: control target
= control target key end

     0   :  { %vm232_vm0 = vcmask 1045504   ;;  %vm225_vm1 = vcmask 359424   ;;  %s833_s19 = smov 8   ;;  %vm646_vm10 = vcmask 64512   ;;  %s835_s15 = smov 24   ;;  %s1079_s1 = inlined_call_operand.vmem [shape: bf16[300,32], index: 1, kind: input, shape index: {}]   ;;  %s1080_s0 = inlined_call_operand.vmem [shape: bf16[32,300], index: 0, kind: input, shape index: {}]   ;;  %s1081_s2 = inlined_call_operand.vmem [shape: f32[1,32], index: 2, kind: input, shape index: {}]   ;;  %s1082_s5 = inlined_call_operand.vmem [shape: f32[32,8], index: 5, kind: input, shape index: {}]   ;;  %s1083_s3 = inlined_call_operand.vmem [shape: f32[32,8], index: 3, kind: input, shape index: {}]   ;;  %s1084_s4 = inlined_call_operand.vmem [shape: f32[32,8], index: 4, kind: input, shape index: {}]   ;;  %s1085_s6 = inlined_call_operand.vmem [shape: f32[32,8], index: 6, kind: input, shape index: {}]   ;;  %s1086_s8 = inlined_call_operand.vmem [shape: f32[32,8], index: 8, kind: output, shape index: {1}]   ;;  %s1087_s7 = inlined_call_operand.vmem [shape: f32[32,8], index: 7, kind: output, shape index: {0}]  }
   0x1   :  { %v741_v0 = vld [vmem:[%s1079_s1 + $0x40] sm:$0xff]   ;;  %v743_v2 = vld [vmem:[%s1079_s1 + $0x48] sm:$0xff]   ;;  %v745_v4 = vld [vmem:[%s1079_s1 + $0x50] sm:$0xff]   ;;  %s836_s26 = smov 16  }
   0x2   :  { %v742_v1 = vld [vmem:[%s1079_s1] sm:$0xff]   ;;  %691 = vmatprep.subr.bf16.mxu0 %v741_v0  ;;  %v744_v3 = vld [vmem:[%s1079_s1 + $0x8] sm:$0xff]   ;;  %v746_v5 = vld [vmem:[%s1079_s1 + $0x10] sm:$0xff]  }
   0x3   :  { %692 = vmatpush3.bf16.msra.mxu0 %v742_v1  ;;  %v747_v6 = vld [vmem:[%s1079_s1 + $0x58] sm:$0xff]   ;;  %v749_v8 = vld [vmem:[%s1079_s1 + $0x60] sm:$0xff]   ;;  %v751_v11 = vld [vmem:[%s1079_s1 + $0x68] sm:$0xff]  }
   0x4   :  { %693 = vmatprep.subr.bf16.mxu0 %v743_v2  ;;  %v748_v7 = vld [vmem:[%s1079_s1 + $0x18] sm:$0xff]   ;;  %v754_v9 = vld [vmem:[%s1079_s1 + $0x80] sm:$0xff]   ;;  %v757_v12 = vld [vmem:[%s1079_s1 + $0x88] sm:$0xff]  }
   0x5   :  { %v750_v10 = vld [vmem:[%s1079_s1 + $0x20] sm:$0xff]   ;;  %724 = vmatprep.subr.bf16.mxu1 %v754_v9  ;;  %v752_v13 = vld [vmem:[%s1079_s1 + $0x28] sm:$0xff]   ;;  %v753_v14 = vld [vmem:[%s1079_s1 + $0x70] sm:$0xff]  }
   0x6   :  { %725 = vmatpush3.bf16.msra.mxu1 %v754_v9  ;;  %v761_v15 = vld [vmem:[%s1080_s0 + $0x4] ss:$12 sps:$4 sm:$0xff]   ;;  %v763_v17 = vld [vmem:[%s1080_s0 + $0x8] ss:$12 sps:$4 sm:$0xff]   ;;  %v764_v20 = vld [vmem:[%s1080_s0 + $0x20] ss:$12 sps:$4 sm:$0xff]  }
   0x7   :  { %694 = vmatpush3.bf16.msra.mxu0 %v744_v3  ;;  %726 = vmatprep.subr.bf16.mxu1 %v757_v12  ;;  %v762_v16 = vld [vmem:[%s1079_s1 + $0x90] sm:$0x3f]   ;;  %v756_v21 = vld [vmem:[%s1079_s1 + $0x78] sm:$0xff]   ;;  %v759_v23 = vld [vmem:[%s1080_s0] ss:$12 sps:$4 sm:$0xff]  }
   0x8   :  { %695 = vmatprep.subr.bf16.mxu0 %v745_v4  ;;  %268 = vmatprep.mubr.bf16.mxu0 %v761_v15  ;;  %v234_v18 = vsel %vm232_vm0, %v762_v16, 0  ;;  %v755_v19 = vld [vmem:[%s1079_s1 + $0x30] sm:$0xff]   ;;  %v758_v22 = vld [vmem:[%s1079_s1 + $0x38] sm:$0xff]   ;;  %v663_v32 = vld [vmem:[%s1081_s2] ss:$0 sm:$0xff] }
   0x9   :  { %730 = vmatprep.mubr.msk.bf16.mxu1 %vm225_vm1, %v763_v17  ;;  %v765_v24 = vld [vmem:[%s1080_s0 + $0x1c] ss:$12 sps:$4 sm:$0xff]   ;;  %v767_v25 = vld [vmem:[%s1080_s0 + $0x18] ss:$12 sps:$4 sm:$0xff]   ;;  %s832_s0 = smov 112   ;;  %v392_v56 = vld [vmem:[%s1082_s5 + $0x10] sm:$0xff] }
   0xa   :  { %727 = vmatpush3.bf16.msra.mxu1 %v757_v12  ;;  %v390_v52 = vld [vmem:[%s1082_s5] sm:$0xff]  ;;  %v336_v58 = vld [vmem:[%s1083_s3 + $0x10] sm:$0xff]  ;;  %v391_v60 = vld [vmem:[%s1082_s5 + $0x8] sm:$0xff] }
   0xb   :  { %696 = vmatpush3.bf16.msra.mxu0 %v746_v5  ;;  %734 = vmatprep.subr.msk.bf16.mxu1 %vm232_vm0, %v762_v16  ;;  %v334_v54 = vld [vmem:[%s1083_s3] sm:$0xff]  ;;  %v396_v59 = vmul.f32 %v392_v56, %v336_v58  ;;  %v335_v62 = vld [vmem:[%s1083_s3 + $0x8] sm:$0xff]  ;;  %v393_v0 = vld [vmem:[%s1082_s5 + $0x18] sm:$0xff] }
   0xc   :  { %697 = vmatprep.subr.bf16.mxu0 %v747_v6  ;;  %v394_v55 = vmul.f32 %v390_v52, %v334_v54  ;;  %v395_v63 = vmul.f32 %v391_v60, %v335_v62  ;;  %v337_v1 = vld [vmem:[%s1083_s3 + $0x18] sm:$0xff]  ;;  %v338_v3 = vld [vmem:[%s1084_s4] sm:$0xff]  ;;  %v339_v5 = vld [vmem:[%s1084_s4 + $0x8] sm:$0xff] }
   0xd   :  { %v397_v2 = vmul.f32 %v393_v0, %v337_v1  ;;  %v342_v4 = vmul.f32 %v338_v3, %v334_v54  ;;  %v341_v12 = vld [vmem:[%s1084_s4 + $0x18] sm:$0xff] }
   0xe   :  { %729 = vmatpush3.bf16.msra.mxu1 %v234_v18  ;;  %v345_v16 = vmul.f32 %v341_v12, %v337_v1 }
   0xf   :  { %698 = vmatpush3.bf16.msra.mxu0 %v748_v7  ;;  %v343_v7 = vmul.f32 %v339_v5, %v335_v62 }
  0x10   :  { %699 = vmatprep.subr.bf16.mxu0 %v749_v8  ;;  %v340_v8 = vld [vmem:[%s1084_s4 + $0x10] sm:$0xff]  ;;  %s834_s4 = smov 120  }
  0x11   :  { %731 = vmatmul.mubr.msk.bf16.vlgmr.msra.gmra.mrb[0].mxu1 %vm225_vm1, %v764_v20 }
  0x13   :  { %700 = vmatpush3.bf16.msra.mxu0 %v750_v10 }
  0x14   :  { %701 = vmatprep.subr.bf16.mxu0 %v751_v11  ;;  %v344_v11 = vmul.f32 %v340_v8, %v336_v58 }
  0x17   :  { %702 = vmatpush3.bf16.msra.mxu0 %v752_v13 }
  0x18   :  { %703 = vmatprep.subr.bf16.mxu0 %v753_v14 }
  0x1b   :  { %704 = vmatpush3.bf16.msra.mxu0 %v755_v19 }
  0x1c   :  { %705 = vmatprep.subr.bf16.mxu0 %v756_v21 }
  0x1f   :  { %706 = vmatpush3.bf16.msra.mxu0 %v758_v22 }
  0x22   :  { %269 = vmatmul.mubr.bf16.vlgmr.msra.gmra.mrb[0].mxu0 %v759_v23 }
  0x23   :  { %276 = vmatprep.mubr.bf16.mxu0 %v765_v24 }
  0x2a   :  { %277 = vmatmul.mubr.bf16.gmra.mrb[4].mxu0 %v767_v25 }
  0xe4   :  { %v732_v26 = vpop.f32.mrb[0].mxu1 }
  0xe5   :  { %v319_v27 = vpop.f32.mrb[1].mxu1 }
  0xe6   :  { %v733_v28 = vpop.f32.mrb[2].mxu1 }
  0xe7   :  { %v322_v29 = vpop.f32.mrb[3].mxu1 }
  0xf5   :  { %v707_v30 = vpop.f32.mrb[0].mxu0 }
  0xf6   :  { %v708_v31 = vpop.f32.mrb[1].mxu0 }
  0xf7   :  { %v709_v33 = vadd.f32 %v708_v31, %v707_v30  ;;  %v710_v34 = vpop.f32.mrb[2].mxu0 }
  0xf8   :  { %v711_v35 = vpop.f32.mrb[3].mxu0 }
  0xf9   :  { %v712_v36 = vadd.f32 %v711_v35, %v710_v34  ;;  %v271_v37 = vadd.f32 %v709_v33, %v663_v32 }
  0xfb   :  { %v963_v38 = vadd.f32 %v319_v27, %v271_v37  ;;  %v274_v39 = vadd.f32 %v712_v36, %v663_v32 }
  0xfd   :  { %768 = vtanh.f32 %v963_v38  ;;  %v966_v40 = vadd.f32 %v322_v29, %v274_v39  ;;  %v713_v41 = vpop.f32.mrb[4].mxu0  ;;  %v346_v6 = vadd.f32 %v342_v4, %v963_v38 }
  0xfe   :  { %v714_v42 = vpop.f32.mrb[5].mxu0 }
  0xff   :  { %v715_v43 = vadd.f32 %v714_v42, %v713_v41  ;;  %v716_v44 = vpop.f32.mrb[6].mxu0  ;;  %770 = vtanh.f32 %v966_v40  ;;  %v350_v9 = vand.u32 2147483647, %v346_v6  ;;  %v347_v10 = vadd.f32 %v343_v7, %v966_v40 }
 0x100   :  { %v717_v45 = vpop.f32.mrb[7].mxu0  ;;  %vm366_vm2 = vcmp.ge.f32.partialorder %v346_v6, 0.0 }
 0x101   :  { %v279_v46 = vadd.f32 %v715_v43, %v663_v32  ;;  %v718_v47 = vadd.f32 %v717_v45, %v716_v44  ;;  %v354_v13 = vsub.f32 0.0, %v350_v9  ;;  %v351_v14 = vand.u32 2147483647, %v347_v10 }
 0x102   :  { %vm367_vm3 = vcmp.ge.f32.partialorder %v347_v10, 0.0 }
 0x103   :  { %v969_v48 = vadd.f32 %v732_v26, %v279_v46  ;;  %v282_v49 = vadd.f32 %v718_v47, %v663_v32  ;;  %v358_v17 = vmul.f32 1.442695, %v354_v13  ;;  %v355_v18 = vsub.f32 0.0, %v351_v14 }
 0x105   :  { %v971_v50 = vadd.f32 %v733_v28, %v282_v49  ;;  %772 = vtanh.f32 %v969_v48  ;;  %v348_v15 = vadd.f32 %v344_v11, %v969_v48  ;;  %v360_v21 = vmul.f32 1.442695, %v355_v18 }
 0x107   :  { %v769_v51 = vpop.eup %768  ;;  %774 = vtanh.f32 %v971_v50  ;;  %v352_v19 = vand.u32 2147483647, %v348_v15  ;;  %v349_v20 = vadd.f32 %v345_v16, %v971_v50  ;;  %vm368_vm4 = vcmp.ge.f32.partialorder %v348_v15, 0.0 }
 0x108   :  { %486 = vrot.lane.b32.xlu0 %v769_v51, %s832_s0  ;;  %776 = vpow2.f32 %v358_v17 }
 0x109   :  { %v771_v53 = vpop.eup %770  ;;  %v356_v22 = vsub.f32 0.0, %v352_v19  ;;  %v353_v23 = vand.u32 2147483647, %v349_v20  ;;  %778 = vpow2.f32 %v360_v21  ;;  %vm369_vm5 = vcmp.ge.f32.partialorder %v349_v20, 0.0 }
 0x10b   :  { %v362_v24 = vmul.f32 1.442695, %v356_v22  ;;  %v357_v25 = vsub.f32 0.0, %v353_v23 }
 0x10c   :  { %488 = vrot.lane.b32.xlu0 %v771_v53, %s832_s0 }
 0x10d   :  { %780 = vpow2.f32 %v362_v24  ;;  %v364_v26 = vmul.f32 1.442695, %v357_v25 }
 0x10f   :  { %v773_v57 = vpop.eup %772  ;;  %782 = vpow2.f32 %v364_v26 }
 0x110   :  { %490 = vrot.lane.b32.xlu1 %v773_v57, %s832_s0  ;;  %402 = vrot.lane.b32.xlu0 %v394_v55, %s833_s19 }
 0x111   :  { %v775_v61 = vpop.eup %774 }
 0x112   :  { %v777_v27 = vpop.eup %776 }
 0x113   :  { %v370_v28 = vadd.f32 1.0, %v777_v27  ;;  %v779_v29 = vpop.eup %778 }
 0x114   :  { %492 = vrot.lane.b32.xlu1 %v775_v61, %s832_s0  ;;  %406 = vrot.lane.b32.xlu0 %v396_v59, %s833_s19  ;;  %v371_v30 = vadd.f32 1.0, %v779_v29 }
 0x115   :  { %784 = vrcp.f32 %v370_v28 }
 0x116   :  { %786 = vrcp.f32 %v371_v30 }
 0x117   :  { %v781_v31 = vpop.eup %780 }
 0x118   :  { %404 = vrot.lane.b32.xlu1 %v395_v63, %s833_s19  ;;  %462 = vrot.lane.b32.xlu0 %v334_v54, %s833_s19  ;;  %v372_v32 = vadd.f32 1.0, %v781_v31 }
 0x119   :  { %v783_v33 = vpop.eup %782 }
 0x11a   :  { %788 = vrcp.f32 %v372_v32  ;;  %v373_v34 = vadd.f32 1.0, %v783_v33 }
 0x11c   :  { %408 = vrot.lane.b32.xlu1 %v397_v2, %s833_s19  ;;  %466 = vrot.lane.b32.xlu0 %v336_v58, %s833_s19  ;;  %790 = vrcp.f32 %v373_v34 }
 0x11f   :  { %v785_v35 = vpop.eup %784 }
 0x120   :  { %464 = vrot.lane.b32.xlu1 %v335_v62, %s833_s19  ;;  %v382_v36 = vmul.f32 %v785_v35, %v777_v27  ;;  %v787_v37 = vpop.eup %786 }
 0x121   :  { %v383_v42 = vmul.f32 %v787_v37, %v779_v29 }
 0x122   :  { %v386_v41 = vsel %vm366_vm2, %v785_v35, %v382_v36 }
 0x123   :  { %v387_v45 = vsel %vm367_vm3, %v787_v37, %v383_v42 }
 0x124   :  { %468 = vrot.lane.b32.xlu1 %v337_v1, %s833_s19  ;;  %v789_v43 = vpop.eup %788 }
 0x125   :  { %v384_v47 = vmul.f32 %v789_v43, %v781_v31 }
 0x126   :  { %v791_v49 = vpop.eup %790 }
 0x127   :  { %v388_v53 = vsel %vm368_vm4, %v789_v43, %v384_v47  ;;  %v385_v54 = vmul.f32 %v791_v49, %v783_v33 }
 0x129   :  { %v389_v56 = vsel %vm369_vm5, %v791_v49, %v385_v54 }
 0x17a   :  { %v487_v39 = vpop.permute.xlu0 %486 }
 0x17b   :  { %v498_v44 = vmul.f32 %v487_v39, %v386_v41 }
 0x17d   :  { %506 = vrot.lane.b32.xlu0 %v498_v44, %s833_s19 }
 0x17e   :  { %v489_v46 = vpop.permute.xlu0 %488 }
 0x17f   :  { %v499_v51 = vmul.f32 %v489_v46, %v387_v45 }
 0x181   :  { %508 = vrot.lane.b32.xlu1 %v499_v51, %s833_s19 }
 0x182   :  { %v491_v52 = vpop.permute.xlu1 %490  ;;  %v403_v59 = vpop.permute.xlu0 %402 }
 0x183   :  { %v500_v55 = vmul.f32 %v491_v52, %v388_v53  ;;  %v414_v60 = vadd.f32 %v403_v59, %v963_v38 }
 0x185   :  { %510 = vrot.lane.b32.xlu0 %v500_v55, %s833_s19  ;;  %v418_v62 = vand.u32 2147483647, %v414_v60  ;;  %vm434_vm6 = vcmp.ge.f32.partialorder %v414_v60, 0.0  ;;  %v522_v55 = vld [vmem:[%s1085_s6] sm:$0xff] }
 0x186   :  { %v493_v57 = vpop.permute.xlu1 %492  ;;  %v407_v0 = vpop.permute.xlu0 %406 }
 0x187   :  { %v501_v58 = vmul.f32 %v493_v57, %v389_v56  ;;  %v422_v1 = vsub.f32 0.0, %v418_v62  ;;  %v416_v2 = vadd.f32 %v407_v0, %v969_v48  ;;  %v525_v0 = vld [vmem:[%s1085_s6 + $0x18] sm:$0xff] }
 0x189   :  { %512 = vrot.lane.b32.xlu1 %v501_v58, %s833_s19  ;;  %v426_v5 = vmul.f32 1.442695, %v422_v1  ;;  %v420_v6 = vand.u32 2147483647, %v416_v2  ;;  %vm436_vm8 = vcmp.ge.f32.partialorder %v416_v2, 0.0  ;;  %v523_v58 = vld [vmem:[%s1085_s6 + $0x8] sm:$0xff] }
 0x18a   :  { %v405_v61 = vpop.permute.xlu1 %404  ;;  %v463_v24 = vpop.permute.xlu0 %462 }
 0x18b   :  { %v415_v63 = vadd.f32 %v405_v61, %v966_v40  ;;  %792 = vpow2.f32 %v426_v5  ;;  %v424_v9 = vsub.f32 0.0, %v420_v6  ;;  %v524_v61 = vld [vmem:[%s1085_s6 + $0x10] sm:$0xff]  ;;  %s837_s6 = smov 104  }
 0x18d   :  { %v419_v3 = vand.u32 2147483647, %v415_v63  ;;  %v430_v12 = vmul.f32 1.442695, %v424_v9  ;;  %vm435_vm7 = vcmp.ge.f32.partialorder %v415_v63, 0.0 }
 0x18e   :  { %v409_v4 = vpop.permute.xlu1 %408  ;;  %v467_v29 = vpop.permute.xlu0 %466 }
 0x18f   :  { %v423_v7 = vsub.f32 0.0, %v419_v3  ;;  %v417_v8 = vadd.f32 %v409_v4, %v971_v50 }
 0x191   :  { %v428_v10 = vmul.f32 1.442695, %v423_v7  ;;  %v421_v11 = vand.u32 2147483647, %v417_v8  ;;  %vm437_vm9 = vcmp.ge.f32.partialorder %v417_v8, 0.0 }
 0x192   :  { %v465_v27 = vpop.permute.xlu1 %464 }
 0x193   :  { %794 = vpow2.f32 %v428_v10  ;;  %v425_v13 = vsub.f32 0.0, %v421_v11 }
 0x194   :  { %796 = vpow2.f32 %v430_v12 }
 0x195   :  { %v432_v14 = vmul.f32 1.442695, %v425_v13  ;;  %v793_v15 = vpop.eup %792 }
 0x196   :  { %v438_v16 = vadd.f32 1.0, %v793_v15  ;;  %v469_v35 = vpop.permute.xlu1 %468 }
 0x197   :  { %798 = vpow2.f32 %v432_v14 }
 0x198   :  { %800 = vrcp.f32 %v438_v16 }
 0x19d   :  { %v795_v17 = vpop.eup %794 }
 0x19e   :  { %v439_v18 = vadd.f32 1.0, %v795_v17  ;;  %v797_v19 = vpop.eup %796 }
 0x19f   :  { %v440_v20 = vadd.f32 1.0, %v797_v19 }
 0x1a0   :  { %802 = vrcp.f32 %v439_v18 }
 0x1a1   :  { %v799_v21 = vpop.eup %798  ;;  %804 = vrcp.f32 %v440_v20 }
 0x1a2   :  { %v441_v22 = vadd.f32 1.0, %v799_v21  ;;  %v801_v23 = vpop.eup %800 }
 0x1a3   :  { %v450_v25 = vmul.f32 %v801_v23, %v793_v15 }
 0x1a4   :  { %806 = vrcp.f32 %v441_v22 }
 0x1a5   :  { %v454_v28 = vsel %vm434_vm6, %v801_v23, %v450_v25 }
 0x1a6   :  { %v474_v32 = vmul.f32 %v463_v24, %v454_v28 }
 0x1aa   :  { %v803_v26 = vpop.eup %802 }
 0x1ab   :  { %v451_v30 = vmul.f32 %v803_v26, %v795_v17  ;;  %v805_v31 = vpop.eup %804 }
 0x1ac   :  { %v452_v33 = vmul.f32 %v805_v31, %v797_v19 }
 0x1ad   :  { %v455_v34 = vsel %vm435_vm7, %v803_v26, %v451_v30 }
 0x1ae   :  { %v807_v37 = vpop.eup %806  ;;  %v475_v41 = vmul.f32 %v465_v27, %v455_v34  ;;  %v456_v42 = vsel %vm436_vm8, %v805_v31, %v452_v33 }
 0x1af   :  { %v453_v43 = vmul.f32 %v807_v37, %v799_v21  ;;  %v476_v46 = vmul.f32 %v467_v29, %v456_v42 }
 0x1b1   :  { %v457_v47 = vsel %vm437_vm9, %v807_v37, %v453_v43 }
 0x1b2   :  { %v477_v52 = vmul.f32 %v469_v35, %v457_v47 }
 0x1ef   :  { %v507_v36 = vpop.permute.xlu0 %506 }
 0x1f0   :  { %v518_v39 = vadd.f32 %v507_v36, %v474_v32 }
 0x1f2   :  { %530 = vrot.lane.b32.xlu0 %v518_v39, %s834_s4  ;;  %808 = vtanh.f32 %v518_v39 }
 0x1f3   :  { %v509_v44 = vpop.permute.xlu1 %508 }
 0x1f4   :  { %v519_v45 = vadd.f32 %v509_v44, %v475_v41 }
 0x1f6   :  { %532 = vrot.lane.b32.xlu1 %v519_v45, %s834_s4  ;;  %810 = vtanh.f32 %v519_v45 }
 0x1f7   :  { %v511_v49 = vpop.permute.xlu0 %510 }
 0x1f8   :  { %v520_v51 = vadd.f32 %v511_v49, %v476_v46 }
 0x1fa   :  { %534 = vrot.lane.b32.xlu0 %v520_v51, %s834_s4  ;;  %812 = vtanh.f32 %v520_v51 }
 0x1fb   :  { %v513_v53 = vpop.permute.xlu1 %512 }
 0x1fc   :  { %v521_v54 = vadd.f32 %v513_v53, %v477_v52  ;;  %v809_v3 = vpop.eup %808 }
 0x1fe   :  { %536 = vrot.lane.b32.xlu1 %v521_v54, %s834_s4  ;;  %814 = vtanh.f32 %v521_v54 }
 0x200   :  { %v811_v4 = vpop.eup %810 }
 0x204   :  { %v813_v5 = vpop.eup %812 }
 0x208   :  { %v815_v6 = vpop.eup %814 }
 0x264   :  { %v531_v56 = vpop.permute.xlu0 %530 }
 0x265   :  { %v542_v57 = vmul.f32 %v531_v56, %v522_v55  ;;  %651 = vst.msk [vmem:[%s1086_s8] sm:$0xff] %vm646_vm10, %v531_v56 }
 0x267   :  { %550 = vrot.lane.b32.xlu0 %v542_v57, %s835_s15 }
 0x268   :  { %v533_v59 = vpop.permute.xlu1 %532 }
 0x269   :  { %v543_v60 = vmul.f32 %v533_v59, %v523_v58  ;;  %652 = vst.msk [vmem:[%s1086_s8 + $0x8] sm:$0xff] %vm646_vm10, %v533_v59 }
 0x26b   :  { %552 = vrot.lane.b32.xlu1 %v543_v60, %s835_s15 }
 0x26c   :  { %v535_v62 = vpop.permute.xlu0 %534 }
 0x26d   :  { %v544_v63 = vmul.f32 %v535_v62, %v524_v61  ;;  %653 = vst.msk [vmem:[%s1086_s8 + $0x10] sm:$0xff] %vm646_vm10, %v535_v62 }
 0x26f   :  { %554 = vrot.lane.b32.xlu0 %v544_v63, %s835_s15 }
 0x270   :  { %v537_v1 = vpop.permute.xlu1 %536 }
 0x271   :  { %v545_v2 = vmul.f32 %v537_v1, %v525_v0  ;;  %654 = vst.msk [vmem:[%s1086_s8 + $0x18] sm:$0xff] %vm646_vm10, %v537_v1 }
 0x273   :  { %556 = vrot.lane.b32.xlu1 %v545_v2, %s835_s15  ;;  %614 = vrot.lane.b32.xlu0 %v809_v3, %s836_s26 }
 0x277   :  { %616 = vrot.lane.b32.xlu1 %v811_v4, %s836_s26  ;;  %618 = vrot.lane.b32.xlu0 %v813_v5, %s836_s26 }
 0x27b   :  { %620 = vrot.lane.b32.xlu1 %v815_v6, %s836_s26 }
 0x2d9   :  { %v551_v7 = vpop.permute.xlu0 %550 }
 0x2da   :  { %v562_v8 = vadd.f32 %v551_v7, %v963_v38 }
 0x2dc   :  { %v566_v9 = vand.u32 2147483647, %v562_v8  ;;  %vm582_vm11 = vcmp.ge.f32.partialorder %v562_v8, 0.0 }
 0x2dd   :  { %v553_v10 = vpop.permute.xlu1 %552 }
 0x2de   :  { %v570_v11 = vsub.f32 0.0, %v566_v9  ;;  %v563_v12 = vadd.f32 %v553_v10, %v966_v40 }
 0x2e0   :  { %v574_v13 = vmul.f32 1.442695, %v570_v11  ;;  %v567_v14 = vand.u32 2147483647, %v563_v12  ;;  %vm583_vm12 = vcmp.ge.f32.partialorder %v563_v12, 0.0 }
 0x2e1   :  { %v555_v15 = vpop.permute.xlu0 %554 }
 0x2e2   :  { %816 = vpow2.f32 %v574_v13  ;;  %v571_v16 = vsub.f32 0.0, %v567_v14  ;;  %v564_v17 = vadd.f32 %v555_v15, %v969_v48 }
 0x2e4   :  { %v576_v18 = vmul.f32 1.442695, %v571_v16  ;;  %v568_v19 = vand.u32 2147483647, %v564_v17  ;;  %vm584_vm13 = vcmp.ge.f32.partialorder %v564_v17, 0.0 }
 0x2e5   :  { %v557_v20 = vpop.permute.xlu1 %556  ;;  %v615_v34 = vpop.permute.xlu0 %614 }
 0x2e6   :  { %818 = vpow2.f32 %v576_v18  ;;  %v572_v21 = vsub.f32 0.0, %v568_v19  ;;  %v565_v22 = vadd.f32 %v557_v20, %v971_v50 }
 0x2e8   :  { %v578_v38 = vmul.f32 1.442695, %v572_v21  ;;  %v569_v23 = vand.u32 2147483647, %v565_v22  ;;  %vm585_vm14 = vcmp.ge.f32.partialorder %v565_v22, 0.0 }
 0x2e9   :  { %v617_v41 = vpop.permute.xlu1 %616  ;;  %v619_v46 = vpop.permute.xlu0 %618 }
 0x2ea   :  { %820 = vpow2.f32 %v578_v38  ;;  %v573_v24 = vsub.f32 0.0, %v569_v23 }
 0x2ec   :  { %v817_v25 = vpop.eup %816  ;;  %v580_v40 = vmul.f32 1.442695, %v573_v24 }
 0x2ed   :  { %v586_v26 = vadd.f32 1.0, %v817_v25  ;;  %v621_v53 = vpop.permute.xlu1 %620 }
 0x2ee   :  { %822 = vpow2.f32 %v580_v40 }
 0x2ef   :  { %824 = vrcp.f32 %v586_v26 }
 0x2f0   :  { %v819_v27 = vpop.eup %818 }
 0x2f1   :  { %v587_v28 = vadd.f32 1.0, %v819_v27 }
 0x2f3   :  { %826 = vrcp.f32 %v587_v28 }
 0x2f4   :  { %v821_v48 = vpop.eup %820 }
 0x2f5   :  { %v588_v29 = vadd.f32 1.0, %v821_v48 }
 0x2f7   :  { %828 = vrcp.f32 %v588_v29 }
 0x2f8   :  { %v823_v30 = vpop.eup %822 }
 0x2f9   :  { %v825_v31 = vpop.eup %824  ;;  %v589_v32 = vadd.f32 1.0, %v823_v30 }
 0x2fa   :  { %v598_v33 = vmul.f32 %v825_v31, %v817_v25 }
 0x2fb   :  { %830 = vrcp.f32 %v589_v32 }
 0x2fc   :  { %v602_v50 = vsel %vm582_vm11, %v825_v31, %v598_v33 }
 0x2fd   :  { %v827_v35 = vpop.eup %826  ;;  %v626_v36 = vmul.f32 %v615_v34, %v602_v50 }
 0x2fe   :  { %v599_v37 = vmul.f32 %v827_v35, %v819_v27 }
 0x2ff   :  { %634 = vrot.lane.b32.xlu0 %v626_v36, %s837_s6 }
 0x300   :  { %v603_v39 = vsel %vm583_vm12, %v827_v35, %v599_v37 }
 0x301   :  { %v829_v42 = vpop.eup %828  ;;  %v627_v43 = vmul.f32 %v617_v41, %v603_v39 }
 0x302   :  { %v600_v44 = vmul.f32 %v829_v42, %v821_v48 }
 0x303   :  { %636 = vrot.lane.b32.xlu1 %v627_v43, %s837_s6 }
 0x304   :  { %v604_v45 = vsel %vm584_vm13, %v829_v42, %v600_v44 }
 0x305   :  { %v831_v47 = vpop.eup %830  ;;  %v628_v49 = vmul.f32 %v619_v46, %v604_v45 }
 0x306   :  { %v601_v51 = vmul.f32 %v831_v47, %v823_v30 }
 0x307   :  { %638 = vrot.lane.b32.xlu0 %v628_v49, %s837_s6 }
 0x308   :  { %v605_v52 = vsel %vm585_vm14, %v831_v47, %v601_v51 }
 0x309   :  { %v629_v54 = vmul.f32 %v621_v53, %v605_v52 }
 0x30b   :  { %640 = vrot.lane.b32.xlu1 %v629_v54, %s837_s6 }
 0x371   :  { %v635_v55 = vpop.permute.xlu0 %634 }
 0x372   :  { %647 = vst.msk [vmem:[%s1087_s7] sm:$0xff] %vm646_vm10, %v635_v55 }
 0x375   :  { %v637_v56 = vpop.permute.xlu1 %636 }
 0x376   :  { %648 = vst.msk [vmem:[%s1087_s7 + $0x8] sm:$0xff] %vm646_vm10, %v637_v56 }
 0x379   :  { %v639_v57 = vpop.permute.xlu0 %638 }
 0x37a   :  { %649 = vst.msk [vmem:[%s1087_s7 + $0x10] sm:$0xff] %vm646_vm10, %v639_v57 }
 0x37d   :  { %v641_v58 = vpop.permute.xlu1 %640 }
 0x37e   :  { %650 = vst.msk [vmem:[%s1087_s7 + $0x18] sm:$0xff] %vm646_vm10, %v641_v58 }

// kernel: decoder_forward.15
= control target key start
LH: loop header
LB: loop body
LE: loop exit
PB: predicated region body
PF: predicated region fallthrough
CT: control target
= control target key end

     0   :  { %v475_v0 = vmov 0   ;;  %vm210_vm0 = vcmask 588800   ;;  %vm235_vm1 = vcmask 1043456   ;;  %vm352_vm2 = vcmask 64512   ;;  %s702_s1 = inlined_call_operand.vmem [shape: bf16[200,8], index: 1, kind: input, shape index: {}]   ;;  %s703_s0 = inlined_call_operand.vmem [shape: bf16[128,200], index: 0, kind: input, shape index: {}]   ;;  %s704_s2 = inlined_call_operand.vmem [shape: f32[1,8], index: 2, kind: input, shape index: {}]   ;;  %s705_s3 = inlined_call_operand.vmem [shape: f32[128,8], index: 3, kind: output, shape index: {}]  }
   0x1   :  { %239 = vmatprep.subr.bf16.mxu0 %v475_v0  ;;  %411 = vmatprep.subr.bf16.mxu1 %v475_v0  ;;  %v438_v1 = vld [vmem:[%s702_s1] sm:$0xff]   ;;  %v439_v2 = vld [vmem:[%s702_s1 + $0x8] sm:$0xff]   ;;  %v440_v3 = vld [vmem:[%s702_s1 + $0x10] sm:$0xff]  }
   0x2   :  { %240 = vmatpush1.bf16.msra.mxu0 %v438_v1  ;;  %424 = vmatpush1.bf16.msra.mxu1 %v438_v1  ;;  %v441_v4 = vld [vmem:[%s702_s1 + $0x18] sm:$0xff]   ;;  %v453_v5 = vld [vmem:[%s703_s0 + $0x4] ss:$8 sps:$4 sm:$0xff]   ;;  %v444_v9 = vld [vmem:[%s702_s1 + $0x30] sm:$0xff]  }
   0x3   :  { %241 = vmatprep.subr.bf16.mxu0 %v475_v0  ;;  %412 = vmatprep.subr.bf16.mxu1 %v475_v0  ;;  %v442_v6 = vld [vmem:[%s702_s1 + $0x20] sm:$0xff]   ;;  %v443_v8 = vld [vmem:[%s702_s1 + $0x28] sm:$0xff]   ;;  %v445_v10 = vld [vmem:[%s702_s1 + $0x38] sm:$0xff]  }
   0x4   :  { %v456_v7 = vld [vmem:[%s703_s0 + $0x44] ss:$8 sps:$4 sm:$0xff]   ;;  %403 = vmatprep.mubr.msk.bf16.mxu0 %vm210_vm0, %v453_v5  ;;  %v448_v13 = vld [vmem:[%s702_s1 + $0x50] sm:$0xff]   ;;  %v449_v14 = vld [vmem:[%s702_s1 + $0x58] sm:$0xff]  }
   0x5   :  { %407 = vmatprep.mubr.msk.bf16.mxu1 %vm210_vm0, %v456_v7  ;;  %v446_v11 = vld [vmem:[%s702_s1 + $0x40] sm:$0xff]   ;;  %v447_v12 = vld [vmem:[%s702_s1 + $0x48] sm:$0xff]   ;;  %v457_v19 = vld [vmem:[%s703_s0 + $0x14] ss:$8 sps:$4 sm:$0xff]  }
   0x6   :  { %242 = vmatpush1.bf16.msra.mxu0 %v439_v2  ;;  %425 = vmatpush1.bf16.msra.mxu1 %v439_v2  ;;  %v450_v15 = vld [vmem:[%s702_s1 + $0x60] ss:$0 sps:$4 sm:$0xff]   ;;  %v459_v20 = vld [vmem:[%s703_s0 + $0x54] ss:$8 sps:$4 sm:$0xff]   ;;  %v461_v21 = vld [vmem:[%s703_s0 + $0x10] ss:$8 sps:$4 sm:$0xff]  }
   0x7   :  { %243 = vmatprep.subr.bf16.mxu0 %v475_v0  ;;  %413 = vmatprep.subr.bf16.mxu1 %v475_v0  ;;  %v237_v16 = vsel %vm235_vm1, %v450_v15, 0  ;;  %v451_v17 = vld [vmem:[%s703_s0] ss:$8 sps:$4 sm:$0xff]   ;;  %v462_v22 = vld [vmem:[%s703_s0 + $0x50] ss:$8 sps:$4 sm:$0xff]  }
   0x8   :  { %v454_v18 = vld [vmem:[%s703_s0 + $0x40] ss:$8 sps:$4 sm:$0xff]   ;;  %v463_v23 = vld [vmem:[%s703_s0 + $0x24] ss:$8 sps:$4 sm:$0xff]   ;;  %v469_v27 = vld [vmem:[%s703_s0 + $0x34] ss:$8 sps:$4 sm:$0xff]  }
   0x9   :  { %v465_v24 = vld [vmem:[%s703_s0 + $0x64] ss:$8 sps:$4 sm:$0xff]   ;;  %v467_v25 = vld [vmem:[%s703_s0 + $0x20] ss:$8 sps:$4 sm:$0xff]   ;;  %v471_v28 = vld [vmem:[%s703_s0 + $0x74] ss:$8 sps:$4 sm:$0xff]  }
   0xa   :  { %244 = vmatpush1.bf16.msra.mxu0 %v440_v3  ;;  %426 = vmatpush1.bf16.msra.mxu1 %v440_v3  ;;  %v468_v26 = vld [vmem:[%s703_s0 + $0x60] ss:$8 sps:$4 sm:$0xff]   ;;  %v473_v29 = vld [vmem:[%s703_s0 + $0x30] ss:$8 sps:$4 sm:$0xff]  }
   0xb   :  { %245 = vmatprep.subr.bf16.mxu0 %v475_v0  ;;  %414 = vmatprep.subr.bf16.mxu1 %v475_v0  ;;  %v474_v30 = vld [vmem:[%s703_s0 + $0x70] ss:$8 sps:$4 sm:$0xff]   ;;  %v620_v31 = vld [vmem:[%s704_s2] ss:$0 sm:$0xff] }
   0xe   :  { %246 = vmatpush1.bf16.msra.mxu0 %v441_v4  ;;  %427 = vmatpush1.bf16.msra.mxu1 %v441_v4 }
   0xf   :  { %247 = vmatprep.subr.bf16.mxu0 %v475_v0  ;;  %415 = vmatprep.subr.bf16.mxu1 %v475_v0 }
  0x12   :  { %248 = vmatpush1.bf16.msra.mxu0 %v442_v6  ;;  %428 = vmatpush1.bf16.msra.mxu1 %v442_v6 }
  0x13   :  { %249 = vmatprep.subr.bf16.mxu0 %v475_v0  ;;  %416 = vmatprep.subr.bf16.mxu1 %v475_v0 }
  0x16   :  { %250 = vmatpush1.bf16.msra.mxu0 %v443_v8  ;;  %429 = vmatpush1.bf16.msra.mxu1 %v443_v8 }
  0x17   :  { %251 = vmatprep.subr.bf16.mxu0 %v475_v0  ;;  %417 = vmatprep.subr.bf16.mxu1 %v475_v0 }
  0x1a   :  { %252 = vmatpush1.bf16.msra.mxu0 %v444_v9  ;;  %430 = vmatpush1.bf16.msra.mxu1 %v444_v9 }
  0x1b   :  { %253 = vmatprep.subr.bf16.mxu0 %v475_v0  ;;  %418 = vmatprep.subr.bf16.mxu1 %v475_v0 }
  0x1e   :  { %254 = vmatpush1.bf16.msra.mxu0 %v445_v10  ;;  %431 = vmatpush1.bf16.msra.mxu1 %v445_v10 }
  0x1f   :  { %255 = vmatprep.subr.bf16.mxu0 %v475_v0  ;;  %419 = vmatprep.subr.bf16.mxu1 %v475_v0 }
  0x22   :  { %256 = vmatpush1.bf16.msra.mxu0 %v446_v11  ;;  %432 = vmatpush1.bf16.msra.mxu1 %v446_v11 }
  0x23   :  { %257 = vmatprep.subr.bf16.mxu0 %v475_v0  ;;  %420 = vmatprep.subr.bf16.mxu1 %v475_v0 }
  0x26   :  { %258 = vmatpush1.bf16.msra.mxu0 %v447_v12  ;;  %433 = vmatpush1.bf16.msra.mxu1 %v447_v12 }
  0x27   :  { %259 = vmatprep.subr.bf16.mxu0 %v475_v0  ;;  %421 = vmatprep.subr.bf16.mxu1 %v475_v0 }
  0x2a   :  { %260 = vmatpush1.bf16.msra.mxu0 %v448_v13  ;;  %434 = vmatpush1.bf16.msra.mxu1 %v448_v13 }
  0x2b   :  { %261 = vmatprep.subr.bf16.mxu0 %v475_v0  ;;  %422 = vmatprep.subr.bf16.mxu1 %v475_v0 }
  0x2e   :  { %262 = vmatpush1.bf16.msra.mxu0 %v449_v14  ;;  %435 = vmatpush1.bf16.msra.mxu1 %v449_v14 }
  0x2f   :  { %263 = vmatprep.subr.bf16.mxu0 %v475_v0  ;;  %423 = vmatprep.subr.bf16.mxu1 %v475_v0 }
  0x32   :  { %264 = vmatpush1.bf16.msra.mxu0 %v237_v16  ;;  %436 = vmatpush1.bf16.msra.mxu1 %v237_v16 }
  0x35   :  { %272 = vmatmul.mubr.bf16.vlgmr.msra.gmra.mrb[0].mxu0 %v451_v17  ;;  %304 = vmatmul.mubr.bf16.vlgmr.msra.gmra.mrb[0].mxu1 %v454_v18 }
  0x36   :  { %404 = vmatprep.mubr.msk.bf16.mxu0 %vm210_vm0, %v457_v19  ;;  %408 = vmatprep.mubr.msk.bf16.mxu1 %vm210_vm0, %v459_v20 }
  0x3d   :  { %280 = vmatmul.mubr.bf16.gmra.mrb[4].mxu0 %v461_v21  ;;  %312 = vmatmul.mubr.bf16.gmra.mrb[4].mxu1 %v462_v22 }
  0x3e   :  { %405 = vmatprep.mubr.msk.bf16.mxu0 %vm210_vm0, %v463_v23  ;;  %409 = vmatprep.mubr.msk.bf16.mxu1 %vm210_vm0, %v465_v24 }
  0x45   :  { %288 = vmatmul.mubr.bf16.gmra.mrb[8].mxu0 %v467_v25  ;;  %320 = vmatmul.mubr.bf16.gmra.mrb[8].mxu1 %v468_v26 }
  0x46   :  { %406 = vmatprep.mubr.msk.bf16.mxu0 %vm210_vm0, %v469_v27  ;;  %410 = vmatprep.mubr.msk.bf16.mxu1 %vm210_vm0, %v471_v28 }
  0x4d   :  { %296 = vmatmul.mubr.bf16.gmra.mrb[12].mxu0 %v473_v29  ;;  %328 = vmatmul.mubr.bf16.gmra.mrb[12].mxu1 %v474_v30 }
 0x108   :  { %v273_v32 = vpop.f32.mrb[0].mxu0  ;;  %v305_v33 = vpop.f32.mrb[0].mxu1 }
 0x109   :  { %v274_v34 = vadd.f32 %v620_v31, %v273_v32  ;;  %v306_v35 = vadd.f32 %v620_v31, %v305_v33  ;;  %v275_v36 = vpop.f32.mrb[1].mxu0  ;;  %v307_v37 = vpop.f32.mrb[1].mxu1 }
 0x10a   :  { %v276_v38 = vpop.f32.mrb[2].mxu0  ;;  %v308_v39 = vpop.f32.mrb[2].mxu1 }
 0x10b   :  { %v336_v40 = vmax.f32 %v274_v34, 0.0  ;;  %v344_v41 = vmax.f32 %v306_v35, 0.0  ;;  %v277_v42 = vadd.f32 %v620_v31, %v276_v38  ;;  %v309_v43 = vadd.f32 %v620_v31, %v308_v39  ;;  %v278_v44 = vpop.f32.mrb[3].mxu0  ;;  %v310_v45 = vpop.f32.mrb[3].mxu1 }
 0x10d   :  { %353 = vst.msk [vmem:[%s705_s3] sm:$0xff] %vm352_vm2, %v336_v40  ;;  %361 = vst.msk [vmem:[%s705_s3 + $0x40] sm:$0xff] %vm352_vm2, %v344_v41  ;;  %v337_v46 = vmax.f32 %v277_v42, 0.0  ;;  %v345_v47 = vmax.f32 %v309_v43, 0.0 }
 0x10f   :  { %354 = vst.msk [vmem:[%s705_s3 + $0x8] sm:$0xff] %vm352_vm2, %v337_v46  ;;  %362 = vst.msk [vmem:[%s705_s3 + $0x48] sm:$0xff] %vm352_vm2, %v345_v47 }
 0x110   :  { %v281_v48 = vpop.f32.mrb[4].mxu0  ;;  %v313_v49 = vpop.f32.mrb[4].mxu1 }
 0x111   :  { %v282_v50 = vadd.f32 %v620_v31, %v281_v48  ;;  %v314_v51 = vadd.f32 %v620_v31, %v313_v49  ;;  %v283_v52 = vpop.f32.mrb[5].mxu0  ;;  %v315_v53 = vpop.f32.mrb[5].mxu1 }
 0x112   :  { %v284_v54 = vpop.f32.mrb[6].mxu0  ;;  %v316_v55 = vpop.f32.mrb[6].mxu1 }
 0x113   :  { %v338_v56 = vmax.f32 %v282_v50, 0.0  ;;  %v346_v57 = vmax.f32 %v314_v51, 0.0  ;;  %v285_v58 = vadd.f32 %v620_v31, %v284_v54  ;;  %v317_v59 = vadd.f32 %v620_v31, %v316_v55  ;;  %v286_v60 = vpop.f32.mrb[7].mxu0  ;;  %v318_v61 = vpop.f32.mrb[7].mxu1 }
 0x115   :  { %355 = vst.msk [vmem:[%s705_s3 + $0x10] sm:$0xff] %vm352_vm2, %v338_v56  ;;  %363 = vst.msk [vmem:[%s705_s3 + $0x50] sm:$0xff] %vm352_vm2, %v346_v57  ;;  %v339_v62 = vmax.f32 %v285_v58, 0.0  ;;  %v347_v63 = vmax.f32 %v317_v59, 0.0 }
 0x117   :  { %356 = vst.msk [vmem:[%s705_s3 + $0x18] sm:$0xff] %vm352_vm2, %v339_v62  ;;  %364 = vst.msk [vmem:[%s705_s3 + $0x58] sm:$0xff] %vm352_vm2, %v347_v63 }
 0x118   :  { %v289_v0 = vpop.f32.mrb[8].mxu0  ;;  %v321_v1 = vpop.f32.mrb[8].mxu1 }
 0x119   :  { %v290_v2 = vadd.f32 %v620_v31, %v289_v0  ;;  %v322_v3 = vadd.f32 %v620_v31, %v321_v1  ;;  %v291_v4 = vpop.f32.mrb[9].mxu0  ;;  %v323_v5 = vpop.f32.mrb[9].mxu1 }
 0x11a   :  { %v292_v6 = vpop.f32.mrb[10].mxu0  ;;  %v324_v7 = vpop.f32.mrb[10].mxu1 }
 0x11b   :  { %v340_v8 = vmax.f32 %v290_v2, 0.0  ;;  %v348_v9 = vmax.f32 %v322_v3, 0.0  ;;  %v293_v10 = vadd.f32 %v620_v31, %v292_v6  ;;  %v325_v11 = vadd.f32 %v620_v31, %v324_v7  ;;  %v294_v12 = vpop.f32.mrb[11].mxu0  ;;  %v326_v13 = vpop.f32.mrb[11].mxu1 }
 0x11d   :  { %357 = vst.msk [vmem:[%s705_s3 + $0x20] sm:$0xff] %vm352_vm2, %v340_v8  ;;  %365 = vst.msk [vmem:[%s705_s3 + $0x60] sm:$0xff] %vm352_vm2, %v348_v9  ;;  %v341_v14 = vmax.f32 %v293_v10, 0.0  ;;  %v349_v15 = vmax.f32 %v325_v11, 0.0 }
 0x11f   :  { %358 = vst.msk [vmem:[%s705_s3 + $0x28] sm:$0xff] %vm352_vm2, %v341_v14  ;;  %366 = vst.msk [vmem:[%s705_s3 + $0x68] sm:$0xff] %vm352_vm2, %v349_v15 }
 0x120   :  { %v297_v16 = vpop.f32.mrb[12].mxu0  ;;  %v329_v17 = vpop.f32.mrb[12].mxu1 }
 0x121   :  { %v298_v18 = vadd.f32 %v620_v31, %v297_v16  ;;  %v330_v19 = vadd.f32 %v620_v31, %v329_v17  ;;  %v299_v20 = vpop.f32.mrb[13].mxu0  ;;  %v331_v21 = vpop.f32.mrb[13].mxu1 }
 0x122   :  { %v300_v22 = vpop.f32.mrb[14].mxu0  ;;  %v332_v23 = vpop.f32.mrb[14].mxu1 }
 0x123   :  { %v342_v24 = vmax.f32 %v298_v18, 0.0  ;;  %v350_v25 = vmax.f32 %v330_v19, 0.0  ;;  %v301_v26 = vadd.f32 %v620_v31, %v300_v22  ;;  %v333_v27 = vadd.f32 %v620_v31, %v332_v23  ;;  %v302_v28 = vpop.f32.mrb[15].mxu0  ;;  %v334_v29 = vpop.f32.mrb[15].mxu1 }
 0x125   :  { %359 = vst.msk [vmem:[%s705_s3 + $0x30] sm:$0xff] %vm352_vm2, %v342_v24  ;;  %367 = vst.msk [vmem:[%s705_s3 + $0x70] sm:$0xff] %vm352_vm2, %v350_v25  ;;  %v343_v30 = vmax.f32 %v301_v26, 0.0  ;;  %v351_v32 = vmax.f32 %v333_v27, 0.0 }
 0x127   :  { %360 = vst.msk [vmem:[%s705_s3 + $0x38] sm:$0xff] %vm352_vm2, %v343_v30  ;;  %368 = vst.msk [vmem:[%s705_s3 + $0x78] sm:$0xff] %vm352_vm2, %v351_v32 }

// kernel: decoder_forward.16
= control target key start
LH: loop header
LB: loop body
LE: loop exit
PB: predicated region body
PF: predicated region fallthrough
CT: control target
= control target key end

     0   :  { %v1683_v0 = vmov 0   ;;  %vm624_vm0 = vcmask 588800   ;;  %vm763_vm1 = vcmask 1043456   ;;  %vm1258_vm2 = vcmask 64512   ;;  %s2548_s1 = inlined_call_operand.vmem [shape: bf16[200,8], index: 1, kind: input, shape index: {}]   ;;  %s2549_s0 = inlined_call_operand.vmem [shape: bf16[728,200], index: 0, kind: input, shape index: {}]   ;;  %s2550_s2 = inlined_call_operand.vmem [shape: f32[1,8], index: 2, kind: input, shape index: {}]   ;;  %s2551_s3 = inlined_call_operand.vmem [shape: f32[728,8], index: 3, kind: output, shape index: {}]  }
   0x1   :  { %767 = vmatprep.subr.bf16.mxu0 %v1683_v0  ;;  %1506 = vmatprep.subr.bf16.mxu1 %v1683_v0  ;;  %v1533_v1 = vld [vmem:[%s2548_s1] sm:$0xff]   ;;  %v1534_v2 = vld [vmem:[%s2548_s1 + $0x8] sm:$0xff]   ;;  %v1535_v3 = vld [vmem:[%s2548_s1 + $0x10] sm:$0xff]  }
   0x2   :  { %768 = vmatpush1.bf16.msra.mxu0 %v1533_v1  ;;  %1519 = vmatpush1.bf16.msra.mxu1 %v1533_v1  ;;  %v1536_v4 = vld [vmem:[%s2548_s1 + $0x18] sm:$0xff]   ;;  %v1548_v5 = vld [vmem:[%s2549_s0 + $0x4] ss:$8 sps:$4 sm:$0xff]   ;;  %v1539_v9 = vld [vmem:[%s2548_s1 + $0x30] sm:$0xff]  }
   0x3   :  { %769 = vmatprep.subr.bf16.mxu0 %v1683_v0  ;;  %1507 = vmatprep.subr.bf16.mxu1 %v1683_v0  ;;  %v1537_v6 = vld [vmem:[%s2548_s1 + $0x20] sm:$0xff]   ;;  %v1551_v7 = vld [vmem:[%s2549_s0 + $0x174] ss:$8 sps:$4 sm:$0xff]   ;;  %v1538_v8 = vld [vmem:[%s2548_s1 + $0x28] sm:$0xff]  }
   0x4   :  { %1460 = vmatprep.mubr.msk.bf16.mxu0 %vm624_vm0, %v1548_v5  ;;  %1483 = vmatprep.mubr.msk.bf16.mxu1 %vm624_vm0, %v1551_v7  ;;  %v1540_v10 = vld [vmem:[%s2548_s1 + $0x38] sm:$0xff]   ;;  %v1541_v11 = vld [vmem:[%s2548_s1 + $0x40] sm:$0xff]   ;;  %v1542_v12 = vld [vmem:[%s2548_s1 + $0x48] sm:$0xff]  }
   0x5   :  { %v1543_v13 = vld [vmem:[%s2548_s1 + $0x50] sm:$0xff]   ;;  %v1544_v14 = vld [vmem:[%s2548_s1 + $0x58] sm:$0xff]   ;;  %v1545_v15 = vld [vmem:[%s2548_s1 + $0x60] ss:$0 sps:$4 sm:$0xff]  }
   0x6   :  { %770 = vmatpush1.bf16.msra.mxu0 %v1534_v2  ;;  %1520 = vmatpush1.bf16.msra.mxu1 %v1534_v2  ;;  %v765_v16 = vsel %vm763_vm1, %v1545_v15, 0  ;;  %v1546_v17 = vld [vmem:[%s2549_s0] ss:$8 sps:$4 sm:$0xff]   ;;  %v1549_v18 = vld [vmem:[%s2549_s0 + $0x170] ss:$8 sps:$4 sm:$0xff]  }
   0x7   :  { %771 = vmatprep.subr.bf16.mxu0 %v1683_v0  ;;  %1508 = vmatprep.subr.bf16.mxu1 %v1683_v0  ;;  %v1552_v19 = vld [vmem:[%s2549_s0 + $0x14] ss:$8 sps:$4 sm:$0xff]   ;;  %v1554_v20 = vld [vmem:[%s2549_s0 + $0x184] ss:$8 sps:$4 sm:$0xff]   ;;  %v1556_v21 = vld [vmem:[%s2549_s0 + $0x10] ss:$8 sps:$4 sm:$0xff]  }
   0x8   :  { %v1557_v22 = vld [vmem:[%s2549_s0 + $0x180] ss:$8 sps:$4 sm:$0xff]   ;;  %v1558_v23 = vld [vmem:[%s2549_s0 + $0x24] ss:$8 sps:$4 sm:$0xff]   ;;  %v1560_v24 = vld [vmem:[%s2549_s0 + $0x194] ss:$8 sps:$4 sm:$0xff]  }
   0x9   :  { %v1562_v25 = vld [vmem:[%s2549_s0 + $0x20] ss:$8 sps:$4 sm:$0xff]   ;;  %v1563_v26 = vld [vmem:[%s2549_s0 + $0x190] ss:$8 sps:$4 sm:$0xff]   ;;  %v1564_v27 = vld [vmem:[%s2549_s0 + $0x34] ss:$8 sps:$4 sm:$0xff]  }
   0xa   :  { %772 = vmatpush1.bf16.msra.mxu0 %v1535_v3  ;;  %1521 = vmatpush1.bf16.msra.mxu1 %v1535_v3  ;;  %v1566_v28 = vld [vmem:[%s2549_s0 + $0x1a4] ss:$8 sps:$4 sm:$0xff]   ;;  %v1568_v29 = vld [vmem:[%s2549_s0 + $0x30] ss:$8 sps:$4 sm:$0xff]   ;;  %v1569_v30 = vld [vmem:[%s2549_s0 + $0x1a0] ss:$8 sps:$4 sm:$0xff]  }
   0xb   :  { %773 = vmatprep.subr.bf16.mxu0 %v1683_v0  ;;  %1509 = vmatprep.subr.bf16.mxu1 %v1683_v0  ;;  %v1570_v31 = vld [vmem:[%s2549_s0 + $0x44] ss:$8 sps:$4 sm:$0xff]   ;;  %v1572_v32 = vld [vmem:[%s2549_s0 + $0x1b4] ss:$8 sps:$4 sm:$0xff]   ;;  %v1574_v33 = vld [vmem:[%s2549_s0 + $0x40] ss:$8 sps:$4 sm:$0xff]  }
   0xc   :  { %v1575_v34 = vld [vmem:[%s2549_s0 + $0x1b0] ss:$8 sps:$4 sm:$0xff]   ;;  %v1576_v35 = vld [vmem:[%s2549_s0 + $0x54] ss:$8 sps:$4 sm:$0xff]   ;;  %v1578_v36 = vld [vmem:[%s2549_s0 + $0x1c4] ss:$8 sps:$4 sm:$0xff]  }
   0xd   :  { %v1580_v37 = vld [vmem:[%s2549_s0 + $0x50] ss:$8 sps:$4 sm:$0xff]   ;;  %v1581_v38 = vld [vmem:[%s2549_s0 + $0x1c0] ss:$8 sps:$4 sm:$0xff]   ;;  %v1582_v39 = vld [vmem:[%s2549_s0 + $0x64] ss:$8 sps:$4 sm:$0xff]  }
   0xe   :  { %774 = vmatpush1.bf16.msra.mxu0 %v1536_v4  ;;  %1522 = vmatpush1.bf16.msra.mxu1 %v1536_v4  ;;  %v1584_v40 = vld [vmem:[%s2549_s0 + $0x1d4] ss:$8 sps:$4 sm:$0xff]   ;;  %v1586_v41 = vld [vmem:[%s2549_s0 + $0x60] ss:$8 sps:$4 sm:$0xff]   ;;  %v1587_v42 = vld [vmem:[%s2549_s0 + $0x1d0] ss:$8 sps:$4 sm:$0xff]  }
   0xf   :  { %775 = vmatprep.subr.bf16.mxu0 %v1683_v0  ;;  %1510 = vmatprep.subr.bf16.mxu1 %v1683_v0  ;;  %v1588_v43 = vld [vmem:[%s2549_s0 + $0x74] ss:$8 sps:$4 sm:$0xff]   ;;  %v1590_v44 = vld [vmem:[%s2549_s0 + $0x1e4] ss:$8 sps:$4 sm:$0xff]   ;;  %v1592_v45 = vld [vmem:[%s2549_s0 + $0x70] ss:$8 sps:$4 sm:$0xff]  }
  0x10   :  { %v1593_v46 = vld [vmem:[%s2549_s0 + $0x1e0] ss:$8 sps:$4 sm:$0xff]   ;;  %v1594_v47 = vld [vmem:[%s2549_s0 + $0x84] ss:$8 sps:$4 sm:$0xff]   ;;  %v1596_v48 = vld [vmem:[%s2549_s0 + $0x1f4] ss:$8 sps:$4 sm:$0xff]  }
  0x11   :  { %v1598_v49 = vld [vmem:[%s2549_s0 + $0x80] ss:$8 sps:$4 sm:$0xff]   ;;  %v1599_v50 = vld [vmem:[%s2549_s0 + $0x1f0] ss:$8 sps:$4 sm:$0xff]   ;;  %v1600_v51 = vld [vmem:[%s2549_s0 + $0x94] ss:$8 sps:$4 sm:$0xff]  }
  0x12   :  { %776 = vmatpush1.bf16.msra.mxu0 %v1537_v6  ;;  %1523 = vmatpush1.bf16.msra.mxu1 %v1537_v6  ;;  %v1602_v52 = vld [vmem:[%s2549_s0 + $0x204] ss:$8 sps:$4 sm:$0xff]   ;;  %v1604_v53 = vld [vmem:[%s2549_s0 + $0x90] ss:$8 sps:$4 sm:$0xff]   ;;  %v1605_v54 = vld [vmem:[%s2549_s0 + $0x200] ss:$8 sps:$4 sm:$0xff]  }
  0x13   :  { %777 = vmatprep.subr.bf16.mxu0 %v1683_v0  ;;  %1511 = vmatprep.subr.bf16.mxu1 %v1683_v0  ;;  %v1606_v55 = vld [vmem:[%s2549_s0 + $0xa4] ss:$8 sps:$4 sm:$0xff]   ;;  %v1608_v56 = vld [vmem:[%s2549_s0 + $0x214] ss:$8 sps:$4 sm:$0xff]   ;;  %v1610_v57 = vld [vmem:[%s2549_s0 + $0xa0] ss:$8 sps:$4 sm:$0xff]  }
  0x14   :  { %v1611_v58 = vld [vmem:[%s2549_s0 + $0x210] ss:$8 sps:$4 sm:$0xff]   ;;  %v1612_v59 = vld [vmem:[%s2549_s0 + $0xb4] ss:$8 sps:$4 sm:$0xff]   ;;  %v1614_v60 = vld [vmem:[%s2549_s0 + $0x224] ss:$8 sps:$4 sm:$0xff]  }
  0x15   :  { %v1616_v61 = vld [vmem:[%s2549_s0 + $0xb0] ss:$8 sps:$4 sm:$0xff]   ;;  %v1617_v62 = vld [vmem:[%s2549_s0 + $0x220] ss:$8 sps:$4 sm:$0xff]   ;;  %v1618_v63 = vld [vmem:[%s2549_s0 + $0xc4] ss:$8 sps:$4 sm:$0xff]  }
  0x16   :  { %778 = vmatpush1.bf16.msra.mxu0 %v1538_v8  ;;  %1524 = vmatpush1.bf16.msra.mxu1 %v1538_v8  ;;  %v1622_v1 = vld [vmem:[%s2549_s0 + $0xc0] ss:$8 sps:$4 sm:$0xff]   ;;  %v1623_v2 = vld [vmem:[%s2549_s0 + $0x230] ss:$8 sps:$4 sm:$0xff]   ;;  %v1624_v3 = vld [vmem:[%s2549_s0 + $0xd4] ss:$8 sps:$4 sm:$0xff]  }
  0x17   :  { %779 = vmatprep.subr.bf16.mxu0 %v1683_v0  ;;  %1512 = vmatprep.subr.bf16.mxu1 %v1683_v0  ;;  %v1626_v4 = vld [vmem:[%s2549_s0 + $0x244] ss:$8 sps:$4 sm:$0xff]   ;;  %v1628_v5 = vld [vmem:[%s2549_s0 + $0xd0] ss:$8 sps:$4 sm:$0xff]   ;;  %v1629_v6 = vld [vmem:[%s2549_s0 + $0x240] ss:$8 sps:$4 sm:$0xff]  }
  0x18   :  { %v1630_v7 = vld [vmem:[%s2549_s0 + $0xe4] ss:$8 sps:$4 sm:$0xff]   ;;  %v1632_v8 = vld [vmem:[%s2549_s0 + $0x254] ss:$8 sps:$4 sm:$0xff]  }
  0x19   :  { %v1642_v15 = vld [vmem:[%s2549_s0 + $0x104] ss:$8 sps:$4 sm:$0xff]  }
  0x1a   :  { %780 = vmatpush1.bf16.msra.mxu0 %v1539_v9  ;;  %1525 = vmatpush1.bf16.msra.mxu1 %v1539_v9  ;;  %v1634_v9 = vld [vmem:[%s2549_s0 + $0xe0] ss:$8 sps:$4 sm:$0xff]  }
  0x1b   :  { %781 = vmatprep.subr.bf16.mxu0 %v1683_v0  ;;  %1513 = vmatprep.subr.bf16.mxu1 %v1683_v0 }
  0x1e   :  { %782 = vmatpush1.bf16.msra.mxu0 %v1540_v10  ;;  %1526 = vmatpush1.bf16.msra.mxu1 %v1540_v10  ;;  %v1635_v10 = vld [vmem:[%s2549_s0 + $0x250] ss:$8 sps:$4 sm:$0xff]  }
  0x1f   :  { %783 = vmatprep.subr.bf16.mxu0 %v1683_v0  ;;  %1514 = vmatprep.subr.bf16.mxu1 %v1683_v0 }
  0x22   :  { %784 = vmatpush1.bf16.msra.mxu0 %v1541_v11  ;;  %1527 = vmatpush1.bf16.msra.mxu1 %v1541_v11  ;;  %v1636_v11 = vld [vmem:[%s2549_s0 + $0xf4] ss:$8 sps:$4 sm:$0xff]  }
  0x23   :  { %785 = vmatprep.subr.bf16.mxu0 %v1683_v0  ;;  %1515 = vmatprep.subr.bf16.mxu1 %v1683_v0 }
  0x26   :  { %786 = vmatpush1.bf16.msra.mxu0 %v1542_v12  ;;  %1528 = vmatpush1.bf16.msra.mxu1 %v1542_v12  ;;  %v1638_v12 = vld [vmem:[%s2549_s0 + $0x264] ss:$8 sps:$4 sm:$0xff]  }
  0x27   :  { %787 = vmatprep.subr.bf16.mxu0 %v1683_v0  ;;  %1516 = vmatprep.subr.bf16.mxu1 %v1683_v0 }
  0x2a   :  { %788 = vmatpush1.bf16.msra.mxu0 %v1543_v13  ;;  %1529 = vmatpush1.bf16.msra.mxu1 %v1543_v13  ;;  %v1640_v13 = vld [vmem:[%s2549_s0 + $0xf0] ss:$8 sps:$4 sm:$0xff]  }
  0x2b   :  { %789 = vmatprep.subr.bf16.mxu0 %v1683_v0  ;;  %1517 = vmatprep.subr.bf16.mxu1 %v1683_v0 }
  0x2e   :  { %790 = vmatpush1.bf16.msra.mxu0 %v1544_v14  ;;  %1530 = vmatpush1.bf16.msra.mxu1 %v1544_v14  ;;  %v1641_v14 = vld [vmem:[%s2549_s0 + $0x260] ss:$8 sps:$4 sm:$0xff]  }
  0x2f   :  { %791 = vmatprep.subr.bf16.mxu0 %v1683_v0  ;;  %1518 = vmatprep.subr.bf16.mxu1 %v1683_v0  ;;  %v1620_v0 = vld [vmem:[%s2549_s0 + $0x234] ss:$8 sps:$4 sm:$0xff]  }
  0x32   :  { %792 = vmatpush1.bf16.msra.mxu0 %v765_v16  ;;  %1531 = vmatpush1.bf16.msra.mxu1 %v765_v16  ;;  %v1644_v16 = vld [vmem:[%s2549_s0 + $0x274] ss:$8 sps:$4 sm:$0xff]  }
  0x35   :  { %800 = vmatmul.mubr.bf16.vlgmr.msra.gmra.mrb[0].mxu0 %v1546_v17  ;;  %984 = vmatmul.mubr.bf16.vlgmr.msra.gmra.mrb[0].mxu1 %v1549_v18  ;;  %v1646_v17 = vld [vmem:[%s2549_s0 + $0x100] ss:$8 sps:$4 sm:$0xff]   ;;  %v1647_v18 = vld [vmem:[%s2549_s0 + $0x270] ss:$8 sps:$4 sm:$0xff]  }
  0x36   :  { %1461 = vmatprep.mubr.msk.bf16.mxu0 %vm624_vm0, %v1552_v19  ;;  %1484 = vmatprep.mubr.msk.bf16.mxu1 %vm624_vm0, %v1554_v20  ;;  %v1648_v19 = vld [vmem:[%s2549_s0 + $0x114] ss:$8 sps:$4 sm:$0xff]   ;;  %v1650_v20 = vld [vmem:[%s2549_s0 + $0x284] ss:$8 sps:$4 sm:$0xff]  }
  0x3d   :  { %808 = vmatmul.mubr.bf16.gmra.mrb[4].mxu0 %v1556_v21  ;;  %992 = vmatmul.mubr.bf16.gmra.mrb[4].mxu1 %v1557_v22  ;;  %v1652_v21 = vld [vmem:[%s2549_s0 + $0x110] ss:$8 sps:$4 sm:$0xff]   ;;  %v1653_v22 = vld [vmem:[%s2549_s0 + $0x280] ss:$8 sps:$4 sm:$0xff]  }
  0x3e   :  { %1462 = vmatprep.mubr.msk.bf16.mxu0 %vm624_vm0, %v1558_v23  ;;  %1485 = vmatprep.mubr.msk.bf16.mxu1 %vm624_vm0, %v1560_v24  ;;  %v1654_v23 = vld [vmem:[%s2549_s0 + $0x124] ss:$8 sps:$4 sm:$0xff]   ;;  %v1656_v24 = vld [vmem:[%s2549_s0 + $0x294] ss:$8 sps:$4 sm:$0xff]  }
  0x45   :  { %816 = vmatmul.mubr.bf16.gmra.mrb[8].mxu0 %v1562_v25  ;;  %1000 = vmatmul.mubr.bf16.gmra.mrb[8].mxu1 %v1563_v26  ;;  %v1658_v25 = vld [vmem:[%s2549_s0 + $0x120] ss:$8 sps:$4 sm:$0xff]   ;;  %v1659_v26 = vld [vmem:[%s2549_s0 + $0x290] ss:$8 sps:$4 sm:$0xff]  }
  0x46   :  { %1463 = vmatprep.mubr.msk.bf16.mxu0 %vm624_vm0, %v1564_v27  ;;  %1486 = vmatprep.mubr.msk.bf16.mxu1 %vm624_vm0, %v1566_v28  ;;  %v1660_v27 = vld [vmem:[%s2549_s0 + $0x134] ss:$8 sps:$4 sm:$0xff]   ;;  %v1662_v28 = vld [vmem:[%s2549_s0 + $0x2a4] ss:$8 sps:$4 sm:$0xff]  }
  0x4d   :  { %824 = vmatmul.mubr.bf16.gmra.mrb[12].mxu0 %v1568_v29  ;;  %1008 = vmatmul.mubr.bf16.gmra.mrb[12].mxu1 %v1569_v30  ;;  %v1664_v29 = vld [vmem:[%s2549_s0 + $0x130] ss:$8 sps:$4 sm:$0xff]   ;;  %v1665_v30 = vld [vmem:[%s2549_s0 + $0x2a0] ss:$8 sps:$4 sm:$0xff]  }
  0x4e   :  { %1464 = vmatprep.mubr.msk.bf16.mxu0 %vm624_vm0, %v1570_v31  ;;  %1487 = vmatprep.mubr.msk.bf16.mxu1 %vm624_vm0, %v1572_v32  ;;  %v1666_v31 = vld [vmem:[%s2549_s0 + $0x144] ss:$8 sps:$4 sm:$0xff]   ;;  %v1668_v32 = vld [vmem:[%s2549_s0 + $0x2b4] ss:$8 sps:$4 sm:$0xff]  }
  0x55   :  { %832 = vmatmul.mubr.bf16.gmra.mrb[16].mxu0 %v1574_v33  ;;  %1016 = vmatmul.mubr.bf16.gmra.mrb[16].mxu1 %v1575_v34  ;;  %v1670_v33 = vld [vmem:[%s2549_s0 + $0x140] ss:$8 sps:$4 sm:$0xff]   ;;  %v1671_v34 = vld [vmem:[%s2549_s0 + $0x2b0] ss:$8 sps:$4 sm:$0xff]  }
  0x56   :  { %1465 = vmatprep.mubr.msk.bf16.mxu0 %vm624_vm0, %v1576_v35  ;;  %1488 = vmatprep.mubr.msk.bf16.mxu1 %vm624_vm0, %v1578_v36  ;;  %v1672_v35 = vld [vmem:[%s2549_s0 + $0x154] ss:$8 sps:$4 sm:$0xff]   ;;  %v1674_v36 = vld [vmem:[%s2549_s0 + $0x2c4] ss:$8 sps:$4 sm:$0xff]  }
  0x5d   :  { %840 = vmatmul.mubr.bf16.gmra.mrb[20].mxu0 %v1580_v37  ;;  %1024 = vmatmul.mubr.bf16.gmra.mrb[20].mxu1 %v1581_v38  ;;  %v105_v37 = vld [vmem:[%s2549_s0 + $0x2d0] sm:$0xff] }
  0x5e   :  { %1466 = vmatprep.mubr.msk.bf16.mxu0 %vm624_vm0, %v1582_v39  ;;  %1489 = vmatprep.mubr.msk.bf16.mxu1 %vm624_vm0, %v1584_v40  ;;  %v1676_v38 = vld [vmem:[%s2549_s0 + $0x150] ss:$8 sps:$4 sm:$0xff]   ;;  %v1677_v39 = vld [vmem:[%s2549_s0 + $0x2c0] ss:$8 sps:$4 sm:$0xff]   ;;  %v1678_v40 = vld [vmem:[%s2549_s0 + $0x164] ss:$8 sps:$4 sm:$0xff]  }
  0x65   :  { %848 = vmatmul.mubr.bf16.gmra.mrb[24].mxu0 %v1586_v41  ;;  %1032 = vmatmul.mubr.bf16.gmra.mrb[24].mxu1 %v1587_v42  ;;  %v1446_v41 = vcombine.high %v105_v37, %v105_v37  ;;  %v1681_v42 = vld [vmem:[%s2549_s0 + $0x160] ss:$8 sps:$4 sm:$0xff]  }
  0x66   :  { %1467 = vmatprep.mubr.msk.bf16.mxu0 %vm624_vm0, %v1588_v43  ;;  %1490 = vmatprep.mubr.msk.bf16.mxu1 %vm624_vm0, %v1590_v44  ;;  %v1445_v43 = vcombine.low %v105_v37, %v105_v37  ;;  %v2091_v44 = vld [vmem:[%s2550_s2] ss:$0 sm:$0xff] }
  0x6d   :  { %856 = vmatmul.mubr.bf16.gmra.mrb[28].mxu0 %v1592_v45  ;;  %1040 = vmatmul.mubr.bf16.gmra.mrb[28].mxu1 %v1593_v46 }
  0x6e   :  { %1468 = vmatprep.mubr.msk.bf16.mxu0 %vm624_vm0, %v1594_v47  ;;  %1491 = vmatprep.mubr.msk.bf16.mxu1 %vm624_vm0, %v1596_v48 }
  0x75   :  { %864 = vmatmul.mubr.bf16.gmra.mrb[32].mxu0 %v1598_v49  ;;  %1048 = vmatmul.mubr.bf16.gmra.mrb[32].mxu1 %v1599_v50 }
  0x76   :  { %1469 = vmatprep.mubr.msk.bf16.mxu0 %vm624_vm0, %v1600_v51  ;;  %1492 = vmatprep.mubr.msk.bf16.mxu1 %vm624_vm0, %v1602_v52 }
  0x7d   :  { %872 = vmatmul.mubr.bf16.gmra.mrb[36].mxu0 %v1604_v53  ;;  %1056 = vmatmul.mubr.bf16.gmra.mrb[36].mxu1 %v1605_v54 }
  0x7e   :  { %1470 = vmatprep.mubr.msk.bf16.mxu0 %vm624_vm0, %v1606_v55  ;;  %1493 = vmatprep.mubr.msk.bf16.mxu1 %vm624_vm0, %v1608_v56 }
  0x85   :  { %880 = vmatmul.mubr.bf16.gmra.mrb[40].mxu0 %v1610_v57  ;;  %1064 = vmatmul.mubr.bf16.gmra.mrb[40].mxu1 %v1611_v58 }
  0x86   :  { %1471 = vmatprep.mubr.msk.bf16.mxu0 %vm624_vm0, %v1612_v59  ;;  %1494 = vmatprep.mubr.msk.bf16.mxu1 %vm624_vm0, %v1614_v60 }
  0x8d   :  { %888 = vmatmul.mubr.bf16.gmra.mrb[44].mxu0 %v1616_v61  ;;  %1072 = vmatmul.mubr.bf16.gmra.mrb[44].mxu1 %v1617_v62 }
  0x8e   :  { %1472 = vmatprep.mubr.msk.bf16.mxu0 %vm624_vm0, %v1618_v63  ;;  %1495 = vmatprep.mubr.msk.bf16.mxu1 %vm624_vm0, %v1620_v0 }
  0x95   :  { %896 = vmatmul.mubr.bf16.gmra.mrb[48].mxu0 %v1622_v1  ;;  %1080 = vmatmul.mubr.bf16.gmra.mrb[48].mxu1 %v1623_v2 }
  0x96   :  { %1473 = vmatprep.mubr.msk.bf16.mxu0 %vm624_vm0, %v1624_v3  ;;  %1496 = vmatprep.mubr.msk.bf16.mxu1 %vm624_vm0, %v1626_v4 }
  0x9d   :  { %904 = vmatmul.mubr.bf16.gmra.mrb[52].mxu0 %v1628_v5  ;;  %1088 = vmatmul.mubr.bf16.gmra.mrb[52].mxu1 %v1629_v6 }
  0x9e   :  { %1474 = vmatprep.mubr.msk.bf16.mxu0 %vm624_vm0, %v1630_v7  ;;  %1497 = vmatprep.mubr.msk.bf16.mxu1 %vm624_vm0, %v1632_v8 }
  0xa5   :  { %912 = vmatmul.mubr.bf16.gmra.mrb[56].mxu0 %v1634_v9  ;;  %1096 = vmatmul.mubr.bf16.gmra.mrb[56].mxu1 %v1635_v10 }
  0xa6   :  { %1475 = vmatprep.mubr.msk.bf16.mxu0 %vm624_vm0, %v1636_v11  ;;  %1498 = vmatprep.mubr.msk.bf16.mxu1 %vm624_vm0, %v1638_v12 }
  0xad   :  { %920 = vmatmul.mubr.bf16.gmra.mrb[60].mxu0 %v1640_v13  ;;  %1104 = vmatmul.mubr.bf16.gmra.mrb[60].mxu1 %v1641_v14 }
  0xae   :  { %1476 = vmatprep.mubr.msk.bf16.mxu0 %vm624_vm0, %v1642_v15  ;;  %1499 = vmatprep.mubr.msk.bf16.mxu1 %vm624_vm0, %v1644_v16 }
  0xb5   :  { %928 = vmatmul.mubr.bf16.gmra.mrb[64].mxu0 %v1646_v17  ;;  %1112 = vmatmul.mubr.bf16.gmra.mrb[64].mxu1 %v1647_v18 }
  0xb6   :  { %1477 = vmatprep.mubr.msk.bf16.mxu0 %vm624_vm0, %v1648_v19  ;;  %1500 = vmatprep.mubr.msk.bf16.mxu1 %vm624_vm0, %v1650_v20 }
  0xbd   :  { %936 = vmatmul.mubr.bf16.gmra.mrb[68].mxu0 %v1652_v21  ;;  %1120 = vmatmul.mubr.bf16.gmra.mrb[68].mxu1 %v1653_v22 }
  0xbe   :  { %1478 = vmatprep.mubr.msk.bf16.mxu0 %vm624_vm0, %v1654_v23  ;;  %1501 = vmatprep.mubr.msk.bf16.mxu1 %vm624_vm0, %v1656_v24 }
  0xc5   :  { %944 = vmatmul.mubr.bf16.gmra.mrb[72].mxu0 %v1658_v25  ;;  %1128 = vmatmul.mubr.bf16.gmra.mrb[72].mxu1 %v1659_v26 }
  0xc6   :  { %1479 = vmatprep.mubr.msk.bf16.mxu0 %vm624_vm0, %v1660_v27  ;;  %1502 = vmatprep.mubr.msk.bf16.mxu1 %vm624_vm0, %v1662_v28 }
  0xcd   :  { %952 = vmatmul.mubr.bf16.gmra.mrb[76].mxu0 %v1664_v29  ;;  %1136 = vmatmul.mubr.bf16.gmra.mrb[76].mxu1 %v1665_v30 }
  0xce   :  { %1480 = vmatprep.mubr.msk.bf16.mxu0 %vm624_vm0, %v1666_v31  ;;  %1503 = vmatprep.mubr.msk.bf16.mxu1 %vm624_vm0, %v1668_v32 }
  0xd5   :  { %960 = vmatmul.mubr.bf16.gmra.mrb[80].mxu0 %v1670_v33  ;;  %1144 = vmatmul.mubr.bf16.gmra.mrb[80].mxu1 %v1671_v34 }
  0xd6   :  { %1481 = vmatprep.mubr.msk.bf16.mxu0 %vm624_vm0, %v1672_v35  ;;  %1504 = vmatprep.mubr.msk.bf16.mxu1 %vm624_vm0, %v1674_v36 }
  0xdd   :  { %968 = vmatmul.mubr.bf16.gmra.mrb[84].mxu0 %v1676_v38  ;;  %1152 = vmatmul.mubr.bf16.gmra.mrb[84].mxu1 %v1677_v39 }
  0xde   :  { %1482 = vmatprep.mubr.msk.bf16.mxu0 %vm624_vm0, %v1678_v40  ;;  %1505 = vmatprep.mubr.msk.bf16.mxu1 %vm624_vm0, %v1446_v41 }
  0xe5   :  { %976 = vmatmul.mubr.bf16.gmra.mrb[88].mxu0 %v1681_v42  ;;  %1160 = vmatmul.mubr.bf16.gmra.mrb[88].mxu1 %v1445_v43 }
 0x108   :  { %v801_v45 = vpop.f32.mrb[0].mxu0  ;;  %v985_v46 = vpop.f32.mrb[0].mxu1 }
 0x109   :  { %v802_v47 = vadd.f32 %v2091_v44, %v801_v45  ;;  %v986_v48 = vadd.f32 %v2091_v44, %v985_v46  ;;  %v803_v49 = vpop.f32.mrb[1].mxu0  ;;  %v987_v50 = vpop.f32.mrb[1].mxu1 }
 0x10a   :  { %v804_v51 = vpop.f32.mrb[2].mxu0  ;;  %v988_v52 = vpop.f32.mrb[2].mxu1 }
 0x10b   :  { %v1167_v53 = vmax.f32 %v802_v47, 0.0  ;;  %v1213_v54 = vmax.f32 %v986_v48, 0.0  ;;  %v805_v55 = vadd.f32 %v2091_v44, %v804_v51  ;;  %v989_v56 = vadd.f32 %v2091_v44, %v988_v52  ;;  %v806_v57 = vpop.f32.mrb[3].mxu0  ;;  %v990_v58 = vpop.f32.mrb[3].mxu1 }
 0x10d   :  { %1259 = vst.msk [vmem:[%s2551_s3] sm:$0xff] %vm1258_vm2, %v1167_v53  ;;  %1305 = vst.msk [vmem:[%s2551_s3 + $0x170] sm:$0xff] %vm1258_vm2, %v1213_v54  ;;  %v1168_v59 = vmax.f32 %v805_v55, 0.0  ;;  %v1214_v60 = vmax.f32 %v989_v56, 0.0 }
 0x10f   :  { %1260 = vst.msk [vmem:[%s2551_s3 + $0x8] sm:$0xff] %vm1258_vm2, %v1168_v59  ;;  %1306 = vst.msk [vmem:[%s2551_s3 + $0x178] sm:$0xff] %vm1258_vm2, %v1214_v60 }
 0x110   :  { %v809_v61 = vpop.f32.mrb[4].mxu0  ;;  %v993_v62 = vpop.f32.mrb[4].mxu1 }
 0x111   :  { %v810_v63 = vadd.f32 %v2091_v44, %v809_v61  ;;  %v994_v0 = vadd.f32 %v2091_v44, %v993_v62  ;;  %v811_v1 = vpop.f32.mrb[5].mxu0  ;;  %v995_v2 = vpop.f32.mrb[5].mxu1 }
 0x112   :  { %v812_v3 = vpop.f32.mrb[6].mxu0  ;;  %v996_v4 = vpop.f32.mrb[6].mxu1 }
 0x113   :  { %v1169_v5 = vmax.f32 %v810_v63, 0.0  ;;  %v1215_v6 = vmax.f32 %v994_v0, 0.0  ;;  %v813_v7 = vadd.f32 %v2091_v44, %v812_v3  ;;  %v997_v8 = vadd.f32 %v2091_v44, %v996_v4  ;;  %v814_v9 = vpop.f32.mrb[7].mxu0  ;;  %v998_v10 = vpop.f32.mrb[7].mxu1 }
 0x115   :  { %1261 = vst.msk [vmem:[%s2551_s3 + $0x10] sm:$0xff] %vm1258_vm2, %v1169_v5  ;;  %1307 = vst.msk [vmem:[%s2551_s3 + $0x180] sm:$0xff] %vm1258_vm2, %v1215_v6  ;;  %v1170_v11 = vmax.f32 %v813_v7, 0.0  ;;  %v1216_v12 = vmax.f32 %v997_v8, 0.0 }
 0x117   :  { %1262 = vst.msk [vmem:[%s2551_s3 + $0x18] sm:$0xff] %vm1258_vm2, %v1170_v11  ;;  %1308 = vst.msk [vmem:[%s2551_s3 + $0x188] sm:$0xff] %vm1258_vm2, %v1216_v12 }
 0x118   :  { %v817_v13 = vpop.f32.mrb[8].mxu0  ;;  %v1001_v14 = vpop.f32.mrb[8].mxu1 }
 0x119   :  { %v818_v15 = vadd.f32 %v2091_v44, %v817_v13  ;;  %v1002_v16 = vadd.f32 %v2091_v44, %v1001_v14  ;;  %v819_v17 = vpop.f32.mrb[9].mxu0  ;;  %v1003_v18 = vpop.f32.mrb[9].mxu1 }
 0x11a   :  { %v820_v19 = vpop.f32.mrb[10].mxu0  ;;  %v1004_v20 = vpop.f32.mrb[10].mxu1 }
 0x11b   :  { %v1171_v21 = vmax.f32 %v818_v15, 0.0  ;;  %v1217_v22 = vmax.f32 %v1002_v16, 0.0  ;;  %v821_v23 = vadd.f32 %v2091_v44, %v820_v19  ;;  %v1005_v24 = vadd.f32 %v2091_v44, %v1004_v20  ;;  %v822_v25 = vpop.f32.mrb[11].mxu0  ;;  %v1006_v26 = vpop.f32.mrb[11].mxu1 }
 0x11d   :  { %1263 = vst.msk [vmem:[%s2551_s3 + $0x20] sm:$0xff] %vm1258_vm2, %v1171_v21  ;;  %1309 = vst.msk [vmem:[%s2551_s3 + $0x190] sm:$0xff] %vm1258_vm2, %v1217_v22  ;;  %v1172_v27 = vmax.f32 %v821_v23, 0.0  ;;  %v1218_v28 = vmax.f32 %v1005_v24, 0.0 }
 0x11f   :  { %1264 = vst.msk [vmem:[%s2551_s3 + $0x28] sm:$0xff] %vm1258_vm2, %v1172_v27  ;;  %1310 = vst.msk [vmem:[%s2551_s3 + $0x198] sm:$0xff] %vm1258_vm2, %v1218_v28 }
 0x120   :  { %v825_v29 = vpop.f32.mrb[12].mxu0  ;;  %v1009_v30 = vpop.f32.mrb[12].mxu1 }
 0x121   :  { %v826_v31 = vadd.f32 %v2091_v44, %v825_v29  ;;  %v1010_v32 = vadd.f32 %v2091_v44, %v1009_v30  ;;  %v827_v33 = vpop.f32.mrb[13].mxu0  ;;  %v1011_v34 = vpop.f32.mrb[13].mxu1 }
 0x122   :  { %v828_v35 = vpop.f32.mrb[14].mxu0  ;;  %v1012_v36 = vpop.f32.mrb[14].mxu1 }
 0x123   :  { %v1173_v37 = vmax.f32 %v826_v31, 0.0  ;;  %v1219_v38 = vmax.f32 %v1010_v32, 0.0  ;;  %v829_v39 = vadd.f32 %v2091_v44, %v828_v35  ;;  %v1013_v40 = vadd.f32 %v2091_v44, %v1012_v36  ;;  %v830_v41 = vpop.f32.mrb[15].mxu0  ;;  %v1014_v42 = vpop.f32.mrb[15].mxu1 }
 0x125   :  { %1265 = vst.msk [vmem:[%s2551_s3 + $0x30] sm:$0xff] %vm1258_vm2, %v1173_v37  ;;  %1311 = vst.msk [vmem:[%s2551_s3 + $0x1a0] sm:$0xff] %vm1258_vm2, %v1219_v38  ;;  %v1174_v43 = vmax.f32 %v829_v39, 0.0  ;;  %v1220_v45 = vmax.f32 %v1013_v40, 0.0 }
 0x127   :  { %1266 = vst.msk [vmem:[%s2551_s3 + $0x38] sm:$0xff] %vm1258_vm2, %v1174_v43  ;;  %1312 = vst.msk [vmem:[%s2551_s3 + $0x1a8] sm:$0xff] %vm1258_vm2, %v1220_v45 }
 0x128   :  { %v833_v46 = vpop.f32.mrb[16].mxu0  ;;  %v1017_v47 = vpop.f32.mrb[16].mxu1 }
 0x129   :  { %v834_v48 = vadd.f32 %v2091_v44, %v833_v46  ;;  %v1018_v49 = vadd.f32 %v2091_v44, %v1017_v47  ;;  %v835_v50 = vpop.f32.mrb[17].mxu0  ;;  %v1019_v51 = vpop.f32.mrb[17].mxu1 }
 0x12a   :  { %v836_v52 = vpop.f32.mrb[18].mxu0  ;;  %v1020_v53 = vpop.f32.mrb[18].mxu1 }
 0x12b   :  { %v1175_v54 = vmax.f32 %v834_v48, 0.0  ;;  %v1221_v55 = vmax.f32 %v1018_v49, 0.0  ;;  %v837_v56 = vadd.f32 %v2091_v44, %v836_v52  ;;  %v1021_v57 = vadd.f32 %v2091_v44, %v1020_v53  ;;  %v838_v58 = vpop.f32.mrb[19].mxu0  ;;  %v1022_v59 = vpop.f32.mrb[19].mxu1 }
 0x12d   :  { %1267 = vst.msk [vmem:[%s2551_s3 + $0x40] sm:$0xff] %vm1258_vm2, %v1175_v54  ;;  %1313 = vst.msk [vmem:[%s2551_s3 + $0x1b0] sm:$0xff] %vm1258_vm2, %v1221_v55  ;;  %v1176_v60 = vmax.f32 %v837_v56, 0.0  ;;  %v1222_v61 = vmax.f32 %v1021_v57, 0.0 }
 0x12f   :  { %1268 = vst.msk [vmem:[%s2551_s3 + $0x48] sm:$0xff] %vm1258_vm2, %v1176_v60  ;;  %1314 = vst.msk [vmem:[%s2551_s3 + $0x1b8] sm:$0xff] %vm1258_vm2, %v1222_v61 }
 0x130   :  { %v841_v62 = vpop.f32.mrb[20].mxu0  ;;  %v1025_v63 = vpop.f32.mrb[20].mxu1 }
 0x131   :  { %v842_v0 = vadd.f32 %v2091_v44, %v841_v62  ;;  %v1026_v1 = vadd.f32 %v2091_v44, %v1025_v63  ;;  %v843_v2 = vpop.f32.mrb[21].mxu0  ;;  %v1027_v3 = vpop.f32.mrb[21].mxu1 }
 0x132   :  { %v844_v4 = vpop.f32.mrb[22].mxu0  ;;  %v1028_v5 = vpop.f32.mrb[22].mxu1 }
 0x133   :  { %v1177_v6 = vmax.f32 %v842_v0, 0.0  ;;  %v1223_v7 = vmax.f32 %v1026_v1, 0.0  ;;  %v845_v8 = vadd.f32 %v2091_v44, %v844_v4  ;;  %v1029_v9 = vadd.f32 %v2091_v44, %v1028_v5  ;;  %v846_v10 = vpop.f32.mrb[23].mxu0  ;;  %v1030_v11 = vpop.f32.mrb[23].mxu1 }
 0x135   :  { %1269 = vst.msk [vmem:[%s2551_s3 + $0x50] sm:$0xff] %vm1258_vm2, %v1177_v6  ;;  %1315 = vst.msk [vmem:[%s2551_s3 + $0x1c0] sm:$0xff] %vm1258_vm2, %v1223_v7  ;;  %v1178_v12 = vmax.f32 %v845_v8, 0.0  ;;  %v1224_v13 = vmax.f32 %v1029_v9, 0.0 }
 0x137   :  { %1270 = vst.msk [vmem:[%s2551_s3 + $0x58] sm:$0xff] %vm1258_vm2, %v1178_v12  ;;  %1316 = vst.msk [vmem:[%s2551_s3 + $0x1c8] sm:$0xff] %vm1258_vm2, %v1224_v13 }
 0x138   :  { %v849_v14 = vpop.f32.mrb[24].mxu0  ;;  %v1033_v15 = vpop.f32.mrb[24].mxu1 }
 0x139   :  { %v850_v16 = vadd.f32 %v2091_v44, %v849_v14  ;;  %v1034_v17 = vadd.f32 %v2091_v44, %v1033_v15  ;;  %v851_v18 = vpop.f32.mrb[25].mxu0  ;;  %v1035_v19 = vpop.f32.mrb[25].mxu1 }
 0x13a   :  { %v852_v20 = vpop.f32.mrb[26].mxu0  ;;  %v1036_v21 = vpop.f32.mrb[26].mxu1 }
 0x13b   :  { %v1179_v22 = vmax.f32 %v850_v16, 0.0  ;;  %v1225_v23 = vmax.f32 %v1034_v17, 0.0  ;;  %v853_v24 = vadd.f32 %v2091_v44, %v852_v20  ;;  %v1037_v25 = vadd.f32 %v2091_v44, %v1036_v21  ;;  %v854_v26 = vpop.f32.mrb[27].mxu0  ;;  %v1038_v27 = vpop.f32.mrb[27].mxu1 }
 0x13d   :  { %1271 = vst.msk [vmem:[%s2551_s3 + $0x60] sm:$0xff] %vm1258_vm2, %v1179_v22  ;;  %1317 = vst.msk [vmem:[%s2551_s3 + $0x1d0] sm:$0xff] %vm1258_vm2, %v1225_v23  ;;  %v1180_v28 = vmax.f32 %v853_v24, 0.0  ;;  %v1226_v29 = vmax.f32 %v1037_v25, 0.0 }
 0x13f   :  { %1272 = vst.msk [vmem:[%s2551_s3 + $0x68] sm:$0xff] %vm1258_vm2, %v1180_v28  ;;  %1318 = vst.msk [vmem:[%s2551_s3 + $0x1d8] sm:$0xff] %vm1258_vm2, %v1226_v29 }
 0x140   :  { %v857_v30 = vpop.f32.mrb[28].mxu0  ;;  %v1041_v31 = vpop.f32.mrb[28].mxu1 }
 0x141   :  { %v858_v32 = vadd.f32 %v2091_v44, %v857_v30  ;;  %v1042_v33 = vadd.f32 %v2091_v44, %v1041_v31  ;;  %v859_v34 = vpop.f32.mrb[29].mxu0  ;;  %v1043_v35 = vpop.f32.mrb[29].mxu1 }
 0x142   :  { %v860_v36 = vpop.f32.mrb[30].mxu0  ;;  %v1044_v37 = vpop.f32.mrb[30].mxu1 }
 0x143   :  { %v1181_v38 = vmax.f32 %v858_v32, 0.0  ;;  %v1227_v39 = vmax.f32 %v1042_v33, 0.0  ;;  %v861_v40 = vadd.f32 %v2091_v44, %v860_v36  ;;  %v1045_v41 = vadd.f32 %v2091_v44, %v1044_v37  ;;  %v862_v42 = vpop.f32.mrb[31].mxu0  ;;  %v1046_v43 = vpop.f32.mrb[31].mxu1 }
 0x145   :  { %1273 = vst.msk [vmem:[%s2551_s3 + $0x70] sm:$0xff] %vm1258_vm2, %v1181_v38  ;;  %1319 = vst.msk [vmem:[%s2551_s3 + $0x1e0] sm:$0xff] %vm1258_vm2, %v1227_v39  ;;  %v1182_v45 = vmax.f32 %v861_v40, 0.0  ;;  %v1228_v46 = vmax.f32 %v1045_v41, 0.0 }
 0x147   :  { %1274 = vst.msk [vmem:[%s2551_s3 + $0x78] sm:$0xff] %vm1258_vm2, %v1182_v45  ;;  %1320 = vst.msk [vmem:[%s2551_s3 + $0x1e8] sm:$0xff] %vm1258_vm2, %v1228_v46 }
 0x148   :  { %v865_v47 = vpop.f32.mrb[32].mxu0  ;;  %v1049_v48 = vpop.f32.mrb[32].mxu1 }
 0x149   :  { %v866_v49 = vadd.f32 %v2091_v44, %v865_v47  ;;  %v1050_v50 = vadd.f32 %v2091_v44, %v1049_v48  ;;  %v867_v51 = vpop.f32.mrb[33].mxu0  ;;  %v1051_v52 = vpop.f32.mrb[33].mxu1 }
 0x14a   :  { %v868_v53 = vpop.f32.mrb[34].mxu0  ;;  %v1052_v54 = vpop.f32.mrb[34].mxu1 }
 0x14b   :  { %v1183_v55 = vmax.f32 %v866_v49, 0.0  ;;  %v1229_v56 = vmax.f32 %v1050_v50, 0.0  ;;  %v869_v57 = vadd.f32 %v2091_v44, %v868_v53  ;;  %v1053_v58 = vadd.f32 %v2091_v44, %v1052_v54  ;;  %v870_v59 = vpop.f32.mrb[35].mxu0  ;;  %v1054_v60 = vpop.f32.mrb[35].mxu1 }
 0x14d   :  { %1275 = vst.msk [vmem:[%s2551_s3 + $0x80] sm:$0xff] %vm1258_vm2, %v1183_v55  ;;  %1321 = vst.msk [vmem:[%s2551_s3 + $0x1f0] sm:$0xff] %vm1258_vm2, %v1229_v56  ;;  %v1184_v61 = vmax.f32 %v869_v57, 0.0  ;;  %v1230_v62 = vmax.f32 %v1053_v58, 0.0 }
 0x14f   :  { %1276 = vst.msk [vmem:[%s2551_s3 + $0x88] sm:$0xff] %vm1258_vm2, %v1184_v61  ;;  %1322 = vst.msk [vmem:[%s2551_s3 + $0x1f8] sm:$0xff] %vm1258_vm2, %v1230_v62 }
 0x150   :  { %v873_v63 = vpop.f32.mrb[36].mxu0  ;;  %v1057_v0 = vpop.f32.mrb[36].mxu1 }
 0x151   :  { %v874_v1 = vadd.f32 %v2091_v44, %v873_v63  ;;  %v1058_v2 = vadd.f32 %v2091_v44, %v1057_v0  ;;  %v875_v3 = vpop.f32.mrb[37].mxu0  ;;  %v1059_v4 = vpop.f32.mrb[37].mxu1 }
 0x152   :  { %v876_v5 = vpop.f32.mrb[38].mxu0  ;;  %v1060_v6 = vpop.f32.mrb[38].mxu1 }
 0x153   :  { %v1185_v7 = vmax.f32 %v874_v1, 0.0  ;;  %v1231_v8 = vmax.f32 %v1058_v2, 0.0  ;;  %v877_v9 = vadd.f32 %v2091_v44, %v876_v5  ;;  %v1061_v10 = vadd.f32 %v2091_v44, %v1060_v6  ;;  %v878_v11 = vpop.f32.mrb[39].mxu0  ;;  %v1062_v12 = vpop.f32.mrb[39].mxu1 }
 0x155   :  { %1277 = vst.msk [vmem:[%s2551_s3 + $0x90] sm:$0xff] %vm1258_vm2, %v1185_v7  ;;  %1323 = vst.msk [vmem:[%s2551_s3 + $0x200] sm:$0xff] %vm1258_vm2, %v1231_v8  ;;  %v1186_v13 = vmax.f32 %v877_v9, 0.0  ;;  %v1232_v14 = vmax.f32 %v1061_v10, 0.0 }
 0x157   :  { %1278 = vst.msk [vmem:[%s2551_s3 + $0x98] sm:$0xff] %vm1258_vm2, %v1186_v13  ;;  %1324 = vst.msk [vmem:[%s2551_s3 + $0x208] sm:$0xff] %vm1258_vm2, %v1232_v14 }
 0x158   :  { %v881_v15 = vpop.f32.mrb[40].mxu0  ;;  %v1065_v16 = vpop.f32.mrb[40].mxu1 }
 0x159   :  { %v882_v17 = vadd.f32 %v2091_v44, %v881_v15  ;;  %v1066_v18 = vadd.f32 %v2091_v44, %v1065_v16  ;;  %v883_v19 = vpop.f32.mrb[41].mxu0  ;;  %v1067_v20 = vpop.f32.mrb[41].mxu1 }
 0x15a   :  { %v884_v21 = vpop.f32.mrb[42].mxu0  ;;  %v1068_v22 = vpop.f32.mrb[42].mxu1 }
 0x15b   :  { %v1187_v23 = vmax.f32 %v882_v17, 0.0  ;;  %v1233_v24 = vmax.f32 %v1066_v18, 0.0  ;;  %v885_v25 = vadd.f32 %v2091_v44, %v884_v21  ;;  %v1069_v26 = vadd.f32 %v2091_v44, %v1068_v22  ;;  %v886_v27 = vpop.f32.mrb[43].mxu0  ;;  %v1070_v28 = vpop.f32.mrb[43].mxu1 }
 0x15d   :  { %1279 = vst.msk [vmem:[%s2551_s3 + $0xa0] sm:$0xff] %vm1258_vm2, %v1187_v23  ;;  %1325 = vst.msk [vmem:[%s2551_s3 + $0x210] sm:$0xff] %vm1258_vm2, %v1233_v24  ;;  %v1188_v29 = vmax.f32 %v885_v25, 0.0  ;;  %v1234_v30 = vmax.f32 %v1069_v26, 0.0 }
 0x15f   :  { %1280 = vst.msk [vmem:[%s2551_s3 + $0xa8] sm:$0xff] %vm1258_vm2, %v1188_v29  ;;  %1326 = vst.msk [vmem:[%s2551_s3 + $0x218] sm:$0xff] %vm1258_vm2, %v1234_v30 }
 0x160   :  { %v889_v31 = vpop.f32.mrb[44].mxu0  ;;  %v1073_v32 = vpop.f32.mrb[44].mxu1 }
 0x161   :  { %v890_v33 = vadd.f32 %v2091_v44, %v889_v31  ;;  %v1074_v34 = vadd.f32 %v2091_v44, %v1073_v32  ;;  %v891_v35 = vpop.f32.mrb[45].mxu0  ;;  %v1075_v36 = vpop.f32.mrb[45].mxu1 }
 0x162   :  { %v892_v37 = vpop.f32.mrb[46].mxu0  ;;  %v1076_v38 = vpop.f32.mrb[46].mxu1 }
 0x163   :  { %v1189_v39 = vmax.f32 %v890_v33, 0.0  ;;  %v1235_v40 = vmax.f32 %v1074_v34, 0.0  ;;  %v893_v41 = vadd.f32 %v2091_v44, %v892_v37  ;;  %v1077_v42 = vadd.f32 %v2091_v44, %v1076_v38  ;;  %v894_v43 = vpop.f32.mrb[47].mxu0  ;;  %v1078_v45 = vpop.f32.mrb[47].mxu1 }
 0x165   :  { %1281 = vst.msk [vmem:[%s2551_s3 + $0xb0] sm:$0xff] %vm1258_vm2, %v1189_v39  ;;  %1327 = vst.msk [vmem:[%s2551_s3 + $0x220] sm:$0xff] %vm1258_vm2, %v1235_v40  ;;  %v1190_v46 = vmax.f32 %v893_v41, 0.0  ;;  %v1236_v47 = vmax.f32 %v1077_v42, 0.0 }
 0x167   :  { %1282 = vst.msk [vmem:[%s2551_s3 + $0xb8] sm:$0xff] %vm1258_vm2, %v1190_v46  ;;  %1328 = vst.msk [vmem:[%s2551_s3 + $0x228] sm:$0xff] %vm1258_vm2, %v1236_v47 }
 0x168   :  { %v897_v48 = vpop.f32.mrb[48].mxu0  ;;  %v1081_v49 = vpop.f32.mrb[48].mxu1 }
 0x169   :  { %v898_v50 = vadd.f32 %v2091_v44, %v897_v48  ;;  %v1082_v51 = vadd.f32 %v2091_v44, %v1081_v49  ;;  %v899_v52 = vpop.f32.mrb[49].mxu0  ;;  %v1083_v53 = vpop.f32.mrb[49].mxu1 }
 0x16a   :  { %v900_v54 = vpop.f32.mrb[50].mxu0  ;;  %v1084_v55 = vpop.f32.mrb[50].mxu1 }
 0x16b   :  { %v1191_v56 = vmax.f32 %v898_v50, 0.0  ;;  %v1237_v57 = vmax.f32 %v1082_v51, 0.0  ;;  %v901_v58 = vadd.f32 %v2091_v44, %v900_v54  ;;  %v1085_v59 = vadd.f32 %v2091_v44, %v1084_v55  ;;  %v902_v60 = vpop.f32.mrb[51].mxu0  ;;  %v1086_v61 = vpop.f32.mrb[51].mxu1 }
 0x16d   :  { %1283 = vst.msk [vmem:[%s2551_s3 + $0xc0] sm:$0xff] %vm1258_vm2, %v1191_v56  ;;  %1329 = vst.msk [vmem:[%s2551_s3 + $0x230] sm:$0xff] %vm1258_vm2, %v1237_v57  ;;  %v1192_v62 = vmax.f32 %v901_v58, 0.0  ;;  %v1238_v63 = vmax.f32 %v1085_v59, 0.0 }
 0x16f   :  { %1284 = vst.msk [vmem:[%s2551_s3 + $0xc8] sm:$0xff] %vm1258_vm2, %v1192_v62  ;;  %1330 = vst.msk [vmem:[%s2551_s3 + $0x238] sm:$0xff] %vm1258_vm2, %v1238_v63 }
 0x170   :  { %v905_v0 = vpop.f32.mrb[52].mxu0  ;;  %v1089_v1 = vpop.f32.mrb[52].mxu1 }
 0x171   :  { %v906_v2 = vadd.f32 %v2091_v44, %v905_v0  ;;  %v1090_v3 = vadd.f32 %v2091_v44, %v1089_v1  ;;  %v907_v4 = vpop.f32.mrb[53].mxu0  ;;  %v1091_v5 = vpop.f32.mrb[53].mxu1 }
 0x172   :  { %v908_v6 = vpop.f32.mrb[54].mxu0  ;;  %v1092_v7 = vpop.f32.mrb[54].mxu1 }
 0x173   :  { %v1193_v8 = vmax.f32 %v906_v2, 0.0  ;;  %v1239_v9 = vmax.f32 %v1090_v3, 0.0  ;;  %v909_v10 = vadd.f32 %v2091_v44, %v908_v6  ;;  %v1093_v11 = vadd.f32 %v2091_v44, %v1092_v7  ;;  %v910_v12 = vpop.f32.mrb[55].mxu0  ;;  %v1094_v13 = vpop.f32.mrb[55].mxu1 }
 0x175   :  { %1285 = vst.msk [vmem:[%s2551_s3 + $0xd0] sm:$0xff] %vm1258_vm2, %v1193_v8  ;;  %1331 = vst.msk [vmem:[%s2551_s3 + $0x240] sm:$0xff] %vm1258_vm2, %v1239_v9  ;;  %v1194_v14 = vmax.f32 %v909_v10, 0.0  ;;  %v1240_v15 = vmax.f32 %v1093_v11, 0.0 }
 0x177   :  { %1286 = vst.msk [vmem:[%s2551_s3 + $0xd8] sm:$0xff] %vm1258_vm2, %v1194_v14  ;;  %1332 = vst.msk [vmem:[%s2551_s3 + $0x248] sm:$0xff] %vm1258_vm2, %v1240_v15 }
 0x178   :  { %v913_v16 = vpop.f32.mrb[56].mxu0  ;;  %v1097_v17 = vpop.f32.mrb[56].mxu1 }
 0x179   :  { %v914_v18 = vadd.f32 %v2091_v44, %v913_v16  ;;  %v1098_v19 = vadd.f32 %v2091_v44, %v1097_v17  ;;  %v915_v20 = vpop.f32.mrb[57].mxu0  ;;  %v1099_v21 = vpop.f32.mrb[57].mxu1 }
 0x17a   :  { %v916_v22 = vpop.f32.mrb[58].mxu0  ;;  %v1100_v23 = vpop.f32.mrb[58].mxu1 }
 0x17b   :  { %v1195_v24 = vmax.f32 %v914_v18, 0.0  ;;  %v1241_v25 = vmax.f32 %v1098_v19, 0.0  ;;  %v917_v26 = vadd.f32 %v2091_v44, %v916_v22  ;;  %v1101_v27 = vadd.f32 %v2091_v44, %v1100_v23  ;;  %v918_v28 = vpop.f32.mrb[59].mxu0  ;;  %v1102_v29 = vpop.f32.mrb[59].mxu1 }
 0x17d   :  { %1287 = vst.msk [vmem:[%s2551_s3 + $0xe0] sm:$0xff] %vm1258_vm2, %v1195_v24  ;;  %1333 = vst.msk [vmem:[%s2551_s3 + $0x250] sm:$0xff] %vm1258_vm2, %v1241_v25  ;;  %v1196_v30 = vmax.f32 %v917_v26, 0.0  ;;  %v1242_v31 = vmax.f32 %v1101_v27, 0.0 }
 0x17f   :  { %1288 = vst.msk [vmem:[%s2551_s3 + $0xe8] sm:$0xff] %vm1258_vm2, %v1196_v30  ;;  %1334 = vst.msk [vmem:[%s2551_s3 + $0x258] sm:$0xff] %vm1258_vm2, %v1242_v31 }
 0x180   :  { %v921_v32 = vpop.f32.mrb[60].mxu0  ;;  %v1105_v33 = vpop.f32.mrb[60].mxu1 }
 0x181   :  { %v922_v34 = vadd.f32 %v2091_v44, %v921_v32  ;;  %v1106_v35 = vadd.f32 %v2091_v44, %v1105_v33  ;;  %v923_v36 = vpop.f32.mrb[61].mxu0  ;;  %v1107_v37 = vpop.f32.mrb[61].mxu1 }
 0x182   :  { %v924_v38 = vpop.f32.mrb[62].mxu0  ;;  %v1108_v39 = vpop.f32.mrb[62].mxu1 }
 0x183   :  { %v1197_v40 = vmax.f32 %v922_v34, 0.0  ;;  %v1243_v41 = vmax.f32 %v1106_v35, 0.0  ;;  %v925_v42 = vadd.f32 %v2091_v44, %v924_v38  ;;  %v1109_v43 = vadd.f32 %v2091_v44, %v1108_v39  ;;  %v926_v45 = vpop.f32.mrb[63].mxu0  ;;  %v1110_v46 = vpop.f32.mrb[63].mxu1 }
 0x185   :  { %1289 = vst.msk [vmem:[%s2551_s3 + $0xf0] sm:$0xff] %vm1258_vm2, %v1197_v40  ;;  %1335 = vst.msk [vmem:[%s2551_s3 + $0x260] sm:$0xff] %vm1258_vm2, %v1243_v41  ;;  %v1198_v47 = vmax.f32 %v925_v42, 0.0  ;;  %v1244_v48 = vmax.f32 %v1109_v43, 0.0 }
 0x187   :  { %1290 = vst.msk [vmem:[%s2551_s3 + $0xf8] sm:$0xff] %vm1258_vm2, %v1198_v47  ;;  %1336 = vst.msk [vmem:[%s2551_s3 + $0x268] sm:$0xff] %vm1258_vm2, %v1244_v48 }
 0x188   :  { %v929_v49 = vpop.f32.mrb[64].mxu0  ;;  %v1113_v50 = vpop.f32.mrb[64].mxu1 }
 0x189   :  { %v930_v51 = vadd.f32 %v2091_v44, %v929_v49  ;;  %v1114_v52 = vadd.f32 %v2091_v44, %v1113_v50  ;;  %v931_v53 = vpop.f32.mrb[65].mxu0  ;;  %v1115_v54 = vpop.f32.mrb[65].mxu1 }
 0x18a   :  { %v932_v55 = vpop.f32.mrb[66].mxu0  ;;  %v1116_v56 = vpop.f32.mrb[66].mxu1 }
 0x18b   :  { %v1199_v57 = vmax.f32 %v930_v51, 0.0  ;;  %v1245_v58 = vmax.f32 %v1114_v52, 0.0  ;;  %v933_v59 = vadd.f32 %v2091_v44, %v932_v55  ;;  %v1117_v60 = vadd.f32 %v2091_v44, %v1116_v56  ;;  %v934_v61 = vpop.f32.mrb[67].mxu0  ;;  %v1118_v62 = vpop.f32.mrb[67].mxu1 }
 0x18d   :  { %1291 = vst.msk [vmem:[%s2551_s3 + $0x100] sm:$0xff] %vm1258_vm2, %v1199_v57  ;;  %1337 = vst.msk [vmem:[%s2551_s3 + $0x270] sm:$0xff] %vm1258_vm2, %v1245_v58  ;;  %v1200_v63 = vmax.f32 %v933_v59, 0.0  ;;  %v1246_v0 = vmax.f32 %v1117_v60, 0.0 }
 0x18f   :  { %1292 = vst.msk [vmem:[%s2551_s3 + $0x108] sm:$0xff] %vm1258_vm2, %v1200_v63  ;;  %1338 = vst.msk [vmem:[%s2551_s3 + $0x278] sm:$0xff] %vm1258_vm2, %v1246_v0 }
 0x190   :  { %v937_v1 = vpop.f32.mrb[68].mxu0  ;;  %v1121_v2 = vpop.f32.mrb[68].mxu1 }
 0x191   :  { %v938_v3 = vadd.f32 %v2091_v44, %v937_v1  ;;  %v1122_v4 = vadd.f32 %v2091_v44, %v1121_v2  ;;  %v939_v5 = vpop.f32.mrb[69].mxu0  ;;  %v1123_v6 = vpop.f32.mrb[69].mxu1 }
 0x192   :  { %v940_v7 = vpop.f32.mrb[70].mxu0  ;;  %v1124_v8 = vpop.f32.mrb[70].mxu1 }
 0x193   :  { %v1201_v9 = vmax.f32 %v938_v3, 0.0  ;;  %v1247_v10 = vmax.f32 %v1122_v4, 0.0  ;;  %v941_v11 = vadd.f32 %v2091_v44, %v940_v7  ;;  %v1125_v12 = vadd.f32 %v2091_v44, %v1124_v8  ;;  %v942_v13 = vpop.f32.mrb[71].mxu0  ;;  %v1126_v14 = vpop.f32.mrb[71].mxu1 }
 0x195   :  { %1293 = vst.msk [vmem:[%s2551_s3 + $0x110] sm:$0xff] %vm1258_vm2, %v1201_v9  ;;  %1339 = vst.msk [vmem:[%s2551_s3 + $0x280] sm:$0xff] %vm1258_vm2, %v1247_v10  ;;  %v1202_v15 = vmax.f32 %v941_v11, 0.0  ;;  %v1248_v16 = vmax.f32 %v1125_v12, 0.0 }
 0x197   :  { %1294 = vst.msk [vmem:[%s2551_s3 + $0x118] sm:$0xff] %vm1258_vm2, %v1202_v15  ;;  %1340 = vst.msk [vmem:[%s2551_s3 + $0x288] sm:$0xff] %vm1258_vm2, %v1248_v16 }
 0x198   :  { %v945_v17 = vpop.f32.mrb[72].mxu0  ;;  %v1129_v18 = vpop.f32.mrb[72].mxu1 }
 0x199   :  { %v946_v19 = vadd.f32 %v2091_v44, %v945_v17  ;;  %v1130_v20 = vadd.f32 %v2091_v44, %v1129_v18  ;;  %v947_v21 = vpop.f32.mrb[73].mxu0  ;;  %v1131_v22 = vpop.f32.mrb[73].mxu1 }
 0x19a   :  { %v948_v23 = vpop.f32.mrb[74].mxu0  ;;  %v1132_v24 = vpop.f32.mrb[74].mxu1 }
 0x19b   :  { %v1203_v25 = vmax.f32 %v946_v19, 0.0  ;;  %v1249_v26 = vmax.f32 %v1130_v20, 0.0  ;;  %v949_v27 = vadd.f32 %v2091_v44, %v948_v23  ;;  %v1133_v28 = vadd.f32 %v2091_v44, %v1132_v24  ;;  %v950_v29 = vpop.f32.mrb[75].mxu0  ;;  %v1134_v30 = vpop.f32.mrb[75].mxu1 }
 0x19d   :  { %1295 = vst.msk [vmem:[%s2551_s3 + $0x120] sm:$0xff] %vm1258_vm2, %v1203_v25  ;;  %1341 = vst.msk [vmem:[%s2551_s3 + $0x290] sm:$0xff] %vm1258_vm2, %v1249_v26  ;;  %v1204_v31 = vmax.f32 %v949_v27, 0.0  ;;  %v1250_v32 = vmax.f32 %v1133_v28, 0.0 }
 0x19f   :  { %1296 = vst.msk [vmem:[%s2551_s3 + $0x128] sm:$0xff] %vm1258_vm2, %v1204_v31  ;;  %1342 = vst.msk [vmem:[%s2551_s3 + $0x298] sm:$0xff] %vm1258_vm2, %v1250_v32 }
 0x1a0   :  { %v953_v33 = vpop.f32.mrb[76].mxu0  ;;  %v1137_v34 = vpop.f32.mrb[76].mxu1 }
 0x1a1   :  { %v954_v35 = vadd.f32 %v2091_v44, %v953_v33  ;;  %v1138_v36 = vadd.f32 %v2091_v44, %v1137_v34  ;;  %v955_v37 = vpop.f32.mrb[77].mxu0  ;;  %v1139_v38 = vpop.f32.mrb[77].mxu1 }
 0x1a2   :  { %v956_v39 = vpop.f32.mrb[78].mxu0  ;;  %v1140_v40 = vpop.f32.mrb[78].mxu1 }
 0x1a3   :  { %v1205_v41 = vmax.f32 %v954_v35, 0.0  ;;  %v1251_v42 = vmax.f32 %v1138_v36, 0.0  ;;  %v957_v43 = vadd.f32 %v2091_v44, %v956_v39  ;;  %v1141_v45 = vadd.f32 %v2091_v44, %v1140_v40  ;;  %v958_v46 = vpop.f32.mrb[79].mxu0  ;;  %v1142_v47 = vpop.f32.mrb[79].mxu1 }
 0x1a5   :  { %1297 = vst.msk [vmem:[%s2551_s3 + $0x130] sm:$0xff] %vm1258_vm2, %v1205_v41  ;;  %1343 = vst.msk [vmem:[%s2551_s3 + $0x2a0] sm:$0xff] %vm1258_vm2, %v1251_v42  ;;  %v1206_v48 = vmax.f32 %v957_v43, 0.0  ;;  %v1252_v49 = vmax.f32 %v1141_v45, 0.0 }
 0x1a7   :  { %1298 = vst.msk [vmem:[%s2551_s3 + $0x138] sm:$0xff] %vm1258_vm2, %v1206_v48  ;;  %1344 = vst.msk [vmem:[%s2551_s3 + $0x2a8] sm:$0xff] %vm1258_vm2, %v1252_v49 }
 0x1a8   :  { %v961_v50 = vpop.f32.mrb[80].mxu0  ;;  %v1145_v51 = vpop.f32.mrb[80].mxu1 }
 0x1a9   :  { %v962_v52 = vadd.f32 %v2091_v44, %v961_v50  ;;  %v1146_v53 = vadd.f32 %v2091_v44, %v1145_v51  ;;  %v963_v54 = vpop.f32.mrb[81].mxu0  ;;  %v1147_v55 = vpop.f32.mrb[81].mxu1 }
 0x1aa   :  { %v964_v56 = vpop.f32.mrb[82].mxu0  ;;  %v1148_v57 = vpop.f32.mrb[82].mxu1 }
 0x1ab   :  { %v1207_v58 = vmax.f32 %v962_v52, 0.0  ;;  %v1253_v59 = vmax.f32 %v1146_v53, 0.0  ;;  %v965_v60 = vadd.f32 %v2091_v44, %v964_v56  ;;  %v1149_v61 = vadd.f32 %v2091_v44, %v1148_v57  ;;  %v966_v62 = vpop.f32.mrb[83].mxu0  ;;  %v1150_v63 = vpop.f32.mrb[83].mxu1 }
 0x1ad   :  { %1299 = vst.msk [vmem:[%s2551_s3 + $0x140] sm:$0xff] %vm1258_vm2, %v1207_v58  ;;  %1345 = vst.msk [vmem:[%s2551_s3 + $0x2b0] sm:$0xff] %vm1258_vm2, %v1253_v59  ;;  %v1208_v0 = vmax.f32 %v965_v60, 0.0  ;;  %v1254_v1 = vmax.f32 %v1149_v61, 0.0 }
 0x1af   :  { %1300 = vst.msk [vmem:[%s2551_s3 + $0x148] sm:$0xff] %vm1258_vm2, %v1208_v0  ;;  %1346 = vst.msk [vmem:[%s2551_s3 + $0x2b8] sm:$0xff] %vm1258_vm2, %v1254_v1 }
 0x1b0   :  { %v969_v2 = vpop.f32.mrb[84].mxu0  ;;  %v1153_v3 = vpop.f32.mrb[84].mxu1 }
 0x1b1   :  { %v970_v4 = vadd.f32 %v2091_v44, %v969_v2  ;;  %v1154_v5 = vadd.f32 %v2091_v44, %v1153_v3  ;;  %v971_v6 = vpop.f32.mrb[85].mxu0  ;;  %v1155_v7 = vpop.f32.mrb[85].mxu1 }
 0x1b2   :  { %v972_v8 = vpop.f32.mrb[86].mxu0  ;;  %v1156_v9 = vpop.f32.mrb[86].mxu1 }
 0x1b3   :  { %v1209_v10 = vmax.f32 %v970_v4, 0.0  ;;  %v1255_v11 = vmax.f32 %v1154_v5, 0.0  ;;  %v973_v12 = vadd.f32 %v2091_v44, %v972_v8  ;;  %v1157_v13 = vadd.f32 %v2091_v44, %v1156_v9  ;;  %v974_v14 = vpop.f32.mrb[87].mxu0  ;;  %v1158_v15 = vpop.f32.mrb[87].mxu1 }
 0x1b5   :  { %1301 = vst.msk [vmem:[%s2551_s3 + $0x150] sm:$0xff] %vm1258_vm2, %v1209_v10  ;;  %1347 = vst.msk [vmem:[%s2551_s3 + $0x2c0] sm:$0xff] %vm1258_vm2, %v1255_v11  ;;  %v1210_v16 = vmax.f32 %v973_v12, 0.0  ;;  %v1256_v17 = vmax.f32 %v1157_v13, 0.0 }
 0x1b7   :  { %1302 = vst.msk [vmem:[%s2551_s3 + $0x158] sm:$0xff] %vm1258_vm2, %v1210_v16  ;;  %1348 = vst.msk [vmem:[%s2551_s3 + $0x2c8] sm:$0xff] %vm1258_vm2, %v1256_v17 }
 0x1b8   :  { %v977_v18 = vpop.f32.mrb[88].mxu0  ;;  %v1161_v19 = vpop.f32.mrb[88].mxu1 }
 0x1b9   :  { %v978_v20 = vadd.f32 %v2091_v44, %v977_v18  ;;  %v1162_v21 = vadd.f32 %v2091_v44, %v1161_v19  ;;  %v979_v22 = vpop.f32.mrb[89].mxu0  ;;  %v1163_v23 = vpop.f32.mrb[89].mxu1 }
 0x1ba   :  { %v980_v24 = vpop.f32.mrb[90].mxu0  ;;  %v1164_v25 = vpop.f32.mrb[90].mxu1 }
 0x1bb   :  { %v1211_v26 = vmax.f32 %v978_v20, 0.0  ;;  %v1257_v27 = vmax.f32 %v1162_v21, 0.0  ;;  %v981_v28 = vadd.f32 %v2091_v44, %v980_v24  ;;  %v982_v29 = vpop.f32.mrb[91].mxu0  ;;  %v1165_v30 = vpop.f32.mrb[91].mxu1 }
 0x1bd   :  { %1303 = vst.msk [vmem:[%s2551_s3 + $0x160] sm:$0xff] %vm1258_vm2, %v1211_v26  ;;  %1349 = vst.msk [vmem:[%s2551_s3 + $0x2d0] sm:$0xff] %vm1258_vm2, %v1257_v27  ;;  %v1212_v31 = vmax.f32 %v981_v28, 0.0 }
 0x1bf   :  { %1304 = vst.msk [vmem:[%s2551_s3 + $0x168] sm:$0xff] %vm1258_vm2, %v1212_v31 }

// kernel: decoder_forward.17
= control target key start
LH: loop header
LB: loop body
LE: loop exit
PB: predicated region body
PF: predicated region fallthrough
CT: control target
= control target key end

     0   :  { %vm485_vm0 = vcmask 1043456   ;;  %vm346_vm1 = vcmask 64512   ;;  %vm889_vm2 = vcmask 7168   ;;  %s4813_s1 = inlined_call_operand.vmem [shape: bf16[8,1], index: 1, kind: input, shape index: {}]   ;;  %s4814_s0 = inlined_call_operand.vmem [shape: bf16[728,8], index: 0, kind: input, shape index: {}]   ;;  %s4815_s2 = inlined_call_operand.<no memory space> [shape: f32[1,1], index: 2, kind: input, shape index: {}]   ;;  %s4816_s3 = inlined_call_operand.vmem [shape: f32[728,1], index: 3, kind: output, shape index: {0}]   ;;  %s4817_s4 = inlined_call_operand.vmem [shape: f32[728,1], index: 4, kind: output, shape index: {1}]  }
   0x1   :  { %v110_v0 = vld [vmem:[%s4813_s1] sm:$0xf]  ;;  %v10_v1 = vstv %s4815_s2  ;;  %v2230_v5 = vld [vmem:[%s4814_s0 + $0x8] sm:$0xff]   ;;  %v2232_v7 = vld [vmem:[%s4814_s0 + $0x10] sm:$0xff]  }
   0x2   :  { %2226 = vmatprep.subr.msk.bf16.mxu0 %vm485_vm0, %v110_v0  ;;  %2227 = vmatprep.subr.msk.bf16.mxu1 %vm485_vm0, %v110_v0  ;;  %v487_v2 = vsel %vm485_vm0, %v110_v0, 0  ;;  %v2228_v3 = vld [vmem:[%s4814_s0] sm:$0xff]   ;;  %11 = vst [vmem:[#allocation2] sm:$0x1] %v10_v1  ;;  %v2231_v6 = vld [vmem:[%s4814_s0 + $0xc8] sm:$0xff]   ;;  %v2233_v8 = vld [vmem:[%s4814_s0 + $0xd0] sm:$0xff]  }
   0x3   :  { %2131 = vmatpush3.bf16.msra.mxu0 %v487_v2  ;;  %2225 = vmatpush3.bf16.msra.mxu1 %v487_v2  ;;  %v2229_v4 = vld [vmem:[%s4814_s0 + $0xc0] sm:$0xff]   ;;  %v2234_v9 = vld [vmem:[%s4814_s0 + $0x18] sm:$0xff]   ;;  %v2238_v13 = vld [vmem:[%s4814_s0 + $0x28] sm:$0xff]  }
   0x4   :  { %2132 = vmatprep.mubr.msk.bf16.mxu0 %vm346_vm1, %v2228_v3  ;;  %2180 = vmatprep.mubr.msk.bf16.mxu1 %vm346_vm1, %v2229_v4  ;;  %v2235_v10 = vld [vmem:[%s4814_s0 + $0xd8] sm:$0xff]   ;;  %v2236_v11 = vld [vmem:[%s4814_s0 + $0x20] sm:$0xff]   ;;  %v2239_v14 = vld [vmem:[%s4814_s0 + $0xe8] sm:$0xff]  }
   0x5   :  { %v2237_v12 = vld [vmem:[%s4814_s0 + $0xe0] sm:$0xff]   ;;  %v2240_v15 = vld [vmem:[%s4814_s0 + $0x30] sm:$0xff]   ;;  %v2242_v17 = vld [vmem:[%s4814_s0 + $0x38] sm:$0xff]  }
   0x6   :  { %2133 = vmatmul.mubr.msk.bf16.vlgmr.msra.gmra.mrb[0].mxu0 %vm346_vm1, %v2230_v5  ;;  %2181 = vmatmul.mubr.msk.bf16.vlgmr.msra.gmra.mrb[0].mxu1 %vm346_vm1, %v2231_v6  ;;  %v2241_v16 = vld [vmem:[%s4814_s0 + $0xf0] sm:$0xff]   ;;  %v2243_v18 = vld [vmem:[%s4814_s0 + $0xf8] sm:$0xff]   ;;  %v2244_v19 = vld [vmem:[%s4814_s0 + $0x40] sm:$0xff]  }
   0x7   :  { %2136 = vmatprep.mubr.msk.bf16.mxu0 %vm346_vm1, %v2232_v7  ;;  %2184 = vmatprep.mubr.msk.bf16.mxu1 %vm346_vm1, %v2233_v8  ;;  %v2245_v20 = vld [vmem:[%s4814_s0 + $0x100] sm:$0xff]   ;;  %v2246_v21 = vld [vmem:[%s4814_s0 + $0x48] sm:$0xff]   ;;  %v2248_v23 = vld [vmem:[%s4814_s0 + $0x50] sm:$0xff]  }
   0x8   :  { %v2247_v22 = vld [vmem:[%s4814_s0 + $0x108] sm:$0xff]   ;;  %v2249_v24 = vld [vmem:[%s4814_s0 + $0x110] sm:$0xff]   ;;  %v2250_v25 = vld [vmem:[%s4814_s0 + $0x58] sm:$0xff]  }
   0x9   :  { %v2251_v26 = vld [vmem:[%s4814_s0 + $0x118] sm:$0xff]   ;;  %v2252_v27 = vld [vmem:[%s4814_s0 + $0x60] sm:$0xff]   ;;  %v2254_v29 = vld [vmem:[%s4814_s0 + $0x68] sm:$0xff]  }
   0xa   :  { %v2253_v28 = vld [vmem:[%s4814_s0 + $0x120] sm:$0xff]   ;;  %v2255_v30 = vld [vmem:[%s4814_s0 + $0x128] sm:$0xff]   ;;  %v2256_v31 = vld [vmem:[%s4814_s0 + $0x70] sm:$0xff]  }
   0xb   :  { %v2257_v32 = vld [vmem:[%s4814_s0 + $0x130] sm:$0xff]   ;;  %v2258_v33 = vld [vmem:[%s4814_s0 + $0x78] sm:$0xff]   ;;  %v2260_v35 = vld [vmem:[%s4814_s0 + $0x80] sm:$0xff]  }
   0xc   :  { %v2259_v34 = vld [vmem:[%s4814_s0 + $0x138] sm:$0xff]   ;;  %v2261_v36 = vld [vmem:[%s4814_s0 + $0x140] sm:$0xff]   ;;  %v2262_v37 = vld [vmem:[%s4814_s0 + $0x88] sm:$0xff]  }
   0xd   :  { %v2263_v38 = vld [vmem:[%s4814_s0 + $0x148] sm:$0xff]   ;;  %v2264_v39 = vld [vmem:[%s4814_s0 + $0x90] sm:$0xff]   ;;  %v2266_v41 = vld [vmem:[%s4814_s0 + $0x98] sm:$0xff]  }
   0xe   :  { %2137 = vmatmul.mubr.msk.bf16.gmra.mrb[4].mxu0 %vm346_vm1, %v2234_v9  ;;  %2185 = vmatmul.mubr.msk.bf16.gmra.mrb[4].mxu1 %vm346_vm1, %v2235_v10  ;;  %v2265_v40 = vld [vmem:[%s4814_s0 + $0x150] sm:$0xff]   ;;  %v2267_v42 = vld [vmem:[%s4814_s0 + $0x158] sm:$0xff]   ;;  %v2268_v43 = vld [vmem:[%s4814_s0 + $0xa0] sm:$0xff]  }
   0xf   :  { %2140 = vmatprep.mubr.msk.bf16.mxu0 %vm346_vm1, %v2236_v11  ;;  %2188 = vmatprep.mubr.msk.bf16.mxu1 %vm346_vm1, %v2237_v12  ;;  %v2269_v44 = vld [vmem:[%s4814_s0 + $0x160] sm:$0xff]   ;;  %v2270_v45 = vld [vmem:[%s4814_s0 + $0xa8] sm:$0xff]   ;;  %v2272_v47 = vld [vmem:[%s4814_s0 + $0xb0] sm:$0xff]  }
  0x10   :  { %v2271_v46 = vld [vmem:[%s4814_s0 + $0x168] ss:$0 sps:$4 sm:$0xff]   ;;  %v2273_v48 = vld [vmem:[%s4814_s0 + $0xb8] sm:$0xff]   ;;  %v2855_v49 = vld [vmem:[#allocation2] ss:$0 sm:$0xff] }
  0x16   :  { %2141 = vmatmul.mubr.msk.bf16.gmra.mrb[8].mxu0 %vm346_vm1, %v2238_v13  ;;  %2189 = vmatmul.mubr.msk.bf16.gmra.mrb[8].mxu1 %vm346_vm1, %v2239_v14 }
  0x17   :  { %2144 = vmatprep.mubr.msk.bf16.mxu0 %vm346_vm1, %v2240_v15  ;;  %2192 = vmatprep.mubr.msk.bf16.mxu1 %vm346_vm1, %v2241_v16 }
  0x1e   :  { %2145 = vmatmul.mubr.msk.bf16.gmra.mrb[12].mxu0 %vm346_vm1, %v2242_v17  ;;  %2193 = vmatmul.mubr.msk.bf16.gmra.mrb[12].mxu1 %vm346_vm1, %v2243_v18 }
  0x1f   :  { %2148 = vmatprep.mubr.msk.bf16.mxu0 %vm346_vm1, %v2244_v19  ;;  %2196 = vmatprep.mubr.msk.bf16.mxu1 %vm346_vm1, %v2245_v20 }
  0x26   :  { %2149 = vmatmul.mubr.msk.bf16.gmra.mrb[16].mxu0 %vm346_vm1, %v2246_v21  ;;  %2197 = vmatmul.mubr.msk.bf16.gmra.mrb[16].mxu1 %vm346_vm1, %v2247_v22 }
  0x27   :  { %2152 = vmatprep.mubr.msk.bf16.mxu0 %vm346_vm1, %v2248_v23  ;;  %2200 = vmatprep.mubr.msk.bf16.mxu1 %vm346_vm1, %v2249_v24 }
  0x2e   :  { %2153 = vmatmul.mubr.msk.bf16.gmra.mrb[20].mxu0 %vm346_vm1, %v2250_v25  ;;  %2201 = vmatmul.mubr.msk.bf16.gmra.mrb[20].mxu1 %vm346_vm1, %v2251_v26 }
  0x2f   :  { %2156 = vmatprep.mubr.msk.bf16.mxu0 %vm346_vm1, %v2252_v27  ;;  %2204 = vmatprep.mubr.msk.bf16.mxu1 %vm346_vm1, %v2253_v28 }
  0x36   :  { %2157 = vmatmul.mubr.msk.bf16.gmra.mrb[24].mxu0 %vm346_vm1, %v2254_v29  ;;  %2205 = vmatmul.mubr.msk.bf16.gmra.mrb[24].mxu1 %vm346_vm1, %v2255_v30 }
  0x37   :  { %2160 = vmatprep.mubr.msk.bf16.mxu0 %vm346_vm1, %v2256_v31  ;;  %2208 = vmatprep.mubr.msk.bf16.mxu1 %vm346_vm1, %v2257_v32 }
  0x3e   :  { %2161 = vmatmul.mubr.msk.bf16.gmra.mrb[28].mxu0 %vm346_vm1, %v2258_v33  ;;  %2209 = vmatmul.mubr.msk.bf16.gmra.mrb[28].mxu1 %vm346_vm1, %v2259_v34 }
  0x3f   :  { %2164 = vmatprep.mubr.msk.bf16.mxu0 %vm346_vm1, %v2260_v35  ;;  %2212 = vmatprep.mubr.msk.bf16.mxu1 %vm346_vm1, %v2261_v36 }
  0x46   :  { %2165 = vmatmul.mubr.msk.bf16.gmra.mrb[32].mxu0 %vm346_vm1, %v2262_v37  ;;  %2213 = vmatmul.mubr.msk.bf16.gmra.mrb[32].mxu1 %vm346_vm1, %v2263_v38 }
  0x47   :  { %2168 = vmatprep.mubr.msk.bf16.mxu0 %vm346_vm1, %v2264_v39  ;;  %2216 = vmatprep.mubr.msk.bf16.mxu1 %vm346_vm1, %v2265_v40 }
  0x4e   :  { %2169 = vmatmul.mubr.msk.bf16.gmra.mrb[36].mxu0 %vm346_vm1, %v2266_v41  ;;  %2217 = vmatmul.mubr.msk.bf16.gmra.mrb[36].mxu1 %vm346_vm1, %v2267_v42 }
  0x4f   :  { %2172 = vmatprep.mubr.msk.bf16.mxu0 %vm346_vm1, %v2268_v43  ;;  %2220 = vmatprep.mubr.msk.bf16.mxu1 %vm346_vm1, %v2269_v44 }
  0x56   :  { %2173 = vmatmul.mubr.msk.bf16.gmra.mrb[40].mxu0 %vm346_vm1, %v2270_v45  ;;  %2221 = vmatmul.mubr.msk.bf16.gmra.mrb[40].mxu1 %vm346_vm1, %v2271_v46 }
  0x57   :  { %2176 = vmatprep.mubr.msk.bf16.mxu0 %vm346_vm1, %v2272_v47 }
  0x5e   :  { %2177 = vmatmul.mubr.msk.bf16.gmra.mrb[44].mxu0 %vm346_vm1, %v2273_v48 }
  0xd9   :  { %v2134_v50 = vpop.f32.mrb[0].mxu0  ;;  %v2182_v52 = vpop.f32.mrb[0].mxu1 }
  0xda   :  { %v2858_v51 = vadd.f32 %v2134_v50, %v2855_v49  ;;  %v523_v53 = vpop.f32.mrb[1].mxu0  ;;  %v2861_v54 = vadd.f32 %v2182_v52, %v2855_v49  ;;  %v715_v56 = vpop.f32.mrb[1].mxu1 }
  0xdb   :  { %v2864_v55 = vadd.f32 %v2855_v49, %v523_v53  ;;  %v2135_v57 = vpop.f32.mrb[2].mxu0  ;;  %v2873_v59 = vadd.f32 %v2855_v49, %v715_v56  ;;  %v2183_v61 = vpop.f32.mrb[2].mxu1 }
  0xdc   :  { %892 = vst.msk [vmem:[%s4816_s3 + $0x10] sm:$0xff] %vm889_vm2, %v2858_v51  ;;  %v983_v58 = vand.u32 2147483647, %v2858_v51  ;;  %v2876_v60 = vadd.f32 %v2135_v57, %v2855_v49  ;;  %v526_v62 = vpop.f32.mrb[3].mxu0  ;;  %940 = vst.msk [vmem:[%s4816_s3 + $0x190] sm:$0xff] %vm889_vm2, %v2861_v54  ;;  %v2903_v6 = vadd.f32 %v2183_v61, %v2855_v49  ;;  %v718_v7 = vpop.f32.mrb[3].mxu1 }
  0xdd   :  { %v1031_v63 = vand.u32 2147483647, %v2861_v54  ;;  %890 = vst.msk [vmem:[%s4816_s3] sm:$0xff] %vm889_vm2, %v2864_v55  ;;  %v981_v0 = vand.u32 2147483647, %v2864_v55  ;;  %938 = vst.msk [vmem:[%s4816_s3 + $0x180] sm:$0xff] %vm889_vm2, %v2873_v59  ;;  %v2906_v11 = vadd.f32 %v2855_v49, %v526_v62  ;;  %v2915_v15 = vadd.f32 %v2855_v49, %v718_v7 }
  0xde   :  { %v1074_v1 = vsub.f32 0.0, %v983_v58  ;;  %v1029_v2 = vand.u32 2147483647, %v2873_v59  ;;  %893 = vst.msk [vmem:[%s4816_s3 + $0x18] sm:$0xff] %vm889_vm2, %v2876_v60  ;;  %v984_v3 = vand.u32 2147483647, %v2876_v60 }
  0xdf   :  { %v1122_v4 = vsub.f32 0.0, %v1031_v63  ;;  %v1072_v5 = vsub.f32 0.0, %v981_v0  ;;  %941 = vst.msk [vmem:[%s4816_s3 + $0x198] sm:$0xff] %vm889_vm2, %v2903_v6  ;;  %v1032_v14 = vand.u32 2147483647, %v2903_v6  ;;  %891 = vst.msk [vmem:[%s4816_s3 + $0x8] sm:$0xff] %vm889_vm2, %v2906_v11 }
  0xe0   :  { %v1167_v8 = vmul.f32 1.442695, %v1074_v1  ;;  %v1120_v9 = vsub.f32 0.0, %v1029_v2  ;;  %v1075_v10 = vsub.f32 0.0, %v984_v3  ;;  %v982_v20 = vand.u32 2147483647, %v2906_v11 }
  0xe1   :  { %v1263_v12 = vmul.f32 1.442695, %v1122_v4  ;;  %v1163_v13 = vmul.f32 1.442695, %v1072_v5  ;;  %v2138_v18 = vpop.f32.mrb[4].mxu0  ;;  %v1123_v19 = vsub.f32 0.0, %v1032_v14 }
  0xe2   :  { %2274 = vpow2.f32 %v1167_v8  ;;  %v1259_v16 = vmul.f32 1.442695, %v1120_v9  ;;  %v1169_v17 = vmul.f32 1.442695, %v1075_v10  ;;  %939 = vst.msk [vmem:[%s4816_s3 + $0x188] sm:$0xff] %vm889_vm2, %v2915_v15  ;;  %v2186_v21 = vpop.f32.mrb[4].mxu1  ;;  %v2930_v24 = vadd.f32 %v2138_v18, %v2855_v49 }
  0xe3   :  { %2276 = vpow2.f32 %v1263_v12  ;;  %v539_v22 = vpop.f32.mrb[5].mxu0  ;;  %v1030_v23 = vand.u32 2147483647, %v2915_v15  ;;  %v731_v25 = vpop.f32.mrb[5].mxu1  ;;  %v1265_v27 = vmul.f32 1.442695, %v1123_v19  ;;  %v2933_v29 = vadd.f32 %v2186_v21, %v2855_v49 }
  0xe4   :  { %2278 = vpow2.f32 %v1163_v13  ;;  %v2139_v26 = vpop.f32.mrb[6].mxu0  ;;  %v1073_v28 = vsub.f32 0.0, %v982_v20  ;;  %v2187_v30 = vpop.f32.mrb[6].mxu1  ;;  %896 = vst.msk [vmem:[%s4816_s3 + $0x30] sm:$0xff] %vm889_vm2, %v2930_v24  ;;  %v987_v33 = vand.u32 2147483647, %v2930_v24  ;;  %v2948_v39 = vadd.f32 %v2855_v49, %v539_v22 }
  0xe5   :  { %2280 = vpow2.f32 %v1259_v16  ;;  %v542_v31 = vpop.f32.mrb[7].mxu0  ;;  %v1121_v32 = vsub.f32 0.0, %v1030_v23  ;;  %v734_v34 = vpop.f32.mrb[7].mxu1  ;;  %944 = vst.msk [vmem:[%s4816_s3 + $0x1b0] sm:$0xff] %vm889_vm2, %v2933_v29  ;;  %v1035_v36 = vand.u32 2147483647, %v2933_v29  ;;  %v2951_v40 = vadd.f32 %v2855_v49, %v731_v25 }
  0xe6   :  { %2282 = vpow2.f32 %v1169_v17  ;;  %v1165_v35 = vmul.f32 1.442695, %v1073_v28  ;;  %v1078_v38 = vsub.f32 0.0, %v987_v33  ;;  %v2954_v42 = vadd.f32 %v2139_v26, %v2855_v49  ;;  %894 = vst.msk [vmem:[%s4816_s3 + $0x20] sm:$0xff] %vm889_vm2, %v2948_v39 }
  0xe7   :  { %2284 = vpow2.f32 %v1265_v27  ;;  %v1261_v37 = vmul.f32 1.442695, %v1121_v32  ;;  %v1126_v41 = vsub.f32 0.0, %v1035_v36  ;;  %v2957_v43 = vadd.f32 %v2187_v30, %v2855_v49  ;;  %942 = vst.msk [vmem:[%s4816_s3 + $0x1a0] sm:$0xff] %vm889_vm2, %v2951_v40 }
  0xe8   :  { %2286 = vpow2.f32 %v1165_v35  ;;  %v1175_v45 = vmul.f32 1.442695, %v1078_v38  ;;  %v985_v46 = vand.u32 2147483647, %v2948_v39  ;;  %v1033_v50 = vand.u32 2147483647, %v2951_v40 }
  0xe9   :  { %v2142_v44 = vpop.f32.mrb[8].mxu0  ;;  %2288 = vpow2.f32 %v1261_v37  ;;  %v2190_v47 = vpop.f32.mrb[8].mxu1  ;;  %v1271_v48 = vmul.f32 1.442695, %v1126_v41  ;;  %897 = vst.msk [vmem:[%s4816_s3 + $0x38] sm:$0xff] %vm889_vm2, %v2954_v42  ;;  %945 = vst.msk [vmem:[%s4816_s3 + $0x1b8] sm:$0xff] %vm889_vm2, %v2957_v43  ;;  %v3001_v9 = vadd.f32 %v2855_v49, %v542_v31  ;;  %v3023_v25 = vadd.f32 %v2855_v49, %v734_v34 }
  0xea   :  { %2290 = vpow2.f32 %v1175_v45  ;;  %v1076_v53 = vsub.f32 0.0, %v985_v46  ;;  %v988_v56 = vand.u32 2147483647, %v2954_v42  ;;  %v1036_v57 = vand.u32 2147483647, %v2957_v43  ;;  %v555_v58 = vpop.f32.mrb[9].mxu0 }
  0xeb   :  { %2292 = vpow2.f32 %v1271_v48  ;;  %v1124_v63 = vsub.f32 0.0, %v1033_v50  ;;  %v2988_v0 = vpop.f32.mrb[9].mxu1  ;;  %v2990_v1 = vpop.f32.mrb[10].mxu0  ;;  %895 = vst.msk [vmem:[%s4816_s3 + $0x28] sm:$0xff] %vm889_vm2, %v3001_v9  ;;  %v986_v21 = vand.u32 2147483647, %v3001_v9  ;;  %v3026_v26 = vadd.f32 %v2142_v44, %v2855_v49 }
  0xec   :  { %v2981_v52 = vpop.eup %2274  ;;  %v2995_v4 = vpop.f32.mrb[10].mxu1  ;;  %v1171_v8 = vmul.f32 1.442695, %v1076_v53  ;;  %v1079_v16 = vsub.f32 0.0, %v988_v56  ;;  %v1127_v17 = vsub.f32 0.0, %v1036_v57  ;;  %vm1347_vm3 = vcmp.ge.f32.partialorder %v2858_v51, 0.0 }
  0xed   :  { %v2985_v61 = vpop.eup %2276  ;;  %v1438_v62 = vadd.f32 1.0, %v2981_v52  ;;  %v3003_v10 = vpop.f32.mrb[11].mxu0  ;;  %v1267_v20 = vmul.f32 1.442695, %v1124_v63  ;;  %v1077_v31 = vsub.f32 0.0, %v986_v21  ;;  %v3036_v32 = vadd.f32 %v2190_v47, %v2855_v49  ;;  %943 = vst.msk [vmem:[%s4816_s3 + $0x1a8] sm:$0xff] %vm889_vm2, %v3023_v25 }
  0xee   :  { %v2992_v2 = vpop.eup %2278  ;;  %v1486_v3 = vadd.f32 1.0, %v2985_v61  ;;  %v3005_v12 = vpop.f32.mrb[11].mxu1  ;;  %v3039_v33 = vadd.f32 %v2855_v49, %v555_v58  ;;  %vm1395_vm4 = vcmp.ge.f32.partialorder %v2861_v54, 0.0  ;;  %v1034_v38 = vand.u32 2147483647, %v3023_v25  ;;  %900 = vst.msk [vmem:[%s4816_s3 + $0x50] sm:$0xff] %vm889_vm2, %v3026_v26 }
  0xef   :  { %v2997_v5 = vpop.eup %2280  ;;  %2294 = vrcp.f32 %v1438_v62  ;;  %v1436_v7 = vadd.f32 1.0, %v2992_v2  ;;  %vm1345_vm5 = vcmp.ge.f32.partialorder %v2864_v55, 0.0  ;;  %v1177_v46 = vmul.f32 1.442695, %v1079_v16  ;;  %948 = vst.msk [vmem:[%s4816_s3 + $0x1d0] sm:$0xff] %vm889_vm2, %v3036_v32 }
  0xf0   :  { %v3007_v13 = vpop.eup %2282  ;;  %2296 = vrcp.f32 %v1486_v3  ;;  %v1484_v14 = vadd.f32 1.0, %v2997_v5  ;;  %v991_v47 = vand.u32 2147483647, %v3026_v26  ;;  %898 = vst.msk [vmem:[%s4816_s3 + $0x40] sm:$0xff] %vm889_vm2, %v3039_v33  ;;  %vm1393_vm6 = vcmp.ge.f32.partialorder %v2873_v59, 0.0 }
  0xf1   :  { %v3010_v18 = vpop.eup %2284  ;;  %2298 = vrcp.f32 %v1436_v7  ;;  %v1439_v19 = vadd.f32 1.0, %v3007_v13  ;;  %v3019_v22 = vpop.f32.mrb[12].mxu0  ;;  %v1273_v53 = vmul.f32 1.442695, %v1127_v17  ;;  %v1125_v56 = vsub.f32 0.0, %v1034_v38 }
  0xf2   :  { %2300 = vrcp.f32 %v1484_v14  ;;  %v1487_v23 = vadd.f32 1.0, %v3010_v18  ;;  %v3028_v27 = vpop.f32.mrb[12].mxu1  ;;  %v3030_v28 = vpop.f32.mrb[13].mxu0  ;;  %v1039_v57 = vand.u32 2147483647, %v3036_v32  ;;  %vm1348_vm7 = vcmp.ge.f32.partialorder %v2876_v60, 0.0 }
  0xf3   :  { %v3032_v30 = vpop.eup %2286  ;;  %2302 = vrcp.f32 %v1439_v19  ;;  %v3041_v34 = vpop.f32.mrb[13].mxu1  ;;  %v1173_v63 = vmul.f32 1.442695, %v1077_v31  ;;  %v1082_v3 = vsub.f32 0.0, %v991_v47  ;;  %vm1396_vm8 = vcmp.ge.f32.partialorder %v2903_v6, 0.0 }
  0xf4   :  { %v3043_v35 = vpop.f32.mrb[14].mxu0  ;;  %v3045_v36 = vpop.eup %2288  ;;  %2304 = vrcp.f32 %v1487_v23  ;;  %v1437_v37 = vadd.f32 1.0, %v3032_v30  ;;  %v1130_v14 = vsub.f32 0.0, %v1039_v57  ;;  %v989_v19 = vand.u32 2147483647, %v3039_v33 }
  0xf5   :  { %v3060_v41 = vpop.f32.mrb[14].mxu1  ;;  %v3062_v44 = vpop.f32.mrb[15].mxu0  ;;  %v1485_v45 = vadd.f32 1.0, %v3045_v36  ;;  %2306 = vpow2.f32 %v1171_v8  ;;  %v1269_v8 = vmul.f32 1.442695, %v1125_v56  ;;  %vm1346_vm9 = vcmp.ge.f32.partialorder %v2906_v11, 0.0 }
  0xf6   :  { %v3077_v48 = vpop.f32.mrb[15].mxu1  ;;  %v3079_v50 = vpop.eup %2290  ;;  %2308 = vrcp.f32 %v1437_v37  ;;  %v1183_v17 = vmul.f32 1.442695, %v1082_v3  ;;  %v1279_v31 = vmul.f32 1.442695, %v1130_v14  ;;  %v1080_v57 = vsub.f32 0.0, %v989_v19 }
  0xf7   :  { %v3083_v58 = vpop.eup %2292  ;;  %2310 = vrcp.f32 %v1485_v45  ;;  %v1442_v62 = vadd.f32 1.0, %v3079_v50  ;;  %vm1394_vm10 = vcmp.ge.f32.partialorder %v2915_v15, 0.0  ;;  %vm1351_vm11 = vcmp.ge.f32.partialorder %v2930_v24, 0.0 }
  0xf8   :  { %v1490_v7 = vadd.f32 1.0, %v3083_v58  ;;  %2312 = vpow2.f32 %v1267_v20  ;;  %v3096_v20 = vadd.f32 %v2855_v49, %v2988_v0  ;;  %v3182_v6 = vadd.f32 %v2995_v4, %v2855_v49 }
  0xf9   :  { %v2295_v16 = vpop.eup %2294  ;;  %2314 = vrcp.f32 %v1442_v62  ;;  %v3090_v21 = vpop.f32.mrb[16].mxu0  ;;  %vm1399_vm12 = vcmp.ge.f32.partialorder %v2933_v29, 0.0  ;;  %vm1349_vm13 = vcmp.ge.f32.partialorder %v2948_v39, 0.0  ;;  %vm1397_vm14 = vcmp.ge.f32.partialorder %v2951_v40, 0.0 }
  0xfa   :  { %v2297_v23 = vpop.eup %2296  ;;  %v1711_v37 = vmul.f32 %v2295_v16, %v2981_v52  ;;  %2316 = vrcp.f32 %v1490_v7  ;;  %v3098_v38 = vpop.f32.mrb[16].mxu1  ;;  %v3105_v52 = vadd.f32 %v2990_v1, %v2855_v49  ;;  %946 = vst.msk [vmem:[%s4816_s3 + $0x1c0] sm:$0xff] %vm889_vm2, %v3096_v20  ;;  %949 = vst.msk [vmem:[%s4816_s3 + $0x1d8] sm:$0xff] %vm889_vm2, %v3182_v6  ;;  %vm1352_vm15 = vcmp.ge.f32.partialorder %v2954_v42, 0.0 }
  0xfb   :  { %v3100_v45 = vpop.f32.mrb[17].mxu0  ;;  %v2299_v47 = vpop.eup %2298  ;;  %v1759_v56 = vmul.f32 %v2297_v23, %v2985_v61  ;;  %2318 = vpow2.f32 %v1177_v46  ;;  %v1037_v61 = vand.u32 2147483647, %v3096_v20  ;;  %vm1400_vm0 = vcmp.ge.f32.partialorder %v2957_v43, 0.0 }
  0xfc   :  { %v3107_v62 = vpop.f32.mrb[17].mxu1  ;;  %v3109_v3 = vpop.f32.mrb[18].mxu0  ;;  %v1802_v0 = vsel %vm1347_vm3, %v2295_v16, %v1711_v37  ;;  %v1709_v14 = vmul.f32 %v2299_v47, %v2992_v2  ;;  %2320 = vpow2.f32 %v1273_v53  ;;  %v1179_v53 = vmul.f32 1.442695, %v1080_v57  ;;  %901 = vst.msk [vmem:[%s4816_s3 + $0x58] sm:$0xff] %vm889_vm2, %v3105_v52 }
  0xfd   :  { %v2301_v7 = vpop.eup %2300  ;;  %v3120_v1 = vpop.f32.mrb[18].mxu1  ;;  %1893 = vst.msk [vmem:[%s4817_s4 + $0x10] sm:$0xff] %vm889_vm2, %v1802_v0  ;;  %v1850_v51 = vsel %vm1395_vm4, %v2297_v23, %v1759_v56  ;;  %2322 = vpow2.f32 %v1173_v63  ;;  %v1128_v63 = vsub.f32 0.0, %v1037_v61  ;;  %vm1350_vm1 = vcmp.ge.f32.partialorder %v3001_v9, 0.0 }
  0xfe   :  { %v3122_v46 = vpop.f32.mrb[19].mxu0  ;;  %v2303_v19 = vpop.eup %2302  ;;  %v1757_v2 = vmul.f32 %v2301_v7, %v2997_v5  ;;  %1941 = vst.msk [vmem:[%s4817_s4 + $0x190] sm:$0xff] %vm889_vm2, %v1850_v51  ;;  %v1800_v54 = vsel %vm1345_vm5, %v2299_v47, %v1709_v14  ;;  %2324 = vpow2.f32 %v1269_v8  ;;  %vm1398_vm3 = vcmp.ge.f32.partialorder %v3023_v25, 0.0 }
  0xff   :  { %v3136_v16 = vpop.f32.mrb[19].mxu1  ;;  %v2305_v37 = vpop.eup %2304  ;;  %v1712_v5 = vmul.f32 %v2303_v19, %v3007_v13  ;;  %1891 = vst.msk [vmem:[%s4817_s4] sm:$0xff] %vm889_vm2, %v1800_v54  ;;  %2326 = vpow2.f32 %v1183_v17  ;;  %v1275_v47 = vmul.f32 1.442695, %v1128_v63  ;;  %v1040_v54 = vand.u32 2147483647, %v3182_v6 }
 0x100   :  { %v3145_v23 = vpop.eup %2306  ;;  %v1848_v56 = vsel %vm1393_vm6, %v2301_v7, %v1757_v2  ;;  %v1760_v57 = vmul.f32 %v2305_v37, %v3010_v18  ;;  %2328 = vpow2.f32 %v1279_v31  ;;  %v992_v7 = vand.u32 2147483647, %v3105_v52 }
 0x101   :  { %v2309_v55 = vpop.eup %2308  ;;  %1939 = vst.msk [vmem:[%s4817_s4 + $0x180] sm:$0xff] %vm889_vm2, %v1848_v56  ;;  %v1803_v13 = vsel %vm1348_vm7, %v2303_v19, %v1712_v5  ;;  %v1440_v8 = vadd.f32 1.0, %v3145_v23  ;;  %2330 = vpow2.f32 %v1179_v53  ;;  %v3170_v60 = vpop.f32.mrb[20].mxu0  ;;  %vm1355_vm4 = vcmp.ge.f32.partialorder %v3026_v26, 0.0 }
 0x102   :  { %v2311_v59 = vpop.eup %2310  ;;  %1894 = vst.msk [vmem:[%s4817_s4 + $0x18] sm:$0xff] %vm889_vm2, %v1803_v13  ;;  %v1851_v18 = vsel %vm1396_vm8, %v2305_v37, %v1760_v57  ;;  %v1710_v17 = vmul.f32 %v2309_v55, %v3032_v30  ;;  %v3184_v30 = vpop.f32.mrb[20].mxu1  ;;  %v1083_v2 = vsub.f32 0.0, %v992_v7  ;;  %v3222_v57 = vadd.f32 %v2855_v49, %v3003_v10 }
 0x103   :  { %v3172_v0 = vpop.eup %2312  ;;  %1942 = vst.msk [vmem:[%s4817_s4 + $0x198] sm:$0xff] %vm889_vm2, %v1851_v18  ;;  %v1758_v31 = vmul.f32 %v2311_v59, %v3045_v36  ;;  %2332 = vrcp.f32 %v1440_v8  ;;  %v3186_v14 = vpop.f32.mrb[21].mxu0  ;;  %v3233_v18 = vadd.f32 %v2855_v49, %v3005_v12  ;;  %v3386_v42 = vadd.f32 %v3043_v35, %v2855_v49 }
 0x104   :  { %v2315_v61 = vpop.eup %2314  ;;  %v1801_v19 = vsel %vm1346_vm9, %v2309_v55, %v1710_v17  ;;  %v1488_v51 = vadd.f32 1.0, %v3172_v0  ;;  %2334 = vpow2.f32 %v1275_v47  ;;  %v3191_v36 = vpop.f32.mrb[21].mxu1  ;;  %899 = vst.msk [vmem:[%s4816_s3 + $0x48] sm:$0xff] %vm889_vm2, %v3222_v57  ;;  %v990_v12 = vand.u32 2147483647, %v3222_v57 }
 0x105   :  { %v3193_v53 = vpop.f32.mrb[22].mxu0  ;;  %v2317_v37 = vpop.eup %2316  ;;  %1892 = vst.msk [vmem:[%s4817_s4 + $0x8] sm:$0xff] %vm889_vm2, %v1801_v19  ;;  %v1849_v4 = vsel %vm1394_vm10, %v2311_v59, %v1758_v31  ;;  %v1715_v11 = vmul.f32 %v2315_v61, %v3079_v50  ;;  %v1185_v50 = vmul.f32 1.442695, %v1083_v2  ;;  %v1131_v59 = vsub.f32 0.0, %v1040_v54  ;;  %947 = vst.msk [vmem:[%s4816_s3 + $0x1c8] sm:$0xff] %vm889_vm2, %v3233_v18 }
 0x106   :  { %v3209_v5 = vpop.f32.mrb[22].mxu1  ;;  %v3211_v63 = vpop.f32.mrb[23].mxu0  ;;  %1940 = vst.msk [vmem:[%s4817_s4 + $0x188] sm:$0xff] %vm889_vm2, %v1849_v4  ;;  %v1763_v15 = vmul.f32 %v2317_v37, %v3083_v58  ;;  %2336 = vrcp.f32 %v1488_v51  ;;  %v1038_v19 = vand.u32 2147483647, %v3233_v18  ;;  %vm1403_vm5 = vcmp.ge.f32.partialorder %v3036_v32, 0.0 }
 0x107   :  { %v3213_v56 = vpop.eup %2318  ;;  %v3224_v55 = vpop.f32.mrb[23].mxu1  ;;  %v1806_v8 = vsel %vm1351_vm11, %v2315_v61, %v1715_v11  ;;  %2338 = vpow2.f32 %v1185_v50  ;;  %v1081_v61 = vsub.f32 0.0, %v990_v12  ;;  %v1281_v4 = vmul.f32 1.442695, %v1131_v59  ;;  %905 = vst.msk [vmem:[%s4816_s3 + $0x78] sm:$0xff] %vm889_vm2, %v3386_v42 }
 0x108   :  { %v3226_v13 = vpop.eup %2320  ;;  %v1443_v47 = vadd.f32 1.0, %v3213_v56  ;;  %1897 = vst.msk [vmem:[%s4817_s4 + $0x30] sm:$0xff] %vm889_vm2, %v1806_v8  ;;  %v1854_v10 = vsel %vm1399_vm12, %v2317_v37, %v1763_v15  ;;  %v3275_v11 = vadd.f32 %v3019_v22, %v2855_v49  ;;  %vm1353_vm6 = vcmp.ge.f32.partialorder %v3039_v33, 0.0 }
 0x109   :  { %v3235_v58 = vpop.eup %2322  ;;  %v1491_v24 = vadd.f32 1.0, %v3226_v13  ;;  %1945 = vst.msk [vmem:[%s4817_s4 + $0x1b0] sm:$0xff] %vm889_vm2, %v1854_v10  ;;  %v3268_v51 = vpop.f32.mrb[24].mxu0  ;;  %v1129_v10 = vsub.f32 0.0, %v1038_v19  ;;  %v3449_v33 = vadd.f32 %v2855_v49, %v3062_v44  ;;  %vm1401_vm7 = vcmp.ge.f32.partialorder %v3096_v20, 0.0 }
 0x10a   :  { %v3250_v17 = vpop.eup %2324  ;;  %2340 = vrcp.f32 %v1443_v47  ;;  %v1441_v29 = vadd.f32 1.0, %v3235_v58  ;;  %4818 = vst [vmem:[#allocation3_spill] sm:$0xff] %v3268_v51  ;;  %v3277_v54 = vpop.f32.mrb[24].mxu1  ;;  %v1181_v47 = vmul.f32 1.442695, %v1081_v61  ;;  %904 = vst.msk [vmem:[%s4816_s3 + $0x70] sm:$0xff] %vm889_vm2, %v3275_v11  ;;  %v3465_v44 = vadd.f32 %v2855_v49, %v3077_v48 }
 0x10b   :  { %v3263_v7 = vpop.eup %2326  ;;  %2342 = vrcp.f32 %v1491_v24  ;;  %v1489_v31 = vadd.f32 1.0, %v3250_v17  ;;  %4819 = vst [vmem:[#allocation4_spill] sm:$0xff] %v3277_v54  ;;  %v3279_v15 = vpop.f32.mrb[25].mxu0  ;;  %903 = vst.msk [vmem:[%s4816_s3 + $0x68] sm:$0xff] %vm889_vm2, %v3449_v33  ;;  %v994_v20 = vand.u32 2147483647, %v3449_v33 }
 0x10c   :  { %v3270_v2 = vpop.eup %2328  ;;  %2344 = vrcp.f32 %v1441_v29  ;;  %v1446_v37 = vadd.f32 1.0, %v3263_v7  ;;  %4820 = vst [vmem:[#allocation5_spill] sm:$0xff] %v3279_v15  ;;  %v3284_v24 = vpop.f32.mrb[25].mxu1  ;;  %v995_v29 = vand.u32 2147483647, %v3275_v11  ;;  %vm1356_vm8 = vcmp.ge.f32.partialorder %v3105_v52, 0.0 }
 0x10d   :  { %v3281_v50 = vpop.eup %2330  ;;  %2346 = vrcp.f32 %v1489_v31  ;;  %v1494_v8 = vadd.f32 1.0, %v3270_v2  ;;  %4821 = vst [vmem:[#allocation6_spill] sm:$0xff] %v3284_v24  ;;  %v3286_v12 = vpop.f32.mrb[26].mxu0  ;;  %v3306_v24 = vadd.f32 %v3028_v27, %v2855_v49  ;;  %951 = vst.msk [vmem:[%s4816_s3 + $0x1e8] sm:$0xff] %vm889_vm2, %v3465_v44  ;;  %vm1404_vm9 = vcmp.ge.f32.partialorder %v3182_v6, 0.0 }
 0x10e   :  { %4822 = vst [vmem:[#allocation7_spill] sm:$0xff] %v3286_v12  ;;  %v2333_v59 = vpop.eup %2332  ;;  %2348 = vrcp.f32 %v1446_v37  ;;  %v1444_v22 = vadd.f32 1.0, %v3281_v50  ;;  %v3296_v31 = vpop.f32.mrb[26].mxu1  ;;  %v1277_v37 = vmul.f32 1.442695, %v1129_v10  ;;  %vm1354_vm10 = vcmp.ge.f32.partialorder %v3222_v57, 0.0 }
 0x10f   :  { %4823 = vst [vmem:[#allocation8_spill] sm:$0xff] %v3296_v31  ;;  %v3298_v61 = vpop.f32.mrb[27].mxu0  ;;  %v3300_v19 = vpop.eup %2334  ;;  %v1713_v12 = vmul.f32 %v2333_v59, %v3145_v23  ;;  %2350 = vrcp.f32 %v1494_v8  ;;  %v1086_v31 = vsub.f32 0.0, %v995_v29  ;;  %952 = vst.msk [vmem:[%s4816_s3 + $0x1f0] sm:$0xff] %vm889_vm2, %v3306_v24  ;;  %v1043_v27 = vand.u32 2147483647, %v3306_v24 }
 0x110   :  { %4824 = vst [vmem:[#allocation9_spill] sm:$0xff] %v3298_v61  ;;  %v3308_v15 = vpop.f32.mrb[27].mxu1  ;;  %2352 = vrcp.f32 %v1444_v22  ;;  %v1492_v54 = vadd.f32 1.0, %v3300_v19  ;;  %v3313_v61 = vadd.f32 %v2855_v49, %v3030_v28  ;;  %v2337_v51 = vpop.eup %2336  ;;  %vm1402_vm11 = vcmp.ge.f32.partialorder %v3233_v18, 0.0 }
 0x111   :  { %v1804_v23 = vsel %vm1349_vm13, %v2333_v59, %v1713_v12  ;;  %2354 = vpow2.f32 %v1281_v4  ;;  %v1761_v28 = vmul.f32 %v2337_v51, %v3172_v0  ;;  %v1191_v39 = vmul.f32 1.442695, %v1086_v31  ;;  %v3335_v8 = vpop.eup %2338  ;;  %v3342_v0 = vpop.f32.mrb[28].mxu0 }
 0x112   :  { %1895 = vst.msk [vmem:[%s4817_s4 + $0x20] sm:$0xff] %vm889_vm2, %v1804_v23  ;;  %2356 = vrcp.f32 %v1492_v54  ;;  %902 = vst.msk [vmem:[%s4816_s3 + $0x60] sm:$0xff] %vm889_vm2, %v3313_v61  ;;  %v993_v4 = vand.u32 2147483647, %v3313_v61  ;;  %v1134_v10 = vsub.f32 0.0, %v1043_v27  ;;  %v3340_v12 = vadd.f32 %v2855_v49, %v3041_v34  ;;  %v3347_v31 = vpop.f32.mrb[28].mxu1 }
 0x113   :  { %2358 = vpow2.f32 %v1181_v47  ;;  %4825 = vst [vmem:[#allocation10_spill] sm:$0xff] %v3342_v0  ;;  %v1852_v59 = vsel %vm1397_vm14, %v2337_v51, %v1761_v28  ;;  %v1447_v22 = vadd.f32 1.0, %v3335_v8  ;;  %4826 = vst [vmem:[#allocation11_spill] sm:$0xff] %v3347_v31  ;;  %v3349_v23 = vpop.f32.mrb[29].mxu0  ;;  %v3362_v51 = vpop.f32.mrb[29].mxu1  ;;  %vm1359_vm12 = vcmp.ge.f32.partialorder %v3275_v11, 0.0 }
 0x114   :  { %v2341_v54 = vpop.eup %2340  ;;  %2360 = vpow2.f32 %v1277_v37  ;;  %v1084_v29 = vsub.f32 0.0, %v993_v4  ;;  %4827 = vst [vmem:[#allocation12_spill] sm:$0xff] %v3349_v23  ;;  %1943 = vst.msk [vmem:[%s4817_s4 + $0x1a0] sm:$0xff] %vm889_vm2, %v1852_v59  ;;  %v1287_v27 = vmul.f32 1.442695, %v1134_v10  ;;  %v3364_v37 = vpop.f32.mrb[30].mxu0 }
 0x115   :  { %v2343_v47 = vpop.eup %2342  ;;  %v1716_v34 = vmul.f32 %v2341_v54, %v3213_v56  ;;  %2362 = vpow2.f32 %v1191_v39  ;;  %950 = vst.msk [vmem:[%s4816_s3 + $0x1e0] sm:$0xff] %vm889_vm2, %v3340_v12  ;;  %v1041_v40 = vand.u32 2147483647, %v3340_v12  ;;  %4828 = vst [vmem:[#allocation13_spill] sm:$0xff] %v3362_v51  ;;  %v3368_v39 = vpop.f32.mrb[30].mxu1  ;;  %vm1407_vm13 = vcmp.ge.f32.partialorder %v3306_v24, 0.0 }
 0x116   :  { %4829 = vst [vmem:[#allocation14_spill] sm:$0xff] %v3364_v37  ;;  %v2345_v28 = vpop.eup %2344  ;;  %v1764_v4 = vmul.f32 %v2343_v47, %v3226_v13  ;;  %2364 = vrcp.f32 %v1447_v22  ;;  %v1187_v56 = vmul.f32 1.442695, %v1084_v29  ;;  %v3370_v10 = vpop.f32.mrb[31].mxu0  ;;  %vm1357_vm14 = vcmp.ge.f32.partialorder %v3313_v61, 0.0 }
 0x117   :  { %v2347_v59 = vpop.eup %2346  ;;  %v1807_v23 = vsel %vm1352_vm15, %v2341_v54, %v1716_v34  ;;  %v1714_v31 = vmul.f32 %v2345_v28, %v3235_v58  ;;  %2366 = vpow2.f32 %v1287_v27  ;;  %v1132_v51 = vsub.f32 0.0, %v1041_v40  ;;  %v3375_v37 = vpop.f32.mrb[31].mxu1 }
 0x118   :  { %v2349_v0 = vpop.eup %2348  ;;  %1898 = vst.msk [vmem:[%s4817_s4 + $0x38] sm:$0xff] %vm889_vm2, %v1807_v23  ;;  %v1855_v13 = vsel %vm1400_vm0, %v2343_v47, %v1764_v4  ;;  %v1762_v22 = vmul.f32 %v2347_v59, %v3250_v17  ;;  %2368 = vpow2.f32 %v1187_v56  ;;  %v3397_v17 = vadd.f32 %v3060_v41, %v2855_v49 }
 0x119   :  { %v2351_v58 = vpop.eup %2350  ;;  %1946 = vst.msk [vmem:[%s4817_s4 + $0x1b8] sm:$0xff] %vm889_vm2, %v1855_v13  ;;  %v1805_v54 = vsel %vm1350_vm1, %v2345_v28, %v1714_v31  ;;  %v1719_v29 = vmul.f32 %v2349_v0, %v3263_v7  ;;  %v1283_v43 = vmul.f32 1.442695, %v1132_v51  ;;  %v996_v41 = vand.u32 2147483647, %v3386_v42 }
 0x11a   :  { %v2353_v23 = vpop.eup %2352  ;;  %1896 = vst.msk [vmem:[%s4817_s4 + $0x28] sm:$0xff] %vm889_vm2, %v1805_v54  ;;  %v1853_v35 = vsel %vm1398_vm3, %v2347_v59, %v1762_v22  ;;  %v1767_v9 = vmul.f32 %v2351_v58, %v3270_v2  ;;  %953 = vst.msk [vmem:[%s4816_s3 + $0x1f8] sm:$0xff] %vm889_vm2, %v3397_v17  ;;  %v1044_v2 = vand.u32 2147483647, %v3397_v17  ;;  %v3428_v31 = vpop.f32.mrb[32].mxu0  ;;  %vm1405_vm15 = vcmp.ge.f32.partialorder %v3340_v12, 0.0 }
 0x11b   :  { %v3413_v7 = vpop.eup %2354  ;;  %1944 = vst.msk [vmem:[%s4817_s4 + $0x1a8] sm:$0xff] %vm889_vm2, %v1853_v35  ;;  %v1810_v25 = vsel %vm1355_vm4, %v2349_v0, %v1719_v29  ;;  %v1717_v32 = vmul.f32 %v2353_v23, %v3281_v50  ;;  %2370 = vpow2.f32 %v1283_v43  ;;  %v1087_v0 = vsub.f32 0.0, %v996_v41  ;;  %v3436_v34 = vpop.f32.mrb[32].mxu1 }
 0x11c   :  { %v2357_v47 = vpop.eup %2356  ;;  %1901 = vst.msk [vmem:[%s4817_s4 + $0x50] sm:$0xff] %vm889_vm2, %v1810_v25  ;;  %v1858_v26 = vsel %vm1403_vm5, %v2351_v58, %v1767_v9  ;;  %v1495_v50 = vadd.f32 1.0, %v3413_v7  ;;  %v3438_v27 = vpop.f32.mrb[33].mxu0  ;;  %v1135_v4 = vsub.f32 0.0, %v1044_v2  ;;  %v1042_v41 = vand.u32 2147483647, %v3465_v44 }
 0x11d   :  { %v3440_v40 = vpop.eup %2358  ;;  %1949 = vst.msk [vmem:[%s4817_s4 + $0x1d0] sm:$0xff] %vm889_vm2, %v1858_v26  ;;  %v1808_v51 = vsel %vm1353_vm6, %v2353_v23, %v1717_v32  ;;  %v1765_v28 = vmul.f32 %v2357_v47, %v3300_v19  ;;  %v3451_v56 = vpop.f32.mrb[33].mxu1  ;;  %v1193_v23 = vmul.f32 1.442695, %v1087_v0  ;;  %v3502_v0 = vadd.f32 %v3090_v21, %v2855_v49 }
 0x11e   :  { %v3453_v59 = vpop.f32.mrb[34].mxu0  ;;  %v3455_v13 = vpop.eup %2360  ;;  %1899 = vst.msk [vmem:[%s4817_s4 + $0x40] sm:$0xff] %vm889_vm2, %v1808_v51  ;;  %2372 = vrcp.f32 %v1495_v50  ;;  %v1445_v19 = vadd.f32 1.0, %v3440_v40  ;;  %v1289_v2 = vmul.f32 1.442695, %v1135_v4  ;;  %v1133_v50 = vsub.f32 0.0, %v1042_v41 }
 0x11f   :  { %v3467_v22 = vpop.f32.mrb[34].mxu1  ;;  %v3469_v58 = vpop.f32.mrb[35].mxu0  ;;  %v1856_v29 = vsel %vm1401_vm7, %v2357_v47, %v1765_v28  ;;  %v1493_v43 = vadd.f32 1.0, %v3455_v13  ;;  %v1085_v47 = vsub.f32 0.0, %v994_v20  ;;  %908 = vst.msk [vmem:[%s4816_s3 + $0x90] sm:$0xff] %vm889_vm2, %v3502_v0  ;;  %v3528_v20 = vadd.f32 %v2855_v49, %v3100_v45 }
 0x120   :  { %v3471_v54 = vpop.eup %2362  ;;  %v3480_v48 = vpop.f32.mrb[35].mxu1  ;;  %1947 = vst.msk [vmem:[%s4817_s4 + $0x1c0] sm:$0xff] %vm889_vm2, %v1856_v29  ;;  %2374 = vrcp.f32 %v1445_v19  ;;  %v999_v21 = vand.u32 2147483647, %v3502_v0  ;;  %vm1360_vm0 = vcmp.ge.f32.partialorder %v3386_v42, 0.0  ;;  %vm1408_vm1 = vcmp.ge.f32.partialorder %v3397_v17, 0.0 }
 0x121   :  { %4830 = vst [vmem:[#allocation15_spill] sm:$0xff] %v3480_v48  ;;  %v2365_v35 = vpop.eup %2364  ;;  %v1450_v9 = vadd.f32 1.0, %v3471_v54  ;;  %2376 = vrcp.f32 %v1493_v43  ;;  %v1189_v19 = vmul.f32 1.442695, %v1085_v47  ;;  %v3505_v29 = vpop.f32.mrb[36].mxu0  ;;  %906 = vst.msk [vmem:[%s4816_s3 + $0x80] sm:$0xff] %vm889_vm2, %v3528_v20 }
 0x122   :  { %v3494_v25 = vpop.eup %2366  ;;  %v1720_v32 = vmul.f32 %v2365_v35, %v3335_v8  ;;  %4831 = vst [vmem:[#allocation16_spill] sm:$0xff] %v3505_v29  ;;  %v1285_v8 = vmul.f32 1.442695, %v1133_v50  ;;  %v3518_v4 = vpop.f32.mrb[36].mxu1  ;;  %v1090_v47 = vsub.f32 0.0, %v999_v21  ;;  %vm1358_vm3 = vcmp.ge.f32.partialorder %v3449_v33, 0.0 }
 0x123   :  { %v3497_v26 = vpop.eup %2368  ;;  %2378 = vrcp.f32 %v1450_v9  ;;  %v1498_v52 = vadd.f32 1.0, %v3494_v25  ;;  %4832 = vst [vmem:[#allocation17_spill] sm:$0xff] %v3518_v4  ;;  %v3534_v9 = vpop.f32.mrb[37].mxu0  ;;  %vm1406_vm4 = vcmp.ge.f32.partialorder %v3465_v44, 0.0  ;;  %vm1363_vm5 = vcmp.ge.f32.partialorder %v3502_v0, 0.0 }
 0x124   :  { %v1811_v51 = vsel %vm1356_vm8, %v2365_v35, %v1720_v32  ;;  %v1448_v28 = vadd.f32 1.0, %v3497_v26  ;;  %2380 = vpow2.f32 %v1193_v23  ;;  %v3524_v23 = vadd.f32 %v3098_v38, %v2855_v49  ;;  %4833 = vst [vmem:[#allocation18_spill] sm:$0xff] %v3534_v9  ;;  %v3536_v41 = vpop.f32.mrb[37].mxu1 }
 0x125   :  { %1902 = vst.msk [vmem:[%s4817_s4 + $0x58] sm:$0xff] %vm889_vm2, %v1811_v51  ;;  %2382 = vrcp.f32 %v1498_v52  ;;  %v3520_v43 = vpop.eup %2370  ;;  %v3532_v35 = vadd.f32 %v2855_v49, %v3107_v62  ;;  %4834 = vst [vmem:[#allocation19_spill] sm:$0xff] %v3536_v41  ;;  %v3541_v38 = vadd.f32 %v3109_v3, %v2855_v49  ;;  %v3543_v52 = vpop.f32.mrb[38].mxu0  ;;  %v997_v3 = vand.u32 2147483647, %v3528_v20 }
 0x126   :  { %2384 = vrcp.f32 %v1448_v28  ;;  %v1496_v32 = vadd.f32 1.0, %v3520_v43  ;;  %4835 = vst [vmem:[#allocation20_spill] sm:$0xff] %v3543_v52  ;;  %v3545_v45 = vpop.f32.mrb[38].mxu1  ;;  %956 = vst.msk [vmem:[%s4816_s3 + $0x210] sm:$0xff] %vm889_vm2, %v3524_v23  ;;  %v1047_v62 = vand.u32 2147483647, %v3524_v23 }
 0x127   :  { %2386 = vpow2.f32 %v1289_v2  ;;  %4836 = vst [vmem:[#allocation21_spill] sm:$0xff] %v3545_v45  ;;  %954 = vst.msk [vmem:[%s4816_s3 + $0x200] sm:$0xff] %vm889_vm2, %v3532_v35  ;;  %v3565_v2 = vpop.f32.mrb[39].mxu0  ;;  %v1199_v51 = vmul.f32 1.442695, %v1090_v47  ;;  %vm1411_vm6 = vcmp.ge.f32.partialorder %v3524_v23, 0.0 }
 0x128   :  { %2388 = vpow2.f32 %v1189_v19  ;;  %4837 = vst [vmem:[#allocation22_spill] sm:$0xff] %v3565_v2  ;;  %v2373_v50 = vpop.eup %2372  ;;  %v1045_v28 = vand.u32 2147483647, %v3532_v35  ;;  %909 = vst.msk [vmem:[%s4816_s3 + $0x98] sm:$0xff] %vm889_vm2, %v3541_v38  ;;  %v3574_v19 = vpop.f32.mrb[39].mxu1  ;;  %v1138_v45 = vsub.f32 0.0, %v1047_v62 }
 0x129   :  { %2390 = vrcp.f32 %v1496_v32  ;;  %4838 = vst [vmem:[#allocation23_spill] sm:$0xff] %v3574_v19  ;;  %v1768_v21 = vmul.f32 %v2373_v50, %v3413_v7  ;;  %v1088_v2 = vsub.f32 0.0, %v997_v3  ;;  %v1000_v47 = vand.u32 2147483647, %v3541_v38  ;;  %v3582_v48 = vpop.f32.mrb[40].mxu0  ;;  %v3590_v6 = vpop.f32.mrb[40].mxu1 }
 0x12a   :  { %2392 = vpow2.f32 %v1285_v8  ;;  %v2375_v52 = vpop.eup %2374  ;;  %v1136_v32 = vsub.f32 0.0, %v1045_v28  ;;  %v1295_v29 = vmul.f32 1.442695, %v1138_v45  ;;  %vm1361_vm7 = vcmp.ge.f32.partialorder %v3528_v20, 0.0 }
 0x12b   :  { %2394 = vpow2.f32 %v1199_v51  ;;  %v2377_v41 = vpop.eup %2376  ;;  %v1859_v9 = vsel %vm1404_vm9, %v2373_v50, %v1768_v21  ;;  %v1718_v4 = vmul.f32 %v2375_v52, %v3440_v40  ;;  %v1195_v19 = vmul.f32 1.442695, %v1088_v2  ;;  %v3592_v50 = vpop.f32.mrb[41].mxu0 }
 0x12c   :  { %1950 = vst.msk [vmem:[%s4817_s4 + $0x1d8] sm:$0xff] %vm889_vm2, %v1859_v9  ;;  %v1766_v8 = vmul.f32 %v2377_v41, %v3455_v13  ;;  %v1291_v62 = vmul.f32 1.442695, %v1136_v32  ;;  %v1091_v3 = vsub.f32 0.0, %v1000_v47  ;;  %2396 = vpow2.f32 %v1295_v29  ;;  %v3603_v13 = vpop.f32.mrb[41].mxu1  ;;  %v3605_v51 = vpop.f32.mrb[42].mxu0 }
 0x12d   :  { %v2379_v7 = vpop.eup %2378  ;;  %v1809_v45 = vsel %vm1354_vm10, %v2375_v52, %v1718_v4  ;;  %v3601_v9 = vadd.f32 %v3120_v1, %v2855_v49  ;;  %2398 = vpow2.f32 %v1195_v19  ;;  %v2223_v4 = vpop.f32.mrb[42].mxu1  ;;  %vm1409_vm8 = vcmp.ge.f32.partialorder %v3532_v35, 0.0 }
 0x12e   :  { %v3594_v40 = vpop.eup %2380  ;;  %v1723_v2 = vmul.f32 %v2379_v7, %v3471_v54  ;;  %1900 = vst.msk [vmem:[%s4817_s4 + $0x48] sm:$0xff] %vm889_vm2, %v1809_v45  ;;  %v1857_v57 = vsel %vm1402_vm11, %v2377_v41, %v1766_v8  ;;  %v1201_v29 = vmul.f32 1.442695, %v1091_v3  ;;  %v3614_v49 = vpop.f32.mrb[43].mxu0  ;;  %2400 = vpow2.f32 %v1291_v62 }
 0x12f   :  { %v2383_v28 = vpop.eup %2382  ;;  %v1451_v54 = vadd.f32 1.0, %v3594_v40  ;;  %1948 = vst.msk [vmem:[%s4817_s4 + $0x1c8] sm:$0xff] %vm889_vm2, %v1857_v57  ;;  %957 = vst.msk [vmem:[%s4816_s3 + $0x218] sm:$0xff] %vm889_vm2, %v3601_v9  ;;  %v1048_v18 = vand.u32 2147483647, %v3601_v9  ;;  %v3629_v41 = vpop.f32.mrb[43].mxu1 }
 0x130   :  { %v2385_v1 = vpop.eup %2384  ;;  %v1814_v52 = vsel %vm1359_vm12, %v2379_v7, %v1723_v2  ;;  %v1771_v21 = vmul.f32 %v2383_v28, %v3494_v25  ;;  %v3639_v25 = vld [vmem:[#allocation2] ss:$0 sm:$0xff]  ;;  %vm1364_vm9 = vcmp.ge.f32.partialorder %v3541_v38, 0.0  ;;  %vm1412_vm10 = vcmp.ge.f32.partialorder %v3601_v9, 0.0 }
 0x131   :  { %v3631_v19 = vpop.eup %2386  ;;  %1905 = vst.msk [vmem:[%s4817_s4 + $0x70] sm:$0xff] %vm889_vm2, %v1814_v52  ;;  %v1721_v11 = vmul.f32 %v2385_v1, %v3497_v26  ;;  %2402 = vrcp.f32 %v1451_v54  ;;  %v3643_v32 = vadd.f32 %v3639_v25, %v3122_v46  ;;  %v1139_v62 = vsub.f32 0.0, %v1048_v18  ;;  %v3673_v57 = vpop.f32.mrb[44].mxu0 }
 0x132   :  { %v3645_v47 = vpop.eup %2388  ;;  %v1862_v7 = vsel %vm1407_vm13, %v2383_v28, %v1771_v21  ;;  %v1499_v8 = vadd.f32 1.0, %v3631_v19  ;;  %2404 = vpow2.f32 %v1201_v29  ;;  %v3671_v28 = vadd.f32 %v3639_v25, %v3136_v16  ;;  %4839 = vst [vmem:[#allocation24_spill] sm:$0xff] %v3673_v57  ;;  %v3682_v52 = vpop.f32.mrb[45].mxu0 }
 0x133   :  { %v2391_v3 = vpop.eup %2390  ;;  %1953 = vst.msk [vmem:[%s4817_s4 + $0x1f0] sm:$0xff] %vm889_vm2, %v1862_v7  ;;  %v1812_v61 = vsel %vm1357_vm14, %v2385_v1, %v1721_v11  ;;  %v1449_v46 = vadd.f32 1.0, %v3645_v47  ;;  %907 = vst.msk [vmem:[%s4816_s3 + $0x88] sm:$0xff] %vm889_vm2, %v3643_v32  ;;  %v998_v24 = vand.u32 2147483647, %v3643_v32  ;;  %v3680_v1 = vadd.f32 %v3639_v25, %v3170_v60  ;;  %v3693_v18 = vpop.f32.mrb[46].mxu0 }
 0x134   :  { %v3662_v26 = vpop.eup %2392  ;;  %1903 = vst.msk [vmem:[%s4817_s4 + $0x60] sm:$0xff] %vm889_vm2, %v1812_v61  ;;  %v1769_v45 = vmul.f32 %v2391_v3, %v3520_v43  ;;  %2406 = vrcp.f32 %v1499_v8  ;;  %v1297_v2 = vmul.f32 1.442695, %v1139_v62  ;;  %4840 = vst [vmem:[#allocation25_spill] sm:$0xff] %v3682_v52  ;;  %v1046_v21 = vand.u32 2147483647, %v3671_v28 }
 0x135   :  { %v3675_v54 = vpop.eup %2394  ;;  %2408 = vrcp.f32 %v1449_v46  ;;  %v1497_v29 = vadd.f32 1.0, %v3662_v26  ;;  %v1089_v4 = vsub.f32 0.0, %v998_v24  ;;  %955 = vst.msk [vmem:[%s4816_s3 + $0x208] sm:$0xff] %vm889_vm2, %v3671_v28  ;;  %4841 = vst [vmem:[#allocation26_spill] sm:$0xff] %v3693_v18  ;;  %v1003_v12 = vand.u32 2147483647, %v3680_v1 }
 0x136   :  { %v1860_v43 = vsel %vm1405_vm15, %v2391_v3, %v1769_v45  ;;  %v1454_v16 = vadd.f32 1.0, %v3675_v54  ;;  %2410 = vpow2.f32 %v1297_v2  ;;  %912 = vst.msk [vmem:[%s4816_s3 + $0xb0] sm:$0xff] %vm889_vm2, %v3680_v1  ;;  %v3706_v11 = vpop.f32.mrb[47].mxu0  ;;  %v3708_v7 = vpop.eup %2396  ;;  %v1137_v8 = vsub.f32 0.0, %v1046_v21 }
 0x137   :  { %1951 = vst.msk [vmem:[%s4817_s4 + $0x1e0] sm:$0xff] %vm889_vm2, %v1860_v43  ;;  %2412 = vrcp.f32 %v1497_v29  ;;  %v1197_v60 = vmul.f32 1.442695, %v1089_v4  ;;  %4842 = vst [vmem:[#allocation27_spill] sm:$0xff] %v3706_v11  ;;  %v3713_v62 = vadd.f32 %v3639_v25, %v3184_v30  ;;  %v3715_v3 = vpop.eup %2398  ;;  %v1502_v61 = vadd.f32 1.0, %v3708_v7 }
 0x138   :  { %2414 = vrcp.f32 %v1454_v16  ;;  %v1094_v46 = vsub.f32 0.0, %v1003_v12  ;;  %v3720_v24 = vadd.f32 %v3639_v25, %v3186_v14  ;;  %v3722_v45 = vpop.eup %2400  ;;  %v1452_v2 = vadd.f32 1.0, %v3715_v3 }
 0x139   :  { %2416 = vpow2.f32 %v1197_v60  ;;  %v1293_v29 = vmul.f32 1.442695, %v1137_v8  ;;  %960 = vst.msk [vmem:[%s4816_s3 + $0x230] sm:$0xff] %vm889_vm2, %v3713_v62  ;;  %v1051_v30 = vand.u32 2147483647, %v3713_v62  ;;  %v1500_v14 = vadd.f32 1.0, %v3722_v45 }
 0x13a   :  { %2418 = vrcp.f32 %v1502_v61  ;;  %910 = vst.msk [vmem:[%s4816_s3 + $0xa0] sm:$0xff] %vm889_vm2, %v3720_v24  ;;  %v1001_v43 = vand.u32 2147483647, %v3720_v24  ;;  %v1207_v60 = vmul.f32 1.442695, %v1094_v46  ;;  %v3746_v11 = vadd.f32 %v3639_v25, %v3191_v36 }
 0x13b   :  { %v2403_v4 = vpop.eup %2402  ;;  %2420 = vrcp.f32 %v1452_v2  ;;  %v1142_v12 = vsub.f32 0.0, %v1051_v30  ;;  %v3808_v44 = vadd.f32 %v3639_v25, %v3211_v63  ;;  %vm1362_vm11 = vcmp.ge.f32.partialorder %v3643_v32, 0.0 }
 0x13c   :  { %v3740_v16 = vpop.eup %2404  ;;  %v1724_v21 = vmul.f32 %v2403_v4, %v3594_v40  ;;  %2422 = vrcp.f32 %v1500_v14  ;;  %v1092_v61 = vsub.f32 0.0, %v1001_v43  ;;  %v3752_v40 = vadd.f32 %v3639_v25, %v3193_v53  ;;  %958 = vst.msk [vmem:[%s4816_s3 + $0x220] sm:$0xff] %vm889_vm2, %v3746_v11 }
 0x13d   :  { %v1455_v8 = vadd.f32 1.0, %v3740_v16  ;;  %2424 = vpow2.f32 %v1293_v29  ;;  %v1303_v57 = vmul.f32 1.442695, %v1142_v12  ;;  %v1049_v42 = vand.u32 2147483647, %v3746_v11  ;;  %911 = vst.msk [vmem:[%s4816_s3 + $0xa8] sm:$0xff] %vm889_vm2, %v3808_v44 }
 0x13e   :  { %v2407_v18 = vpop.eup %2406  ;;  %v1815_v52 = vsel %vm1360_vm0, %v2403_v4, %v1724_v21  ;;  %v1203_v36 = vmul.f32 1.442695, %v1092_v61  ;;  %913 = vst.msk [vmem:[%s4816_s3 + $0xb8] sm:$0xff] %vm889_vm2, %v3752_v40  ;;  %vm1410_vm12 = vcmp.ge.f32.partialorder %v3671_v28, 0.0  ;;  %vm1367_vm13 = vcmp.ge.f32.partialorder %v3680_v1, 0.0 }
 0x13f   :  { %v2409_v46 = vpop.eup %2408  ;;  %1906 = vst.msk [vmem:[%s4817_s4 + $0x78] sm:$0xff] %vm889_vm2, %v1815_v52  ;;  %v1772_v2 = vmul.f32 %v2407_v18, %v3631_v19  ;;  %2426 = vrcp.f32 %v1455_v8  ;;  %v1004_v19 = vand.u32 2147483647, %v3752_v40  ;;  %v1140_v14 = vsub.f32 0.0, %v1049_v42 }
 0x140   :  { %v3765_v53 = vpop.eup %2410  ;;  %v1722_v29 = vmul.f32 %v2409_v46, %v3645_v47  ;;  %2428 = vpow2.f32 %v1207_v60  ;;  %v3798_v8 = vadd.f32 %v3639_v25, %v3209_v5  ;;  %vm1415_vm14 = vcmp.ge.f32.partialorder %v3713_v62, 0.0 }
 0x141   :  { %v2413_v52 = vpop.eup %2412  ;;  %v1863_v30 = vsel %vm1408_vm1, %v2407_v18, %v1772_v2  ;;  %v1503_v4 = vadd.f32 1.0, %v3765_v53  ;;  %2430 = vpow2.f32 %v1303_v57  ;;  %v1095_v60 = vsub.f32 0.0, %v1004_v19 }
 0x142   :  { %v2415_v47 = vpop.eup %2414  ;;  %1954 = vst.msk [vmem:[%s4817_s4 + $0x1f8] sm:$0xff] %vm889_vm2, %v1863_v30  ;;  %v1813_v43 = vsel %vm1358_vm3, %v2409_v46, %v1722_v29  ;;  %v1770_v21 = vmul.f32 %v2413_v52, %v3662_v26  ;;  %2432 = vpow2.f32 %v1203_v36  ;;  %v1299_v57 = vmul.f32 1.442695, %v1140_v14  ;;  %961 = vst.msk [vmem:[%s4816_s3 + $0x238] sm:$0xff] %vm889_vm2, %v3798_v8 }
 0x143   :  { %v3785_v12 = vpop.eup %2416  ;;  %1904 = vst.msk [vmem:[%s4817_s4 + $0x68] sm:$0xff] %vm889_vm2, %v1813_v43  ;;  %v1727_v17 = vmul.f32 %v2415_v47, %v3675_v54  ;;  %2434 = vrcp.f32 %v1503_v4  ;;  %v1209_v18 = vmul.f32 1.442695, %v1095_v60  ;;  %v3812_v46 = vadd.f32 %v3639_v25, %v3224_v55 }
 0x144   :  { %v1861_v33 = vsel %vm1406_vm4, %v2413_v52, %v1770_v21  ;;  %v1453_v26 = vadd.f32 1.0, %v3785_v12  ;;  %v2419_v61 = vpop.eup %2418  ;;  %2436 = vpow2.f32 %v1299_v57  ;;  %v1052_v63 = vand.u32 2147483647, %v3798_v8 }
 0x145   :  { %1952 = vst.msk [vmem:[%s4817_s4 + $0x1e8] sm:$0xff] %vm889_vm2, %v1861_v33  ;;  %v1818_v54 = vsel %vm1363_vm5, %v2415_v47, %v1727_v17  ;;  %v2421_v5 = vpop.eup %2420  ;;  %v1775_v2 = vmul.f32 %v2419_v61, %v3708_v7  ;;  %v1002_v7 = vand.u32 2147483647, %v3808_v44  ;;  %959 = vst.msk [vmem:[%s4816_s3 + $0x228] sm:$0xff] %vm889_vm2, %v3812_v46  ;;  %v1050_v19 = vand.u32 2147483647, %v3812_v46 }
 0x146   :  { %1909 = vst.msk [vmem:[%s4817_s4 + $0x90] sm:$0xff] %vm889_vm2, %v1818_v54  ;;  %2438 = vrcp.f32 %v1453_v26  ;;  %v2423_v55 = vpop.eup %2422  ;;  %v1725_v0 = vmul.f32 %v2421_v5, %v3715_v3  ;;  %v1143_v29 = vsub.f32 0.0, %v1052_v63  ;;  %v4843_v17 = vld [vmem:[#allocation3_spill] sm:$0xff]  ;;  %vm1365_vm15 = vcmp.ge.f32.partialorder %v3720_v24, 0.0  ;;  %v4850_v24 = vld [vmem:[#allocation10_spill] sm:$0xff] }
 0x147   :  { %2440 = vpow2.f32 %v1209_v18  ;;  %v3839_v36 = vpop.eup %2424  ;;  %v1866_v3 = vsel %vm1411_vm6, %v2419_v61, %v1775_v2  ;;  %v1773_v42 = vmul.f32 %v2423_v55, %v3722_v45  ;;  %v1093_v23 = vsub.f32 0.0, %v1002_v7  ;;  %v4844_v2 = vld [vmem:[#allocation4_spill] sm:$0xff] }
 0x148   :  { %1957 = vst.msk [vmem:[%s4817_s4 + $0x210] sm:$0xff] %vm889_vm2, %v1866_v3  ;;  %v1816_v30 = vsel %vm1361_vm7, %v2421_v5, %v1725_v0  ;;  %v1501_v4 = vadd.f32 1.0, %v3839_v36  ;;  %v1305_v43 = vmul.f32 1.442695, %v1143_v29  ;;  %v1141_v20 = vsub.f32 0.0, %v1050_v19  ;;  %v4847_v19 = vld [vmem:[#allocation7_spill] sm:$0xff] }
 0x149   :  { %v2427_v52 = vpop.eup %2426  ;;  %1907 = vst.msk [vmem:[%s4817_s4 + $0x80] sm:$0xff] %vm889_vm2, %v1816_v30  ;;  %v1864_v45 = vsel %vm1409_vm8, %v2423_v55, %v1773_v42  ;;  %v3872_v35 = vadd.f32 %v3639_v25, %v4843_v17  ;;  %v1205_v26 = vmul.f32 1.442695, %v1093_v23  ;;  %v3893_v63 = vadd.f32 %v3639_v25, %v4844_v2  ;;  %v4845_v55 = vld [vmem:[#allocation5_spill] sm:$0xff]  ;;  %v4846_v42 = vld [vmem:[#allocation6_spill] sm:$0xff] }
 0x14a   :  { %v3853_v14 = vpop.eup %2428  ;;  %v1728_v47 = vmul.f32 %v2427_v52, %v3740_v16  ;;  %1955 = vst.msk [vmem:[%s4817_s4 + $0x200] sm:$0xff] %vm889_vm2, %v1864_v45  ;;  %2442 = vrcp.f32 %v1501_v4  ;;  %v1301_v54 = vmul.f32 1.442695, %v1141_v20  ;;  %v3897_v0 = vadd.f32 %v3639_v25, %v4845_v55  ;;  %v4849_v55 = vld [vmem:[#allocation9_spill] sm:$0xff] }
 0x14b   :  { %v3862_v21 = vpop.eup %2430  ;;  %v1458_v60 = vadd.f32 1.0, %v3853_v14  ;;  %2444 = vpow2.f32 %v1305_v43  ;;  %916 = vst.msk [vmem:[%s4816_s3 + $0xd0] sm:$0xff] %vm889_vm2, %v3872_v35  ;;  %v1007_v38 = vand.u32 2147483647, %v3872_v35  ;;  %v3903_v29 = vadd.f32 %v3639_v25, %v4846_v42  ;;  %964 = vst.msk [vmem:[%s4816_s3 + $0x250] sm:$0xff] %vm889_vm2, %v3893_v63 }
 0x14c   :  { %v3874_v57 = vpop.eup %2432  ;;  %v1819_v16 = vsel %vm1364_vm9, %v2427_v52, %v1728_v47  ;;  %v1506_v33 = vadd.f32 1.0, %v3862_v21  ;;  %v1055_v23 = vand.u32 2147483647, %v3893_v63  ;;  %914 = vst.msk [vmem:[%s4816_s3 + $0xc0] sm:$0xff] %vm889_vm2, %v3897_v0  ;;  %vm1413_vm0 = vcmp.ge.f32.partialorder %v3746_v11, 0.0 }
 0x14d   :  { %v2435_v18 = vpop.eup %2434  ;;  %1910 = vst.msk [vmem:[%s4817_s4 + $0x98] sm:$0xff] %vm889_vm2, %v1819_v16  ;;  %2446 = vrcp.f32 %v1458_v60  ;;  %v1456_v61 = vadd.f32 1.0, %v3874_v57  ;;  %v1098_v3 = vsub.f32 0.0, %v1007_v38  ;;  %962 = vst.msk [vmem:[%s4816_s3 + $0x240] sm:$0xff] %vm889_vm2, %v3903_v29  ;;  %v1053_v60 = vand.u32 2147483647, %v3903_v29 }
 0x14e   :  { %v1776_v5 = vmul.f32 %v2435_v18, %v3765_v53  ;;  %2448 = vrcp.f32 %v1506_v33  ;;  %v3899_v7 = vpop.eup %2436  ;;  %v3907_v53 = vadd.f32 %v3639_v25, %v4847_v19  ;;  %v1146_v32 = vsub.f32 0.0, %v1055_v23 }
 0x14f   :  { %2450 = vrcp.f32 %v1456_v61  ;;  %v1504_v4 = vadd.f32 1.0, %v3899_v7  ;;  %v1215_v47 = vmul.f32 1.442695, %v1098_v3  ;;  %v4848_v61 = vld [vmem:[#allocation8_spill] sm:$0xff]  ;;  %v3961_v3 = vadd.f32 %v3639_v25, %v4849_v55 }
 0x150   :  { %v2439_v52 = vpop.eup %2438  ;;  %v1867_v30 = vsel %vm1412_vm10, %v2435_v18, %v1776_v5  ;;  %2452 = vpow2.f32 %v1205_v26  ;;  %917 = vst.msk [vmem:[%s4816_s3 + $0xd8] sm:$0xff] %vm889_vm2, %v3907_v53  ;;  %v1311_v17 = vmul.f32 1.442695, %v1146_v32  ;;  %v1144_v26 = vsub.f32 0.0, %v1053_v60 }
 0x151   :  { %v3923_v45 = vpop.eup %2440  ;;  %1958 = vst.msk [vmem:[%s4817_s4 + $0x218] sm:$0xff] %vm889_vm2, %v1867_v30  ;;  %v1726_v9 = vmul.f32 %v2439_v52, %v3785_v12  ;;  %2454 = vpow2.f32 %v1301_v54  ;;  %v1005_v12 = vand.u32 2147483647, %v3897_v0  ;;  %v1008_v18 = vand.u32 2147483647, %v3907_v53  ;;  %915 = vst.msk [vmem:[%s4816_s3 + $0xc8] sm:$0xff] %vm889_vm2, %v3961_v3 }
 0x152   :  { %2456 = vrcp.f32 %v1504_v4  ;;  %v1459_v43 = vadd.f32 1.0, %v3923_v45  ;;  %v3954_v54 = vadd.f32 %v3639_v25, %v4848_v61  ;;  %v1006_v60 = vand.u32 2147483647, %v3961_v3 }
 0x153   :  { %v1817_v20 = vsel %vm1362_vm11, %v2439_v52, %v1726_v9  ;;  %2458 = vpow2.f32 %v1215_v47  ;;  %v1096_v16 = vsub.f32 0.0, %v1005_v12  ;;  %v1307_v52 = vmul.f32 1.442695, %v1144_v26 }
 0x154   :  { %1908 = vst.msk [vmem:[%s4817_s4 + $0x88] sm:$0xff] %vm889_vm2, %v1817_v20  ;;  %2460 = vrcp.f32 %v1459_v43  ;;  %v2443_v33 = vpop.eup %2442  ;;  %v1099_v30 = vsub.f32 0.0, %v1008_v18  ;;  %965 = vst.msk [vmem:[%s4816_s3 + $0x258] sm:$0xff] %vm889_vm2, %v3954_v54  ;;  %v1056_v4 = vand.u32 2147483647, %v3954_v54  ;;  %v1097_v18 = vsub.f32 0.0, %v1006_v60 }
 0x155   :  { %v3956_v38 = vpop.eup %2444  ;;  %v1774_v5 = vmul.f32 %v2443_v33, %v3839_v36  ;;  %2462 = vpow2.f32 %v1311_v17  ;;  %v1211_v2 = vmul.f32 1.442695, %v1096_v16  ;;  %v4020_v11 = vadd.f32 %v3639_v25, %v4850_v24 }
 0x156   :  { %v1507_v19 = vadd.f32 1.0, %v3956_v38  ;;  %v1217_v43 = vmul.f32 1.442695, %v1099_v30  ;;  %vm1368_vm1 = vcmp.ge.f32.partialorder %v3752_v40, 0.0  ;;  %vm1416_vm3 = vcmp.ge.f32.partialorder %v3798_v8, 0.0  ;;  %v4854_v8 = vld [vmem:[#allocation14_spill] sm:$0xff] }
 0x157   :  { %v2447_v42 = vpop.eup %2446  ;;  %v1865_v23 = vsel %vm1410_vm12, %v2443_v33, %v1774_v5  ;;  %2464 = vpow2.f32 %v1211_v2  ;;  %v4016_v5 = vadd.f32 %v3639_v25, %v3308_v15  ;;  %920 = vst.msk [vmem:[%s4816_s3 + $0xf0] sm:$0xff] %vm889_vm2, %v4020_v11  ;;  %vm1366_vm4 = vcmp.ge.f32.partialorder %v3808_v44, 0.0 }
 0x158   :  { %v2449_v36 = vpop.eup %2448  ;;  %v1731_v9 = vmul.f32 %v2447_v42, %v3853_v14  ;;  %1956 = vst.msk [vmem:[%s4817_s4 + $0x208] sm:$0xff] %vm889_vm2, %v1865_v23  ;;  %2466 = vrcp.f32 %v1507_v19  ;;  %v1147_v14 = vsub.f32 0.0, %v1056_v4  ;;  %v4851_v19 = vld [vmem:[#allocation11_spill] sm:$0xff]  ;;  %vm1414_vm5 = vcmp.ge.f32.partialorder %v3812_v46, 0.0 }
 0x159   :  { %v2451_v47 = vpop.eup %2450  ;;  %v1779_v28 = vmul.f32 %v2449_v36, %v3862_v21  ;;  %2468 = vpow2.f32 %v1307_v52  ;;  %v4025_v52 = vadd.f32 %v3639_v25, %v4851_v19  ;;  %963 = vst.msk [vmem:[%s4816_s3 + $0x248] sm:$0xff] %vm889_vm2, %v4016_v5  ;;  %v1054_v15 = vand.u32 2147483647, %v4016_v5 }
 0x15a   :  { %v3984_v32 = vpop.eup %2452  ;;  %v1822_v12 = vsel %vm1367_vm13, %v2447_v42, %v1731_v9  ;;  %v1729_v20 = vmul.f32 %v2451_v47, %v3874_v57  ;;  %2470 = vpow2.f32 %v1217_v43  ;;  %v1313_v1 = vmul.f32 1.442695, %v1147_v14  ;;  %v4852_v43 = vld [vmem:[#allocation12_spill] sm:$0xff] }
 0x15b   :  { %v3990_v17 = vpop.eup %2454  ;;  %1913 = vst.msk [vmem:[%s4817_s4 + $0xb0] sm:$0xff] %vm889_vm2, %v1822_v12  ;;  %v1870_v21 = vsel %vm1415_vm14, %v2449_v36, %v1779_v28  ;;  %v1457_v16 = vadd.f32 1.0, %v3984_v32  ;;  %v1213_v42 = vmul.f32 1.442695, %v1097_v18  ;;  %968 = vst.msk [vmem:[%s4816_s3 + $0x270] sm:$0xff] %vm889_vm2, %v4025_v52  ;;  %v1145_v9 = vsub.f32 0.0, %v1054_v15 }
 0x15c   :  { %v2457_v33 = vpop.eup %2456  ;;  %1961 = vst.msk [vmem:[%s4817_s4 + $0x230] sm:$0xff] %vm889_vm2, %v1870_v21  ;;  %v1820_v57 = vsel %vm1365_vm15, %v2451_v47, %v1729_v20  ;;  %v1505_v26 = vadd.f32 1.0, %v3990_v17  ;;  %v1059_v28 = vand.u32 2147483647, %v4025_v52  ;;  %v4064_v14 = vadd.f32 %v3639_v25, %v4852_v43  ;;  %v4853_v21 = vld [vmem:[#allocation13_spill] sm:$0xff] }
 0x15d   :  { %v4007_v62 = vpop.eup %2458  ;;  %1911 = vst.msk [vmem:[%s4817_s4 + $0xa0] sm:$0xff] %vm889_vm2, %v1820_v57  ;;  %v1777_v61 = vmul.f32 %v2457_v33, %v3899_v7  ;;  %2472 = vrcp.f32 %v1457_v16  ;;  %v1309_v60 = vmul.f32 1.442695, %v1145_v9  ;;  %v4069_v16 = vadd.f32 %v3639_v25, %v4853_v21 }
 0x15e   :  { %v2461_v2 = vpop.eup %2460  ;;  %2474 = vrcp.f32 %v1505_v26  ;;  %v1462_v55 = vadd.f32 1.0, %v4007_v62  ;;  %v1150_v57 = vsub.f32 0.0, %v1059_v28  ;;  %918 = vst.msk [vmem:[%s4816_s3 + $0xe0] sm:$0xff] %vm889_vm2, %v4064_v14  ;;  %v1009_v26 = vand.u32 2147483647, %v4064_v14 }
 0x15f   :  { %v1868_v30 = vsel %vm1413_vm0, %v2457_v33, %v1777_v61  ;;  %v1732_v7 = vmul.f32 %v2461_v2, %v3923_v45  ;;  %2476 = vpow2.f32 %v1313_v1  ;;  %v4039_v4 = vpop.eup %2462  ;;  %v1011_v45 = vand.u32 2147483647, %v4020_v11  ;;  %966 = vst.msk [vmem:[%s4816_s3 + $0x260] sm:$0xff] %vm889_vm2, %v4069_v16 }
 0x160   :  { %1959 = vst.msk [vmem:[%s4817_s4 + $0x220] sm:$0xff] %vm889_vm2, %v1868_v30  ;;  %2478 = vrcp.f32 %v1462_v55  ;;  %v1510_v23 = vadd.f32 1.0, %v4039_v4  ;;  %vm1371_vm6 = vcmp.ge.f32.partialorder %v3872_v35, 0.0  ;;  %v1100_v30 = vsub.f32 0.0, %v1009_v26 }
 0x161   :  { %v1823_v36 = vsel %vm1368_vm1, %v2461_v2, %v1732_v7  ;;  %2480 = vpow2.f32 %v1213_v42  ;;  %v4054_v47 = vpop.eup %2464  ;;  %v1102_v40 = vsub.f32 0.0, %v1011_v45  ;;  %v1319_v42 = vmul.f32 1.442695, %v1150_v57 }
 0x162   :  { %1914 = vst.msk [vmem:[%s4817_s4 + $0xb8] sm:$0xff] %vm889_vm2, %v1823_v36  ;;  %v2467_v12 = vpop.eup %2466  ;;  %2482 = vrcp.f32 %v1510_v23  ;;  %v1460_v20 = vadd.f32 1.0, %v4054_v47  ;;  %v4101_v36 = vadd.f32 %v3639_v25, %v4854_v8  ;;  %v4105_v23 = vadd.f32 %v3639_v25, %v3368_v39 }
 0x163   :  { %v4071_v1 = vpop.eup %2468  ;;  %v1780_v33 = vmul.f32 %v2467_v12, %v3956_v38  ;;  %v1223_v24 = vmul.f32 1.442695, %v1102_v40  ;;  %v1057_v38 = vand.u32 2147483647, %v4069_v16  ;;  %v1219_v28 = vmul.f32 1.442695, %v1100_v30 }
 0x164   :  { %v4081_v18 = vpop.eup %2470  ;;  %2484 = vrcp.f32 %v1460_v20  ;;  %v1508_v61 = vadd.f32 1.0, %v4071_v1  ;;  %921 = vst.msk [vmem:[%s4816_s3 + $0xf8] sm:$0xff] %vm889_vm2, %v4101_v36  ;;  %v1012_v39 = vand.u32 2147483647, %v4101_v36  ;;  %969 = vst.msk [vmem:[%s4816_s3 + $0x278] sm:$0xff] %vm889_vm2, %v4105_v23  ;;  %vm1419_vm7 = vcmp.ge.f32.partialorder %v3893_v63, 0.0 }
 0x165   :  { %v1871_v2 = vsel %vm1416_vm3, %v2467_v12, %v1780_v33  ;;  %v1463_v55 = vadd.f32 1.0, %v4081_v18  ;;  %2486 = vpow2.f32 %v1309_v60  ;;  %v1148_v7 = vsub.f32 0.0, %v1057_v38 }
 0x166   :  { %1962 = vst.msk [vmem:[%s4817_s4 + $0x238] sm:$0xff] %vm889_vm2, %v1871_v2  ;;  %2488 = vrcp.f32 %v1508_v61  ;;  %v1103_v33 = vsub.f32 0.0, %v1012_v39  ;;  %v1060_v57 = vand.u32 2147483647, %v4105_v23  ;;  %vm1369_vm8 = vcmp.ge.f32.partialorder %v3897_v0, 0.0 }
 0x167   :  { %v2473_v19 = vpop.eup %2472  ;;  %2490 = vrcp.f32 %v1463_v55  ;;  %v1315_v43 = vmul.f32 1.442695, %v1148_v7  ;;  %vm1417_vm9 = vcmp.ge.f32.partialorder %v3903_v29, 0.0  ;;  %v4161_v35 = vadd.f32 %v3639_v25, %v3375_v37 }
 0x168   :  { %v2475_v15 = vpop.eup %2474  ;;  %v1730_v45 = vmul.f32 %v2473_v19, %v3984_v32  ;;  %2492 = vpow2.f32 %v1223_v24  ;;  %v1225_v24 = vmul.f32 1.442695, %v1103_v33  ;;  %v1151_v38 = vsub.f32 0.0, %v1060_v57 }
 0x169   :  { %v4107_v9 = vpop.eup %2476  ;;  %v1778_v40 = vmul.f32 %v2475_v15, %v3990_v17  ;;  %2494 = vpow2.f32 %v1319_v42  ;;  %vm1372_vm10 = vcmp.ge.f32.partialorder %v3907_v53, 0.0  ;;  %967 = vst.msk [vmem:[%s4816_s3 + $0x268] sm:$0xff] %vm889_vm2, %v4161_v35  ;;  %v1058_v63 = vand.u32 2147483647, %v4161_v35 }
 0x16a   :  { %v2479_v12 = vpop.eup %2478  ;;  %v1821_v32 = vsel %vm1366_vm4, %v2473_v19, %v1730_v45  ;;  %v1511_v20 = vadd.f32 1.0, %v4107_v9  ;;  %2496 = vpow2.f32 %v1219_v28  ;;  %v1321_v30 = vmul.f32 1.442695, %v1151_v38 }
 0x16b   :  { %v4124_v17 = vpop.eup %2480  ;;  %1912 = vst.msk [vmem:[%s4817_s4 + $0xa8] sm:$0xff] %vm889_vm2, %v1821_v32  ;;  %v1869_v44 = vsel %vm1414_vm5, %v2475_v15, %v1778_v40  ;;  %v1735_v60 = vmul.f32 %v2479_v12, %v4007_v62  ;;  %v4145_v62 = vadd.f32 %v3639_v25, %v3370_v10  ;;  %vm1420_vm11 = vcmp.ge.f32.partialorder %v3954_v54, 0.0 }
 0x16c   :  { %1960 = vst.msk [vmem:[%s4817_s4 + $0x228] sm:$0xff] %vm889_vm2, %v1869_v44  ;;  %2498 = vrcp.f32 %v1511_v20  ;;  %v1461_v21 = vadd.f32 1.0, %v4124_v17  ;;  %v2483_v26 = vpop.eup %2482  ;;  %v4222_v57 = vadd.f32 %v3639_v25, %v3436_v34  ;;  %vm1370_vm12 = vcmp.ge.f32.partialorder %v3961_v3, 0.0 }
 0x16d   :  { %v1826_v46 = vsel %vm1371_vm6, %v2479_v12, %v1735_v60  ;;  %2500 = vpow2.f32 %v1315_v43  ;;  %v1783_v61 = vmul.f32 %v2483_v26, %v4039_v4  ;;  %919 = vst.msk [vmem:[%s4816_s3 + $0xe8] sm:$0xff] %vm889_vm2, %v4145_v62  ;;  %v1010_v10 = vand.u32 2147483647, %v4145_v62 }
 0x16e   :  { %1917 = vst.msk [vmem:[%s4817_s4 + $0xd0] sm:$0xff] %vm889_vm2, %v1826_v46  ;;  %2502 = vrcp.f32 %v1461_v21  ;;  %v2485_v2 = vpop.eup %2484  ;;  %v4165_v4 = vadd.f32 %v3639_v25, %v3428_v31  ;;  %v1149_v12 = vsub.f32 0.0, %v1058_v63  ;;  %v4229_v46 = vadd.f32 %v3639_v25, %v3438_v27  ;;  %972 = vst.msk [vmem:[%s4816_s3 + $0x290] sm:$0xff] %vm889_vm2, %v4222_v57 }
 0x16f   :  { %v4167_v55 = vpop.eup %2486  ;;  %v1874_v42 = vsel %vm1419_vm7, %v2483_v26, %v1783_v61  ;;  %v1733_v19 = vmul.f32 %v2485_v2, %v4054_v47  ;;  %2504 = vpow2.f32 %v1225_v24  ;;  %v1101_v31 = vsub.f32 0.0, %v1010_v10 }
 0x170   :  { %v2489_v7 = vpop.eup %2488  ;;  %1965 = vst.msk [vmem:[%s4817_s4 + $0x250] sm:$0xff] %vm889_vm2, %v1874_v42  ;;  %v1509_v37 = vadd.f32 1.0, %v4167_v55  ;;  %924 = vst.msk [vmem:[%s4816_s3 + $0x110] sm:$0xff] %vm889_vm2, %v4165_v4  ;;  %2506 = vpow2.f32 %v1321_v30  ;;  %v1015_v8 = vand.u32 2147483647, %v4165_v4  ;;  %v4233_v61 = vadd.f32 %v3639_v25, %v3451_v56 }
 0x171   :  { %v2491_v47 = vpop.eup %2490  ;;  %v1824_v15 = vsel %vm1369_vm8, %v2485_v2, %v1733_v19  ;;  %v1781_v45 = vmul.f32 %v2489_v7, %v4071_v1  ;;  %v1221_v43 = vmul.f32 1.442695, %v1101_v31  ;;  %v1317_v29 = vmul.f32 1.442695, %v1149_v12  ;;  %922 = vst.msk [vmem:[%s4816_s3 + $0x100] sm:$0xff] %vm889_vm2, %v4229_v46 }
 0x172   :  { %v4193_v40 = vpop.eup %2492  ;;  %1915 = vst.msk [vmem:[%s4817_s4 + $0xc0] sm:$0xff] %vm889_vm2, %v1824_v15  ;;  %v1736_v28 = vmul.f32 %v2491_v47, %v4081_v18  ;;  %2508 = vrcp.f32 %v1509_v37  ;;  %v1106_v20 = vsub.f32 0.0, %v1015_v8  ;;  %v1013_v38 = vand.u32 2147483647, %v4229_v46  ;;  %970 = vst.msk [vmem:[%s4816_s3 + $0x280] sm:$0xff] %vm889_vm2, %v4233_v61 }
 0x173   :  { %v4200_v32 = vpop.eup %2494  ;;  %v1872_v0 = vsel %vm1417_vm9, %v2489_v7, %v1781_v45  ;;  %v1466_v1 = vadd.f32 1.0, %v4193_v40  ;;  %2510 = vpow2.f32 %v1221_v43  ;;  %vm1418_vm13 = vcmp.ge.f32.partialorder %v4016_v5, 0.0 }
 0x174   :  { %v4206_v39 = vpop.eup %2496  ;;  %1963 = vst.msk [vmem:[%s4817_s4 + $0x240] sm:$0xff] %vm889_vm2, %v1872_v0  ;;  %v1827_v18 = vsel %vm1372_vm10, %v2491_v47, %v1736_v28  ;;  %v1514_v44 = vadd.f32 1.0, %v4200_v32  ;;  %v1231_v33 = vmul.f32 1.442695, %v1106_v20  ;;  %v1104_v19 = vsub.f32 0.0, %v1013_v38 }
 0x175   :  { %1918 = vst.msk [vmem:[%s4817_s4 + $0xd8] sm:$0xff] %vm889_vm2, %v1827_v18  ;;  %2512 = vrcp.f32 %v1466_v1  ;;  %v1464_v21 = vadd.f32 1.0, %v4206_v39  ;;  %vm1375_vm14 = vcmp.ge.f32.partialorder %v4020_v11, 0.0  ;;  %v4277_v31 = vadd.f32 %v3639_v25, %v3453_v59 }
 0x176   :  { %v2499_v60 = vpop.eup %2498  ;;  %2514 = vrcp.f32 %v1514_v44  ;;  %v1227_v47 = vmul.f32 1.442695, %v1104_v19  ;;  %v4282_v15 = vadd.f32 %v3639_v25, %v3467_v22  ;;  %vm1423_vm15 = vcmp.ge.f32.partialorder %v4025_v52, 0.0  ;;  %v4857_v19 = vld [vmem:[#allocation17_spill] sm:$0xff] }
 0x177   :  { %v4224_v53 = vpop.eup %2500  ;;  %v1784_v26 = vmul.f32 %v2499_v60, %v4107_v9  ;;  %2516 = vrcp.f32 %v1464_v21  ;;  %v1063_v9 = vand.u32 2147483647, %v4222_v57  ;;  %925 = vst.msk [vmem:[%s4816_s3 + $0x118] sm:$0xff] %vm889_vm2, %v4277_v31  ;;  %v1016_v59 = vand.u32 2147483647, %v4277_v31  ;;  %v4855_v21 = vld [vmem:[#allocation15_spill] sm:$0xff] }
 0x178   :  { %v2503_v24 = vpop.eup %2502  ;;  %v1512_v34 = vadd.f32 1.0, %v4224_v53  ;;  %2518 = vpow2.f32 %v1317_v29  ;;  %vm1373_vm0 = vcmp.ge.f32.partialorder %v4064_v14, 0.0  ;;  %973 = vst.msk [vmem:[%s4816_s3 + $0x298] sm:$0xff] %vm889_vm2, %v4282_v15  ;;  %v1064_v22 = vand.u32 2147483647, %v4282_v15 }
 0x179   :  { %v1875_v27 = vsel %vm1420_vm11, %v2499_v60, %v1784_v26  ;;  %v1734_v56 = vmul.f32 %v2503_v24, %v4124_v17  ;;  %v4257_v2 = vpop.eup %2504  ;;  %v1154_v54 = vsub.f32 0.0, %v1063_v9  ;;  %v1061_v17 = vand.u32 2147483647, %v4233_v61 }
 0x17a   :  { %1966 = vst.msk [vmem:[%s4817_s4 + $0x258] sm:$0xff] %vm889_vm2, %v1875_v27  ;;  %2520 = vrcp.f32 %v1512_v34  ;;  %v1467_v42 = vadd.f32 1.0, %v4257_v2  ;;  %v4268_v30 = vpop.eup %2506  ;;  %v1107_v0 = vsub.f32 0.0, %v1016_v59  ;;  %v1155_v18 = vsub.f32 0.0, %v1064_v22 }
 0x17b   :  { %v1825_v10 = vsel %vm1370_vm12, %v2503_v24, %v1734_v56  ;;  %2522 = vpow2.f32 %v1231_v33  ;;  %v1327_v7 = vmul.f32 1.442695, %v1154_v54  ;;  %v1152_v37 = vsub.f32 0.0, %v1061_v17 }
 0x17c   :  { %1916 = vst.msk [vmem:[%s4817_s4 + $0xc8] sm:$0xff] %vm889_vm2, %v1825_v10  ;;  %v2509_v3 = vpop.eup %2508  ;;  %2524 = vrcp.f32 %v1467_v42  ;;  %v1515_v63 = vadd.f32 1.0, %v4268_v30  ;;  %v4311_v44 = vadd.f32 %v3639_v25, %v3469_v58  ;;  %v1233_v60 = vmul.f32 1.442695, %v1107_v0 }
 0x17d   :  { %v1782_v45 = vmul.f32 %v2509_v3, %v4167_v55  ;;  %2526 = vpow2.f32 %v1327_v7  ;;  %v1323_v8 = vmul.f32 1.442695, %v1152_v37  ;;  %v4291_v28 = vpop.eup %2510  ;;  %v4316_v33 = vadd.f32 %v3639_v25, %v4855_v21 }
 0x17e   :  { %2528 = vrcp.f32 %v1515_v63  ;;  %v1465_v12 = vadd.f32 1.0, %v4291_v28  ;;  %v1329_v34 = vmul.f32 1.442695, %v1155_v18  ;;  %923 = vst.msk [vmem:[%s4816_s3 + $0x108] sm:$0xff] %vm889_vm2, %v4311_v44  ;;  %v1014_v58 = vand.u32 2147483647, %v4311_v44 }
 0x17f   :  { %v2513_v55 = vpop.eup %2512  ;;  %v1873_v43 = vsel %vm1418_vm13, %v2509_v3, %v1782_v45  ;;  %2530 = vpow2.f32 %v1227_v47  ;;  %vm1421_vm1 = vcmp.ge.f32.partialorder %v4069_v16, 0.0  ;;  %971 = vst.msk [vmem:[%s4816_s3 + $0x288] sm:$0xff] %vm889_vm2, %v4316_v33  ;;  %vm1376_vm3 = vcmp.ge.f32.partialorder %v4101_v36, 0.0  ;;  %v4858_v63 = vld [vmem:[#allocation18_spill] sm:$0xff] }
 0x180   :  { %v2515_v1 = vpop.eup %2514  ;;  %1964 = vst.msk [vmem:[%s4817_s4 + $0x248] sm:$0xff] %vm889_vm2, %v1873_v43  ;;  %v1739_v20 = vmul.f32 %v2513_v55, %v4193_v40  ;;  %2532 = vpow2.f32 %v1323_v8  ;;  %v1105_v56 = vsub.f32 0.0, %v1014_v58  ;;  %v1062_v54 = vand.u32 2147483647, %v4316_v33 }
 0x181   :  { %v2517_v5 = vpop.eup %2516  ;;  %v1787_v29 = vmul.f32 %v2515_v1, %v4200_v32  ;;  %2534 = vrcp.f32 %v1465_v12  ;;  %v4366_v7 = vadd.f32 %v3639_v25, %v4857_v19  ;;  %v4377_v47 = vadd.f32 %v3639_v25, %v4858_v63  ;;  %v4862_v19 = vld [vmem:[#allocation22_spill] sm:$0xff] }
 0x182   :  { %v4318_v26 = vpop.eup %2518  ;;  %v1830_v40 = vsel %vm1375_vm14, %v2513_v55, %v1739_v20  ;;  %v1737_v24 = vmul.f32 %v2517_v5, %v4206_v39  ;;  %2536 = vpow2.f32 %v1233_v60  ;;  %v1229_v10 = vmul.f32 1.442695, %v1105_v56 }
 0x183   :  { %1921 = vst.msk [vmem:[%s4817_s4 + $0xf0] sm:$0xff] %vm889_vm2, %v1830_v40  ;;  %v1878_v11 = vsel %vm1423_vm15, %v2515_v1, %v1787_v29  ;;  %v1513_v39 = vadd.f32 1.0, %v4318_v26  ;;  %2538 = vpow2.f32 %v1329_v34  ;;  %v1153_v16 = vsub.f32 0.0, %v1062_v54  ;;  %976 = vst.msk [vmem:[%s4816_s3 + $0x2b0] sm:$0xff] %vm889_vm2, %v4366_v7  ;;  %v4423_v40 = vld [vmem:[#allocation2] ss:$0 sm:$0xff] }
 0x184   :  { %v2521_v32 = vpop.eup %2520  ;;  %1969 = vst.msk [vmem:[%s4817_s4 + $0x270] sm:$0xff] %vm889_vm2, %v1878_v11  ;;  %v1828_v52 = vsel %vm1373_vm0, %v2517_v5, %v1737_v24  ;;  %vm1424_vm4 = vcmp.ge.f32.partialorder %v4105_v23, 0.0  ;;  %v1067_v43 = vand.u32 2147483647, %v4366_v7  ;;  %926 = vst.msk [vmem:[%s4816_s3 + $0x120] sm:$0xff] %vm889_vm2, %v4377_v47  ;;  %vm1374_vm5 = vcmp.ge.f32.partialorder %v4145_v62, 0.0 }
 0x185   :  { %v4342_v9 = vpop.eup %2522  ;;  %v1785_v27 = vmul.f32 %v2521_v32, %v4224_v53  ;;  %1919 = vst.msk [vmem:[%s4817_s4 + $0xe0] sm:$0xff] %vm889_vm2, %v1828_v52  ;;  %2540 = vrcp.f32 %v1513_v39  ;;  %v4856_v53 = vld [vmem:[#allocation16_spill] sm:$0xff]  ;;  %v1325_v55 = vmul.f32 1.442695, %v1153_v16  ;;  %v1017_v60 = vand.u32 2147483647, %v4377_v47 }
 0x186   :  { %v1470_v38 = vadd.f32 1.0, %v4342_v9  ;;  %v2525_v17 = vpop.eup %2524  ;;  %v4362_v42 = vadd.f32 %v3639_v25, %v4856_v53  ;;  %v1158_v18 = vsub.f32 0.0, %v1067_v43  ;;  %vm1422_vm6 = vcmp.ge.f32.partialorder %v4161_v35, 0.0  ;;  %v4859_v24 = vld [vmem:[#allocation19_spill] sm:$0xff] }
 0x187   :  { %v1876_v14 = vsel %vm1421_vm1, %v2521_v32, %v1785_v27  ;;  %v4368_v37 = vpop.eup %2526  ;;  %v1740_v3 = vmul.f32 %v2525_v17, %v4257_v2  ;;  %v4427_v34 = vadd.f32 %v4423_v40, %v4859_v24  ;;  %v1108_v11 = vsub.f32 0.0, %v1017_v60 }
 0x188   :  { %1967 = vst.msk [vmem:[%s4817_s4 + $0x260] sm:$0xff] %vm889_vm2, %v1876_v14  ;;  %2542 = vrcp.f32 %v1470_v38  ;;  %v2529_v45 = vpop.eup %2528  ;;  %v1518_v8 = vadd.f32 1.0, %v4368_v37  ;;  %928 = vst.msk [vmem:[%s4816_s3 + $0x130] sm:$0xff] %vm889_vm2, %v4362_v42  ;;  %v1019_v2 = vand.u32 2147483647, %v4362_v42  ;;  %vm1379_vm7 = vcmp.ge.f32.partialorder %v4165_v4, 0.0 }
 0x189   :  { %2544 = vpow2.f32 %v1229_v10  ;;  %v4392_v25 = vpop.eup %2530  ;;  %v1831_v59 = vsel %vm1376_vm3, %v2525_v17, %v1740_v3  ;;  %v1788_v22 = vmul.f32 %v2529_v45, %v4268_v30  ;;  %v1335_v23 = vmul.f32 1.442695, %v1158_v18  ;;  %974 = vst.msk [vmem:[%s4816_s3 + $0x2a0] sm:$0xff] %vm889_vm2, %v4427_v34  ;;  %v4860_v38 = vld [vmem:[#allocation20_spill] sm:$0xff]  ;;  %v4861_v10 = vld [vmem:[#allocation21_spill] sm:$0xff] }
 0x18a   :  { %v4403_v12 = vpop.eup %2532  ;;  %1922 = vst.msk [vmem:[%s4817_s4 + $0xf8] sm:$0xff] %vm889_vm2, %v1831_v59  ;;  %2546 = vrcp.f32 %v1518_v8  ;;  %v1468_v36 = vadd.f32 1.0, %v4392_v25  ;;  %v1110_v30 = vsub.f32 0.0, %v1019_v2  ;;  %v1065_v62 = vand.u32 2147483647, %v4427_v34 }
 0x18b   :  { %v2535_v0 = vpop.eup %2534  ;;  %v1879_v1 = vsel %vm1424_vm4, %v2529_v45, %v1788_v22  ;;  %v1516_v20 = vadd.f32 1.0, %v4403_v12  ;;  %2548 = vpow2.f32 %v1325_v55  ;;  %v1235_v56 = vmul.f32 1.442695, %v1108_v11 }
 0x18c   :  { %1970 = vst.msk [vmem:[%s4817_s4 + $0x278] sm:$0xff] %vm889_vm2, %v1879_v1  ;;  %v1738_v5 = vmul.f32 %v2535_v0, %v4291_v28  ;;  %2550 = vrcp.f32 %v1468_v36  ;;  %v1239_v29 = vmul.f32 1.442695, %v1110_v30  ;;  %v4420_v21 = vpop.eup %2536  ;;  %v4449_v54 = vadd.f32 %v4423_v40, %v4860_v38 }
 0x18d   :  { %2552 = vrcp.f32 %v1516_v20  ;;  %v4429_v58 = vpop.eup %2538  ;;  %v1471_v32 = vadd.f32 1.0, %v4420_v21  ;;  %v1156_v14 = vsub.f32 0.0, %v1065_v62  ;;  %v4453_v53 = vadd.f32 %v4423_v40, %v4861_v10 }
 0x18e   :  { %v1829_v28 = vsel %vm1374_vm5, %v2535_v0, %v1738_v5  ;;  %2554 = vpow2.f32 %v1239_v29  ;;  %v1519_v52 = vadd.f32 1.0, %v4429_v58  ;;  %v4457_v3 = vadd.f32 %v4423_v40, %v4862_v19  ;;  %929 = vst.msk [vmem:[%s4816_s3 + $0x138] sm:$0xff] %vm889_vm2, %v4449_v54 }
 0x18f   :  { %v2541_v39 = vpop.eup %2540  ;;  %1920 = vst.msk [vmem:[%s4817_s4 + $0xe8] sm:$0xff] %vm889_vm2, %v1829_v28  ;;  %2556 = vpow2.f32 %v1335_v23  ;;  %v1020_v45 = vand.u32 2147483647, %v4449_v54  ;;  %vm1427_vm8 = vcmp.ge.f32.partialorder %v4222_v57, 0.0  ;;  %v1331_v8 = vmul.f32 1.442695, %v1156_v14 }
 0x190   :  { %v1786_v27 = vmul.f32 %v2541_v39, %v4318_v26  ;;  %2558 = vrcp.f32 %v1471_v32  ;;  %977 = vst.msk [vmem:[%s4816_s3 + $0x2b8] sm:$0xff] %vm889_vm2, %v4453_v53  ;;  %927 = vst.msk [vmem:[%s4816_s3 + $0x128] sm:$0xff] %vm889_vm2, %v4457_v3  ;;  %vm1377_vm9 = vcmp.ge.f32.partialorder %v4229_v46, 0.0  ;;  %v1018_v55 = vand.u32 2147483647, %v4457_v3  ;;  %v4863_v23 = vld [vmem:[#allocation23_spill] sm:$0xff] }
 0x191   :  { %2560 = vrcp.f32 %v1519_v52  ;;  %v1111_v22 = vsub.f32 0.0, %v1020_v45  ;;  %vm1425_vm10 = vcmp.ge.f32.partialorder %v4233_v61, 0.0  ;;  %v4516_v57 = vadd.f32 %v4423_v40, %v3582_v48 }
 0x192   :  { %v2543_v17 = vpop.eup %2542  ;;  %v1877_v26 = vsel %vm1422_vm6, %v2541_v39, %v1786_v27  ;;  %2562 = vpow2.f32 %v1235_v56  ;;  %v1109_v20 = vsub.f32 0.0, %v1018_v55  ;;  %vm1380_vm11 = vcmp.ge.f32.partialorder %v4277_v31, 0.0 }
 0x193   :  { %v4459_v16 = vpop.eup %2544  ;;  %v1743_v63 = vmul.f32 %v2543_v17, %v4342_v9  ;;  %1968 = vst.msk [vmem:[%s4817_s4 + $0x268] sm:$0xff] %vm889_vm2, %v1877_v26  ;;  %v1068_v9 = vand.u32 2147483647, %v4453_v53  ;;  %v1241_v1 = vmul.f32 1.442695, %v1111_v22  ;;  %932 = vst.msk [vmem:[%s4816_s3 + $0x150] sm:$0xff] %vm889_vm2, %v4516_v57  ;;  %v4574_v26 = vadd.f32 %v4423_v40, %v3592_v50 }
 0x194   :  { %v1469_v35 = vadd.f32 1.0, %v4459_v16  ;;  %v2547_v2 = vpop.eup %2546  ;;  %v1237_v32 = vmul.f32 1.442695, %v1109_v20  ;;  %v1023_v31 = vand.u32 2147483647, %v4516_v57  ;;  %vm1428_vm12 = vcmp.ge.f32.partialorder %v4282_v15, 0.0 }
 0x195   :  { %v1834_v59 = vsel %vm1379_vm7, %v2543_v17, %v1743_v63  ;;  %v4491_v43 = vpop.eup %2548  ;;  %v1791_v36 = vmul.f32 %v2547_v2, %v4368_v37  ;;  %v1159_v30 = vsub.f32 0.0, %v1068_v9  ;;  %v4505_v37 = vadd.f32 %v4423_v40, %v4863_v23  ;;  %930 = vst.msk [vmem:[%s4816_s3 + $0x140] sm:$0xff] %vm889_vm2, %v4574_v26 }
 0x196   :  { %1925 = vst.msk [vmem:[%s4817_s4 + $0x110] sm:$0xff] %vm889_vm2, %v1834_v59  ;;  %2564 = vrcp.f32 %v1469_v35  ;;  %v2551_v4 = vpop.eup %2550  ;;  %v1517_v0 = vadd.f32 1.0, %v4491_v43  ;;  %v4554_v17 = vadd.f32 %v4423_v40, %v3590_v6  ;;  %vm1378_vm13 = vcmp.ge.f32.partialorder %v4311_v44, 0.0 }
 0x197   :  { %2566 = vpow2.f32 %v1331_v8  ;;  %v2553_v18 = vpop.eup %2552  ;;  %v1882_v5 = vsel %vm1427_vm8, %v2547_v2, %v1791_v36  ;;  %v1741_v29 = vmul.f32 %v2551_v4, %v4392_v25  ;;  %v1337_v60 = vmul.f32 1.442695, %v1159_v30  ;;  %975 = vst.msk [vmem:[%s4816_s3 + $0x2a8] sm:$0xff] %vm889_vm2, %v4505_v37 }
 0x198   :  { %v4507_v24 = vpop.eup %2554  ;;  %1973 = vst.msk [vmem:[%s4817_s4 + $0x290] sm:$0xff] %vm889_vm2, %v1882_v5  ;;  %v1789_v28 = vmul.f32 %v2553_v18, %v4403_v12  ;;  %2568 = vrcp.f32 %v1517_v0  ;;  %v1066_v12 = vand.u32 2147483647, %v4505_v37  ;;  %v1114_v15 = vsub.f32 0.0, %v1023_v31  ;;  %980 = vst.msk [vmem:[%s4816_s3 + $0x2d0] sm:$0xff] %vm889_vm2, %v4554_v17 }
 0x199   :  { %v4518_v25 = vpop.eup %2556  ;;  %v1832_v11 = vsel %vm1377_vm9, %v2551_v4, %v1741_v29  ;;  %v1474_v39 = vadd.f32 1.0, %v4507_v24  ;;  %2570 = vpow2.f32 %v1241_v1  ;;  %v1071_v6 = vand.u32 2147483647, %v4554_v17 }
 0x19a   :  { %v2559_v52 = vpop.eup %2558  ;;  %1923 = vst.msk [vmem:[%s4817_s4 + $0x100] sm:$0xff] %vm889_vm2, %v1832_v11  ;;  %v1880_v48 = vsel %vm1425_vm10, %v2553_v18, %v1789_v28  ;;  %v1522_v46 = vadd.f32 1.0, %v4518_v25  ;;  %2572 = vpow2.f32 %v1337_v60  ;;  %v1157_v27 = vsub.f32 0.0, %v1066_v12  ;;  %v4864_v12 = vld [vmem:[#allocation24_spill] sm:$0xff] }
 0x19b   :  { %v2561_v62 = vpop.eup %2560  ;;  %1971 = vst.msk [vmem:[%s4817_s4 + $0x280] sm:$0xff] %vm889_vm2, %v1880_v48  ;;  %v1744_v61 = vmul.f32 %v2559_v52, %v4420_v21  ;;  %2574 = vrcp.f32 %v1474_v39  ;;  %v4578_v63 = vadd.f32 %v4423_v40, %v3603_v13  ;;  %v4582_v45 = vadd.f32 %v4423_v40, %v3605_v51 }
 0x19c   :  { %v4548_v56 = vpop.eup %2562  ;;  %v1792_v38 = vmul.f32 %v2561_v62, %v4429_v58  ;;  %2576 = vrcp.f32 %v1522_v46  ;;  %v1333_v21 = vmul.f32 1.442695, %v1157_v27  ;;  %v1247_v9 = vmul.f32 1.442695, %v1114_v15 }
 0x19d   :  { %v1835_v14 = vsel %vm1380_vm11, %v2559_v52, %v1744_v61  ;;  %v1472_v10 = vadd.f32 1.0, %v4548_v56  ;;  %2578 = vpow2.f32 %v1237_v32  ;;  %v1162_v2 = vsub.f32 0.0, %v1071_v6  ;;  %978 = vst.msk [vmem:[%s4816_s3 + $0x2c0] sm:$0xff] %vm889_vm2, %v4578_v63  ;;  %933 = vst.msk [vmem:[%s4816_s3 + $0x158] sm:$0xff] %vm889_vm2, %v4582_v45 }
 0x19e   :  { %1926 = vst.msk [vmem:[%s4817_s4 + $0x118] sm:$0xff] %vm889_vm2, %v1835_v14  ;;  %v1883_v19 = vsel %vm1428_vm12, %v2561_v62, %v1792_v38  ;;  %vm1426_vm14 = vcmp.ge.f32.partialorder %v4316_v33, 0.0  ;;  %v1021_v13 = vand.u32 2147483647, %v4574_v26  ;;  %v1069_v51 = vand.u32 2147483647, %v4578_v63 }
 0x19f   :  { %1974 = vst.msk [vmem:[%s4817_s4 + $0x298] sm:$0xff] %vm889_vm2, %v1883_v19  ;;  %2580 = vrcp.f32 %v1472_v10  ;;  %vm1383_vm15 = vcmp.ge.f32.partialorder %v4362_v42, 0.0  ;;  %v1343_v22 = vmul.f32 1.442695, %v1162_v2  ;;  %vm1431_vm0 = vcmp.ge.f32.partialorder %v4366_v7, 0.0 }
 0x1a0   :  { %v2565_v58 = vpop.eup %2564  ;;  %2582 = vpow2.f32 %v1333_v21  ;;  %v1112_v30 = vsub.f32 0.0, %v1021_v13  ;;  %v1160_v4 = vsub.f32 0.0, %v1069_v51  ;;  %v1024_v1 = vand.u32 2147483647, %v4582_v45  ;;  %v4865_v21 = vld [vmem:[#allocation25_spill] sm:$0xff]  ;;  %v4866_v51 = vld [vmem:[#allocation26_spill] sm:$0xff] }
 0x1a1   :  { %v4584_v35 = vpop.eup %2566  ;;  %v1742_v8 = vmul.f32 %v2565_v58, %v4459_v16  ;;  %2584 = vpow2.f32 %v1247_v9  ;;  %v4631_v32 = vadd.f32 %v4423_v40, %v3614_v49  ;;  %v4638_v39 = vadd.f32 %v4423_v40, %v3629_v41 }
 0x1a2   :  { %v1520_v50 = vadd.f32 1.0, %v4584_v35  ;;  %v2569_v16 = vpop.eup %2568  ;;  %v1243_v29 = vmul.f32 1.442695, %v1112_v30  ;;  %v1115_v28 = vsub.f32 0.0, %v1024_v1  ;;  %v4642_v52 = vadd.f32 %v4423_v40, %v4864_v12 }
 0x1a3   :  { %v1833_v59 = vsel %vm1378_vm13, %v2565_v58, %v1742_v8  ;;  %v4609_v55 = vpop.eup %2570  ;;  %v1790_v36 = vmul.f32 %v2569_v16, %v4491_v43  ;;  %v1339_v43 = vmul.f32 1.442695, %v1160_v4  ;;  %931 = vst.msk [vmem:[%s4816_s3 + $0x148] sm:$0xff] %vm889_vm2, %v4631_v32  ;;  %v1022_v42 = vand.u32 2147483647, %v4631_v32  ;;  %979 = vst.msk [vmem:[%s4816_s3 + $0x2c8] sm:$0xff] %vm889_vm2, %v4638_v39 }
 0x1a4   :  { %1924 = vst.msk [vmem:[%s4817_s4 + $0x108] sm:$0xff] %vm889_vm2, %v1833_v59  ;;  %2586 = vrcp.f32 %v1520_v50  ;;  %v4616_v0 = vpop.eup %2572  ;;  %v1475_v44 = vadd.f32 1.0, %v4609_v55  ;;  %v1249_v49 = vmul.f32 1.442695, %v1115_v28  ;;  %936 = vst.msk [vmem:[%s4816_s3 + $0x170] sm:$0xff] %vm889_vm2, %v4642_v52  ;;  %vm1381_vm1 = vcmp.ge.f32.partialorder %v4377_v47, 0.0 }
 0x1a5   :  { %2588 = vpow2.f32 %v1343_v22  ;;  %v2575_v20 = vpop.eup %2574  ;;  %v1881_v18 = vsel %vm1426_vm14, %v2569_v16, %v1790_v36  ;;  %v1523_v5 = vadd.f32 1.0, %v4616_v0  ;;  %v1070_v62 = vand.u32 2147483647, %v4638_v39  ;;  %v4867_v36 = vld [vmem:[#allocation27_spill] sm:$0xff] }
 0x1a6   :  { %v2577_v60 = vpop.eup %2576  ;;  %1972 = vst.msk [vmem:[%s4817_s4 + $0x288] sm:$0xff] %vm889_vm2, %v1881_v18  ;;  %v1747_v23 = vmul.f32 %v2575_v20, %v4507_v24  ;;  %2590 = vrcp.f32 %v1475_v44  ;;  %v1113_v27 = vsub.f32 0.0, %v1022_v42  ;;  %v1027_v31 = vand.u32 2147483647, %v4642_v52 }
 0x1a7   :  { %v4633_v33 = vpop.eup %2578  ;;  %v1795_v11 = vmul.f32 %v2577_v60, %v4518_v25  ;;  %2592 = vrcp.f32 %v1523_v5  ;;  %vm1429_vm3 = vcmp.ge.f32.partialorder %v4427_v34, 0.0  ;;  %v1161_v10 = vsub.f32 0.0, %v1070_v62 }
 0x1a8   :  { %v1838_v24 = vsel %vm1383_vm15, %v2575_v20, %v1747_v23  ;;  %v1473_v48 = vadd.f32 1.0, %v4633_v33  ;;  %2594 = vpow2.f32 %v1243_v29  ;;  %v4685_v47 = vadd.f32 %v4423_v40, %v4865_v21 }
 0x1a9   :  { %v2581_v25 = vpop.eup %2580  ;;  %1929 = vst.msk [vmem:[%s4817_s4 + $0x130] sm:$0xff] %vm889_vm2, %v1838_v24  ;;  %v1886_v41 = vsel %vm1431_vm0, %v2577_v60, %v1795_v11  ;;  %2596 = vpow2.f32 %v1339_v43  ;;  %v1245_v15 = vmul.f32 1.442695, %v1113_v27  ;;  %v1118_v6 = vsub.f32 0.0, %v1027_v31 }
 0x1aa   :  { %v4669_v46 = vpop.eup %2582  ;;  %1977 = vst.msk [vmem:[%s4817_s4 + $0x2b0] sm:$0xff] %vm889_vm2, %v1886_v41  ;;  %v1745_v7 = vmul.f32 %v2581_v25, %v4548_v56  ;;  %2598 = vrcp.f32 %v1473_v48  ;;  %vm1384_vm4 = vcmp.ge.f32.partialorder %v4449_v54, 0.0  ;;  %v1341_v9 = vmul.f32 1.442695, %v1161_v10  ;;  %934 = vst.msk [vmem:[%s4816_s3 + $0x160] sm:$0xff] %vm889_vm2, %v4685_v47 }
 0x1ab   :  { %v1521_v61 = vadd.f32 1.0, %v4669_v46  ;;  %2600 = vpow2.f32 %v1249_v49  ;;  %v4680_v38 = vpop.eup %2584  ;;  %v1025_v2 = vand.u32 2147483647, %v4685_v47  ;;  %v1255_v13 = vmul.f32 1.442695, %v1118_v6 }
 0x1ac   :  { %v1836_v14 = vsel %vm1381_vm1, %v2581_v25, %v1745_v7  ;;  %v1478_v19 = vadd.f32 1.0, %v4680_v38  ;;  %v4705_v16 = vadd.f32 %v4423_v40, %v4866_v51  ;;  %v4711_v30 = vadd.f32 %v4423_v40, %v4867_v36 }
 0x1ad   :  { %1927 = vst.msk [vmem:[%s4817_s4 + $0x120] sm:$0xff] %vm889_vm2, %v1836_v14  ;;  %2602 = vrcp.f32 %v1521_v61  ;;  %v1116_v22 = vsub.f32 0.0, %v1025_v2  ;;  %vm1432_vm5 = vcmp.ge.f32.partialorder %v4453_v53, 0.0  ;;  %vm1382_vm6 = vcmp.ge.f32.partialorder %v4457_v3, 0.0 }
 0x1ae   :  { %v2587_v56 = vpop.eup %2586  ;;  %2604 = vrcp.f32 %v1478_v19  ;;  %937 = vst.msk [vmem:[%s4816_s3 + $0x178] sm:$0xff] %vm889_vm2, %v4705_v16  ;;  %v1028_v40 = vand.u32 2147483647, %v4705_v16  ;;  %935 = vst.msk [vmem:[%s4816_s3 + $0x168] sm:$0xff] %vm889_vm2, %v4711_v30  ;;  %vm1430_vm7 = vcmp.ge.f32.partialorder %v4505_v37, 0.0  ;;  %vm1387_vm8 = vcmp.ge.f32.partialorder %v4516_v57, 0.0 }
 0x1af   :  { %v4692_v58 = vpop.eup %2588  ;;  %v1793_v8 = vmul.f32 %v2587_v56, %v4584_v35  ;;  %2606 = vpow2.f32 %v1245_v15  ;;  %v1251_v20 = vmul.f32 1.442695, %v1116_v22  ;;  %vm1435_vm9 = vcmp.ge.f32.partialorder %v4554_v17, 0.0 }
 0x1b0   :  { %v1526_v50 = vadd.f32 1.0, %v4692_v58  ;;  %v2591_v35 = vpop.eup %2590  ;;  %v1119_v43 = vsub.f32 0.0, %v1028_v40  ;;  %vm1385_vm10 = vcmp.ge.f32.partialorder %v4574_v26, 0.0  ;;  %vm1433_vm11 = vcmp.ge.f32.partialorder %v4578_v63, 0.0 }
 0x1b1   :  { %v1884_v59 = vsel %vm1429_vm3, %v2587_v56, %v1793_v8  ;;  %v2593_v4 = vpop.eup %2592  ;;  %v1748_v44 = vmul.f32 %v2591_v35, %v4609_v55  ;;  %v1026_v55 = vand.u32 2147483647, %v4711_v30  ;;  %vm1388_vm12 = vcmp.ge.f32.partialorder %v4582_v45, 0.0 }
 0x1b2   :  { %1975 = vst.msk [vmem:[%s4817_s4 + $0x2a0] sm:$0xff] %vm889_vm2, %v1884_v59  ;;  %2608 = vrcp.f32 %v1526_v50  ;;  %v2595_v34 = vpop.eup %2594  ;;  %v1796_v1 = vmul.f32 %v2593_v4, %v4616_v0  ;;  %v1257_v12 = vmul.f32 1.442695, %v1119_v43  ;;  %vm1386_vm13 = vcmp.ge.f32.partialorder %v4631_v32, 0.0 }
 0x1b3   :  { %2610 = vpow2.f32 %v1341_v9  ;;  %v2597_v18 = vpop.eup %2596  ;;  %v1839_v5 = vsel %vm1384_vm4, %v2591_v35, %v1748_v44  ;;  %v1476_v29 = vadd.f32 1.0, %v2595_v34  ;;  %v1117_v28 = vsub.f32 0.0, %v1026_v55 }
 0x1b4   :  { %2612 = vpow2.f32 %v1255_v13  ;;  %v2599_v60 = vpop.eup %2598  ;;  %1930 = vst.msk [vmem:[%s4817_s4 + $0x138] sm:$0xff] %vm889_vm2, %v1839_v5  ;;  %v1887_v0 = vsel %vm1432_vm5, %v2593_v4, %v1796_v1  ;;  %v1524_v23 = vadd.f32 1.0, %v2597_v18  ;;  %vm1434_vm14 = vcmp.ge.f32.partialorder %v4638_v39, 0.0 }
 0x1b5   :  { %2614 = vpow2.f32 %v1251_v20  ;;  %v2601_v11 = vpop.eup %2600  ;;  %1978 = vst.msk [vmem:[%s4817_s4 + $0x2b8] sm:$0xff] %vm889_vm2, %v1887_v0  ;;  %v1746_v54 = vmul.f32 %v2599_v60, %v4633_v33  ;;  %v1253_v48 = vmul.f32 1.442695, %v1117_v28  ;;  %vm1391_vm15 = vcmp.ge.f32.partialorder %v4642_v52, 0.0 }
 0x1b6   :  { %2616 = vrcp.f32 %v1476_v29  ;;  %v1479_v24 = vadd.f32 1.0, %v2601_v11  ;;  %vm1389_vm0 = vcmp.ge.f32.partialorder %v4685_v47, 0.0  ;;  %vm1392_vm1 = vcmp.ge.f32.partialorder %v4705_v16, 0.0 }
 0x1b7   :  { %2618 = vrcp.f32 %v1524_v23  ;;  %v2603_v53 = vpop.eup %2602  ;;  %v1837_v49 = vsel %vm1382_vm6, %v2599_v60, %v1746_v54  ;;  %vm1390_vm3 = vcmp.ge.f32.partialorder %v4711_v30, 0.0 }
 0x1b8   :  { %2620 = vpow2.f32 %v1257_v12  ;;  %1928 = vst.msk [vmem:[%s4817_s4 + $0x128] sm:$0xff] %vm889_vm2, %v1837_v49  ;;  %v1794_v25 = vmul.f32 %v2603_v53, %v4669_v46  ;;  %v2605_v41 = vpop.eup %2604 }
 0x1b9   :  { %2622 = vrcp.f32 %v1479_v24  ;;  %v2607_v33 = vpop.eup %2606  ;;  %v1751_v42 = vmul.f32 %v2605_v41, %v4680_v38 }
 0x1ba   :  { %2624 = vpow2.f32 %v1253_v48  ;;  %v1885_v3 = vsel %vm1430_vm7, %v2603_v53, %v1794_v25  ;;  %v1477_v62 = vadd.f32 1.0, %v2607_v33 }
 0x1bb   :  { %1976 = vst.msk [vmem:[%s4817_s4 + $0x2a8] sm:$0xff] %vm889_vm2, %v1885_v3  ;;  %v1842_v46 = vsel %vm1387_vm8, %v2605_v41, %v1751_v42 }
 0x1bc   :  { %v2609_v7 = vpop.eup %2608  ;;  %1933 = vst.msk [vmem:[%s4817_s4 + $0x150] sm:$0xff] %vm889_vm2, %v1842_v46  ;;  %2626 = vrcp.f32 %v1477_v62 }
 0x1bd   :  { %v2611_v61 = vpop.eup %2610  ;;  %v1799_v27 = vmul.f32 %v2609_v7, %v4692_v58 }
 0x1be   :  { %v2613_v31 = vpop.eup %2612  ;;  %v1525_v37 = vadd.f32 1.0, %v2611_v61 }
 0x1bf   :  { %v2615_v38 = vpop.eup %2614  ;;  %v1890_v14 = vsel %vm1435_vm9, %v2609_v7, %v1799_v27  ;;  %v1482_v10 = vadd.f32 1.0, %v2613_v31 }
 0x1c0   :  { %v2617_v21 = vpop.eup %2616  ;;  %1981 = vst.msk [vmem:[%s4817_s4 + $0x2d0] sm:$0xff] %vm889_vm2, %v1890_v14  ;;  %2628 = vrcp.f32 %v1525_v37  ;;  %v1480_v57 = vadd.f32 1.0, %v2615_v38 }
 0x1c1   :  { %v2619_v56 = vpop.eup %2618  ;;  %v1749_v19 = vmul.f32 %v2617_v21, %v2595_v34  ;;  %2630 = vrcp.f32 %v1482_v10 }
 0x1c2   :  { %v2621_v15 = vpop.eup %2620  ;;  %v1797_v17 = vmul.f32 %v2619_v56, %v2597_v18  ;;  %2632 = vrcp.f32 %v1480_v57 }
 0x1c3   :  { %v2623_v6 = vpop.eup %2622  ;;  %v1840_v58 = vsel %vm1385_vm10, %v2617_v21, %v1749_v19  ;;  %v1483_v8 = vadd.f32 1.0, %v2621_v15 }
 0x1c4   :  { %v2625_v9 = vpop.eup %2624  ;;  %1931 = vst.msk [vmem:[%s4817_s4 + $0x140] sm:$0xff] %vm889_vm2, %v1840_v58  ;;  %v1888_v2 = vsel %vm1433_vm11, %v2619_v56, %v1797_v17  ;;  %v1752_v50 = vmul.f32 %v2623_v6, %v2601_v11 }
 0x1c5   :  { %1979 = vst.msk [vmem:[%s4817_s4 + $0x2c0] sm:$0xff] %vm889_vm2, %v1888_v2  ;;  %2634 = vrcp.f32 %v1483_v8  ;;  %v1481_v26 = vadd.f32 1.0, %v2625_v9 }
 0x1c6   :  { %v1843_v13 = vsel %vm1388_vm12, %v2623_v6, %v1752_v50  ;;  %v2627_v63 = vpop.eup %2626 }
 0x1c7   :  { %1934 = vst.msk [vmem:[%s4817_s4 + $0x158] sm:$0xff] %vm889_vm2, %v1843_v13  ;;  %2636 = vrcp.f32 %v1481_v26  ;;  %v1750_v51 = vmul.f32 %v2627_v63, %v2607_v33 }
 0x1c9   :  { %v1841_v22 = vsel %vm1386_vm13, %v2627_v63, %v1750_v51 }
 0x1ca   :  { %v2629_v35 = vpop.eup %2628  ;;  %1932 = vst.msk [vmem:[%s4817_s4 + $0x148] sm:$0xff] %vm889_vm2, %v1841_v22 }
 0x1cb   :  { %v2631_v59 = vpop.eup %2630  ;;  %v1798_v36 = vmul.f32 %v2629_v35, %v2611_v61 }
 0x1cc   :  { %v2633_v4 = vpop.eup %2632  ;;  %v1755_v45 = vmul.f32 %v2631_v59, %v2613_v31 }
 0x1cd   :  { %v1889_v44 = vsel %vm1434_vm14, %v2629_v35, %v1798_v36  ;;  %v1753_v40 = vmul.f32 %v2633_v4, %v2615_v38 }
 0x1ce   :  { %1980 = vst.msk [vmem:[%s4817_s4 + $0x2c8] sm:$0xff] %vm889_vm2, %v1889_v44  ;;  %v1846_v32 = vsel %vm1391_vm15, %v2631_v59, %v1755_v45 }
 0x1cf   :  { %v2635_v34 = vpop.eup %2634  ;;  %1937 = vst.msk [vmem:[%s4817_s4 + $0x170] sm:$0xff] %vm889_vm2, %v1846_v32  ;;  %v1844_v39 = vsel %vm1389_vm0, %v2633_v4, %v1753_v40 }
 0x1d0   :  { %1935 = vst.msk [vmem:[%s4817_s4 + $0x160] sm:$0xff] %vm889_vm2, %v1844_v39  ;;  %v1756_v52 = vmul.f32 %v2635_v34, %v2621_v15 }
 0x1d1   :  { %v2637_v1 = vpop.eup %2636 }
 0x1d2   :  { %v1847_v20 = vsel %vm1392_vm1, %v2635_v34, %v1756_v52  ;;  %v1754_v55 = vmul.f32 %v2637_v1, %v2625_v9 }
 0x1d3   :  { %1938 = vst.msk [vmem:[%s4817_s4 + $0x178] sm:$0xff] %vm889_vm2, %v1847_v20 }
 0x1d4   :  { %v1845_v47 = vsel %vm1390_vm3, %v2637_v1, %v1754_v55 }
 0x1d5   :  { %1936 = vst.msk [vmem:[%s4817_s4 + $0x168] sm:$0xff] %vm889_vm2, %v1845_v47 }

// kernel: decoder_forward.20
= control target key start
LH: loop header
LB: loop body
LE: loop exit
PB: predicated region body
PF: predicated region fallthrough
CT: control target
= control target key end

     0   :  { %vm233_vm0 = vcmask 1045504   ;;  %vm226_vm1 = vcmask 359424   ;;  %s1129_s0 = inlined_call_operand.vmem [shape: bf16[32,300], index: 0, kind: input, shape index: {}]   ;;  %s1130_s1 = inlined_call_operand.vmem [shape: bf16[300,32], index: 1, kind: input, shape index: {}]   ;;  %s1131_s2 = inlined_call_operand.vmem [shape: f32[1,32], index: 2, kind: input, shape index: {}]   ;;  %s1132_s3 = inlined_call_operand.vmem [shape: f32[32,8], index: 3, kind: input, shape index: {}]   ;;  %s1133_s4 = inlined_call_operand.vmem [shape: f32[32,8], index: 4, kind: input, shape index: {}]   ;;  %s1134_s5 = inlined_call_operand.vmem [shape: f32[32,8], index: 5, kind: input, shape index: {}]   ;;  %s1135_s6 = inlined_call_operand.vmem [shape: f32[32,8], index: 6, kind: input, shape index: {}]   ;;  %s1136_s7 = inlined_call_operand.vmem [shape: f32[32,8], index: 7, kind: output, shape index: {0}]   ;;  %s1137_s8 = inlined_call_operand.hbm [shape: f32[32,8], index: 8, kind: output, shape index: {1}]  }
   0x1   :  { %v756_v0 = vld [vmem:[%s1130_s1 + $0x40] sm:$0xff]   ;;  %v758_v2 = vld [vmem:[%s1130_s1 + $0x48] sm:$0xff]   ;;  %v760_v4 = vld [vmem:[%s1130_s1 + $0x50] sm:$0xff]  }
   0x2   :  { %v757_v1 = vld [vmem:[%s1130_s1] sm:$0xff]   ;;  %704 = vmatprep.subr.bf16.mxu0 %v756_v0  ;;  %v759_v3 = vld [vmem:[%s1130_s1 + $0x8] sm:$0xff]   ;;  %v761_v5 = vld [vmem:[%s1130_s1 + $0x10] sm:$0xff]  }
   0x3   :  { %705 = vmatpush3.bf16.msra.mxu0 %v757_v1  ;;  %v762_v6 = vld [vmem:[%s1130_s1 + $0x58] sm:$0xff]   ;;  %v764_v8 = vld [vmem:[%s1130_s1 + $0x60] sm:$0xff]   ;;  %v766_v11 = vld [vmem:[%s1130_s1 + $0x68] sm:$0xff]  }
   0x4   :  { %706 = vmatprep.subr.bf16.mxu0 %v758_v2  ;;  %v763_v7 = vld [vmem:[%s1130_s1 + $0x18] sm:$0xff]   ;;  %v769_v9 = vld [vmem:[%s1130_s1 + $0x80] sm:$0xff]   ;;  %v772_v12 = vld [vmem:[%s1130_s1 + $0x88] sm:$0xff]  }
   0x5   :  { %v765_v10 = vld [vmem:[%s1130_s1 + $0x20] sm:$0xff]   ;;  %737 = vmatprep.subr.bf16.mxu1 %v769_v9  ;;  %v767_v13 = vld [vmem:[%s1130_s1 + $0x28] sm:$0xff]   ;;  %v768_v14 = vld [vmem:[%s1130_s1 + $0x70] sm:$0xff]  }
   0x6   :  { %738 = vmatpush3.bf16.msra.mxu1 %v769_v9  ;;  %v776_v15 = vld [vmem:[%s1129_s0 + $0x4] ss:$12 sps:$4 sm:$0xff]   ;;  %v778_v17 = vld [vmem:[%s1129_s0 + $0x8] ss:$12 sps:$4 sm:$0xff]   ;;  %v779_v20 = vld [vmem:[%s1129_s0 + $0x20] ss:$12 sps:$4 sm:$0xff]  }
   0x7   :  { %707 = vmatpush3.bf16.msra.mxu0 %v759_v3  ;;  %739 = vmatprep.subr.bf16.mxu1 %v772_v12  ;;  %v777_v16 = vld [vmem:[%s1130_s1 + $0x90] sm:$0x3f]  }
   0x8   :  { %708 = vmatprep.subr.bf16.mxu0 %v760_v4  ;;  %269 = vmatprep.mubr.bf16.mxu0 %v776_v15  ;;  %v235_v18 = vsel %vm233_vm0, %v777_v16, 0  ;;  %v770_v19 = vld [vmem:[%s1130_s1 + $0x30] sm:$0xff]  }
   0x9   :  { %743 = vmatprep.mubr.msk.bf16.mxu1 %vm226_vm1, %v778_v17 }
   0xa   :  { %740 = vmatpush3.bf16.msra.mxu1 %v772_v12 }
   0xb   :  { %709 = vmatpush3.bf16.msra.mxu0 %v761_v5  ;;  %747 = vmatprep.subr.msk.bf16.mxu1 %vm233_vm0, %v777_v16 }
   0xc   :  { %710 = vmatprep.subr.bf16.mxu0 %v762_v6 }
   0xf   :  { %711 = vmatpush3.bf16.msra.mxu0 %v763_v7 }
  0x10   :  { %712 = vmatprep.subr.bf16.mxu0 %v764_v8 }
  0x13   :  { %713 = vmatpush3.bf16.msra.mxu0 %v765_v10 }
  0x14   :  { %714 = vmatprep.subr.bf16.mxu0 %v766_v11 }
  0x17   :  { %715 = vmatpush3.bf16.msra.mxu0 %v767_v13 }
  0x18   :  { %14 = vsyncpa [#allocation3], 0  ;;  %716 = vmatprep.subr.bf16.mxu0 %v768_v14  ;;  %v771_v21 = vld [vmem:[%s1130_s1 + $0x78] sm:$0xff]   ;;  %742 = vmatpush3.bf16.msra.mxu1 %v235_v18  ;;  %v774_v23 = vld [vmem:[%s1129_s0] ss:$12 sps:$4 sm:$0xff]   ;;  %s872_s19 = smov 8  }
  0x19   :  { %v773_v22 = vld [vmem:[%s1130_s1 + $0x38] sm:$0xff]   ;;  %v676_v32 = vld [vmem:[%s1131_s2] ss:$0 sm:$0xff]  ;;  %v393_v56 = vld [vmem:[%s1134_s5 + $0x10] sm:$0xff]  ;;  %vm647_vm10 = vcmask 64512   ;;  %s874_s13 = smov 24  }
  0x1a   :  { %v780_v24 = vld [vmem:[%s1129_s0 + $0x1c] ss:$12 sps:$4 sm:$0xff]   ;;  %v782_v25 = vld [vmem:[%s1129_s0 + $0x18] ss:$12 sps:$4 sm:$0xff]   ;;  %s871_s0 = smov 112   ;;  %v337_v58 = vld [vmem:[%s1132_s3 + $0x10] sm:$0xff] }
  0x1b   :  { %717 = vmatpush3.bf16.msra.mxu0 %v770_v19  ;;  %744 = vmatmul.mubr.msk.bf16.vlgmr.msra.gmra.mrb[0].mxu1 %vm226_vm1, %v779_v20  ;;  %v391_v52 = vld [vmem:[%s1134_s5] sm:$0xff]  ;;  %v397_v59 = vmul.f32 %v393_v56, %v337_v58  ;;  %v392_v60 = vld [vmem:[%s1134_s5 + $0x8] sm:$0xff]  ;;  %v394_v0 = vld [vmem:[%s1134_s5 + $0x18] sm:$0xff]  ;;  %s875_s18 = smov 16   ;;  %s877_s21 = smov 104  }
  0x1c   :  { %718 = vmatprep.subr.bf16.mxu0 %v771_v21  ;;  %v335_v54 = vld [vmem:[%s1132_s3] sm:$0xff]  ;;  %v336_v62 = vld [vmem:[%s1132_s3 + $0x8] sm:$0xff]  ;;  %v338_v1 = vld [vmem:[%s1132_s3 + $0x18] sm:$0xff] }
  0x1d   :  { %v395_v55 = vmul.f32 %v391_v52, %v335_v54  ;;  %v396_v63 = vmul.f32 %v392_v60, %v336_v62  ;;  %v398_v2 = vmul.f32 %v394_v0, %v338_v1  ;;  %v339_v3 = vld [vmem:[%s1133_s4] sm:$0xff]  ;;  %v340_v5 = vld [vmem:[%s1133_s4 + $0x8] sm:$0xff]  ;;  %v341_v8 = vld [vmem:[%s1133_s4 + $0x10] sm:$0xff] }
  0x1e   :  { %v343_v4 = vmul.f32 %v339_v3, %v335_v54  ;;  %v344_v7 = vmul.f32 %v340_v5, %v336_v62  ;;  %v345_v11 = vmul.f32 %v341_v8, %v337_v58  ;;  %v342_v12 = vld [vmem:[%s1133_s4 + $0x18] sm:$0xff]  ;;  %s873_s4 = smov 120  }
  0x1f   :  { %719 = vmatpush3.bf16.msra.mxu0 %v773_v22  ;;  %v346_v16 = vmul.f32 %v342_v12, %v338_v1 }
  0x22   :  { %270 = vmatmul.mubr.bf16.vlgmr.msra.gmra.mrb[0].mxu0 %v774_v23 }
  0x23   :  { %277 = vmatprep.mubr.bf16.mxu0 %v780_v24 }
  0x2a   :  { %278 = vmatmul.mubr.bf16.gmra.mrb[4].mxu0 %v782_v25 }
  0xee   :  { %v745_v26 = vpop.f32.mrb[0].mxu1 }
  0xef   :  { %v320_v27 = vpop.f32.mrb[1].mxu1 }
  0xf0   :  { %v746_v28 = vpop.f32.mrb[2].mxu1 }
  0xf1   :  { %v323_v29 = vpop.f32.mrb[3].mxu1 }
  0xf5   :  { %v720_v30 = vpop.f32.mrb[0].mxu0 }
  0xf6   :  { %v721_v31 = vpop.f32.mrb[1].mxu0 }
  0xf7   :  { %v722_v33 = vadd.f32 %v721_v31, %v720_v30  ;;  %v723_v34 = vpop.f32.mrb[2].mxu0 }
  0xf8   :  { %v724_v35 = vpop.f32.mrb[3].mxu0 }
  0xf9   :  { %v725_v36 = vadd.f32 %v724_v35, %v723_v34  ;;  %v272_v37 = vadd.f32 %v722_v33, %v676_v32 }
  0xfb   :  { %v1004_v38 = vadd.f32 %v320_v27, %v272_v37  ;;  %v275_v39 = vadd.f32 %v725_v36, %v676_v32 }
  0xfd   :  { %783 = vtanh.f32 %v1004_v38  ;;  %v1007_v40 = vadd.f32 %v323_v29, %v275_v39  ;;  %v726_v41 = vpop.f32.mrb[4].mxu0  ;;  %v347_v6 = vadd.f32 %v343_v4, %v1004_v38 }
  0xfe   :  { %v727_v42 = vpop.f32.mrb[5].mxu0 }
  0xff   :  { %v728_v43 = vadd.f32 %v727_v42, %v726_v41  ;;  %v729_v44 = vpop.f32.mrb[6].mxu0  ;;  %785 = vtanh.f32 %v1007_v40  ;;  %v351_v9 = vand.u32 2147483647, %v347_v6  ;;  %v348_v10 = vadd.f32 %v344_v7, %v1007_v40 }
 0x100   :  { %v730_v45 = vpop.f32.mrb[7].mxu0  ;;  %vm367_vm2 = vcmp.ge.f32.partialorder %v347_v6, 0.0 }
 0x101   :  { %v280_v46 = vadd.f32 %v728_v43, %v676_v32  ;;  %v731_v47 = vadd.f32 %v730_v45, %v729_v44  ;;  %v355_v13 = vsub.f32 0.0, %v351_v9  ;;  %v352_v14 = vand.u32 2147483647, %v348_v10 }
 0x102   :  { %vm368_vm3 = vcmp.ge.f32.partialorder %v348_v10, 0.0 }
 0x103   :  { %v1010_v48 = vadd.f32 %v745_v26, %v280_v46  ;;  %v283_v49 = vadd.f32 %v731_v47, %v676_v32  ;;  %v359_v17 = vmul.f32 1.442695, %v355_v13  ;;  %v356_v18 = vsub.f32 0.0, %v352_v14 }
 0x105   :  { %v1012_v50 = vadd.f32 %v746_v28, %v283_v49  ;;  %787 = vtanh.f32 %v1010_v48  ;;  %v349_v15 = vadd.f32 %v345_v11, %v1010_v48  ;;  %v361_v21 = vmul.f32 1.442695, %v356_v18 }
 0x107   :  { %v784_v51 = vpop.eup %783  ;;  %789 = vtanh.f32 %v1012_v50  ;;  %v353_v19 = vand.u32 2147483647, %v349_v15  ;;  %v350_v20 = vadd.f32 %v346_v16, %v1012_v50  ;;  %vm369_vm4 = vcmp.ge.f32.partialorder %v349_v15, 0.0 }
 0x108   :  { %487 = vrot.lane.b32.xlu0 %v784_v51, %s871_s0  ;;  %791 = vpow2.f32 %v359_v17 }
 0x109   :  { %v786_v53 = vpop.eup %785  ;;  %v357_v22 = vsub.f32 0.0, %v353_v19  ;;  %v354_v23 = vand.u32 2147483647, %v350_v20  ;;  %793 = vpow2.f32 %v361_v21  ;;  %vm370_vm5 = vcmp.ge.f32.partialorder %v350_v20, 0.0 }
 0x10b   :  { %v363_v24 = vmul.f32 1.442695, %v357_v22  ;;  %v358_v25 = vsub.f32 0.0, %v354_v23 }
 0x10c   :  { %489 = vrot.lane.b32.xlu0 %v786_v53, %s871_s0 }
 0x10d   :  { %795 = vpow2.f32 %v363_v24  ;;  %v365_v26 = vmul.f32 1.442695, %v358_v25 }
 0x10f   :  { %v788_v57 = vpop.eup %787  ;;  %797 = vpow2.f32 %v365_v26 }
 0x110   :  { %491 = vrot.lane.b32.xlu1 %v788_v57, %s871_s0  ;;  %403 = vrot.lane.b32.xlu0 %v395_v55, %s872_s19 }
 0x111   :  { %v790_v61 = vpop.eup %789 }
 0x112   :  { %v792_v27 = vpop.eup %791 }
 0x113   :  { %v371_v28 = vadd.f32 1.0, %v792_v27  ;;  %v794_v29 = vpop.eup %793 }
 0x114   :  { %493 = vrot.lane.b32.xlu1 %v790_v61, %s871_s0  ;;  %407 = vrot.lane.b32.xlu0 %v397_v59, %s872_s19  ;;  %v372_v30 = vadd.f32 1.0, %v794_v29 }
 0x115   :  { %799 = vrcp.f32 %v371_v28 }
 0x116   :  { %801 = vrcp.f32 %v372_v30 }
 0x117   :  { %v796_v31 = vpop.eup %795 }
 0x118   :  { %405 = vrot.lane.b32.xlu1 %v396_v63, %s872_s19  ;;  %463 = vrot.lane.b32.xlu0 %v335_v54, %s872_s19  ;;  %v373_v32 = vadd.f32 1.0, %v796_v31 }
 0x119   :  { %v798_v33 = vpop.eup %797 }
 0x11a   :  { %803 = vrcp.f32 %v373_v32  ;;  %v374_v34 = vadd.f32 1.0, %v798_v33 }
 0x11c   :  { %409 = vrot.lane.b32.xlu1 %v398_v2, %s872_s19  ;;  %467 = vrot.lane.b32.xlu0 %v337_v58, %s872_s19  ;;  %805 = vrcp.f32 %v374_v34 }
 0x11f   :  { %v800_v35 = vpop.eup %799 }
 0x120   :  { %465 = vrot.lane.b32.xlu1 %v336_v62, %s872_s19  ;;  %v383_v36 = vmul.f32 %v800_v35, %v792_v27  ;;  %v802_v37 = vpop.eup %801 }
 0x121   :  { %v384_v42 = vmul.f32 %v802_v37, %v794_v29 }
 0x122   :  { %v387_v41 = vsel %vm367_vm2, %v800_v35, %v383_v36 }
 0x123   :  { %v388_v45 = vsel %vm368_vm3, %v802_v37, %v384_v42 }
 0x124   :  { %469 = vrot.lane.b32.xlu1 %v338_v1, %s872_s19  ;;  %v804_v43 = vpop.eup %803 }
 0x125   :  { %v385_v47 = vmul.f32 %v804_v43, %v796_v31 }
 0x126   :  { %v806_v49 = vpop.eup %805 }
 0x127   :  { %v389_v53 = vsel %vm369_vm4, %v804_v43, %v385_v47  ;;  %v386_v54 = vmul.f32 %v806_v49, %v798_v33 }
 0x129   :  { %v390_v56 = vsel %vm370_vm5, %v806_v49, %v386_v54 }
 0x17a   :  { %v488_v39 = vpop.permute.xlu0 %487 }
 0x17b   :  { %v499_v44 = vmul.f32 %v488_v39, %v387_v41 }
 0x17d   :  { %507 = vrot.lane.b32.xlu0 %v499_v44, %s872_s19 }
 0x17e   :  { %v490_v46 = vpop.permute.xlu0 %489 }
 0x17f   :  { %v500_v51 = vmul.f32 %v490_v46, %v388_v45 }
 0x181   :  { %509 = vrot.lane.b32.xlu1 %v500_v51, %s872_s19 }
 0x182   :  { %v492_v52 = vpop.permute.xlu1 %491  ;;  %v404_v59 = vpop.permute.xlu0 %403 }
 0x183   :  { %v501_v55 = vmul.f32 %v492_v52, %v389_v53  ;;  %v415_v60 = vadd.f32 %v404_v59, %v1004_v38 }
 0x185   :  { %511 = vrot.lane.b32.xlu0 %v501_v55, %s872_s19  ;;  %v419_v62 = vand.u32 2147483647, %v415_v60  ;;  %vm435_vm6 = vcmp.ge.f32.partialorder %v415_v60, 0.0  ;;  %v523_v55 = vld [vmem:[%s1135_s6] sm:$0xff] }
 0x186   :  { %v494_v57 = vpop.permute.xlu1 %493  ;;  %v408_v0 = vpop.permute.xlu0 %407 }
 0x187   :  { %v502_v58 = vmul.f32 %v494_v57, %v390_v56  ;;  %v423_v1 = vsub.f32 0.0, %v419_v62  ;;  %v417_v2 = vadd.f32 %v408_v0, %v1010_v48  ;;  %v526_v0 = vld [vmem:[%s1135_s6 + $0x18] sm:$0xff] }
 0x189   :  { %513 = vrot.lane.b32.xlu1 %v502_v58, %s872_s19  ;;  %v427_v5 = vmul.f32 1.442695, %v423_v1  ;;  %v421_v6 = vand.u32 2147483647, %v417_v2  ;;  %vm437_vm8 = vcmp.ge.f32.partialorder %v417_v2, 0.0  ;;  %v524_v58 = vld [vmem:[%s1135_s6 + $0x8] sm:$0xff] }
 0x18a   :  { %v406_v61 = vpop.permute.xlu1 %405  ;;  %v464_v24 = vpop.permute.xlu0 %463 }
 0x18b   :  { %v416_v63 = vadd.f32 %v406_v61, %v1007_v40  ;;  %807 = vpow2.f32 %v427_v5  ;;  %v425_v9 = vsub.f32 0.0, %v421_v6  ;;  %v525_v61 = vld [vmem:[%s1135_s6 + $0x10] sm:$0xff]  ;;  %s876_s6 = smov [#allocation2]  }
 0x18c   :  { %s663_s20 = sshll.u32 %s876_s6, 4  ;;  %s664_s20 = int_to_ptr.vmem [resolvable:$true] %s663_s20 }
 0x18d   :  { %v420_v3 = vand.u32 2147483647, %v416_v63  ;;  %v431_v12 = vmul.f32 1.442695, %v425_v9  ;;  %vm436_vm7 = vcmp.ge.f32.partialorder %v416_v63, 0.0  ;;  %s847_s22 = scalar_lea.vmem %s664_s20, 512  ;;  %p852_p1 = scmp.lt.s32.totalorder %s664_s20, %s664_s20 }
 0x18e   :  { %v410_v4 = vpop.permute.xlu1 %409  ;;  %v468_v29 = vpop.permute.xlu0 %467  ;;  %p848_p0 = scmp.ne.s32.totalorder %s664_s20, %s847_s22  ;;  %p853_p2 = scmp.lt.s32.totalorder %s847_s22, %s847_s22 }
 0x18f   :  { %v424_v7 = vsub.f32 0.0, %v420_v3  ;;  %v418_v8 = vadd.f32 %v410_v4, %v1012_v50 }
 0x190   :  { %p854_p3 = por %p853_p2, %p852_p1 }
 0x191   :  { %v429_v10 = vmul.f32 1.442695, %v424_v7  ;;  %v422_v11 = vand.u32 2147483647, %v418_v8  ;;  %vm438_vm9 = vcmp.ge.f32.partialorder %v418_v8, 0.0 }
 0x192   :  { %v466_v27 = vpop.permute.xlu1 %465  ;;  %p855_p4 = pnand %p854_p3, %p848_p0 }
 0x193   :  { %809 = vpow2.f32 %v429_v10  ;;  %v426_v13 = vsub.f32 0.0, %v422_v11 }
 0x194   :  { %811 = vpow2.f32 %v431_v12 }
 0x195   :  { %v433_v14 = vmul.f32 1.442695, %v426_v13  ;;  %v808_v15 = vpop.eup %807 }
 0x196   :  { %v439_v16 = vadd.f32 1.0, %v808_v15  ;;  %v470_v35 = vpop.permute.xlu1 %469 }
 0x197   :  { %813 = vpow2.f32 %v433_v14 }
 0x198   :  { %815 = vrcp.f32 %v439_v16 }
 0x19d   :  { %v810_v17 = vpop.eup %809 }
 0x19e   :  { %v440_v18 = vadd.f32 1.0, %v810_v17  ;;  %v812_v19 = vpop.eup %811 }
 0x19f   :  { %v441_v20 = vadd.f32 1.0, %v812_v19 }
 0x1a0   :  { %817 = vrcp.f32 %v440_v18 }
 0x1a1   :  { %v814_v21 = vpop.eup %813  ;;  %819 = vrcp.f32 %v441_v20 }
 0x1a2   :  { %v442_v22 = vadd.f32 1.0, %v814_v21  ;;  %v816_v23 = vpop.eup %815 }
 0x1a3   :  { %v451_v25 = vmul.f32 %v816_v23, %v808_v15 }
 0x1a4   :  { %821 = vrcp.f32 %v442_v22 }
 0x1a5   :  { %v455_v28 = vsel %vm435_vm6, %v816_v23, %v451_v25 }
 0x1a6   :  { %v475_v32 = vmul.f32 %v464_v24, %v455_v28 }
 0x1aa   :  { %v818_v26 = vpop.eup %817 }
 0x1ab   :  { %v452_v30 = vmul.f32 %v818_v26, %v810_v17  ;;  %v820_v31 = vpop.eup %819 }
 0x1ac   :  { %v453_v33 = vmul.f32 %v820_v31, %v812_v19 }
 0x1ad   :  { %v456_v34 = vsel %vm436_vm7, %v818_v26, %v452_v30 }
 0x1ae   :  { %v822_v37 = vpop.eup %821  ;;  %v476_v41 = vmul.f32 %v466_v27, %v456_v34  ;;  %v457_v42 = vsel %vm437_vm8, %v820_v31, %v453_v33 }
 0x1af   :  { %v454_v43 = vmul.f32 %v822_v37, %v814_v21  ;;  %v477_v46 = vmul.f32 %v468_v29, %v457_v42 }
 0x1b1   :  { %v458_v47 = vsel %vm438_vm9, %v822_v37, %v454_v43 }
 0x1b2   :  { %v478_v52 = vmul.f32 %v470_v35, %v458_v47 }
 0x1ef   :  { %v508_v36 = vpop.permute.xlu0 %507 }
 0x1f0   :  { %v519_v39 = vadd.f32 %v508_v36, %v475_v32 }
 0x1f2   :  { %531 = vrot.lane.b32.xlu0 %v519_v39, %s873_s4  ;;  %823 = vtanh.f32 %v519_v39 }
 0x1f3   :  { %v510_v44 = vpop.permute.xlu1 %509 }
 0x1f4   :  { %v520_v45 = vadd.f32 %v510_v44, %v476_v41 }
 0x1f6   :  { %533 = vrot.lane.b32.xlu1 %v520_v45, %s873_s4  ;;  %825 = vtanh.f32 %v520_v45 }
 0x1f7   :  { %v512_v49 = vpop.permute.xlu0 %511 }
 0x1f8   :  { %v521_v51 = vadd.f32 %v512_v49, %v477_v46 }
 0x1fa   :  { %535 = vrot.lane.b32.xlu0 %v521_v51, %s873_s4  ;;  %827 = vtanh.f32 %v521_v51 }
 0x1fb   :  { %v514_v53 = vpop.permute.xlu1 %513 }
 0x1fc   :  { %v522_v54 = vadd.f32 %v514_v53, %v478_v52  ;;  %v824_v3 = vpop.eup %823 }
 0x1fe   :  { %537 = vrot.lane.b32.xlu1 %v522_v54, %s873_s4  ;;  %829 = vtanh.f32 %v522_v54 }
 0x200   :  { %v826_v4 = vpop.eup %825 }
 0x204   :  { %v828_v5 = vpop.eup %827 }
 0x208   :  { %v830_v6 = vpop.eup %829 }
 0x264   :  { %v532_v56 = vpop.permute.xlu0 %531 }
 0x265   :  { %v543_v57 = vmul.f32 %v532_v56, %v523_v55  ;;  %652 = vst.msk [vmem:[#allocation2] sm:$0xff] %vm647_vm10, %v532_v56 }
 0x267   :  { %551 = vrot.lane.b32.xlu0 %v543_v57, %s874_s13 }
 0x268   :  { %v534_v59 = vpop.permute.xlu1 %533 }
 0x269   :  { %v544_v60 = vmul.f32 %v534_v59, %v524_v58  ;;  %653 = vst.msk [vmem:[#allocation2 + $0x8] sm:$0xff] %vm647_vm10, %v534_v59 }
 0x26b   :  { %553 = vrot.lane.b32.xlu1 %v544_v60, %s874_s13 }
 0x26c   :  { %v536_v62 = vpop.permute.xlu0 %535 }
 0x26d   :  { %v545_v63 = vmul.f32 %v536_v62, %v525_v61  ;;  %654 = vst.msk [vmem:[#allocation2 + $0x10] sm:$0xff] %vm647_vm10, %v536_v62 }
 0x26f   :  { %555 = vrot.lane.b32.xlu0 %v545_v63, %s874_s13 }
 0x270   :  { %v538_v1 = vpop.permute.xlu1 %537 }
 0x271   :  { %v546_v2 = vmul.f32 %v538_v1, %v526_v0  ;;  %655 = vst.msk [vmem:[#allocation2 + $0x18] sm:$0xff] %vm647_vm10, %v538_v1 }
 0x273   :  { %557 = vrot.lane.b32.xlu1 %v546_v2, %s874_s13  ;;  %615 = vrot.lane.b32.xlu0 %v824_v3, %s875_s18 }
 0x277   :  { %617 = vrot.lane.b32.xlu1 %v826_v4, %s875_s18  ;;  %619 = vrot.lane.b32.xlu0 %v828_v5, %s875_s18 }
 0x27b   :  { %621 = vrot.lane.b32.xlu1 %v830_v6, %s875_s18 }
 0x2d9   :  { %v552_v7 = vpop.permute.xlu0 %551 }
 0x2da   :  { %v563_v8 = vadd.f32 %v552_v7, %v1004_v38 }
 0x2dc   :  { %v567_v9 = vand.u32 2147483647, %v563_v8  ;;  %vm583_vm11 = vcmp.ge.f32.partialorder %v563_v8, 0.0 }
 0x2dd   :  { %v554_v10 = vpop.permute.xlu1 %553 }
 0x2de   :  { %v571_v11 = vsub.f32 0.0, %v567_v9  ;;  %v564_v12 = vadd.f32 %v554_v10, %v1007_v40 }
 0x2e0   :  { %v575_v13 = vmul.f32 1.442695, %v571_v11  ;;  %v568_v14 = vand.u32 2147483647, %v564_v12  ;;  %vm584_vm12 = vcmp.ge.f32.partialorder %v564_v12, 0.0 }
 0x2e1   :  { %v556_v15 = vpop.permute.xlu0 %555 }
 0x2e2   :  { %831 = vpow2.f32 %v575_v13  ;;  %v572_v16 = vsub.f32 0.0, %v568_v14  ;;  %v565_v17 = vadd.f32 %v556_v15, %v1010_v48 }
 0x2e4   :  { %v577_v18 = vmul.f32 1.442695, %v572_v16  ;;  %v569_v19 = vand.u32 2147483647, %v565_v17 }
 0x2e5   :  { %v558_v20 = vpop.permute.xlu1 %557  ;;  %v616_v34 = vpop.permute.xlu0 %615 }
 0x2e6   :  { %833 = vpow2.f32 %v577_v18  ;;  %v573_v21 = vsub.f32 0.0, %v569_v19  ;;  %v1092_v22 = vadd.f32 %v558_v20, %v1012_v50 }
 0x2e8   :  { %v579_v38 = vmul.f32 1.442695, %v573_v21  ;;  %v570_v23 = vand.u32 2147483647, %v1092_v22 }
 0x2e9   :  { %v618_v41 = vpop.permute.xlu1 %617 }
 0x2ea   :  { %835 = vpow2.f32 %v579_v38  ;;  %v574_v40 = vsub.f32 0.0, %v570_v23 }
 0x2ec   :  { %v832_v24 = vpop.eup %831  ;;  %v581_v25 = vmul.f32 1.442695, %v574_v40 }
 0x2ed   :  { %v587_v26 = vadd.f32 1.0, %v832_v24 }
 0x2ee   :  { %837 = vpow2.f32 %v581_v25 }
 0x2ef   :  { %839 = vrcp.f32 %v587_v26 }
 0x2f0   :  { %v834_v27 = vpop.eup %833 }
 0x2f1   :  { %v588_v48 = vadd.f32 1.0, %v834_v27 }
 0x2f3   :  { %841 = vrcp.f32 %v588_v48 }
 0x2f4   :  { %v836_v28 = vpop.eup %835 }
 0x2f5   :  { %v589_v29 = vadd.f32 1.0, %v836_v28 }
 0x2f7   :  { %843 = vrcp.f32 %v589_v29 }
 0x2f8   :  { %v838_v30 = vpop.eup %837 }
 0x2f9   :  { %v840_v31 = vpop.eup %839  ;;  %v590_v50 = vadd.f32 1.0, %v838_v30 }
 0x2fa   :  { %v599_v32 = vmul.f32 %v840_v31, %v832_v24 }
 0x2fb   :  { %845 = vrcp.f32 %v590_v50 }
 0x2fc   :  { %v603_v33 = vsel %vm583_vm11, %v840_v31, %v599_v32 }
 0x2fd   :  { %v842_v35 = vpop.eup %841  ;;  %v627_v36 = vmul.f32 %v616_v34, %v603_v33 }
 0x2fe   :  { %v600_v37 = vmul.f32 %v842_v35, %v834_v27 }
 0x2ff   :  { %635 = vrot.lane.b32.xlu0 %v627_v36, %s877_s21 }
 0x300   :  { %v604_v39 = vsel %vm584_vm12, %v842_v35, %v600_v37 }
 0x301   :  { %858 = shalt.err (!%p855_p4)
}
 0x302   :  { %s859_s25 = scalar_lea.hbm %s1137_s8, 512 }
 0x303   :  { %p860_p5 = scmp.ne.s32.totalorder %s1137_s8, %s859_s25  ;;  %p863_p6 = scmp.lt.u32.totalorder %s859_s25, %s1137_s8 }
 0x305   :  { %p865_p7 = pnand %p863_p6, %p860_p5 }
 0x307   :  { %868 = shalt.err (!%p865_p7)
}
 0x308   :  { %s878_s5 = smov 128   ;;  %v844_v42 = vpop.eup %843  ;;  %v628_v43 = vmul.f32 %v618_v41, %v604_v39  ;;  %vm585_vm13 = vcmp.ge.f32.partialorder %v565_v17, 0.0  ;;  %v620_v46 = vpop.permute.xlu0 %619  ;;  %vm586_vm14 = vcmp.ge.f32.partialorder %v1092_v22, 0.0 }
 0x309   :  { %669 = dma.vmem_to_hbm [thread:$0]  %s664_s20, 512, %s1137_s8, [#allocation3], %s878_s5, %s878_s5, %s872_s19   ;;  %v601_v44 = vmul.f32 %v844_v42, %v836_v28  ;;  %v846_v47 = vpop.eup %845  ;;  %v622_v53 = vpop.permute.xlu1 %621 }
 0x30a   :  { %637 = vrot.lane.b32.xlu1 %v628_v43, %s877_s21  ;;  %v602_v51 = vmul.f32 %v846_v47, %v838_v30 }
 0x30b   :  { %v605_v45 = vsel %vm585_vm13, %v844_v42, %v601_v44 }
 0x30c   :  { %v629_v49 = vmul.f32 %v620_v46, %v605_v45  ;;  %v606_v52 = vsel %vm586_vm14, %v846_v47, %v602_v51 }
 0x30d   :  { %v630_v54 = vmul.f32 %v622_v53, %v606_v52 }
 0x30e   :  { %639 = vrot.lane.b32.xlu0 %v629_v49, %s877_s21 }
 0x30f   :  { %641 = vrot.lane.b32.xlu1 %v630_v54, %s877_s21 }
 0x371   :  { %v636_v55 = vpop.permute.xlu0 %635 }
 0x372   :  { %648 = vst.msk [vmem:[%s1136_s7] sm:$0xff] %vm647_vm10, %v636_v55 }
 0x37c   :  { %v638_v56 = vpop.permute.xlu1 %637 }
 0x37d   :  { %649 = vst.msk [vmem:[%s1136_s7 + $0x8] sm:$0xff] %vm647_vm10, %v638_v56 }
 0x380   :  { %v640_v57 = vpop.permute.xlu0 %639 }
 0x381   :  { %650 = vst.msk [vmem:[%s1136_s7 + $0x10] sm:$0xff] %vm647_vm10, %v640_v57  ;;  %v642_v58 = vpop.permute.xlu1 %641 }
 0x382   :  { %651 = vst.msk [vmem:[%s1136_s7 + $0x18] sm:$0xff] %vm647_vm10, %v642_v58 }
 0x383   :  { %869 = dma.done.wait [#allocation3], 512  }
 0x384   :  { %870 = vsyncadd [#allocation3], 4294966784 }
 0x385   :  { %675 = vsyncpa [#allocation3], 1 }

// kernel: decoder_forward.23
= control target key start
LH: loop header
LB: loop body
LE: loop exit
PB: predicated region body
PF: predicated region fallthrough
CT: control target
= control target key end

     0   :  { %s4595_s0 = inlined_call_operand.vmem [shape: bf16[728,8], index: 0, kind: input, shape index: {}]   ;;  %s4596_s1 = inlined_call_operand.vmem [shape: bf16[8,1], index: 1, kind: input, shape index: {}]   ;;  %s4597_s2 = inlined_call_operand.<no memory space> [shape: f32[1,1], index: 2, kind: input, shape index: {}]   ;;  %s4598_s3 = inlined_call_operand.vmem [shape: f32[728,1], index: 3, kind: output, shape index: {0}]   ;;  %s4599_s4 = inlined_call_operand.hbm [shape: f32[728,1], index: 4, kind: output, shape index: {1}]  }
   0x1   :  { %v10_v0 = vstv %s4597_s2 }
   0x2   :  { %11 = vst [vmem:[#allocation2] sm:$0x1] %v10_v0 }
   0x3   :  { %v111_v1 = vld [vmem:[%s4596_s1] sm:$0xf]  ;;  %vm486_vm0 = vcmask 1043456   ;;  %vm347_vm1 = vcmask 64512   ;;  %v2246_v5 = vld [vmem:[%s4595_s0 + $0x8] sm:$0xff]   ;;  %v2248_v7 = vld [vmem:[%s4595_s0 + $0x10] sm:$0xff]  }
   0x4   :  { %v2244_v2 = vld [vmem:[%s4595_s0] sm:$0xff]   ;;  %2239 = vmatprep.subr.msk.bf16.mxu0 %vm486_vm0, %v111_v1  ;;  %2240 = vmatprep.subr.msk.bf16.mxu1 %vm486_vm0, %v111_v1  ;;  %v488_v3 = vsel %vm486_vm0, %v111_v1, 0  ;;  %v2247_v6 = vld [vmem:[%s4595_s0 + $0xc8] sm:$0xff]   ;;  %v2249_v8 = vld [vmem:[%s4595_s0 + $0xd0] sm:$0xff]  }
   0x5   :  { %2144 = vmatpush3.bf16.msra.mxu0 %v488_v3  ;;  %2238 = vmatpush3.bf16.msra.mxu1 %v488_v3  ;;  %v2245_v4 = vld [vmem:[%s4595_s0 + $0xc0] sm:$0xff]   ;;  %v2250_v9 = vld [vmem:[%s4595_s0 + $0x18] sm:$0xff]   ;;  %v2254_v13 = vld [vmem:[%s4595_s0 + $0x28] sm:$0xff]  }
   0x6   :  { %2145 = vmatprep.mubr.msk.bf16.mxu0 %vm347_vm1, %v2244_v2  ;;  %2193 = vmatprep.mubr.msk.bf16.mxu1 %vm347_vm1, %v2245_v4  ;;  %v2251_v10 = vld [vmem:[%s4595_s0 + $0xd8] sm:$0xff]   ;;  %v2252_v11 = vld [vmem:[%s4595_s0 + $0x20] sm:$0xff]   ;;  %v2255_v14 = vld [vmem:[%s4595_s0 + $0xe8] sm:$0xff]  }
   0x7   :  { %v2253_v12 = vld [vmem:[%s4595_s0 + $0xe0] sm:$0xff]   ;;  %v2256_v15 = vld [vmem:[%s4595_s0 + $0x30] sm:$0xff]   ;;  %v2258_v17 = vld [vmem:[%s4595_s0 + $0x38] sm:$0xff]  }
   0x8   :  { %2146 = vmatmul.mubr.msk.bf16.vlgmr.msra.gmra.mrb[0].mxu0 %vm347_vm1, %v2246_v5  ;;  %2194 = vmatmul.mubr.msk.bf16.vlgmr.msra.gmra.mrb[0].mxu1 %vm347_vm1, %v2247_v6  ;;  %v2257_v16 = vld [vmem:[%s4595_s0 + $0xf0] sm:$0xff]   ;;  %v2259_v18 = vld [vmem:[%s4595_s0 + $0xf8] sm:$0xff]   ;;  %v2260_v19 = vld [vmem:[%s4595_s0 + $0x40] sm:$0xff]  }
   0x9   :  { %2149 = vmatprep.mubr.msk.bf16.mxu0 %vm347_vm1, %v2248_v7  ;;  %2197 = vmatprep.mubr.msk.bf16.mxu1 %vm347_vm1, %v2249_v8  ;;  %v2261_v20 = vld [vmem:[%s4595_s0 + $0x100] sm:$0xff]   ;;  %v2262_v21 = vld [vmem:[%s4595_s0 + $0x48] sm:$0xff]   ;;  %v2264_v23 = vld [vmem:[%s4595_s0 + $0x50] sm:$0xff]  }
   0xa   :  { %v2263_v22 = vld [vmem:[%s4595_s0 + $0x108] sm:$0xff]   ;;  %v2265_v24 = vld [vmem:[%s4595_s0 + $0x110] sm:$0xff]   ;;  %v2266_v25 = vld [vmem:[%s4595_s0 + $0x58] sm:$0xff]  }
   0xb   :  { %v2267_v26 = vld [vmem:[%s4595_s0 + $0x118] sm:$0xff]   ;;  %v2268_v27 = vld [vmem:[%s4595_s0 + $0x60] sm:$0xff]  }
   0xc   :  { %v2269_v28 = vld [vmem:[%s4595_s0 + $0x120] sm:$0xff]  }
  0x10   :  { %2150 = vmatmul.mubr.msk.bf16.gmra.mrb[4].mxu0 %vm347_vm1, %v2250_v9  ;;  %2198 = vmatmul.mubr.msk.bf16.gmra.mrb[4].mxu1 %vm347_vm1, %v2251_v10 }
  0x11   :  { %2153 = vmatprep.mubr.msk.bf16.mxu0 %vm347_vm1, %v2252_v11  ;;  %2201 = vmatprep.mubr.msk.bf16.mxu1 %vm347_vm1, %v2253_v12 }
  0x18   :  { %2154 = vmatmul.mubr.msk.bf16.gmra.mrb[8].mxu0 %vm347_vm1, %v2254_v13  ;;  %2202 = vmatmul.mubr.msk.bf16.gmra.mrb[8].mxu1 %vm347_vm1, %v2255_v14 }
  0x19   :  { %2157 = vmatprep.mubr.msk.bf16.mxu0 %vm347_vm1, %v2256_v15  ;;  %2205 = vmatprep.mubr.msk.bf16.mxu1 %vm347_vm1, %v2257_v16 }
  0x20   :  { %2158 = vmatmul.mubr.msk.bf16.gmra.mrb[12].mxu0 %vm347_vm1, %v2258_v17  ;;  %2206 = vmatmul.mubr.msk.bf16.gmra.mrb[12].mxu1 %vm347_vm1, %v2259_v18 }
  0x21   :  { %2161 = vmatprep.mubr.msk.bf16.mxu0 %vm347_vm1, %v2260_v19  ;;  %2209 = vmatprep.mubr.msk.bf16.mxu1 %vm347_vm1, %v2261_v20 }
  0x28   :  { %2162 = vmatmul.mubr.msk.bf16.gmra.mrb[16].mxu0 %vm347_vm1, %v2262_v21  ;;  %2210 = vmatmul.mubr.msk.bf16.gmra.mrb[16].mxu1 %vm347_vm1, %v2263_v22 }
  0x29   :  { %2165 = vmatprep.mubr.msk.bf16.mxu0 %vm347_vm1, %v2264_v23  ;;  %2213 = vmatprep.mubr.msk.bf16.mxu1 %vm347_vm1, %v2265_v24 }
  0x30   :  { %2166 = vmatmul.mubr.msk.bf16.gmra.mrb[20].mxu0 %vm347_vm1, %v2266_v25  ;;  %2214 = vmatmul.mubr.msk.bf16.gmra.mrb[20].mxu1 %vm347_vm1, %v2267_v26 }
  0x31   :  { %2169 = vmatprep.mubr.msk.bf16.mxu0 %vm347_vm1, %v2268_v27 }
  0x32   :  { %12 = vsyncpa [#allocation4], 0  ;;  %2217 = vmatprep.mubr.msk.bf16.mxu1 %vm347_vm1, %v2269_v28  ;;  %v2270_v29 = vld [vmem:[%s4595_s0 + $0x68] sm:$0xff]   ;;  %v2272_v31 = vld [vmem:[%s4595_s0 + $0x70] sm:$0xff]   ;;  %vm890_vm2 = vcmask 7168  }
  0x33   :  { %v2271_v30 = vld [vmem:[%s4595_s0 + $0x128] sm:$0xff]   ;;  %v2273_v32 = vld [vmem:[%s4595_s0 + $0x130] sm:$0xff]   ;;  %v2274_v33 = vld [vmem:[%s4595_s0 + $0x78] sm:$0xff]  }
  0x34   :  { %v2275_v34 = vld [vmem:[%s4595_s0 + $0x138] sm:$0xff]   ;;  %v2276_v35 = vld [vmem:[%s4595_s0 + $0x80] sm:$0xff]   ;;  %v2278_v37 = vld [vmem:[%s4595_s0 + $0x88] sm:$0xff]  }
  0x35   :  { %v2277_v36 = vld [vmem:[%s4595_s0 + $0x140] sm:$0xff]   ;;  %v2279_v38 = vld [vmem:[%s4595_s0 + $0x148] sm:$0xff]   ;;  %v2280_v39 = vld [vmem:[%s4595_s0 + $0x90] sm:$0xff]  }
  0x36   :  { %v2281_v40 = vld [vmem:[%s4595_s0 + $0x150] sm:$0xff]   ;;  %v2282_v41 = vld [vmem:[%s4595_s0 + $0x98] sm:$0xff]   ;;  %v2284_v43 = vld [vmem:[%s4595_s0 + $0xa0] sm:$0xff]  }
  0x37   :  { %v2283_v42 = vld [vmem:[%s4595_s0 + $0x158] sm:$0xff]   ;;  %v2285_v44 = vld [vmem:[%s4595_s0 + $0x160] sm:$0xff]   ;;  %v2286_v45 = vld [vmem:[%s4595_s0 + $0xa8] sm:$0xff]  }
  0x38   :  { %2170 = vmatmul.mubr.msk.bf16.gmra.mrb[24].mxu0 %vm347_vm1, %v2270_v29  ;;  %2218 = vmatmul.mubr.msk.bf16.gmra.mrb[24].mxu1 %vm347_vm1, %v2271_v30  ;;  %v2287_v46 = vld [vmem:[%s4595_s0 + $0x168] ss:$0 sps:$4 sm:$0xff]   ;;  %v2288_v47 = vld [vmem:[%s4595_s0 + $0xb0] sm:$0xff]   ;;  %v2289_v48 = vld [vmem:[%s4595_s0 + $0xb8] sm:$0xff]  }
  0x39   :  { %2173 = vmatprep.mubr.msk.bf16.mxu0 %vm347_vm1, %v2272_v31  ;;  %2221 = vmatprep.mubr.msk.bf16.mxu1 %vm347_vm1, %v2273_v32  ;;  %v2898_v49 = vld [vmem:[#allocation2] ss:$0 sm:$0xff] }
  0x40   :  { %2174 = vmatmul.mubr.msk.bf16.gmra.mrb[28].mxu0 %vm347_vm1, %v2274_v33  ;;  %2222 = vmatmul.mubr.msk.bf16.gmra.mrb[28].mxu1 %vm347_vm1, %v2275_v34 }
  0x41   :  { %2177 = vmatprep.mubr.msk.bf16.mxu0 %vm347_vm1, %v2276_v35  ;;  %2225 = vmatprep.mubr.msk.bf16.mxu1 %vm347_vm1, %v2277_v36 }
  0x48   :  { %2178 = vmatmul.mubr.msk.bf16.gmra.mrb[32].mxu0 %vm347_vm1, %v2278_v37  ;;  %2226 = vmatmul.mubr.msk.bf16.gmra.mrb[32].mxu1 %vm347_vm1, %v2279_v38 }
  0x49   :  { %2181 = vmatprep.mubr.msk.bf16.mxu0 %vm347_vm1, %v2280_v39  ;;  %2229 = vmatprep.mubr.msk.bf16.mxu1 %vm347_vm1, %v2281_v40 }
  0x50   :  { %2182 = vmatmul.mubr.msk.bf16.gmra.mrb[36].mxu0 %vm347_vm1, %v2282_v41  ;;  %2230 = vmatmul.mubr.msk.bf16.gmra.mrb[36].mxu1 %vm347_vm1, %v2283_v42 }
  0x51   :  { %2185 = vmatprep.mubr.msk.bf16.mxu0 %vm347_vm1, %v2284_v43  ;;  %2233 = vmatprep.mubr.msk.bf16.mxu1 %vm347_vm1, %v2285_v44 }
  0x58   :  { %2186 = vmatmul.mubr.msk.bf16.gmra.mrb[40].mxu0 %vm347_vm1, %v2286_v45  ;;  %2234 = vmatmul.mubr.msk.bf16.gmra.mrb[40].mxu1 %vm347_vm1, %v2287_v46 }
  0x59   :  { %2189 = vmatprep.mubr.msk.bf16.mxu0 %vm347_vm1, %v2288_v47 }
  0x60   :  { %2190 = vmatmul.mubr.msk.bf16.gmra.mrb[44].mxu0 %vm347_vm1, %v2289_v48 }
  0xdb   :  { %v2147_v50 = vpop.f32.mrb[0].mxu0  ;;  %v2195_v52 = vpop.f32.mrb[0].mxu1 }
  0xdc   :  { %v2901_v51 = vadd.f32 %v2147_v50, %v2898_v49  ;;  %v524_v53 = vpop.f32.mrb[1].mxu0  ;;  %v2904_v54 = vadd.f32 %v2195_v52, %v2898_v49  ;;  %v716_v56 = vpop.f32.mrb[1].mxu1 }
  0xdd   :  { %v2907_v55 = vadd.f32 %v2898_v49, %v524_v53  ;;  %v2148_v57 = vpop.f32.mrb[2].mxu0  ;;  %v2916_v59 = vadd.f32 %v2898_v49, %v716_v56  ;;  %v2196_v61 = vpop.f32.mrb[2].mxu1 }
  0xde   :  { %893 = vst.msk [vmem:[%s4598_s3 + $0x10] sm:$0xff] %vm890_vm2, %v2901_v51  ;;  %v984_v58 = vand.u32 2147483647, %v2901_v51  ;;  %v2919_v60 = vadd.f32 %v2148_v57, %v2898_v49  ;;  %v527_v62 = vpop.f32.mrb[3].mxu0  ;;  %941 = vst.msk [vmem:[%s4598_s3 + $0x190] sm:$0xff] %vm890_vm2, %v2904_v54  ;;  %v2946_v6 = vadd.f32 %v2196_v61, %v2898_v49  ;;  %v719_v7 = vpop.f32.mrb[3].mxu1 }
  0xdf   :  { %v1032_v63 = vand.u32 2147483647, %v2904_v54  ;;  %891 = vst.msk [vmem:[%s4598_s3] sm:$0xff] %vm890_vm2, %v2907_v55  ;;  %v982_v0 = vand.u32 2147483647, %v2907_v55  ;;  %939 = vst.msk [vmem:[%s4598_s3 + $0x180] sm:$0xff] %vm890_vm2, %v2916_v59  ;;  %v2949_v11 = vadd.f32 %v2898_v49, %v527_v62  ;;  %v2958_v15 = vadd.f32 %v2898_v49, %v719_v7 }
  0xe0   :  { %v1075_v1 = vsub.f32 0.0, %v984_v58  ;;  %v1030_v2 = vand.u32 2147483647, %v2916_v59  ;;  %894 = vst.msk [vmem:[%s4598_s3 + $0x18] sm:$0xff] %vm890_vm2, %v2919_v60  ;;  %v985_v3 = vand.u32 2147483647, %v2919_v60 }
  0xe1   :  { %v1123_v4 = vsub.f32 0.0, %v1032_v63  ;;  %v1073_v5 = vsub.f32 0.0, %v982_v0  ;;  %942 = vst.msk [vmem:[%s4598_s3 + $0x198] sm:$0xff] %vm890_vm2, %v2946_v6  ;;  %v1033_v14 = vand.u32 2147483647, %v2946_v6  ;;  %892 = vst.msk [vmem:[%s4598_s3 + $0x8] sm:$0xff] %vm890_vm2, %v2949_v11 }
  0xe2   :  { %v1168_v8 = vmul.f32 1.442695, %v1075_v1  ;;  %v1121_v9 = vsub.f32 0.0, %v1030_v2  ;;  %v1076_v10 = vsub.f32 0.0, %v985_v3  ;;  %v983_v20 = vand.u32 2147483647, %v2949_v11 }
  0xe3   :  { %v1264_v12 = vmul.f32 1.442695, %v1123_v4  ;;  %v1164_v13 = vmul.f32 1.442695, %v1073_v5  ;;  %v2151_v18 = vpop.f32.mrb[4].mxu0  ;;  %v1124_v19 = vsub.f32 0.0, %v1033_v14 }
  0xe4   :  { %2290 = vpow2.f32 %v1168_v8  ;;  %v1260_v16 = vmul.f32 1.442695, %v1121_v9  ;;  %v1170_v17 = vmul.f32 1.442695, %v1076_v10  ;;  %940 = vst.msk [vmem:[%s4598_s3 + $0x188] sm:$0xff] %vm890_vm2, %v2958_v15  ;;  %v2199_v21 = vpop.f32.mrb[4].mxu1  ;;  %v2973_v24 = vadd.f32 %v2151_v18, %v2898_v49 }
  0xe5   :  { %2292 = vpow2.f32 %v1264_v12  ;;  %v540_v22 = vpop.f32.mrb[5].mxu0  ;;  %v1031_v23 = vand.u32 2147483647, %v2958_v15  ;;  %v732_v25 = vpop.f32.mrb[5].mxu1  ;;  %v1266_v27 = vmul.f32 1.442695, %v1124_v19  ;;  %v2976_v29 = vadd.f32 %v2199_v21, %v2898_v49 }
  0xe6   :  { %2294 = vpow2.f32 %v1164_v13  ;;  %v2152_v26 = vpop.f32.mrb[6].mxu0  ;;  %v1074_v28 = vsub.f32 0.0, %v983_v20  ;;  %v2200_v30 = vpop.f32.mrb[6].mxu1  ;;  %897 = vst.msk [vmem:[%s4598_s3 + $0x30] sm:$0xff] %vm890_vm2, %v2973_v24  ;;  %v988_v33 = vand.u32 2147483647, %v2973_v24  ;;  %v2991_v39 = vadd.f32 %v2898_v49, %v540_v22 }
  0xe7   :  { %2296 = vpow2.f32 %v1260_v16  ;;  %v543_v31 = vpop.f32.mrb[7].mxu0  ;;  %v1122_v32 = vsub.f32 0.0, %v1031_v23  ;;  %v735_v34 = vpop.f32.mrb[7].mxu1  ;;  %945 = vst.msk [vmem:[%s4598_s3 + $0x1b0] sm:$0xff] %vm890_vm2, %v2976_v29  ;;  %v1036_v36 = vand.u32 2147483647, %v2976_v29  ;;  %v2994_v40 = vadd.f32 %v2898_v49, %v732_v25 }
  0xe8   :  { %2298 = vpow2.f32 %v1170_v17  ;;  %v1166_v35 = vmul.f32 1.442695, %v1074_v28  ;;  %v1079_v38 = vsub.f32 0.0, %v988_v33  ;;  %v2997_v42 = vadd.f32 %v2152_v26, %v2898_v49  ;;  %895 = vst.msk [vmem:[%s4598_s3 + $0x20] sm:$0xff] %vm890_vm2, %v2991_v39 }
  0xe9   :  { %2300 = vpow2.f32 %v1266_v27  ;;  %v1262_v37 = vmul.f32 1.442695, %v1122_v32  ;;  %v1127_v41 = vsub.f32 0.0, %v1036_v36  ;;  %v3000_v43 = vadd.f32 %v2200_v30, %v2898_v49  ;;  %943 = vst.msk [vmem:[%s4598_s3 + $0x1a0] sm:$0xff] %vm890_vm2, %v2994_v40 }
  0xea   :  { %2302 = vpow2.f32 %v1166_v35  ;;  %v1176_v45 = vmul.f32 1.442695, %v1079_v38  ;;  %v986_v46 = vand.u32 2147483647, %v2991_v39  ;;  %v1034_v50 = vand.u32 2147483647, %v2994_v40 }
  0xeb   :  { %v2155_v44 = vpop.f32.mrb[8].mxu0  ;;  %2304 = vpow2.f32 %v1262_v37  ;;  %v2203_v47 = vpop.f32.mrb[8].mxu1  ;;  %v1272_v48 = vmul.f32 1.442695, %v1127_v41  ;;  %898 = vst.msk [vmem:[%s4598_s3 + $0x38] sm:$0xff] %vm890_vm2, %v2997_v42  ;;  %946 = vst.msk [vmem:[%s4598_s3 + $0x1b8] sm:$0xff] %vm890_vm2, %v3000_v43  ;;  %v3044_v9 = vadd.f32 %v2898_v49, %v543_v31  ;;  %v3066_v25 = vadd.f32 %v2898_v49, %v735_v34 }
  0xec   :  { %2306 = vpow2.f32 %v1176_v45  ;;  %v1077_v53 = vsub.f32 0.0, %v986_v46  ;;  %v989_v56 = vand.u32 2147483647, %v2997_v42  ;;  %v1037_v57 = vand.u32 2147483647, %v3000_v43  ;;  %v556_v58 = vpop.f32.mrb[9].mxu0 }
  0xed   :  { %2308 = vpow2.f32 %v1272_v48  ;;  %v1125_v63 = vsub.f32 0.0, %v1034_v50  ;;  %v3031_v0 = vpop.f32.mrb[9].mxu1  ;;  %v3033_v1 = vpop.f32.mrb[10].mxu0  ;;  %896 = vst.msk [vmem:[%s4598_s3 + $0x28] sm:$0xff] %vm890_vm2, %v3044_v9  ;;  %v987_v21 = vand.u32 2147483647, %v3044_v9  ;;  %v3069_v26 = vadd.f32 %v2155_v44, %v2898_v49 }
  0xee   :  { %v3024_v52 = vpop.eup %2290  ;;  %v3038_v4 = vpop.f32.mrb[10].mxu1  ;;  %v1172_v8 = vmul.f32 1.442695, %v1077_v53  ;;  %v1080_v16 = vsub.f32 0.0, %v989_v56  ;;  %v1128_v17 = vsub.f32 0.0, %v1037_v57  ;;  %vm1348_vm3 = vcmp.ge.f32.partialorder %v2901_v51, 0.0 }
  0xef   :  { %v3028_v61 = vpop.eup %2292  ;;  %v1439_v62 = vadd.f32 1.0, %v3024_v52  ;;  %v3046_v10 = vpop.f32.mrb[11].mxu0  ;;  %v1268_v20 = vmul.f32 1.442695, %v1125_v63  ;;  %v1078_v31 = vsub.f32 0.0, %v987_v21  ;;  %v3079_v32 = vadd.f32 %v2203_v47, %v2898_v49  ;;  %944 = vst.msk [vmem:[%s4598_s3 + $0x1a8] sm:$0xff] %vm890_vm2, %v3066_v25 }
  0xf0   :  { %v3035_v2 = vpop.eup %2294  ;;  %v1487_v3 = vadd.f32 1.0, %v3028_v61  ;;  %v3048_v12 = vpop.f32.mrb[11].mxu1  ;;  %v3082_v33 = vadd.f32 %v2898_v49, %v556_v58  ;;  %vm1396_vm4 = vcmp.ge.f32.partialorder %v2904_v54, 0.0  ;;  %v1035_v38 = vand.u32 2147483647, %v3066_v25  ;;  %901 = vst.msk [vmem:[%s4598_s3 + $0x50] sm:$0xff] %vm890_vm2, %v3069_v26 }
  0xf1   :  { %v3040_v5 = vpop.eup %2296  ;;  %2310 = vrcp.f32 %v1439_v62  ;;  %v1437_v7 = vadd.f32 1.0, %v3035_v2  ;;  %vm1346_vm5 = vcmp.ge.f32.partialorder %v2907_v55, 0.0  ;;  %v1178_v46 = vmul.f32 1.442695, %v1080_v16  ;;  %949 = vst.msk [vmem:[%s4598_s3 + $0x1d0] sm:$0xff] %vm890_vm2, %v3079_v32 }
  0xf2   :  { %v3050_v13 = vpop.eup %2298  ;;  %2312 = vrcp.f32 %v1487_v3  ;;  %v1485_v14 = vadd.f32 1.0, %v3040_v5  ;;  %v992_v47 = vand.u32 2147483647, %v3069_v26  ;;  %899 = vst.msk [vmem:[%s4598_s3 + $0x40] sm:$0xff] %vm890_vm2, %v3082_v33  ;;  %vm1394_vm6 = vcmp.ge.f32.partialorder %v2916_v59, 0.0 }
  0xf3   :  { %v3053_v18 = vpop.eup %2300  ;;  %2314 = vrcp.f32 %v1437_v7  ;;  %v1440_v19 = vadd.f32 1.0, %v3050_v13  ;;  %v3062_v22 = vpop.f32.mrb[12].mxu0  ;;  %v1274_v53 = vmul.f32 1.442695, %v1128_v17  ;;  %v1126_v56 = vsub.f32 0.0, %v1035_v38 }
  0xf4   :  { %2316 = vrcp.f32 %v1485_v14  ;;  %v1488_v23 = vadd.f32 1.0, %v3053_v18  ;;  %v3071_v27 = vpop.f32.mrb[12].mxu1  ;;  %v3073_v28 = vpop.f32.mrb[13].mxu0  ;;  %v1040_v57 = vand.u32 2147483647, %v3079_v32  ;;  %vm1349_vm7 = vcmp.ge.f32.partialorder %v2919_v60, 0.0 }
  0xf5   :  { %v3075_v30 = vpop.eup %2302  ;;  %2318 = vrcp.f32 %v1440_v19  ;;  %v3084_v34 = vpop.f32.mrb[13].mxu1  ;;  %v1174_v63 = vmul.f32 1.442695, %v1078_v31  ;;  %v1083_v3 = vsub.f32 0.0, %v992_v47  ;;  %vm1397_vm8 = vcmp.ge.f32.partialorder %v2946_v6, 0.0 }
  0xf6   :  { %v3086_v35 = vpop.f32.mrb[14].mxu0  ;;  %v3088_v36 = vpop.eup %2304  ;;  %2320 = vrcp.f32 %v1488_v23  ;;  %v1438_v37 = vadd.f32 1.0, %v3075_v30  ;;  %v1131_v14 = vsub.f32 0.0, %v1040_v57  ;;  %v990_v19 = vand.u32 2147483647, %v3082_v33 }
  0xf7   :  { %v3103_v41 = vpop.f32.mrb[14].mxu1  ;;  %v3105_v44 = vpop.f32.mrb[15].mxu0  ;;  %v1486_v45 = vadd.f32 1.0, %v3088_v36  ;;  %2322 = vpow2.f32 %v1172_v8  ;;  %v1270_v8 = vmul.f32 1.442695, %v1126_v56  ;;  %vm1347_vm9 = vcmp.ge.f32.partialorder %v2949_v11, 0.0 }
  0xf8   :  { %v3120_v48 = vpop.f32.mrb[15].mxu1  ;;  %v3122_v50 = vpop.eup %2306  ;;  %2324 = vrcp.f32 %v1438_v37  ;;  %v1184_v17 = vmul.f32 1.442695, %v1083_v3  ;;  %v1280_v31 = vmul.f32 1.442695, %v1131_v14  ;;  %v1081_v57 = vsub.f32 0.0, %v990_v19 }
  0xf9   :  { %v3126_v58 = vpop.eup %2308  ;;  %2326 = vrcp.f32 %v1486_v45  ;;  %v1443_v62 = vadd.f32 1.0, %v3122_v50  ;;  %vm1395_vm10 = vcmp.ge.f32.partialorder %v2958_v15, 0.0  ;;  %vm1352_vm11 = vcmp.ge.f32.partialorder %v2973_v24, 0.0 }
  0xfa   :  { %v1491_v7 = vadd.f32 1.0, %v3126_v58  ;;  %2328 = vpow2.f32 %v1268_v20  ;;  %v3139_v20 = vadd.f32 %v2898_v49, %v3031_v0  ;;  %v3207_v6 = vadd.f32 %v3038_v4, %v2898_v49 }
  0xfb   :  { %v2311_v16 = vpop.eup %2310  ;;  %2330 = vrcp.f32 %v1443_v62  ;;  %v3133_v21 = vpop.f32.mrb[16].mxu0  ;;  %vm1400_vm12 = vcmp.ge.f32.partialorder %v2976_v29, 0.0  ;;  %vm1350_vm13 = vcmp.ge.f32.partialorder %v2991_v39, 0.0  ;;  %vm1398_vm14 = vcmp.ge.f32.partialorder %v2994_v40, 0.0 }
  0xfc   :  { %v2313_v23 = vpop.eup %2312  ;;  %v1712_v37 = vmul.f32 %v2311_v16, %v3024_v52  ;;  %2332 = vrcp.f32 %v1491_v7  ;;  %v3141_v38 = vpop.f32.mrb[16].mxu1  ;;  %v3148_v52 = vadd.f32 %v3033_v1, %v2898_v49  ;;  %947 = vst.msk [vmem:[%s4598_s3 + $0x1c0] sm:$0xff] %vm890_vm2, %v3139_v20  ;;  %950 = vst.msk [vmem:[%s4598_s3 + $0x1d8] sm:$0xff] %vm890_vm2, %v3207_v6  ;;  %v1041_v11 = vand.u32 2147483647, %v3207_v6 }
  0xfd   :  { %v3143_v45 = vpop.f32.mrb[17].mxu0  ;;  %v2315_v47 = vpop.eup %2314  ;;  %v1760_v56 = vmul.f32 %v2313_v23, %v3028_v61  ;;  %2334 = vpow2.f32 %v1178_v46  ;;  %v1038_v61 = vand.u32 2147483647, %v3139_v20  ;;  %vm1353_vm15 = vcmp.ge.f32.partialorder %v2997_v42, 0.0 }
  0xfe   :  { %v3150_v62 = vpop.f32.mrb[17].mxu1  ;;  %v3152_v3 = vpop.f32.mrb[18].mxu0  ;;  %v1803_v0 = vsel %vm1348_vm3, %v2311_v16, %v1712_v37  ;;  %v1710_v14 = vmul.f32 %v2315_v47, %v3035_v2  ;;  %2336 = vpow2.f32 %v1274_v53  ;;  %v1180_v53 = vmul.f32 1.442695, %v1081_v57  ;;  %902 = vst.msk [vmem:[%s4598_s3 + $0x58] sm:$0xff] %vm890_vm2, %v3148_v52 }
  0xff   :  { %v2317_v7 = vpop.eup %2316  ;;  %v3163_v1 = vpop.f32.mrb[18].mxu1  ;;  %1894 = vst.msk [vmem:[#allocation3 + $0x10] sm:$0xff] %vm890_vm2, %v1803_v0  ;;  %v1851_v51 = vsel %vm1396_vm4, %v2313_v23, %v1760_v56  ;;  %2338 = vpow2.f32 %v1174_v63  ;;  %vm1401_vm0 = vcmp.ge.f32.partialorder %v3000_v43, 0.0  ;;  %vm1351_vm1 = vcmp.ge.f32.partialorder %v3044_v9, 0.0 }
 0x100   :  { %v3165_v46 = vpop.f32.mrb[19].mxu0  ;;  %v2319_v19 = vpop.eup %2318  ;;  %v1758_v2 = vmul.f32 %v2317_v7, %v3040_v5  ;;  %1942 = vst.msk [vmem:[#allocation3 + $0x190] sm:$0xff] %vm890_vm2, %v1851_v51  ;;  %v1801_v0 = vsel %vm1346_vm5, %v2315_v47, %v1710_v14  ;;  %2340 = vpow2.f32 %v1270_v8  ;;  %v1129_v5 = vsub.f32 0.0, %v1038_v61 }
 0x101   :  { %v3176_v16 = vpop.f32.mrb[19].mxu1  ;;  %v2321_v37 = vpop.eup %2320  ;;  %v1713_v54 = vmul.f32 %v2319_v19, %v3050_v13  ;;  %1892 = vst.msk [vmem:[#allocation3] sm:$0xff] %vm890_vm2, %v1801_v0  ;;  %2342 = vpow2.f32 %v1184_v17  ;;  %v993_v17 = vand.u32 2147483647, %v3148_v52  ;;  %vm1399_vm3 = vcmp.ge.f32.partialorder %v3066_v25, 0.0 }
 0x102   :  { %v3182_v63 = vpop.eup %2322  ;;  %v1849_v23 = vsel %vm1394_vm6, %v2317_v7, %v1758_v2  ;;  %v1761_v56 = vmul.f32 %v2321_v37, %v3053_v18  ;;  %2344 = vpow2.f32 %v1280_v31  ;;  %v1276_v8 = vmul.f32 1.442695, %v1129_v5 }
 0x103   :  { %v2325_v57 = vpop.eup %2324  ;;  %1940 = vst.msk [vmem:[#allocation3 + $0x180] sm:$0xff] %vm890_vm2, %v1849_v23  ;;  %v1804_v55 = vsel %vm1349_vm7, %v2319_v19, %v1713_v54  ;;  %v1441_v13 = vadd.f32 1.0, %v3182_v63  ;;  %2346 = vpow2.f32 %v1180_v53  ;;  %v3198_v7 = vpop.f32.mrb[20].mxu0  ;;  %v1084_v2 = vsub.f32 0.0, %v993_v17 }
 0x104   :  { %v2327_v47 = vpop.eup %2326  ;;  %1895 = vst.msk [vmem:[#allocation3 + $0x18] sm:$0xff] %vm890_vm2, %v1804_v55  ;;  %v1852_v59 = vsel %vm1397_vm8, %v2321_v37, %v1761_v56  ;;  %v1711_v18 = vmul.f32 %v2325_v57, %v3075_v30  ;;  %v3209_v31 = vpop.f32.mrb[20].mxu1  ;;  %v3241_v56 = vadd.f32 %v2898_v49, %v3046_v10  ;;  %vm1356_vm4 = vcmp.ge.f32.partialorder %v3069_v26, 0.0 }
 0x105   :  { %v3200_v14 = vpop.eup %2328  ;;  %1943 = vst.msk [vmem:[#allocation3 + $0x198] sm:$0xff] %vm890_vm2, %v1852_v59  ;;  %v1759_v60 = vmul.f32 %v2327_v47, %v3088_v36  ;;  %2348 = vrcp.f32 %v1441_v13  ;;  %v3211_v30 = vpop.f32.mrb[21].mxu0  ;;  %v3252_v59 = vadd.f32 %v2898_v49, %v3048_v12  ;;  %v3398_v43 = vadd.f32 %v3103_v41, %v2898_v49 }
 0x106   :  { %v2331_v61 = vpop.eup %2330  ;;  %v1802_v19 = vsel %vm1347_vm9, %v2325_v57, %v1711_v18  ;;  %v1489_v51 = vadd.f32 1.0, %v3200_v14  ;;  %2350 = vpow2.f32 %v1276_v8  ;;  %v3216_v36 = vpop.f32.mrb[21].mxu1  ;;  %900 = vst.msk [vmem:[%s4598_s3 + $0x48] sm:$0xff] %vm890_vm2, %v3241_v56  ;;  %v991_v24 = vand.u32 2147483647, %v3241_v56 }
 0x107   :  { %v3218_v53 = vpop.f32.mrb[22].mxu0  ;;  %v2333_v37 = vpop.eup %2332  ;;  %1893 = vst.msk [vmem:[#allocation3 + $0x8] sm:$0xff] %vm890_vm2, %v1802_v19  ;;  %v1850_v4 = vsel %vm1395_vm10, %v2327_v47, %v1759_v60  ;;  %v1716_v0 = vmul.f32 %v2331_v61, %v3122_v50  ;;  %v1186_v50 = vmul.f32 1.442695, %v1084_v2  ;;  %v1132_v47 = vsub.f32 0.0, %v1041_v11  ;;  %948 = vst.msk [vmem:[%s4598_s3 + $0x1c8] sm:$0xff] %vm890_vm2, %v3252_v59 }
 0x108   :  { %v3231_v54 = vpop.f32.mrb[22].mxu1  ;;  %v3233_v5 = vpop.f32.mrb[23].mxu0  ;;  %1941 = vst.msk [vmem:[#allocation3 + $0x188] sm:$0xff] %vm890_vm2, %v1850_v4  ;;  %v1764_v15 = vmul.f32 %v2333_v37, %v3126_v58  ;;  %2352 = vrcp.f32 %v1489_v51  ;;  %v1039_v19 = vand.u32 2147483647, %v3252_v59  ;;  %vm1404_vm5 = vcmp.ge.f32.partialorder %v3079_v32, 0.0 }
 0x109   :  { %v3235_v23 = vpop.eup %2334  ;;  %v3243_v57 = vpop.f32.mrb[23].mxu1  ;;  %v1807_v13 = vsel %vm1352_vm11, %v2331_v61, %v1716_v0  ;;  %2354 = vpow2.f32 %v1186_v50  ;;  %v1082_v61 = vsub.f32 0.0, %v991_v24  ;;  %v1282_v4 = vmul.f32 1.442695, %v1132_v47  ;;  %954 = vst.msk [vmem:[%s4598_s3 + $0x1f8] sm:$0xff] %vm890_vm2, %v3398_v43 }
 0x10a   :  { %v3245_v55 = vpop.eup %2336  ;;  %v1444_v8 = vadd.f32 1.0, %v3235_v23  ;;  %1898 = vst.msk [vmem:[#allocation3 + $0x30] sm:$0xff] %vm890_vm2, %v1807_v13  ;;  %v1855_v10 = vsel %vm1400_vm12, %v2333_v37, %v1764_v15  ;;  %v3288_v0 = vadd.f32 %v3062_v22, %v2898_v49  ;;  %v1045_v32 = vand.u32 2147483647, %v3398_v43 }
 0x10b   :  { %v3254_v58 = vpop.eup %2338  ;;  %v1492_v18 = vadd.f32 1.0, %v3245_v55  ;;  %1946 = vst.msk [vmem:[#allocation3 + $0x1b0] sm:$0xff] %vm890_vm2, %v1855_v10  ;;  %v3281_v51 = vpop.f32.mrb[24].mxu0  ;;  %v1130_v10 = vsub.f32 0.0, %v1039_v19  ;;  %vm1354_vm6 = vcmp.ge.f32.partialorder %v3082_v33, 0.0  ;;  %vm1402_vm7 = vcmp.ge.f32.partialorder %v3139_v20, 0.0 }
 0x10c   :  { %v3266_v12 = vpop.eup %2340  ;;  %2356 = vrcp.f32 %v1444_v8  ;;  %v1442_v29 = vadd.f32 1.0, %v3254_v58  ;;  %4600 = vst [vmem:[#allocation6_spill] sm:$0xff] %v3281_v51  ;;  %v3290_v11 = vpop.f32.mrb[24].mxu1  ;;  %v1182_v8 = vmul.f32 1.442695, %v1082_v61  ;;  %905 = vst.msk [vmem:[%s4598_s3 + $0x70] sm:$0xff] %vm890_vm2, %v3288_v0 }
 0x10d   :  { %v3276_v17 = vpop.eup %2342  ;;  %2358 = vrcp.f32 %v1492_v18  ;;  %v1490_v60 = vadd.f32 1.0, %v3266_v12  ;;  %4601 = vst [vmem:[#allocation7_spill] sm:$0xff] %v3290_v11  ;;  %v3292_v15 = vpop.f32.mrb[25].mxu0  ;;  %vm1357_vm8 = vcmp.ge.f32.partialorder %v3148_v52, 0.0  ;;  %vm1405_vm9 = vcmp.ge.f32.partialorder %v3207_v6, 0.0 }
 0x10e   :  { %v3283_v2 = vpop.eup %2344  ;;  %2360 = vrcp.f32 %v1442_v29  ;;  %v1447_v37 = vadd.f32 1.0, %v3276_v17  ;;  %4602 = vst [vmem:[#allocation8_spill] sm:$0xff] %v3292_v15  ;;  %v3297_v18 = vpop.f32.mrb[25].mxu1  ;;  %v996_v29 = vand.u32 2147483647, %v3288_v0  ;;  %vm1355_vm10 = vcmp.ge.f32.partialorder %v3241_v56, 0.0 }
 0x10f   :  { %v3294_v50 = vpop.eup %2346  ;;  %2362 = vrcp.f32 %v1490_v60  ;;  %v1495_v13 = vadd.f32 1.0, %v3283_v2  ;;  %4603 = vst [vmem:[#allocation9_spill] sm:$0xff] %v3297_v18  ;;  %v3299_v24 = vpop.f32.mrb[26].mxu0  ;;  %v3319_v18 = vadd.f32 %v3071_v27, %v2898_v49  ;;  %vm1403_vm11 = vcmp.ge.f32.partialorder %v3252_v59, 0.0 }
 0x110   :  { %4604 = vst [vmem:[#allocation10_spill] sm:$0xff] %v3299_v24  ;;  %v2349_v47 = vpop.eup %2348  ;;  %2364 = vrcp.f32 %v1447_v37  ;;  %v1445_v22 = vadd.f32 1.0, %v3294_v50  ;;  %v3309_v60 = vpop.f32.mrb[26].mxu1  ;;  %v1278_v37 = vmul.f32 1.442695, %v1130_v10  ;;  %vm1360_vm12 = vcmp.ge.f32.partialorder %v3288_v0, 0.0 }
 0x111   :  { %4605 = vst [vmem:[#allocation11_spill] sm:$0xff] %v3309_v60  ;;  %v3311_v61 = vpop.f32.mrb[27].mxu0  ;;  %v3313_v19 = vpop.eup %2350  ;;  %v1714_v24 = vmul.f32 %v2349_v47, %v3182_v63  ;;  %2366 = vrcp.f32 %v1495_v13  ;;  %v1087_v60 = vsub.f32 0.0, %v996_v29  ;;  %953 = vst.msk [vmem:[%s4598_s3 + $0x1f0] sm:$0xff] %vm890_vm2, %v3319_v18  ;;  %v1044_v27 = vand.u32 2147483647, %v3319_v18 }
 0x112   :  { %4606 = vst [vmem:[#allocation12_spill] sm:$0xff] %v3311_v61  ;;  %v3321_v15 = vpop.f32.mrb[27].mxu1  ;;  %2368 = vrcp.f32 %v1445_v22  ;;  %v1493_v11 = vadd.f32 1.0, %v3313_v19  ;;  %v3326_v61 = vadd.f32 %v2898_v49, %v3073_v28  ;;  %v2353_v51 = vpop.eup %2352 }
 0x113   :  { %v1805_v63 = vsel %vm1350_vm13, %v2349_v47, %v1714_v24  ;;  %2370 = vpow2.f32 %v1282_v4  ;;  %v1762_v28 = vmul.f32 %v2353_v51, %v3200_v14  ;;  %v1192_v13 = vmul.f32 1.442695, %v1087_v60  ;;  %v3345_v4 = vpop.eup %2354  ;;  %v3352_v14 = vpop.f32.mrb[28].mxu0 }
 0x114   :  { %1896 = vst.msk [vmem:[#allocation3 + $0x20] sm:$0xff] %vm890_vm2, %v1805_v63  ;;  %2372 = vrcp.f32 %v1493_v11  ;;  %903 = vst.msk [vmem:[%s4598_s3 + $0x60] sm:$0xff] %vm890_vm2, %v3326_v61  ;;  %v994_v39 = vand.u32 2147483647, %v3326_v61  ;;  %v1135_v10 = vsub.f32 0.0, %v1044_v27  ;;  %v3350_v24 = vadd.f32 %v2898_v49, %v3084_v34  ;;  %v3357_v60 = vpop.f32.mrb[28].mxu1 }
 0x115   :  { %2374 = vpow2.f32 %v1182_v8  ;;  %4607 = vst [vmem:[#allocation13_spill] sm:$0xff] %v3352_v14  ;;  %v1853_v47 = vsel %vm1398_vm14, %v2353_v51, %v1762_v28  ;;  %v1448_v22 = vadd.f32 1.0, %v3345_v4  ;;  %4608 = vst [vmem:[#allocation14_spill] sm:$0xff] %v3357_v60  ;;  %v3359_v63 = vpop.f32.mrb[29].mxu0  ;;  %v3369_v51 = vpop.f32.mrb[29].mxu1  ;;  %vm1408_vm13 = vcmp.ge.f32.partialorder %v3319_v18, 0.0 }
 0x116   :  { %v2357_v11 = vpop.eup %2356  ;;  %2376 = vpow2.f32 %v1278_v37  ;;  %v1085_v29 = vsub.f32 0.0, %v994_v39  ;;  %4609 = vst [vmem:[#allocation15_spill] sm:$0xff] %v3359_v63  ;;  %1944 = vst.msk [vmem:[#allocation3 + $0x1a0] sm:$0xff] %vm890_vm2, %v1853_v47  ;;  %v1288_v27 = vmul.f32 1.442695, %v1135_v10  ;;  %v3371_v37 = vpop.f32.mrb[30].mxu0 }
 0x117   :  { %v2359_v8 = vpop.eup %2358  ;;  %v1717_v34 = vmul.f32 %v2357_v11, %v3235_v23  ;;  %2378 = vpow2.f32 %v1192_v13  ;;  %951 = vst.msk [vmem:[%s4598_s3 + $0x1e0] sm:$0xff] %vm890_vm2, %v3350_v24  ;;  %v1042_v40 = vand.u32 2147483647, %v3350_v24  ;;  %4610 = vst [vmem:[#allocation16_spill] sm:$0xff] %v3369_v51  ;;  %v3375_v13 = vpop.f32.mrb[30].mxu1  ;;  %vm1358_vm14 = vcmp.ge.f32.partialorder %v3326_v61, 0.0 }
 0x118   :  { %4611 = vst [vmem:[#allocation17_spill] sm:$0xff] %v3371_v37  ;;  %v2361_v28 = vpop.eup %2360  ;;  %v1765_v39 = vmul.f32 %v2359_v8, %v3245_v55  ;;  %2380 = vrcp.f32 %v1448_v22  ;;  %v1188_v23 = vmul.f32 1.442695, %v1085_v29  ;;  %v3377_v10 = vpop.f32.mrb[31].mxu0  ;;  %v3390_v29 = vadd.f32 %v3086_v35, %v2898_v49 }
 0x119   :  { %v2363_v47 = vpop.eup %2362  ;;  %v1808_v63 = vsel %vm1353_vm15, %v2357_v11, %v1717_v34  ;;  %v1715_v60 = vmul.f32 %v2361_v28, %v3254_v58  ;;  %2382 = vpow2.f32 %v1288_v27  ;;  %v1133_v51 = vsub.f32 0.0, %v1042_v40  ;;  %v3382_v37 = vpop.f32.mrb[31].mxu1 }
 0x11a   :  { %v2365_v14 = vpop.eup %2364  ;;  %1899 = vst.msk [vmem:[#allocation3 + $0x38] sm:$0xff] %vm890_vm2, %v1808_v63  ;;  %v1856_v55 = vsel %vm1401_vm0, %v2359_v8, %v1765_v39  ;;  %v1763_v22 = vmul.f32 %v2363_v47, %v3266_v12  ;;  %2384 = vpow2.f32 %v1188_v23  ;;  %906 = vst.msk [vmem:[%s4598_s3 + $0x78] sm:$0xff] %vm890_vm2, %v3390_v29  ;;  %v997_v9 = vand.u32 2147483647, %v3390_v29 }
 0x11b   :  { %v2367_v42 = vpop.eup %2366  ;;  %1947 = vst.msk [vmem:[#allocation3 + $0x1b8] sm:$0xff] %vm890_vm2, %v1856_v55  ;;  %v1806_v58 = vsel %vm1351_vm1, %v2361_v28, %v1715_v60  ;;  %v1720_v11 = vmul.f32 %v2365_v14, %v3276_v17  ;;  %v1284_v34 = vmul.f32 1.442695, %v1133_v51  ;;  %v1136_v39 = vsub.f32 0.0, %v1045_v32 }
 0x11c   :  { %v2369_v63 = vpop.eup %2368  ;;  %1897 = vst.msk [vmem:[#allocation3 + $0x28] sm:$0xff] %vm890_vm2, %v1806_v58  ;;  %v1854_v35 = vsel %vm1399_vm3, %v2363_v47, %v1763_v22  ;;  %v1768_v12 = vmul.f32 %v2367_v42, %v3283_v2  ;;  %v3423_v2 = vpop.f32.mrb[32].mxu0  ;;  %v3438_v23 = vadd.f32 %v2898_v49, %v3105_v44  ;;  %vm1406_vm15 = vcmp.ge.f32.partialorder %v3350_v24, 0.0 }
 0x11d   :  { %v3411_v41 = vpop.eup %2370  ;;  %1945 = vst.msk [vmem:[#allocation3 + $0x1a8] sm:$0xff] %vm890_vm2, %v1854_v35  ;;  %v1811_v25 = vsel %vm1356_vm4, %v2365_v14, %v1720_v11  ;;  %v1718_v17 = vmul.f32 %v2369_v63, %v3294_v50  ;;  %2386 = vpow2.f32 %v1284_v34  ;;  %v1088_v50 = vsub.f32 0.0, %v997_v9  ;;  %v3428_v14 = vpop.f32.mrb[32].mxu1 }
 0x11e   :  { %v2373_v60 = vpop.eup %2372  ;;  %1902 = vst.msk [vmem:[#allocation3 + $0x50] sm:$0xff] %vm890_vm2, %v1811_v25  ;;  %v1859_v8 = vsel %vm1404_vm5, %v2367_v42, %v1768_v12  ;;  %v1496_v26 = vadd.f32 1.0, %v3411_v41  ;;  %v3430_v27 = vpop.f32.mrb[33].mxu0  ;;  %904 = vst.msk [vmem:[%s4598_s3 + $0x68] sm:$0xff] %vm890_vm2, %v3438_v23  ;;  %v995_v20 = vand.u32 2147483647, %v3438_v23 }
 0x11f   :  { %v3432_v40 = vpop.eup %2374  ;;  %1950 = vst.msk [vmem:[#allocation3 + $0x1d0] sm:$0xff] %vm890_vm2, %v1859_v8  ;;  %v1809_v51 = vsel %vm1354_vm6, %v2369_v63, %v1718_v17  ;;  %v1766_v28 = vmul.f32 %v2373_v60, %v3313_v19  ;;  %v3440_v33 = vpop.f32.mrb[33].mxu1  ;;  %v3451_v19 = vadd.f32 %v2898_v49, %v3120_v48  ;;  %v1194_v63 = vmul.f32 1.442695, %v1088_v50 }
 0x120   :  { %v3442_v47 = vpop.f32.mrb[34].mxu0  ;;  %v3444_v55 = vpop.eup %2376  ;;  %1900 = vst.msk [vmem:[#allocation3 + $0x40] sm:$0xff] %vm890_vm2, %v1809_v51  ;;  %2388 = vrcp.f32 %v1496_v26  ;;  %v1446_v22 = vadd.f32 1.0, %v3432_v40  ;;  %v1290_v32 = vmul.f32 1.442695, %v1136_v39  ;;  %v3485_v50 = vadd.f32 %v3133_v21, %v2898_v49 }
 0x121   :  { %v3453_v42 = vpop.f32.mrb[34].mxu1  ;;  %v3455_v44 = vpop.f32.mrb[35].mxu0  ;;  %v1857_v11 = vsel %vm1402_vm7, %v2373_v60, %v1766_v28  ;;  %v1494_v34 = vadd.f32 1.0, %v3444_v55  ;;  %952 = vst.msk [vmem:[%s4598_s3 + $0x1e8] sm:$0xff] %vm890_vm2, %v3451_v19  ;;  %v1043_v9 = vand.u32 2147483647, %v3451_v19 }
 0x122   :  { %v3457_v58 = vpop.eup %2378  ;;  %v3466_v48 = vpop.f32.mrb[35].mxu1  ;;  %1948 = vst.msk [vmem:[#allocation3 + $0x1c0] sm:$0xff] %vm890_vm2, %v1857_v11  ;;  %2390 = vrcp.f32 %v1446_v22  ;;  %v1086_v60 = vsub.f32 0.0, %v995_v20  ;;  %909 = vst.msk [vmem:[%s4598_s3 + $0x90] sm:$0xff] %vm890_vm2, %v3485_v50  ;;  %v1000_v21 = vand.u32 2147483647, %v3485_v50  ;;  %v3508_v20 = vadd.f32 %v2898_v49, %v3143_v45 }
 0x123   :  { %4612 = vst [vmem:[#allocation18_spill] sm:$0xff] %v3466_v48  ;;  %v2381_v35 = vpop.eup %2380  ;;  %v1451_v12 = vadd.f32 1.0, %v3457_v58  ;;  %2392 = vrcp.f32 %v1494_v34  ;;  %v1134_v26 = vsub.f32 0.0, %v1043_v9  ;;  %v3488_v11 = vpop.f32.mrb[36].mxu0  ;;  %vm1361_vm0 = vcmp.ge.f32.partialorder %v3390_v29, 0.0 }
 0x124   :  { %v3477_v25 = vpop.eup %2382  ;;  %v1721_v17 = vmul.f32 %v2381_v35, %v3345_v4  ;;  %v1190_v22 = vmul.f32 1.442695, %v1086_v60  ;;  %4613 = vst [vmem:[#allocation19_spill] sm:$0xff] %v3488_v11  ;;  %v3498_v39 = vpop.f32.mrb[36].mxu1  ;;  %v1091_v60 = vsub.f32 0.0, %v1000_v21  ;;  %907 = vst.msk [vmem:[%s4598_s3 + $0x80] sm:$0xff] %vm890_vm2, %v3508_v20 }
 0x125   :  { %v3480_v8 = vpop.eup %2384  ;;  %2394 = vrcp.f32 %v1451_v12  ;;  %v1499_v52 = vadd.f32 1.0, %v3477_v25  ;;  %v1286_v4 = vmul.f32 1.442695, %v1134_v26  ;;  %4614 = vst [vmem:[#allocation20_spill] sm:$0xff] %v3498_v39  ;;  %v3514_v12 = vpop.f32.mrb[37].mxu0  ;;  %vm1409_vm1 = vcmp.ge.f32.partialorder %v3398_v43, 0.0 }
 0x126   :  { %v1812_v51 = vsel %vm1357_vm8, %v2381_v35, %v1721_v17  ;;  %v1449_v28 = vadd.f32 1.0, %v3480_v8  ;;  %2396 = vpow2.f32 %v1194_v63  ;;  %v3504_v63 = vadd.f32 %v3141_v38, %v2898_v49  ;;  %4615 = vst [vmem:[#allocation21_spill] sm:$0xff] %v3514_v12  ;;  %v3516_v9 = vpop.f32.mrb[37].mxu1 }
 0x127   :  { %1903 = vst.msk [vmem:[#allocation3 + $0x58] sm:$0xff] %vm890_vm2, %v1812_v51  ;;  %2398 = vrcp.f32 %v1499_v52  ;;  %v3500_v34 = vpop.eup %2386  ;;  %v3512_v35 = vadd.f32 %v2898_v49, %v3150_v62  ;;  %4616 = vst [vmem:[#allocation22_spill] sm:$0xff] %v3516_v9  ;;  %v3521_v38 = vadd.f32 %v3152_v3, %v2898_v49  ;;  %v3523_v52 = vpop.f32.mrb[38].mxu0  ;;  %v998_v3 = vand.u32 2147483647, %v3508_v20 }
 0x128   :  { %2400 = vrcp.f32 %v1449_v28  ;;  %v1497_v17 = vadd.f32 1.0, %v3500_v34  ;;  %4617 = vst [vmem:[#allocation23_spill] sm:$0xff] %v3523_v52  ;;  %v3525_v45 = vpop.f32.mrb[38].mxu1  ;;  %957 = vst.msk [vmem:[%s4598_s3 + $0x210] sm:$0xff] %vm890_vm2, %v3504_v63  ;;  %v1048_v62 = vand.u32 2147483647, %v3504_v63 }
 0x129   :  { %2402 = vpow2.f32 %v1290_v32  ;;  %4618 = vst [vmem:[#allocation24_spill] sm:$0xff] %v3525_v45  ;;  %955 = vst.msk [vmem:[%s4598_s3 + $0x200] sm:$0xff] %vm890_vm2, %v3512_v35  ;;  %v3545_v32 = vpop.f32.mrb[39].mxu0  ;;  %v1200_v51 = vmul.f32 1.442695, %v1091_v60  ;;  %vm1359_vm3 = vcmp.ge.f32.partialorder %v3438_v23, 0.0 }
 0x12a   :  { %2404 = vpow2.f32 %v1190_v22  ;;  %4619 = vst [vmem:[#allocation25_spill] sm:$0xff] %v3545_v32  ;;  %v2389_v26 = vpop.eup %2388  ;;  %v1046_v28 = vand.u32 2147483647, %v3512_v35  ;;  %910 = vst.msk [vmem:[%s4598_s3 + $0x98] sm:$0xff] %vm890_vm2, %v3521_v38  ;;  %v3554_v22 = vpop.f32.mrb[39].mxu1  ;;  %v1139_v45 = vsub.f32 0.0, %v1048_v62 }
 0x12b   :  { %2406 = vrcp.f32 %v1497_v17  ;;  %4620 = vst [vmem:[#allocation26_spill] sm:$0xff] %v3554_v22  ;;  %v1769_v21 = vmul.f32 %v2389_v26, %v3411_v41  ;;  %v1089_v32 = vsub.f32 0.0, %v998_v3  ;;  %v1001_v60 = vand.u32 2147483647, %v3521_v38  ;;  %v3562_v48 = vpop.f32.mrb[40].mxu0 }
 0x12c   :  { %2408 = vpow2.f32 %v1286_v4  ;;  %v2391_v52 = vpop.eup %2390  ;;  %v1137_v17 = vsub.f32 0.0, %v1046_v28  ;;  %v1296_v11 = vmul.f32 1.442695, %v1139_v45  ;;  %v3569_v28 = vpop.f32.mrb[41].mxu0  ;;  %vm1407_vm4 = vcmp.ge.f32.partialorder %v3451_v19, 0.0 }
 0x12d   :  { %2410 = vpow2.f32 %v1200_v51  ;;  %v2393_v9 = vpop.eup %2392  ;;  %v1860_v12 = vsel %vm1405_vm9, %v2389_v26, %v1769_v21  ;;  %v1719_v39 = vmul.f32 %v2391_v52, %v3432_v40  ;;  %v1196_v22 = vmul.f32 1.442695, %v1089_v32  ;;  %v3567_v51 = vpop.f32.mrb[40].mxu1 }
 0x12e   :  { %1951 = vst.msk [vmem:[#allocation3 + $0x1d8] sm:$0xff] %vm890_vm2, %v1860_v12  ;;  %v1767_v4 = vmul.f32 %v2393_v9, %v3444_v55  ;;  %v1292_v62 = vmul.f32 1.442695, %v1137_v17  ;;  %v1092_v3 = vsub.f32 0.0, %v1001_v60  ;;  %2412 = vpow2.f32 %v1296_v11  ;;  %v3580_v55 = vpop.f32.mrb[41].mxu1  ;;  %v3582_v32 = vpop.f32.mrb[42].mxu0 }
 0x12f   :  { %v2395_v41 = vpop.eup %2394  ;;  %v1810_v40 = vsel %vm1355_vm10, %v2391_v52, %v1719_v39  ;;  %v3578_v12 = vadd.f32 %v3163_v1, %v2898_v49  ;;  %2414 = vpow2.f32 %v1196_v22  ;;  %v3588_v11 = vpop.f32.mrb[43].mxu0  ;;  %vm1364_vm5 = vcmp.ge.f32.partialorder %v3485_v50, 0.0 }
 0x130   :  { %v3571_v6 = vpop.eup %2396  ;;  %v1724_v45 = vmul.f32 %v2395_v41, %v3457_v58  ;;  %1901 = vst.msk [vmem:[#allocation3 + $0x48] sm:$0xff] %vm890_vm2, %v1810_v40  ;;  %v1858_v21 = vsel %vm1403_vm11, %v2393_v9, %v1767_v4  ;;  %v1202_v39 = vmul.f32 1.442695, %v1092_v3  ;;  %v2236_v58 = vpop.f32.mrb[42].mxu1  ;;  %2416 = vpow2.f32 %v1292_v62 }
 0x131   :  { %v2399_v26 = vpop.eup %2398  ;;  %v1452_v56 = vadd.f32 1.0, %v3571_v6  ;;  %1949 = vst.msk [vmem:[#allocation3 + $0x1c8] sm:$0xff] %vm890_vm2, %v1858_v21  ;;  %958 = vst.msk [vmem:[%s4598_s3 + $0x218] sm:$0xff] %vm890_vm2, %v3578_v12  ;;  %v1049_v59 = vand.u32 2147483647, %v3578_v12  ;;  %v3600_v9 = vpop.f32.mrb[43].mxu1 }
 0x132   :  { %v2401_v52 = vpop.eup %2400  ;;  %v1815_v49 = vsel %vm1360_vm12, %v2395_v41, %v1724_v45  ;;  %v1772_v1 = vmul.f32 %v2399_v26, %v3477_v25  ;;  %v3607_v25 = vld [vmem:[#allocation2] ss:$0 sm:$0xff]  ;;  %vm1412_vm6 = vcmp.ge.f32.partialorder %v3504_v63, 0.0  ;;  %vm1362_vm7 = vcmp.ge.f32.partialorder %v3508_v20, 0.0 }
 0x133   :  { %v3602_v22 = vpop.eup %2402  ;;  %1906 = vst.msk [vmem:[#allocation3 + $0x70] sm:$0xff] %vm890_vm2, %v1815_v49  ;;  %v1722_v0 = vmul.f32 %v2401_v52, %v3480_v8  ;;  %2418 = vrcp.f32 %v1452_v56  ;;  %v3611_v17 = vadd.f32 %v3607_v25, %v3165_v46  ;;  %v1140_v62 = vsub.f32 0.0, %v1049_v59  ;;  %v3635_v21 = vpop.f32.mrb[44].mxu0 }
 0x134   :  { %v3613_v60 = vpop.eup %2404  ;;  %v1863_v41 = vsel %vm1408_vm13, %v2399_v26, %v1772_v1  ;;  %v1500_v4 = vadd.f32 1.0, %v3602_v22  ;;  %2420 = vpow2.f32 %v1202_v39  ;;  %v3633_v26 = vadd.f32 %v3607_v25, %v3176_v16  ;;  %4621 = vst [vmem:[#allocation27_spill] sm:$0xff] %v3635_v21  ;;  %v3644_v49 = vpop.f32.mrb[45].mxu0 }
 0x135   :  { %v2407_v3 = vpop.eup %2406  ;;  %1954 = vst.msk [vmem:[#allocation3 + $0x1f0] sm:$0xff] %vm890_vm2, %v1863_v41  ;;  %v1813_v61 = vsel %vm1358_vm14, %v2401_v52, %v1722_v0  ;;  %v1450_v8 = vadd.f32 1.0, %v3613_v60  ;;  %908 = vst.msk [vmem:[%s4598_s3 + $0x88] sm:$0xff] %vm890_vm2, %v3611_v17  ;;  %v999_v46 = vand.u32 2147483647, %v3611_v17  ;;  %v3642_v52 = vadd.f32 %v3607_v25, %v3198_v7  ;;  %v3655_v59 = vpop.f32.mrb[46].mxu0 }
 0x136   :  { %v3627_v18 = vpop.eup %2408  ;;  %1904 = vst.msk [vmem:[#allocation3 + $0x60] sm:$0xff] %vm890_vm2, %v1813_v61  ;;  %v1770_v40 = vmul.f32 %v2407_v3, %v3500_v34  ;;  %2422 = vrcp.f32 %v1500_v4  ;;  %v1298_v45 = vmul.f32 1.442695, %v1140_v62  ;;  %4622 = vst [vmem:[#allocation28_spill] sm:$0xff] %v3644_v49  ;;  %v1047_v1 = vand.u32 2147483647, %v3633_v26 }
 0x137   :  { %v3637_v56 = vpop.eup %2410  ;;  %2424 = vrcp.f32 %v1450_v8  ;;  %v1498_v39 = vadd.f32 1.0, %v3627_v18  ;;  %v1090_v58 = vsub.f32 0.0, %v999_v46  ;;  %956 = vst.msk [vmem:[%s4598_s3 + $0x208] sm:$0xff] %vm890_vm2, %v3633_v26  ;;  %4623 = vst [vmem:[#allocation29_spill] sm:$0xff] %v3655_v59  ;;  %v1004_v24 = vand.u32 2147483647, %v3642_v52 }
 0x138   :  { %v1861_v34 = vsel %vm1406_vm15, %v2407_v3, %v1770_v40  ;;  %v1455_v16 = vadd.f32 1.0, %v3637_v56  ;;  %2426 = vpow2.f32 %v1298_v45  ;;  %913 = vst.msk [vmem:[%s4598_s3 + $0xb0] sm:$0xff] %vm890_vm2, %v3642_v52  ;;  %v3665_v0 = vpop.f32.mrb[47].mxu0  ;;  %v3667_v41 = vpop.eup %2412  ;;  %v1138_v4 = vsub.f32 0.0, %v1047_v1 }
 0x139   :  { %1952 = vst.msk [vmem:[#allocation3 + $0x1e0] sm:$0xff] %vm890_vm2, %v1861_v34  ;;  %2428 = vrcp.f32 %v1498_v39  ;;  %v1198_v7 = vmul.f32 1.442695, %v1090_v58  ;;  %4624 = vst [vmem:[#allocation30_spill] sm:$0xff] %v3665_v0  ;;  %v3672_v62 = vadd.f32 %v3607_v25, %v3209_v31  ;;  %v3674_v3 = vpop.eup %2414  ;;  %v1503_v61 = vadd.f32 1.0, %v3667_v41 }
 0x13a   :  { %2430 = vrcp.f32 %v1455_v16  ;;  %v1095_v8 = vsub.f32 0.0, %v1004_v24  ;;  %v3679_v46 = vadd.f32 %v3607_v25, %v3211_v30  ;;  %v3681_v40 = vpop.eup %2416  ;;  %v1453_v45 = vadd.f32 1.0, %v3674_v3 }
 0x13b   :  { %2432 = vpow2.f32 %v1198_v7  ;;  %v1294_v39 = vmul.f32 1.442695, %v1138_v4  ;;  %961 = vst.msk [vmem:[%s4598_s3 + $0x230] sm:$0xff] %vm890_vm2, %v3672_v62  ;;  %v1052_v31 = vand.u32 2147483647, %v3672_v62  ;;  %v1501_v30 = vadd.f32 1.0, %v3681_v40 }
 0x13c   :  { %2434 = vrcp.f32 %v1503_v61  ;;  %911 = vst.msk [vmem:[%s4598_s3 + $0xa0] sm:$0xff] %vm890_vm2, %v3679_v46  ;;  %v1002_v34 = vand.u32 2147483647, %v3679_v46  ;;  %v1208_v7 = vmul.f32 1.442695, %v1095_v8  ;;  %v3705_v0 = vadd.f32 %v3607_v25, %v3216_v36 }
 0x13d   :  { %v2419_v58 = vpop.eup %2418  ;;  %2436 = vrcp.f32 %v1453_v45  ;;  %v1143_v24 = vsub.f32 0.0, %v1052_v31  ;;  %v3759_v19 = vadd.f32 %v3607_v25, %v3243_v57  ;;  %vm1410_vm8 = vcmp.ge.f32.partialorder %v3512_v35, 0.0 }
 0x13e   :  { %v3699_v16 = vpop.eup %2420  ;;  %v1725_v1 = vmul.f32 %v2419_v58, %v3571_v6  ;;  %2438 = vrcp.f32 %v1501_v30  ;;  %v1093_v61 = vsub.f32 0.0, %v1002_v34  ;;  %v3711_v6 = vadd.f32 %v3607_v25, %v3218_v53  ;;  %959 = vst.msk [vmem:[%s4598_s3 + $0x220] sm:$0xff] %vm890_vm2, %v3705_v0 }
 0x13f   :  { %v1456_v4 = vadd.f32 1.0, %v3699_v16  ;;  %2440 = vpow2.f32 %v1294_v39  ;;  %v1304_v21 = vmul.f32 1.442695, %v1143_v24  ;;  %v1050_v36 = vand.u32 2147483647, %v3705_v0  ;;  %960 = vst.msk [vmem:[%s4598_s3 + $0x228] sm:$0xff] %vm890_vm2, %v3759_v19 }
 0x140   :  { %v2423_v59 = vpop.eup %2422  ;;  %v1816_v49 = vsel %vm1361_vm0, %v2419_v58, %v1725_v1  ;;  %v1204_v31 = vmul.f32 1.442695, %v1093_v61  ;;  %914 = vst.msk [vmem:[%s4598_s3 + $0xb8] sm:$0xff] %vm890_vm2, %v3711_v6  ;;  %vm1365_vm9 = vcmp.ge.f32.partialorder %v3521_v38, 0.0  ;;  %vm1413_vm10 = vcmp.ge.f32.partialorder %v3578_v12, 0.0 }
 0x141   :  { %v2425_v8 = vpop.eup %2424  ;;  %1907 = vst.msk [vmem:[#allocation3 + $0x78] sm:$0xff] %vm890_vm2, %v1816_v49  ;;  %v1773_v45 = vmul.f32 %v2423_v59, %v3602_v22  ;;  %2442 = vrcp.f32 %v1456_v4  ;;  %v1005_v22 = vand.u32 2147483647, %v3711_v6  ;;  %v1141_v30 = vsub.f32 0.0, %v1050_v36 }
 0x142   :  { %v3721_v29 = vpop.eup %2426  ;;  %v1723_v53 = vmul.f32 %v2425_v8, %v3613_v60  ;;  %2444 = vpow2.f32 %v1208_v7  ;;  %vm1363_vm11 = vcmp.ge.f32.partialorder %v3611_v17, 0.0  ;;  %vm1411_vm12 = vcmp.ge.f32.partialorder %v3633_v26, 0.0 }
 0x143   :  { %v2429_v49 = vpop.eup %2428  ;;  %v1864_v39 = vsel %vm1409_vm1, %v2423_v59, %v1773_v45  ;;  %v1504_v58 = vadd.f32 1.0, %v3721_v29  ;;  %2446 = vpow2.f32 %v1304_v21  ;;  %v1096_v7 = vsub.f32 0.0, %v1005_v22 }
 0x144   :  { %v2431_v60 = vpop.eup %2430  ;;  %1955 = vst.msk [vmem:[#allocation3 + $0x1f8] sm:$0xff] %vm890_vm2, %v1864_v39  ;;  %v1814_v34 = vsel %vm1359_vm3, %v2425_v8, %v1723_v53  ;;  %v1771_v1 = vmul.f32 %v2429_v49, %v3627_v18  ;;  %2448 = vpow2.f32 %v1204_v31  ;;  %v1300_v21 = vmul.f32 1.442695, %v1141_v30 }
 0x145   :  { %v3738_v24 = vpop.eup %2432  ;;  %1905 = vst.msk [vmem:[#allocation3 + $0x68] sm:$0xff] %vm890_vm2, %v1814_v34  ;;  %v1728_v43 = vmul.f32 %v2431_v60, %v3637_v56  ;;  %2450 = vrcp.f32 %v1504_v58  ;;  %v1210_v4 = vmul.f32 1.442695, %v1096_v7  ;;  %v3748_v18 = vadd.f32 %v3607_v25, %v3231_v54 }
 0x146   :  { %v1862_v59 = vsel %vm1407_vm4, %v2429_v49, %v1771_v1  ;;  %v1454_v23 = vadd.f32 1.0, %v3738_v24  ;;  %v2435_v61 = vpop.eup %2434  ;;  %2452 = vpow2.f32 %v1300_v21  ;;  %v3755_v8 = vadd.f32 %v3607_v25, %v3233_v5 }
 0x147   :  { %1953 = vst.msk [vmem:[#allocation3 + $0x1e8] sm:$0xff] %vm890_vm2, %v1862_v59  ;;  %v1819_v56 = vsel %vm1364_vm5, %v2431_v60, %v1728_v43  ;;  %v2437_v45 = vpop.eup %2436  ;;  %v1776_v54 = vmul.f32 %v2435_v61, %v3667_v41  ;;  %962 = vst.msk [vmem:[%s4598_s3 + $0x238] sm:$0xff] %vm890_vm2, %v3748_v18  ;;  %v1053_v5 = vand.u32 2147483647, %v3748_v18  ;;  %v1051_v22 = vand.u32 2147483647, %v3759_v19 }
 0x148   :  { %1910 = vst.msk [vmem:[#allocation3 + $0x90] sm:$0xff] %vm890_vm2, %v1819_v56  ;;  %2454 = vrcp.f32 %v1454_v23  ;;  %v2439_v50 = vpop.eup %2438  ;;  %v1726_v57 = vmul.f32 %v2437_v45, %v3674_v3  ;;  %912 = vst.msk [vmem:[%s4598_s3 + $0xa8] sm:$0xff] %vm890_vm2, %v3755_v8  ;;  %v1003_v41 = vand.u32 2147483647, %v3755_v8  ;;  %v4625_v43 = vld [vmem:[#allocation6_spill] sm:$0xff]  ;;  %vm1368_vm13 = vcmp.ge.f32.partialorder %v3642_v52, 0.0 }
 0x149   :  { %2456 = vpow2.f32 %v1210_v4  ;;  %v3783_v31 = vpop.eup %2440  ;;  %v1867_v3 = vsel %vm1412_vm6, %v2435_v61, %v1776_v54  ;;  %v1774_v36 = vmul.f32 %v2439_v50, %v3681_v40  ;;  %v1144_v53 = vsub.f32 0.0, %v1053_v5  ;;  %v4626_v54 = vld [vmem:[#allocation7_spill] sm:$0xff] }
 0x14a   :  { %1958 = vst.msk [vmem:[#allocation3 + $0x210] sm:$0xff] %vm890_vm2, %v1867_v3  ;;  %v1817_v39 = vsel %vm1362_vm7, %v2437_v45, %v1726_v57  ;;  %v1502_v58 = vadd.f32 1.0, %v3783_v31  ;;  %v1094_v30 = vsub.f32 0.0, %v1003_v41  ;;  %v1142_v1 = vsub.f32 0.0, %v1051_v22  ;;  %v4629_v22 = vld [vmem:[#allocation10_spill] sm:$0xff] }
 0x14b   :  { %v2443_v49 = vpop.eup %2442  ;;  %1908 = vst.msk [vmem:[#allocation3 + $0x80] sm:$0xff] %vm890_vm2, %v1817_v39  ;;  %v1865_v63 = vsel %vm1410_vm8, %v2439_v50, %v1774_v36  ;;  %v1306_v34 = vmul.f32 1.442695, %v1144_v53  ;;  %v3807_v21 = vadd.f32 %v3607_v25, %v4625_v43  ;;  %v3825_v5 = vadd.f32 %v3607_v25, %v4626_v54  ;;  %v4627_v50 = vld [vmem:[#allocation8_spill] sm:$0xff]  ;;  %v4628_v36 = vld [vmem:[#allocation9_spill] sm:$0xff] }
 0x14c   :  { %v3794_v60 = vpop.eup %2444  ;;  %v1729_v40 = vmul.f32 %v2443_v49, %v3699_v16  ;;  %1956 = vst.msk [vmem:[#allocation3 + $0x200] sm:$0xff] %vm890_vm2, %v1865_v63  ;;  %2458 = vrcp.f32 %v1502_v58  ;;  %v1206_v23 = vmul.f32 1.442695, %v1094_v30  ;;  %v1302_v56 = vmul.f32 1.442695, %v1142_v1 }
 0x14d   :  { %v3800_v7 = vpop.eup %2446  ;;  %v1459_v20 = vadd.f32 1.0, %v3794_v60  ;;  %2460 = vpow2.f32 %v1306_v34  ;;  %917 = vst.msk [vmem:[%s4598_s3 + $0xd0] sm:$0xff] %vm890_vm2, %v3807_v21  ;;  %v1008_v38 = vand.u32 2147483647, %v3807_v21  ;;  %v3829_v57 = vadd.f32 %v3607_v25, %v4627_v50  ;;  %965 = vst.msk [vmem:[%s4598_s3 + $0x250] sm:$0xff] %vm890_vm2, %v3825_v5  ;;  %v4631_v50 = vld [vmem:[#allocation12_spill] sm:$0xff] }
 0x14e   :  { %v3809_v59 = vpop.eup %2448  ;;  %v1820_v35 = vsel %vm1365_vm9, %v2443_v49, %v1729_v40  ;;  %v1507_v16 = vadd.f32 1.0, %v3800_v7  ;;  %v3835_v53 = vadd.f32 %v3607_v25, %v4628_v36  ;;  %v1056_v30 = vand.u32 2147483647, %v3825_v5 }
 0x14f   :  { %v2451_v4 = vpop.eup %2450  ;;  %1911 = vst.msk [vmem:[#allocation3 + $0x98] sm:$0xff] %vm890_vm2, %v1820_v35  ;;  %2462 = vrcp.f32 %v1459_v20  ;;  %v1457_v61 = vadd.f32 1.0, %v3809_v59  ;;  %v1099_v3 = vsub.f32 0.0, %v1008_v38  ;;  %915 = vst.msk [vmem:[%s4598_s3 + $0xc0] sm:$0xff] %vm890_vm2, %v3829_v57  ;;  %vm1416_vm14 = vcmp.ge.f32.partialorder %v3672_v62, 0.0 }
 0x150   :  { %v1777_v45 = vmul.f32 %v2451_v4, %v3721_v29  ;;  %2464 = vrcp.f32 %v1507_v16  ;;  %v3831_v41 = vpop.eup %2452  ;;  %v3839_v29 = vadd.f32 %v3607_v25, %v4629_v22  ;;  %963 = vst.msk [vmem:[%s4598_s3 + $0x240] sm:$0xff] %vm890_vm2, %v3835_v53  ;;  %v1147_v17 = vsub.f32 0.0, %v1056_v30 }
 0x151   :  { %2466 = vrcp.f32 %v1457_v61  ;;  %v1505_v58 = vadd.f32 1.0, %v3831_v41  ;;  %v1216_v40 = vmul.f32 1.442695, %v1099_v3  ;;  %v1054_v20 = vand.u32 2147483647, %v3835_v53  ;;  %v4630_v61 = vld [vmem:[#allocation11_spill] sm:$0xff] }
 0x152   :  { %v2455_v49 = vpop.eup %2454  ;;  %v1868_v39 = vsel %vm1413_vm10, %v2451_v4, %v1777_v45  ;;  %2468 = vpow2.f32 %v1206_v23  ;;  %918 = vst.msk [vmem:[%s4598_s3 + $0xd8] sm:$0xff] %vm890_vm2, %v3839_v29  ;;  %v1312_v43 = vmul.f32 1.442695, %v1147_v17  ;;  %v1009_v4 = vand.u32 2147483647, %v3839_v29 }
 0x153   :  { %v3855_v63 = vpop.eup %2456  ;;  %1959 = vst.msk [vmem:[#allocation3 + $0x218] sm:$0xff] %vm890_vm2, %v1868_v39  ;;  %v1727_v12 = vmul.f32 %v2455_v49, %v3738_v24  ;;  %2470 = vpow2.f32 %v1302_v56  ;;  %v1006_v24 = vand.u32 2147483647, %v3829_v57  ;;  %v1145_v23 = vsub.f32 0.0, %v1054_v20 }
 0x154   :  { %2472 = vrcp.f32 %v1505_v58  ;;  %v1460_v34 = vadd.f32 1.0, %v3855_v63  ;;  %v3880_v56 = vadd.f32 %v3607_v25, %v4630_v61  ;;  %v3887_v3 = vadd.f32 %v3607_v25, %v4631_v50 }
 0x155   :  { %v1818_v1 = vsel %vm1363_vm11, %v2455_v49, %v1727_v12  ;;  %2474 = vpow2.f32 %v1216_v40  ;;  %v1097_v35 = vsub.f32 0.0, %v1006_v24  ;;  %v1308_v49 = vmul.f32 1.442695, %v1145_v23 }
 0x156   :  { %1909 = vst.msk [vmem:[#allocation3 + $0x88] sm:$0xff] %vm890_vm2, %v1818_v1  ;;  %2476 = vrcp.f32 %v1460_v34  ;;  %v2459_v16 = vpop.eup %2458  ;;  %v1100_v39 = vsub.f32 0.0, %v1009_v4  ;;  %966 = vst.msk [vmem:[%s4598_s3 + $0x258] sm:$0xff] %vm890_vm2, %v3880_v56  ;;  %v1057_v58 = vand.u32 2147483647, %v3880_v56  ;;  %vm1366_vm15 = vcmp.ge.f32.partialorder %v3679_v46, 0.0 }
 0x157   :  { %v3882_v38 = vpop.eup %2460  ;;  %v1775_v45 = vmul.f32 %v2459_v16, %v3783_v31  ;;  %2478 = vpow2.f32 %v1312_v43  ;;  %v1212_v54 = vmul.f32 1.442695, %v1097_v35  ;;  %916 = vst.msk [vmem:[%s4598_s3 + $0xc8] sm:$0xff] %vm890_vm2, %v3887_v3  ;;  %v1007_v20 = vand.u32 2147483647, %v3887_v3 }
 0x158   :  { %v1508_v22 = vadd.f32 1.0, %v3882_v38  ;;  %v1218_v17 = vmul.f32 1.442695, %v1100_v39  ;;  %v1148_v26 = vsub.f32 0.0, %v1057_v58  ;;  %vm1414_vm0 = vcmp.ge.f32.partialorder %v3705_v0, 0.0 }
 0x159   :  { %v2463_v36 = vpop.eup %2462  ;;  %v1866_v30 = vsel %vm1411_vm12, %v2459_v16, %v1775_v45  ;;  %2480 = vpow2.f32 %v1212_v54  ;;  %v1098_v4 = vsub.f32 0.0, %v1007_v20  ;;  %v3930_v45 = vadd.f32 %v3607_v25, %v3321_v15  ;;  %v4632_v54 = vld [vmem:[#allocation13_spill] sm:$0xff] }
 0x15a   :  { %v2465_v31 = vpop.eup %2464  ;;  %v1732_v12 = vmul.f32 %v2463_v36, %v3794_v60  ;;  %1957 = vst.msk [vmem:[#allocation3 + $0x208] sm:$0xff] %vm890_vm2, %v1866_v30  ;;  %2482 = vrcp.f32 %v1508_v22  ;;  %v1314_v16 = vmul.f32 1.442695, %v1148_v26  ;;  %v3934_v46 = vadd.f32 %v3607_v25, %v4632_v54  ;;  %v4633_v22 = vld [vmem:[#allocation14_spill] sm:$0xff] }
 0x15b   :  { %v2467_v40 = vpop.eup %2466  ;;  %v1780_v34 = vmul.f32 %v2465_v31, %v3800_v7  ;;  %2484 = vpow2.f32 %v1308_v49  ;;  %v3939_v49 = vadd.f32 %v3607_v25, %v4633_v22  ;;  %964 = vst.msk [vmem:[%s4598_s3 + $0x248] sm:$0xff] %vm890_vm2, %v3930_v45  ;;  %v1055_v15 = vand.u32 2147483647, %v3930_v45 }
 0x15c   :  { %v3907_v24 = vpop.eup %2468  ;;  %v1823_v60 = vsel %vm1368_vm13, %v2463_v36, %v1732_v12  ;;  %v1730_v1 = vmul.f32 %v2467_v40, %v3809_v59  ;;  %2486 = vpow2.f32 %v1218_v17  ;;  %v1214_v36 = vmul.f32 1.442695, %v1098_v4  ;;  %921 = vst.msk [vmem:[%s4598_s3 + $0xf0] sm:$0xff] %vm890_vm2, %v3934_v46  ;;  %v4634_v17 = vld [vmem:[#allocation15_spill] sm:$0xff] }
 0x15d   :  { %v3913_v43 = vpop.eup %2470  ;;  %1914 = vst.msk [vmem:[#allocation3 + $0xb0] sm:$0xff] %vm890_vm2, %v1823_v60  ;;  %v1871_v7 = vsel %vm1416_vm14, %v2465_v31, %v1780_v34  ;;  %v1458_v35 = vadd.f32 1.0, %v3907_v24  ;;  %vm1369_vm1 = vcmp.ge.f32.partialorder %v3711_v6, 0.0  ;;  %vm1417_vm3 = vcmp.ge.f32.partialorder %v3748_v18, 0.0  ;;  %969 = vst.msk [vmem:[%s4598_s3 + $0x270] sm:$0xff] %vm890_vm2, %v3939_v49 }
 0x15e   :  { %v2473_v23 = vpop.eup %2472  ;;  %1962 = vst.msk [vmem:[#allocation3 + $0x230] sm:$0xff] %vm890_vm2, %v1871_v7  ;;  %v1821_v52 = vsel %vm1366_vm15, %v2467_v40, %v1730_v1  ;;  %v1506_v59 = vadd.f32 1.0, %v3913_v43  ;;  %v1146_v12 = vsub.f32 0.0, %v1055_v15  ;;  %vm1367_vm4 = vcmp.ge.f32.partialorder %v3755_v8, 0.0  ;;  %v4635_v7 = vld [vmem:[#allocation16_spill] sm:$0xff] }
 0x15f   :  { %v3924_v61 = vpop.eup %2474  ;;  %1912 = vst.msk [vmem:[#allocation3 + $0xa0] sm:$0xff] %vm890_vm2, %v1821_v52  ;;  %v1778_v62 = vmul.f32 %v2473_v23, %v3831_v41  ;;  %2488 = vrcp.f32 %v1458_v35  ;;  %v1060_v34 = vand.u32 2147483647, %v3939_v49  ;;  %v3972_v26 = vadd.f32 %v3607_v25, %v4634_v17 }
 0x160   :  { %v2477_v50 = vpop.eup %2476  ;;  %2490 = vrcp.f32 %v1506_v59  ;;  %v1463_v0 = vadd.f32 1.0, %v3924_v61  ;;  %v1310_v20 = vmul.f32 1.442695, %v1146_v12  ;;  %v3977_v35 = vadd.f32 %v3607_v25, %v4635_v7 }
 0x161   :  { %v1869_v39 = vsel %vm1414_vm0, %v2473_v23, %v1778_v62  ;;  %v1733_v41 = vmul.f32 %v2477_v50, %v3855_v63  ;;  %2492 = vpow2.f32 %v1314_v16  ;;  %v3953_v58 = vpop.eup %2478  ;;  %v1012_v63 = vand.u32 2147483647, %v3934_v46  ;;  %919 = vst.msk [vmem:[%s4598_s3 + $0xe0] sm:$0xff] %vm890_vm2, %v3972_v26 }
 0x162   :  { %1960 = vst.msk [vmem:[#allocation3 + $0x220] sm:$0xff] %vm890_vm2, %v1869_v39  ;;  %2494 = vrcp.f32 %v1463_v0  ;;  %v1511_v30 = vadd.f32 1.0, %v3953_v58  ;;  %vm1415_vm5 = vcmp.ge.f32.partialorder %v3759_v19, 0.0  ;;  %v1151_v52 = vsub.f32 0.0, %v1060_v34  ;;  %967 = vst.msk [vmem:[%s4598_s3 + $0x260] sm:$0xff] %vm890_vm2, %v3977_v35 }
 0x163   :  { %v1824_v31 = vsel %vm1369_vm1, %v2477_v50, %v1733_v41  ;;  %2496 = vpow2.f32 %v1214_v36  ;;  %v3965_v40 = vpop.eup %2480  ;;  %v1103_v6 = vsub.f32 0.0, %v1012_v63  ;;  %v1010_v59 = vand.u32 2147483647, %v3972_v26 }
 0x164   :  { %1915 = vst.msk [vmem:[#allocation3 + $0xb8] sm:$0xff] %vm890_vm2, %v1824_v31  ;;  %v2483_v60 = vpop.eup %2482  ;;  %2498 = vrcp.f32 %v1511_v30  ;;  %v1461_v1 = vadd.f32 1.0, %v3965_v40  ;;  %v1320_v36 = vmul.f32 1.442695, %v1151_v52  ;;  %vm1372_vm6 = vcmp.ge.f32.partialorder %v3807_v21, 0.0  ;;  %v4636_v31 = vld [vmem:[#allocation17_spill] sm:$0xff] }
 0x165   :  { %v3979_v16 = vpop.eup %2484  ;;  %v1781_v23 = vmul.f32 %v2483_v60, %v3882_v38  ;;  %v1224_v54 = vmul.f32 1.442695, %v1103_v6  ;;  %v1058_v38 = vand.u32 2147483647, %v3977_v35  ;;  %v1101_v39 = vsub.f32 0.0, %v1010_v59 }
 0x166   :  { %v3989_v4 = vpop.eup %2486  ;;  %2500 = vrcp.f32 %v1461_v1  ;;  %v1509_v62 = vadd.f32 1.0, %v3979_v16  ;;  %v4006_v18 = vadd.f32 %v3607_v25, %v4636_v31  ;;  %v4010_v30 = vadd.f32 %v3607_v25, %v3375_v13 }
 0x167   :  { %v1872_v50 = vsel %vm1417_vm3, %v2483_v60, %v1781_v23  ;;  %v1464_v0 = vadd.f32 1.0, %v3989_v4  ;;  %2502 = vpow2.f32 %v1310_v20  ;;  %v1149_v41 = vsub.f32 0.0, %v1058_v38 }
 0x168   :  { %1963 = vst.msk [vmem:[#allocation3 + $0x238] sm:$0xff] %vm890_vm2, %v1872_v50  ;;  %2504 = vrcp.f32 %v1509_v62  ;;  %v1220_v34 = vmul.f32 1.442695, %v1101_v39  ;;  %922 = vst.msk [vmem:[%s4598_s3 + $0xf8] sm:$0xff] %vm890_vm2, %v4006_v18  ;;  %v1013_v13 = vand.u32 2147483647, %v4006_v18  ;;  %v4044_v19 = vadd.f32 %v3607_v25, %v3377_v10 }
 0x169   :  { %v2489_v22 = vpop.eup %2488  ;;  %2506 = vrcp.f32 %v1464_v0  ;;  %v1316_v17 = vmul.f32 1.442695, %v1149_v41  ;;  %970 = vst.msk [vmem:[%s4598_s3 + $0x278] sm:$0xff] %vm890_vm2, %v4010_v30  ;;  %vm1420_vm7 = vcmp.ge.f32.partialorder %v3825_v5, 0.0  ;;  %v1061_v52 = vand.u32 2147483647, %v4010_v30 }
 0x16a   :  { %v2491_v15 = vpop.eup %2490  ;;  %v1731_v63 = vmul.f32 %v2489_v22, %v3907_v24  ;;  %2508 = vpow2.f32 %v1224_v54  ;;  %v1104_v23 = vsub.f32 0.0, %v1013_v13  ;;  %vm1370_vm8 = vcmp.ge.f32.partialorder %v3829_v57, 0.0  ;;  %920 = vst.msk [vmem:[%s4598_s3 + $0xe8] sm:$0xff] %vm890_vm2, %v4044_v19 }
 0x16b   :  { %v4012_v12 = vpop.eup %2492  ;;  %v1779_v6 = vmul.f32 %v2491_v15, %v3913_v43  ;;  %2510 = vpow2.f32 %v1320_v36  ;;  %v1152_v38 = vsub.f32 0.0, %v1061_v52  ;;  %vm1418_vm9 = vcmp.ge.f32.partialorder %v3835_v53, 0.0 }
 0x16c   :  { %v2495_v60 = vpop.eup %2494  ;;  %v1822_v24 = vsel %vm1367_vm4, %v2489_v22, %v1731_v63  ;;  %v1512_v1 = vadd.f32 1.0, %v4012_v12  ;;  %2512 = vpow2.f32 %v1220_v34  ;;  %v1226_v54 = vmul.f32 1.442695, %v1104_v23 }
 0x16d   :  { %v4029_v43 = vpop.eup %2496  ;;  %1913 = vst.msk [vmem:[#allocation3 + $0xa8] sm:$0xff] %vm890_vm2, %v1822_v24  ;;  %v1870_v8 = vsel %vm1415_vm5, %v2491_v15, %v1779_v6  ;;  %v1736_v20 = vmul.f32 %v2495_v60, %v3924_v61  ;;  %v1011_v21 = vand.u32 2147483647, %v4044_v19  ;;  %v4057_v10 = vadd.f32 %v3607_v25, %v3382_v37 }
 0x16e   :  { %1961 = vst.msk [vmem:[#allocation3 + $0x228] sm:$0xff] %vm890_vm2, %v1870_v8  ;;  %2514 = vrcp.f32 %v1512_v1  ;;  %v1462_v7 = vadd.f32 1.0, %v4029_v43  ;;  %v2499_v59 = vpop.eup %2498  ;;  %v1322_v39 = vmul.f32 1.442695, %v1152_v38  ;;  %vm1373_vm10 = vcmp.ge.f32.partialorder %v3839_v29, 0.0 }
 0x16f   :  { %v1827_v62 = vsel %vm1372_vm6, %v2495_v60, %v1736_v20  ;;  %2516 = vpow2.f32 %v1316_v17  ;;  %v1784_v61 = vmul.f32 %v2499_v59, %v3953_v58  ;;  %v4061_v58 = vadd.f32 %v3607_v25, %v3423_v2  ;;  %968 = vst.msk [vmem:[%s4598_s3 + $0x268] sm:$0xff] %vm890_vm2, %v4057_v10 }
 0x170   :  { %1918 = vst.msk [vmem:[#allocation3 + $0xd0] sm:$0xff] %vm890_vm2, %v1827_v62  ;;  %2518 = vrcp.f32 %v1462_v7  ;;  %v2501_v50 = vpop.eup %2500  ;;  %v1102_v15 = vsub.f32 0.0, %v1011_v21  ;;  %v1059_v2 = vand.u32 2147483647, %v4057_v10  ;;  %vm1421_vm11 = vcmp.ge.f32.partialorder %v3880_v56, 0.0 }
 0x171   :  { %v4063_v0 = vpop.eup %2502  ;;  %v1875_v36 = vsel %vm1420_vm7, %v2499_v59, %v1784_v61  ;;  %v1734_v22 = vmul.f32 %v2501_v50, %v3965_v40  ;;  %2520 = vpow2.f32 %v1226_v54  ;;  %925 = vst.msk [vmem:[%s4598_s3 + $0x110] sm:$0xff] %vm890_vm2, %v4061_v58  ;;  %v1016_v31 = vand.u32 2147483647, %v4061_v58 }
 0x172   :  { %v2505_v41 = vpop.eup %2504  ;;  %1966 = vst.msk [vmem:[#allocation3 + $0x250] sm:$0xff] %vm890_vm2, %v1875_v36  ;;  %v1510_v37 = vadd.f32 1.0, %v4063_v0  ;;  %2522 = vpow2.f32 %v1322_v39  ;;  %v1222_v17 = vmul.f32 1.442695, %v1102_v15  ;;  %v1150_v60 = vsub.f32 0.0, %v1059_v2 }
 0x173   :  { %v2507_v5 = vpop.eup %2506  ;;  %v1825_v40 = vsel %vm1370_vm8, %v2501_v50, %v1734_v22  ;;  %v1782_v63 = vmul.f32 %v2505_v41, %v3979_v16  ;;  %v1107_v1 = vsub.f32 0.0, %v1016_v31  ;;  %v4106_v52 = vadd.f32 %v3607_v25, %v3428_v14 }
 0x174   :  { %v4086_v6 = vpop.eup %2508  ;;  %1916 = vst.msk [vmem:[#allocation3 + $0xc0] sm:$0xff] %vm890_vm2, %v1825_v40  ;;  %v1737_v34 = vmul.f32 %v2507_v5, %v3989_v4  ;;  %2524 = vrcp.f32 %v1510_v37  ;;  %v1318_v20 = vmul.f32 1.442695, %v1150_v60  ;;  %v4113_v62 = vadd.f32 %v3607_v25, %v3430_v27 }
 0x175   :  { %v4090_v24 = vpop.eup %2510  ;;  %v1873_v57 = vsel %vm1418_vm9, %v2505_v41, %v1782_v63  ;;  %v1467_v16 = vadd.f32 1.0, %v4086_v6  ;;  %2526 = vpow2.f32 %v1222_v17  ;;  %v1232_v23 = vmul.f32 1.442695, %v1107_v1  ;;  %973 = vst.msk [vmem:[%s4598_s3 + $0x290] sm:$0xff] %vm890_vm2, %v4106_v52 }
 0x176   :  { %v4096_v13 = vpop.eup %2512  ;;  %1964 = vst.msk [vmem:[#allocation3 + $0x240] sm:$0xff] %vm890_vm2, %v1873_v57  ;;  %v1828_v4 = vsel %vm1373_vm10, %v2507_v5, %v1737_v34  ;;  %v1515_v8 = vadd.f32 1.0, %v4090_v24  ;;  %v4117_v61 = vadd.f32 %v3607_v25, %v3440_v33  ;;  %vm1371_vm12 = vcmp.ge.f32.partialorder %v3887_v3, 0.0  ;;  %923 = vst.msk [vmem:[%s4598_s3 + $0x100] sm:$0xff] %vm890_vm2, %v4113_v62 }
 0x177   :  { %1919 = vst.msk [vmem:[#allocation3 + $0xd8] sm:$0xff] %vm890_vm2, %v1828_v4  ;;  %2528 = vrcp.f32 %v1467_v16  ;;  %v1465_v53 = vadd.f32 1.0, %v4096_v13  ;;  %v1014_v38 = vand.u32 2147483647, %v4113_v62  ;;  %vm1419_vm13 = vcmp.ge.f32.partialorder %v3930_v45, 0.0 }
 0x178   :  { %v2515_v7 = vpop.eup %2514  ;;  %2530 = vrcp.f32 %v1515_v8  ;;  %971 = vst.msk [vmem:[%s4598_s3 + $0x280] sm:$0xff] %vm890_vm2, %v4117_v61  ;;  %vm1376_vm14 = vcmp.ge.f32.partialorder %v3934_v46, 0.0  ;;  %v4155_v15 = vadd.f32 %v3607_v25, %v3442_v47  ;;  %v4160_v40 = vadd.f32 %v3607_v25, %v3453_v42 }
 0x179   :  { %v4108_v59 = vpop.eup %2516  ;;  %v1785_v29 = vmul.f32 %v2515_v7, %v4012_v12  ;;  %2532 = vrcp.f32 %v1465_v53  ;;  %v1064_v12 = vand.u32 2147483647, %v4106_v52  ;;  %v1105_v22 = vsub.f32 0.0, %v1014_v38  ;;  %v4637_v53 = vld [vmem:[#allocation18_spill] sm:$0xff] }
 0x17a   :  { %v2519_v54 = vpop.eup %2518  ;;  %v1513_v14 = vadd.f32 1.0, %v4108_v59  ;;  %2534 = vpow2.f32 %v1318_v20  ;;  %926 = vst.msk [vmem:[%s4598_s3 + $0x118] sm:$0xff] %vm890_vm2, %v4155_v15  ;;  %v1017_v47 = vand.u32 2147483647, %v4155_v15  ;;  %vm1424_vm15 = vcmp.ge.f32.partialorder %v3939_v49, 0.0  ;;  %974 = vst.msk [vmem:[%s4598_s3 + $0x298] sm:$0xff] %vm890_vm2, %v4160_v40 }
 0x17b   :  { %v1876_v27 = vsel %vm1421_vm11, %v2515_v7, %v1785_v29  ;;  %v1735_v33 = vmul.f32 %v2519_v54, %v4029_v43  ;;  %v4141_v50 = vpop.eup %2520  ;;  %v1155_v56 = vsub.f32 0.0, %v1064_v12  ;;  %v1062_v43 = vand.u32 2147483647, %v4117_v61 }
 0x17c   :  { %1967 = vst.msk [vmem:[#allocation3 + $0x258] sm:$0xff] %vm890_vm2, %v1876_v27  ;;  %2536 = vrcp.f32 %v1513_v14  ;;  %v1468_v36 = vadd.f32 1.0, %v4141_v50  ;;  %v4149_v39 = vpop.eup %2522  ;;  %v1228_v5 = vmul.f32 1.442695, %v1105_v22  ;;  %vm1374_vm0 = vcmp.ge.f32.partialorder %v3972_v26, 0.0  ;;  %v4638_v26 = vld [vmem:[#allocation19_spill] sm:$0xff] }
 0x17d   :  { %v1826_v21 = vsel %vm1371_vm12, %v2519_v54, %v1735_v33  ;;  %2538 = vpow2.f32 %v1232_v23  ;;  %v1328_v41 = vmul.f32 1.442695, %v1155_v56  ;;  %v1153_v37 = vsub.f32 0.0, %v1062_v43 }
 0x17e   :  { %1917 = vst.msk [vmem:[#allocation3 + $0xc8] sm:$0xff] %vm890_vm2, %v1826_v21  ;;  %v2525_v2 = vpop.eup %2524  ;;  %2540 = vrcp.f32 %v1468_v36  ;;  %v1516_v3 = vadd.f32 1.0, %v4149_v39  ;;  %v1065_v42 = vand.u32 2147483647, %v4160_v40  ;;  %v1108_v57 = vsub.f32 0.0, %v1017_v47 }
 0x17f   :  { %v1783_v63 = vmul.f32 %v2525_v2, %v4063_v0  ;;  %2542 = vpow2.f32 %v1328_v41  ;;  %v1324_v31 = vmul.f32 1.442695, %v1153_v37  ;;  %v4169_v34 = vpop.eup %2526  ;;  %v4186_v8 = vadd.f32 %v3607_v25, %v3455_v44 }
 0x180   :  { %2544 = vrcp.f32 %v1516_v3  ;;  %v1466_v60 = vadd.f32 1.0, %v4169_v34  ;;  %v1156_v4 = vsub.f32 0.0, %v1065_v42  ;;  %v1234_v45 = vmul.f32 1.442695, %v1108_v57 }
 0x181   :  { %v2529_v0 = vpop.eup %2528  ;;  %v1874_v17 = vsel %vm1419_vm13, %v2525_v2, %v1783_v63  ;;  %2546 = vpow2.f32 %v1228_v5  ;;  %v4191_v23 = vadd.f32 %v3607_v25, %v4637_v53  ;;  %924 = vst.msk [vmem:[%s4598_s3 + $0x108] sm:$0xff] %vm890_vm2, %v4186_v8  ;;  %v1015_v44 = vand.u32 2147483647, %v4186_v8  ;;  %v4640_v5 = vld [vmem:[#allocation21_spill] sm:$0xff] }
 0x182   :  { %v2531_v16 = vpop.eup %2530  ;;  %1965 = vst.msk [vmem:[#allocation3 + $0x248] sm:$0xff] %vm890_vm2, %v1874_v17  ;;  %v1740_v1 = vmul.f32 %v2529_v0, %v4086_v6  ;;  %2548 = vpow2.f32 %v1324_v31  ;;  %v1330_v14 = vmul.f32 1.442695, %v1156_v4  ;;  %vm1422_vm1 = vcmp.ge.f32.partialorder %v3977_v35, 0.0 }
 0x183   :  { %v2533_v20 = vpop.eup %2532  ;;  %v1788_v7 = vmul.f32 %v2531_v16, %v4090_v24  ;;  %2550 = vrcp.f32 %v1466_v60  ;;  %972 = vst.msk [vmem:[%s4598_s3 + $0x288] sm:$0xff] %vm890_vm2, %v4191_v23  ;;  %v1106_v33 = vsub.f32 0.0, %v1015_v44  ;;  %vm1377_vm3 = vcmp.ge.f32.partialorder %v4006_v18, 0.0 }
 0x184   :  { %v4193_v29 = vpop.eup %2534  ;;  %v1831_v6 = vsel %vm1376_vm14, %v2529_v0, %v1740_v1  ;;  %v1738_v54 = vmul.f32 %v2533_v20, %v4096_v13  ;;  %2552 = vpow2.f32 %v1234_v45  ;;  %v1063_v56 = vand.u32 2147483647, %v4191_v23 }
 0x185   :  { %1922 = vst.msk [vmem:[#allocation3 + $0xf0] sm:$0xff] %vm890_vm2, %v1831_v6  ;;  %v1879_v12 = vsel %vm1424_vm15, %v2531_v16, %v1788_v7  ;;  %v1514_v46 = vadd.f32 1.0, %v4193_v29  ;;  %2554 = vpow2.f32 %v1330_v14  ;;  %v1230_v36 = vmul.f32 1.442695, %v1106_v33 }
 0x186   :  { %v2537_v24 = vpop.eup %2536  ;;  %1970 = vst.msk [vmem:[#allocation3 + $0x270] sm:$0xff] %vm890_vm2, %v1879_v12  ;;  %v1829_v27 = vsel %vm1374_vm0, %v2533_v20, %v1738_v54  ;;  %v4228_v22 = vadd.f32 %v3607_v25, %v4638_v26  ;;  %v1154_v3 = vsub.f32 0.0, %v1063_v56  ;;  %v4240_v35 = vadd.f32 %v3607_v25, %v4640_v5  ;;  %v4641_v54 = vld [vmem:[#allocation22_spill] sm:$0xff] }
 0x187   :  { %v4214_v13 = vpop.eup %2538  ;;  %v1786_v49 = vmul.f32 %v2537_v24, %v4108_v59  ;;  %1920 = vst.msk [vmem:[#allocation3 + $0xe0] sm:$0xff] %vm890_vm2, %v1829_v27  ;;  %2556 = vrcp.f32 %v1514_v46  ;;  %v4639_v59 = vld [vmem:[#allocation20_spill] sm:$0xff]  ;;  %vm1425_vm4 = vcmp.ge.f32.partialorder %v4010_v30, 0.0  ;;  %vm1375_vm5 = vcmp.ge.f32.partialorder %v4044_v19, 0.0  ;;  %v4280_v30 = vld [vmem:[#allocation2] ss:$0 sm:$0xff] }
 0x188   :  { %v1471_v38 = vadd.f32 1.0, %v4214_v13  ;;  %v2541_v43 = vpop.eup %2540  ;;  %v4232_v41 = vadd.f32 %v3607_v25, %v4639_v59  ;;  %929 = vst.msk [vmem:[%s4598_s3 + $0x130] sm:$0xff] %vm890_vm2, %v4228_v22  ;;  %v1326_v0 = vmul.f32 1.442695, %v1154_v3  ;;  %927 = vst.msk [vmem:[%s4598_s3 + $0x120] sm:$0xff] %vm890_vm2, %v4240_v35  ;;  %vm1423_vm6 = vcmp.ge.f32.partialorder %v4057_v10, 0.0 }
 0x189   :  { %v1877_v21 = vsel %vm1422_vm1, %v2537_v24, %v1786_v49  ;;  %v4234_v37 = vpop.eup %2542  ;;  %v1741_v2 = vmul.f32 %v2541_v43, %v4141_v50  ;;  %v1020_v50 = vand.u32 2147483647, %v4228_v22  ;;  %v1018_v45 = vand.u32 2147483647, %v4240_v35  ;;  %v4644_v59 = vld [vmem:[#allocation25_spill] sm:$0xff] }
 0x18a   :  { %1968 = vst.msk [vmem:[#allocation3 + $0x260] sm:$0xff] %vm890_vm2, %v1877_v21  ;;  %2558 = vrcp.f32 %v1471_v38  ;;  %v2545_v63 = vpop.eup %2544  ;;  %v1519_v31 = vadd.f32 1.0, %v4234_v37  ;;  %977 = vst.msk [vmem:[%s4598_s3 + $0x2b0] sm:$0xff] %vm890_vm2, %v4232_v41  ;;  %v1068_v17 = vand.u32 2147483647, %v4232_v41  ;;  %v4284_v14 = vadd.f32 %v4280_v30, %v4641_v54  ;;  %v4642_v38 = vld [vmem:[#allocation23_spill] sm:$0xff] }
 0x18b   :  { %2560 = vpow2.f32 %v1230_v36  ;;  %v4255_v25 = vpop.eup %2546  ;;  %v1832_v47 = vsel %vm1377_vm3, %v2541_v43, %v1741_v2  ;;  %v1789_v42 = vmul.f32 %v2545_v63, %v4149_v39  ;;  %v1111_v57 = vsub.f32 0.0, %v1020_v50  ;;  %v4643_v36 = vld [vmem:[#allocation24_spill] sm:$0xff] }
 0x18c   :  { %v4266_v60 = vpop.eup %2548  ;;  %1923 = vst.msk [vmem:[#allocation3 + $0xf8] sm:$0xff] %vm890_vm2, %v1832_v47  ;;  %2562 = vrcp.f32 %v1519_v31  ;;  %v1469_v18 = vadd.f32 1.0, %v4255_v25  ;;  %v1159_v4 = vsub.f32 0.0, %v1068_v17  ;;  %v1109_v12 = vsub.f32 0.0, %v1018_v45  ;;  %975 = vst.msk [vmem:[%s4598_s3 + $0x2a0] sm:$0xff] %vm890_vm2, %v4284_v14 }
 0x18d   :  { %v2551_v39 = vpop.eup %2550  ;;  %v1880_v16 = vsel %vm1425_vm4, %v2545_v63, %v1789_v42  ;;  %v1517_v1 = vadd.f32 1.0, %v4266_v60  ;;  %2564 = vpow2.f32 %v1326_v0  ;;  %v1240_v7 = vmul.f32 1.442695, %v1111_v57 }
 0x18e   :  { %1971 = vst.msk [vmem:[#allocation3 + $0x278] sm:$0xff] %vm890_vm2, %v1880_v16  ;;  %v1739_v20 = vmul.f32 %v2551_v39, %v4169_v34  ;;  %2566 = vrcp.f32 %v1469_v18  ;;  %v4277_v53 = vpop.eup %2552  ;;  %v1336_v6 = vmul.f32 1.442695, %v1159_v4  ;;  %vm1380_vm7 = vcmp.ge.f32.partialorder %v4061_v58, 0.0 }
 0x18f   :  { %2568 = vrcp.f32 %v1517_v1  ;;  %v4286_v44 = vpop.eup %2554  ;;  %v1472_v24 = vadd.f32 1.0, %v4277_v53  ;;  %v1066_v19 = vand.u32 2147483647, %v4284_v14  ;;  %v1236_v33 = vmul.f32 1.442695, %v1109_v12 }
 0x190   :  { %v1830_v34 = vsel %vm1375_vm5, %v2551_v39, %v1739_v20  ;;  %2570 = vpow2.f32 %v1240_v7  ;;  %v1520_v27 = vadd.f32 1.0, %v4286_v44  ;;  %v4303_v56 = vadd.f32 %v4280_v30, %v4642_v38 }
 0x191   :  { %v2557_v46 = vpop.eup %2556  ;;  %1921 = vst.msk [vmem:[#allocation3 + $0xe8] sm:$0xff] %vm890_vm2, %v1830_v34  ;;  %2572 = vpow2.f32 %v1336_v6  ;;  %v1157_v21 = vsub.f32 0.0, %v1066_v19  ;;  %v4307_v26 = vadd.f32 %v4280_v30, %v4643_v36  ;;  %v4311_v2 = vadd.f32 %v4280_v30, %v4644_v59  ;;  %v4645_v6 = vld [vmem:[#allocation26_spill] sm:$0xff] }
 0x192   :  { %v1787_v49 = vmul.f32 %v2557_v46, %v4193_v29  ;;  %2574 = vrcp.f32 %v1472_v24  ;;  %930 = vst.msk [vmem:[%s4598_s3 + $0x138] sm:$0xff] %vm890_vm2, %v4303_v56  ;;  %v1021_v63 = vand.u32 2147483647, %v4303_v56  ;;  %vm1428_vm8 = vcmp.ge.f32.partialorder %v4106_v52, 0.0 }
 0x193   :  { %2576 = vrcp.f32 %v1520_v27  ;;  %v1332_v50 = vmul.f32 1.442695, %v1157_v21  ;;  %978 = vst.msk [vmem:[%s4598_s3 + $0x2b8] sm:$0xff] %vm890_vm2, %v4307_v26  ;;  %v1069_v10 = vand.u32 2147483647, %v4307_v26  ;;  %928 = vst.msk [vmem:[%s4598_s3 + $0x128] sm:$0xff] %vm890_vm2, %v4311_v2  ;;  %v4361_v12 = vadd.f32 %v4280_v30, %v3562_v48 }
 0x194   :  { %v2559_v43 = vpop.eup %2558  ;;  %v1878_v29 = vsel %vm1423_vm6, %v2557_v46, %v1787_v49  ;;  %2578 = vpow2.f32 %v1236_v33  ;;  %vm1378_vm9 = vcmp.ge.f32.partialorder %v4113_v62, 0.0  ;;  %v1112_v42 = vsub.f32 0.0, %v1021_v63 }
 0x195   :  { %v4313_v3 = vpop.eup %2560  ;;  %v1744_v5 = vmul.f32 %v2559_v43, %v4214_v13  ;;  %1969 = vst.msk [vmem:[#allocation3 + $0x268] sm:$0xff] %vm890_vm2, %v1878_v29  ;;  %v1019_v0 = vand.u32 2147483647, %v4311_v2  ;;  %vm1426_vm10 = vcmp.ge.f32.partialorder %v4117_v61, 0.0  ;;  %v1160_v57 = vsub.f32 0.0, %v1069_v10  ;;  %933 = vst.msk [vmem:[%s4598_s3 + $0x150] sm:$0xff] %vm890_vm2, %v4361_v12 }
 0x196   :  { %v1470_v31 = vadd.f32 1.0, %v4313_v3  ;;  %v2563_v13 = vpop.eup %2562  ;;  %v1242_v58 = vmul.f32 1.442695, %v1112_v42  ;;  %vm1381_vm11 = vcmp.ge.f32.partialorder %v4155_v15, 0.0  ;;  %v1024_v61 = vand.u32 2147483647, %v4361_v12 }
 0x197   :  { %v1835_v47 = vsel %vm1380_vm7, %v2559_v43, %v1744_v5  ;;  %v4342_v17 = vpop.eup %2564  ;;  %v1792_v18 = vmul.f32 %v2563_v13, %v4234_v37  ;;  %v1110_v1 = vsub.f32 0.0, %v1019_v0  ;;  %v1338_v45 = vmul.f32 1.442695, %v1160_v57 }
 0x198   :  { %1926 = vst.msk [vmem:[#allocation3 + $0x110] sm:$0xff] %vm890_vm2, %v1835_v47  ;;  %2580 = vrcp.f32 %v1470_v31  ;;  %v2567_v39 = vpop.eup %2566  ;;  %v1518_v16 = vadd.f32 1.0, %v4342_v17  ;;  %v4353_v37 = vadd.f32 %v4280_v30, %v4645_v6  ;;  %vm1429_vm12 = vcmp.ge.f32.partialorder %v4160_v40, 0.0 }
 0x199   :  { %2582 = vpow2.f32 %v1332_v50  ;;  %v2569_v4 = vpop.eup %2568  ;;  %v1883_v20 = vsel %vm1428_vm8, %v2563_v13, %v1792_v18  ;;  %v1742_v7 = vmul.f32 %v2567_v39, %v4255_v25  ;;  %v1238_v24 = vmul.f32 1.442695, %v1110_v1 }
 0x19a   :  { %v4355_v54 = vpop.eup %2570  ;;  %1974 = vst.msk [vmem:[#allocation3 + $0x290] sm:$0xff] %vm890_vm2, %v1883_v20  ;;  %v1790_v34 = vmul.f32 %v2569_v4, %v4266_v60  ;;  %2584 = vrcp.f32 %v1518_v16  ;;  %976 = vst.msk [vmem:[%s4598_s3 + $0x2a8] sm:$0xff] %vm890_vm2, %v4353_v37  ;;  %v1067_v60 = vand.u32 2147483647, %v4353_v37  ;;  %v4393_v43 = vadd.f32 %v4280_v30, %v3567_v51 }
 0x19b   :  { %v4363_v52 = vpop.eup %2572  ;;  %v1833_v25 = vsel %vm1378_vm9, %v2567_v39, %v1742_v7  ;;  %v1475_v46 = vadd.f32 1.0, %v4355_v54  ;;  %2586 = vpow2.f32 %v1242_v58  ;;  %vm1379_vm13 = vcmp.ge.f32.partialorder %v4186_v8, 0.0 }
 0x19c   :  { %v2575_v27 = vpop.eup %2574  ;;  %1924 = vst.msk [vmem:[#allocation3 + $0x100] sm:$0xff] %vm890_vm2, %v1833_v25  ;;  %v1881_v48 = vsel %vm1426_vm10, %v2569_v4, %v1790_v34  ;;  %v1523_v62 = vadd.f32 1.0, %v4363_v52  ;;  %2588 = vpow2.f32 %v1338_v45  ;;  %v1158_v33 = vsub.f32 0.0, %v1067_v60  ;;  %981 = vst.msk [vmem:[%s4598_s3 + $0x2d0] sm:$0xff] %vm890_vm2, %v4393_v43  ;;  %v4646_v60 = vld [vmem:[#allocation27_spill] sm:$0xff] }
 0x19d   :  { %v2577_v19 = vpop.eup %2576  ;;  %1972 = vst.msk [vmem:[#allocation3 + $0x280] sm:$0xff] %vm890_vm2, %v1881_v48  ;;  %v1745_v49 = vmul.f32 %v2575_v27, %v4277_v53  ;;  %2590 = vrcp.f32 %v1475_v46  ;;  %v1115_v29 = vsub.f32 0.0, %v1024_v61  ;;  %v1072_v51 = vand.u32 2147483647, %v4393_v43 }
 0x19e   :  { %v4387_v38 = vpop.eup %2578  ;;  %v1793_v15 = vmul.f32 %v2577_v19, %v4286_v44  ;;  %2592 = vrcp.f32 %v1523_v62  ;;  %v1334_v53 = vmul.f32 1.442695, %v1158_v33  ;;  %v4407_v44 = vadd.f32 %v4280_v30, %v3569_v28 }
 0x19f   :  { %v1836_v21 = vsel %vm1381_vm11, %v2575_v27, %v1745_v49  ;;  %v1473_v36 = vadd.f32 1.0, %v4387_v38  ;;  %2594 = vpow2.f32 %v1238_v24  ;;  %v4411_v5 = vadd.f32 %v4280_v30, %v3580_v55 }
 0x1a0   :  { %1927 = vst.msk [vmem:[#allocation3 + $0x118] sm:$0xff] %vm890_vm2, %v1836_v21  ;;  %v1884_v59 = vsel %vm1429_vm12, %v2577_v19, %v1793_v15  ;;  %v4415_v63 = vadd.f32 %v4280_v30, %v3582_v32  ;;  %v1248_v10 = vmul.f32 1.442695, %v1115_v29  ;;  %v1163_v13 = vsub.f32 0.0, %v1072_v51  ;;  %931 = vst.msk [vmem:[%s4598_s3 + $0x140] sm:$0xff] %vm890_vm2, %v4407_v44 }
 0x1a1   :  { %1975 = vst.msk [vmem:[#allocation3 + $0x298] sm:$0xff] %vm890_vm2, %v1884_v59  ;;  %2596 = vrcp.f32 %v1473_v36  ;;  %vm1427_vm14 = vcmp.ge.f32.partialorder %v4191_v23, 0.0  ;;  %v1022_v55 = vand.u32 2147483647, %v4407_v44  ;;  %979 = vst.msk [vmem:[%s4598_s3 + $0x2c0] sm:$0xff] %vm890_vm2, %v4411_v5  ;;  %vm1384_vm15 = vcmp.ge.f32.partialorder %v4228_v22, 0.0 }
 0x1a2   :  { %v2581_v40 = vpop.eup %2580  ;;  %2598 = vpow2.f32 %v1334_v53  ;;  %v1070_v32 = vand.u32 2147483647, %v4411_v5  ;;  %934 = vst.msk [vmem:[%s4598_s3 + $0x158] sm:$0xff] %vm890_vm2, %v4415_v63  ;;  %v1344_v42 = vmul.f32 1.442695, %v1163_v13  ;;  %vm1432_vm0 = vcmp.ge.f32.partialorder %v4232_v41, 0.0 }
 0x1a3   :  { %v4417_v31 = vpop.eup %2582  ;;  %v1743_v50 = vmul.f32 %v2581_v40, %v4313_v3  ;;  %2600 = vpow2.f32 %v1248_v10  ;;  %v1113_v57 = vsub.f32 0.0, %v1022_v55  ;;  %v1025_v58 = vand.u32 2147483647, %v4415_v63  ;;  %v4647_v53 = vld [vmem:[#allocation28_spill] sm:$0xff] }
 0x1a4   :  { %v1521_v28 = vadd.f32 1.0, %v4417_v31  ;;  %v2585_v3 = vpop.eup %2584  ;;  %v1161_v39 = vsub.f32 0.0, %v1070_v32  ;;  %v4458_v24 = vadd.f32 %v4280_v30, %v3588_v11  ;;  %v4465_v46 = vadd.f32 %v4280_v30, %v3600_v9  ;;  %v4648_v32 = vld [vmem:[#allocation29_spill] sm:$0xff] }
 0x1a5   :  { %v1834_v47 = vsel %vm1379_vm13, %v2581_v40, %v1743_v50  ;;  %v4442_v0 = vpop.eup %2586  ;;  %v1791_v18 = vmul.f32 %v2585_v3, %v4342_v17  ;;  %v1244_v7 = vmul.f32 1.442695, %v1113_v57  ;;  %v1116_v34 = vsub.f32 0.0, %v1025_v58 }
 0x1a6   :  { %1925 = vst.msk [vmem:[#allocation3 + $0x108] sm:$0xff] %vm890_vm2, %v1834_v47  ;;  %2602 = vrcp.f32 %v1521_v28  ;;  %v4446_v16 = vpop.eup %2588  ;;  %v1476_v8 = vadd.f32 1.0, %v4442_v0  ;;  %v1340_v17 = vmul.f32 1.442695, %v1161_v39  ;;  %v4469_v27 = vadd.f32 %v4280_v30, %v4646_v60  ;;  %932 = vst.msk [vmem:[%s4598_s3 + $0x148] sm:$0xff] %vm890_vm2, %v4458_v24 }
 0x1a7   :  { %2604 = vpow2.f32 %v1344_v42  ;;  %v2591_v1 = vpop.eup %2590  ;;  %v1882_v4 = vsel %vm1427_vm14, %v2585_v3, %v1791_v18  ;;  %v1524_v20 = vadd.f32 1.0, %v4446_v16  ;;  %v1250_v11 = vmul.f32 1.442695, %v1116_v34  ;;  %980 = vst.msk [vmem:[%s4598_s3 + $0x2c8] sm:$0xff] %vm890_vm2, %v4465_v46  ;;  %v4649_v18 = vld [vmem:[#allocation30_spill] sm:$0xff] }
 0x1a8   :  { %v2593_v45 = vpop.eup %2592  ;;  %1973 = vst.msk [vmem:[#allocation3 + $0x288] sm:$0xff] %vm890_vm2, %v1882_v4  ;;  %v1748_v6 = vmul.f32 %v2591_v1, %v4355_v54  ;;  %2606 = vrcp.f32 %v1476_v8  ;;  %v1023_v22 = vand.u32 2147483647, %v4458_v24  ;;  %937 = vst.msk [vmem:[%s4598_s3 + $0x170] sm:$0xff] %vm890_vm2, %v4469_v27  ;;  %vm1382_vm1 = vcmp.ge.f32.partialorder %v4240_v35, 0.0 }
 0x1a9   :  { %v4460_v25 = vpop.eup %2594  ;;  %v1796_v23 = vmul.f32 %v2593_v45, %v4363_v52  ;;  %2608 = vrcp.f32 %v1524_v20  ;;  %v1071_v19 = vand.u32 2147483647, %v4465_v46  ;;  %v1028_v61 = vand.u32 2147483647, %v4469_v27 }
 0x1aa   :  { %v1839_v54 = vsel %vm1384_vm15, %v2591_v1, %v1748_v6  ;;  %v1474_v48 = vadd.f32 1.0, %v4460_v25  ;;  %2610 = vpow2.f32 %v1244_v7  ;;  %v1114_v33 = vsub.f32 0.0, %v1023_v22 }
 0x1ab   :  { %v2597_v52 = vpop.eup %2596  ;;  %1930 = vst.msk [vmem:[#allocation3 + $0x130] sm:$0xff] %vm890_vm2, %v1839_v54  ;;  %v1887_v9 = vsel %vm1432_vm0, %v2593_v45, %v1796_v23  ;;  %2612 = vpow2.f32 %v1340_v17  ;;  %vm1430_vm3 = vcmp.ge.f32.partialorder %v4284_v14, 0.0  ;;  %v1162_v36 = vsub.f32 0.0, %v1071_v19 }
 0x1ac   :  { %v4493_v62 = vpop.eup %2598  ;;  %1978 = vst.msk [vmem:[#allocation3 + $0x2b0] sm:$0xff] %vm890_vm2, %v1887_v9  ;;  %v1746_v41 = vmul.f32 %v2597_v52, %v4387_v38  ;;  %2614 = vrcp.f32 %v1474_v48  ;;  %v4506_v35 = vadd.f32 %v4280_v30, %v4647_v53  ;;  %v1246_v29 = vmul.f32 1.442695, %v1114_v33 }
 0x1ad   :  { %v1522_v49 = vadd.f32 1.0, %v4493_v62  ;;  %2616 = vpow2.f32 %v1250_v11  ;;  %v4501_v15 = vpop.eup %2600  ;;  %v1119_v51 = vsub.f32 0.0, %v1028_v61  ;;  %vm1385_vm4 = vcmp.ge.f32.partialorder %v4303_v56, 0.0 }
 0x1ae   :  { %v1837_v21 = vsel %vm1382_vm1, %v2597_v52, %v1746_v41  ;;  %v1479_v59 = vadd.f32 1.0, %v4501_v15  ;;  %v1342_v10 = vmul.f32 1.442695, %v1162_v36  ;;  %935 = vst.msk [vmem:[%s4598_s3 + $0x160] sm:$0xff] %vm890_vm2, %v4506_v35  ;;  %v1026_v13 = vand.u32 2147483647, %v4506_v35 }
 0x1af   :  { %1928 = vst.msk [vmem:[#allocation3 + $0x120] sm:$0xff] %vm890_vm2, %v1837_v21  ;;  %2618 = vrcp.f32 %v1522_v49  ;;  %v1256_v55 = vmul.f32 1.442695, %v1119_v51  ;;  %v4523_v3 = vadd.f32 %v4280_v30, %v4648_v32  ;;  %v4529_v57 = vadd.f32 %v4280_v30, %v4649_v18 }
 0x1b0   :  { %v2603_v38 = vpop.eup %2602  ;;  %2620 = vrcp.f32 %v1479_v59  ;;  %v1117_v42 = vsub.f32 0.0, %v1026_v13  ;;  %vm1433_vm5 = vcmp.ge.f32.partialorder %v4307_v26, 0.0  ;;  %vm1383_vm6 = vcmp.ge.f32.partialorder %v4311_v2, 0.0 }
 0x1b1   :  { %v4510_v40 = vpop.eup %2604  ;;  %v1794_v50 = vmul.f32 %v2603_v38, %v4417_v31  ;;  %2622 = vpow2.f32 %v1246_v29  ;;  %938 = vst.msk [vmem:[%s4598_s3 + $0x178] sm:$0xff] %vm890_vm2, %v4523_v3  ;;  %v1029_v14 = vand.u32 2147483647, %v4523_v3  ;;  %936 = vst.msk [vmem:[%s4598_s3 + $0x168] sm:$0xff] %vm890_vm2, %v4529_v57  ;;  %vm1431_vm7 = vcmp.ge.f32.partialorder %v4353_v37, 0.0  ;;  %s2680_s3 = smov [#allocation3]  }
 0x1b2   :  { %v1527_v28 = vadd.f32 1.0, %v4510_v40  ;;  %v2607_v31 = vpop.eup %2606  ;;  %v1252_v1 = vmul.f32 1.442695, %v1117_v42  ;;  %vm1388_vm8 = vcmp.ge.f32.partialorder %v4361_v12, 0.0  ;;  %vm1436_vm9 = vcmp.ge.f32.partialorder %v4393_v43, 0.0  ;;  %s1990_s6 = sshll.u32 %s2680_s3, 4  ;;  %s1991_s6 = int_to_ptr.vmem [resolvable:$true] %s1990_s6 }
 0x1b3   :  { %v1885_v47 = vsel %vm1430_vm3, %v2603_v38, %v1794_v50  ;;  %v2609_v39 = vpop.eup %2608  ;;  %v1749_v8 = vmul.f32 %v2607_v31, %v4442_v0  ;;  %v1027_v0 = vand.u32 2147483647, %v4529_v57  ;;  %v1120_v17 = vsub.f32 0.0, %v1029_v14  ;;  %s2656_s7 = scalar_lea.vmem %s1991_s6, 11648  ;;  %p2661_p1 = scmp.lt.s32.totalorder %s1991_s6, %s1991_s6 }
 0x1b4   :  { %1976 = vst.msk [vmem:[#allocation3 + $0x2a0] sm:$0xff] %vm890_vm2, %v1885_v47  ;;  %2624 = vrcp.f32 %v1527_v28  ;;  %v2611_v58 = vpop.eup %2610  ;;  %v1797_v30 = vmul.f32 %v2609_v39, %v4446_v16  ;;  %vm1386_vm10 = vcmp.ge.f32.partialorder %v4407_v44, 0.0  ;;  %vm1434_vm11 = vcmp.ge.f32.partialorder %v4411_v5, 0.0  ;;  %p2657_p0 = scmp.ne.s32.totalorder %s1991_s6, %s2656_s7  ;;  %p2662_p2 = scmp.lt.s32.totalorder %s2656_s7, %s2656_s7 }
 0x1b5   :  { %2626 = vpow2.f32 %v1342_v10  ;;  %v2613_v4 = vpop.eup %2612  ;;  %v1840_v20 = vsel %vm1385_vm4, %v2607_v31, %v1749_v8  ;;  %v1477_v7 = vadd.f32 1.0, %v2611_v58  ;;  %v1118_v34 = vsub.f32 0.0, %v1027_v0 }
 0x1b6   :  { %2628 = vpow2.f32 %v1256_v55  ;;  %v2615_v45 = vpop.eup %2614  ;;  %1931 = vst.msk [vmem:[#allocation3 + $0x138] sm:$0xff] %vm890_vm2, %v1840_v20  ;;  %v1888_v16 = vsel %vm1433_vm5, %v2609_v39, %v1797_v30  ;;  %v1525_v6 = vadd.f32 1.0, %v2613_v4  ;;  %v1258_v56 = vmul.f32 1.442695, %v1120_v17  ;;  %p2663_p3 = por %p2662_p2, %p2661_p1 }
 0x1b7   :  { %2630 = vpow2.f32 %v1252_v1  ;;  %v2617_v23 = vpop.eup %2616  ;;  %1979 = vst.msk [vmem:[#allocation3 + $0x2b8] sm:$0xff] %vm890_vm2, %v1888_v16  ;;  %v1747_v60 = vmul.f32 %v2615_v45, %v4460_v25  ;;  %v1254_v48 = vmul.f32 1.442695, %v1118_v34  ;;  %vm1389_vm12 = vcmp.ge.f32.partialorder %v4415_v63, 0.0 }
 0x1b8   :  { %2632 = vrcp.f32 %v1477_v7  ;;  %v1480_v54 = vadd.f32 1.0, %v2617_v23  ;;  %vm1387_vm13 = vcmp.ge.f32.partialorder %v4458_v24, 0.0  ;;  %vm1435_vm14 = vcmp.ge.f32.partialorder %v4465_v46, 0.0  ;;  %p2664_p4 = pnand %p2663_p3, %p2657_p0 }
 0x1b9   :  { %2634 = vrcp.f32 %v1525_v6  ;;  %v2619_v11 = vpop.eup %2618  ;;  %v1838_v52 = vsel %vm1383_vm6, %v2615_v45, %v1747_v60  ;;  %vm1392_vm15 = vcmp.ge.f32.partialorder %v4469_v27, 0.0  ;;  %vm1390_vm0 = vcmp.ge.f32.partialorder %v4506_v35, 0.0 }
 0x1ba   :  { %2636 = vpow2.f32 %v1258_v56  ;;  %1929 = vst.msk [vmem:[#allocation3 + $0x128] sm:$0xff] %vm890_vm2, %v1838_v52  ;;  %v1795_v26 = vmul.f32 %v2619_v11, %v4493_v62  ;;  %v2621_v9 = vpop.eup %2620  ;;  %vm1393_vm1 = vcmp.ge.f32.partialorder %v4523_v3, 0.0  ;;  %vm1391_vm3 = vcmp.ge.f32.partialorder %v4529_v57, 0.0 }
 0x1bb   :  { %2638 = vrcp.f32 %v1480_v54  ;;  %v2623_v25 = vpop.eup %2622  ;;  %v1752_v41 = vmul.f32 %v2621_v9, %v4501_v15 }
 0x1bc   :  { %2640 = vpow2.f32 %v1254_v48  ;;  %v1886_v22 = vsel %vm1431_vm7, %v2619_v11, %v1795_v26  ;;  %v1478_v19 = vadd.f32 1.0, %v2623_v25 }
 0x1bd   :  { %1977 = vst.msk [vmem:[#allocation3 + $0x2a8] sm:$0xff] %vm890_vm2, %v1886_v22  ;;  %v1843_v33 = vsel %vm1388_vm8, %v2621_v9, %v1752_v41 }
 0x1be   :  { %v2625_v2 = vpop.eup %2624  ;;  %1934 = vst.msk [vmem:[#allocation3 + $0x150] sm:$0xff] %vm890_vm2, %v1843_v33  ;;  %2642 = vrcp.f32 %v1478_v19 }
 0x1bf   :  { %v2627_v49 = vpop.eup %2626  ;;  %v1800_v61 = vmul.f32 %v2625_v2, %v4510_v40 }
 0x1c0   :  { %v2629_v62 = vpop.eup %2628  ;;  %v1526_v37 = vadd.f32 1.0, %v2627_v49 }
 0x1c1   :  { %v2631_v21 = vpop.eup %2630  ;;  %v1891_v36 = vsel %vm1436_vm9, %v2625_v2, %v1800_v61  ;;  %v1483_v15 = vadd.f32 1.0, %v2629_v62 }
 0x1c2   :  { %v2633_v53 = vpop.eup %2632  ;;  %1982 = vst.msk [vmem:[#allocation3 + $0x2d0] sm:$0xff] %vm890_vm2, %v1891_v36  ;;  %2644 = vrcp.f32 %v1526_v37  ;;  %v1481_v12 = vadd.f32 1.0, %v2631_v21 }
 0x1c3   :  { %v2635_v38 = vpop.eup %2634  ;;  %v1750_v59 = vmul.f32 %v2633_v53, %v2611_v58  ;;  %2646 = vrcp.f32 %v1483_v15 }
 0x1c4   :  { %v2637_v29 = vpop.eup %2636  ;;  %v1798_v51 = vmul.f32 %v2635_v38, %v2613_v4  ;;  %2648 = vrcp.f32 %v1481_v12 }
 0x1c5   :  { %v2639_v40 = vpop.eup %2638  ;;  %v1841_v43 = vsel %vm1386_vm10, %v2633_v53, %v1750_v59  ;;  %v1484_v50 = vadd.f32 1.0, %v2637_v29 }
 0x1c6   :  { %v2641_v10 = vpop.eup %2640  ;;  %1932 = vst.msk [vmem:[#allocation3 + $0x140] sm:$0xff] %vm890_vm2, %v1841_v43  ;;  %v1889_v13 = vsel %vm1434_vm11, %v2635_v38, %v1798_v51  ;;  %v1753_v28 = vmul.f32 %v2639_v40, %v2617_v23 }
 0x1c7   :  { %1980 = vst.msk [vmem:[#allocation3 + $0x2c0] sm:$0xff] %vm890_vm2, %v1889_v13  ;;  %2650 = vrcp.f32 %v1484_v50  ;;  %v1482_v55 = vadd.f32 1.0, %v2641_v10 }
 0x1c8   :  { %v1844_v32 = vsel %vm1389_vm12, %v2639_v40, %v1753_v28  ;;  %v2643_v44 = vpop.eup %2642 }
 0x1c9   :  { %1935 = vst.msk [vmem:[#allocation3 + $0x158] sm:$0xff] %vm890_vm2, %v1844_v32  ;;  %2652 = vrcp.f32 %v1482_v55  ;;  %v1751_v31 = vmul.f32 %v2643_v44, %v2623_v25 }
 0x1cb   :  { %v1842_v42 = vsel %vm1387_vm13, %v2643_v44, %v1751_v31 }
 0x1cc   :  { %v2645_v47 = vpop.eup %2644  ;;  %1933 = vst.msk [vmem:[#allocation3 + $0x148] sm:$0xff] %vm890_vm2, %v1842_v42 }
 0x1cd   :  { %v2647_v5 = vpop.eup %2646  ;;  %v1799_v18 = vmul.f32 %v2645_v47, %v2627_v49 }
 0x1ce   :  { %v2649_v39 = vpop.eup %2648  ;;  %v1756_v63 = vmul.f32 %v2647_v5, %v2629_v62 }
 0x1cf   :  { %v1890_v8 = vsel %vm1435_vm14, %v2645_v47, %v1799_v18  ;;  %v1754_v14 = vmul.f32 %v2649_v39, %v2631_v21 }
 0x1d0   :  { %1981 = vst.msk [vmem:[#allocation3 + $0x2c8] sm:$0xff] %vm890_vm2, %v1890_v8  ;;  %v1847_v58 = vsel %vm1392_vm15, %v2647_v5, %v1756_v63 }
 0x1d1   :  { %v2651_v30 = vpop.eup %2650  ;;  %1938 = vst.msk [vmem:[#allocation3 + $0x170] sm:$0xff] %vm890_vm2, %v1847_v58  ;;  %v1845_v24 = vsel %vm1390_vm0, %v2649_v39, %v1754_v14 }
 0x1d2   :  { %1936 = vst.msk [vmem:[#allocation3 + $0x160] sm:$0xff] %vm890_vm2, %v1845_v24  ;;  %v1757_v1 = vmul.f32 %v2651_v30, %v2637_v29 }
 0x1d3   :  { %v2653_v46 = vpop.eup %2652 }
 0x1d4   :  { %v1848_v0 = vsel %vm1393_vm1, %v2651_v30, %v1757_v1  ;;  %v1755_v27 = vmul.f32 %v2653_v46, %v2641_v10 }
 0x1d5   :  { %1939 = vst.msk [vmem:[#allocation3 + $0x178] sm:$0xff] %vm890_vm2, %v1848_v0 }
 0x1d6   :  { %v1846_v35 = vsel %vm1391_vm3, %v2653_v46, %v1755_v27 }
 0x1d7   :  { %1937 = vst.msk [vmem:[#allocation3 + $0x168] sm:$0xff] %vm890_vm2, %v1846_v35 }
 0x1d8   :  { %2667 = shalt.err (!%p2664_p4)
}
 0x1d9   :  { %s2668_s10 = scalar_lea.hbm %s4599_s4, 11648 }
 0x1da   :  { %p2669_p5 = scmp.ne.s32.totalorder %s4599_s4, %s2668_s10  ;;  %p2672_p6 = scmp.lt.u32.totalorder %s2668_s10, %s4599_s4 }
 0x1dc   :  { %p2674_p7 = pnand %p2672_p6, %p2669_p5 }
 0x1de   :  { %2677 = shalt.err (!%p2674_p7)
}
 0x1df   :  { %s2681_s15 = smov 128   ;;  %s2682_s16 = smov 8  }
 0x1e0   :  { %1996 = dma.vmem_to_hbm [thread:$0]  %s1991_s6, 11648, %s4599_s4, [#allocation4], %s2681_s15, %s2681_s15, %s2682_s16  }
 0x1e1   :  { %2678 = dma.done.wait [#allocation4], 11648  }
 0x1e2   :  { %2679 = vsyncadd [#allocation4], 4294955648 }
 0x1e3   :  { %2002 = vsyncpa [#allocation4], 1 }

</bundles_post_ra>
